<compile_context>
chip_gen: v7x
topology: tpu7x:2x2x1
jax: 0.10.0
libtpu: 0.0.40
codegen_flags: <defaults>
</compile_context>

<pallas_src>
import jax
import jax.numpy as jnp
from jax.experimental import pallas as pl
from jax.experimental.pallas import tpu as pltpu

N_EMBED = 64
BLOCK_SIZE = 16
N_HEADS = 8
HEAD_SIZE = N_EMBED // N_HEADS
LN_EPS = 1e-5


def _layer_norm(h, gamma, beta):
    mean = jnp.mean(h, axis=-1, keepdims=True)
    var = jnp.mean((h - mean) ** 2, axis=-1, keepdims=True)
    return (h - mean) * jax.lax.rsqrt(var + LN_EPS) * gamma + beta


def block_kernel(
    x_ref,
    wqkv_ref, wo3_ref, bo_ref,
    w1_ref, b1_ref, w2_ref, b2_ref,
    ln1_g_ref, ln1_b_ref, ln2_g_ref, ln2_b_ref,
    o_ref,
):
    x3d = x_ref[...]                               # (Bb, T, C)
    Bb, T, C = x3d.shape
    rows = Bb * T
    x = x3d.reshape(rows, C)                       # flatten -> big matmul rows

    # ---------------- self-attention branch ----------------
    h = _layer_norm(x, ln1_g_ref[...], ln1_b_ref[...])                    # (rows, C)

    # Fused Q/K/V projection: one (rows, C) @ (C, 3C) matmul.
    qkv = jnp.dot(h, wqkv_ref[...], preferred_element_type=jnp.float32)   # (rows, 3C)

    # Causal mask built once, broadcast over the batch block and all heads.
    r = jax.lax.broadcasted_iota(jnp.int32, (T, T), 0)
    c = jax.lax.broadcasted_iota(jnp.int32, (T, T), 1)
    causal = (c <= r)[None, :, :]                  # (1, T, T)

    scale = C ** (-0.5)    # NOTE: PyTorch source scales by n_embed**-0.5, not head_size**-0.5

    # Static loop over heads; each head uses batched (single leading batch dim)
    # 3-D einsums over the whole batch block, and its output is folded directly
    # into the output projection (accumulated) -- no lane concatenation.
    sa = jnp.zeros((rows, C), jnp.float32)
    for hh in range(N_HEADS):
        q_h = qkv[:, hh * HEAD_SIZE:(hh + 1) * HEAD_SIZE].reshape(Bb, T, HEAD_SIZE)
        k_h = qkv[:, C + hh * HEAD_SIZE:C + (hh + 1) * HEAD_SIZE].reshape(Bb, T, HEAD_SIZE)
        v_h = qkv[:, 2 * C + hh * HEAD_SIZE:2 * C + (hh + 1) * HEAD_SIZE].reshape(Bb, T, HEAD_SIZE)

        wei = jnp.einsum("btd,bsd->bts", q_h, k_h,
                         preferred_element_type=jnp.float32) * scale      # (Bb, T, T)
        wei = jnp.where(causal, wei, -jnp.inf)
        wei = jnp.exp(wei - jnp.max(wei, axis=-1, keepdims=True))
        wei = wei / jnp.sum(wei, axis=-1, keepdims=True)                  # exact softmax
        # TODO(synk): attention-weight dropout (p=0.02) omitted — kernel runs in eval mode.
        out_h = jnp.einsum("bts,bsd->btd", wei, v_h,
                           preferred_element_type=jnp.float32)            # (Bb, T, hs)

        # head-recombine folded into the projection: out_h @ Wo[h*hs:(h+1)*hs, :]
        sa = sa + jnp.dot(out_h.reshape(rows, HEAD_SIZE), wo3_ref[hh],
                          preferred_element_type=jnp.float32)

    sa = sa + bo_ref[...]
    # TODO(synk): projection dropout (p=0.02) omitted — kernel runs in eval mode.

    x = x + sa

    # ---------------- feed-forward branch ----------------
    h2 = _layer_norm(x, ln2_g_ref[...], ln2_b_ref[...])
    ff = jnp.dot(h2, w1_ref[...], preferred_element_type=jnp.float32) + b1_ref[...]
    ff = jnp.maximum(ff, 0.0)
    ff = jnp.dot(ff, w2_ref[...], preferred_element_type=jnp.float32) + b2_ref[...]

    o_ref[...] = (x + ff).reshape(Bb, T, C)


def _is_v7x():
    """True only on 2-TensorCore (v7x-class) chips; default False if unknown."""
    try:
        kind = jax.devices()[0].device_kind.lower()
        return ("v7" in kind) or ("tpu7" in kind) or ("tpu 7" in kind)
    except Exception:
        return False


def _choose_batch_block(B, T):
    """Fold batch elements into each grid step so matmuls see many rows.

    On single-TC chips (v5e/v6e) the grid is a serial loop, so prefer ONE grid
    step (largest batch block). Only on v7x (2 TCs) keep >= 2 parallel steps.
    """
    max_rows = 2048   # ~MBs of activations at C=64; far below any VMEM limit
    divisors = [d for d in range(1, B + 1) if B % d == 0 and d * T <= max_rows]
    if not divisors:
        return 1
    if _is_v7x():
        multi_step = [d for d in divisors if B // d >= 2]
        if multi_step:
            return max(multi_step)
    return max(divisors)


def transformer_block(x, params):
    B, T, C = x.shape
    assert C == N_EMBED and T <= BLOCK_SIZE

    b_blk = _choose_batch_block(B, T)
    grid = (B // b_blk,)

    # Wrapper-side weight packing (free layout plumbing outside the kernel):
    #   * fuse q|k|v projection weights into one (C, 3C) matrix
    #   * view the output-projection weight as (H, head_size, C) for per-head folding
    wqkv = jnp.concatenate([params["wq"], params["wk"], params["wv"]], axis=1)
    wo3 = params["wo"].reshape(N_HEADS, HEAD_SIZE, N_EMBED)

    weight_args = (
        wqkv, wo3, params["bo"],
        params["w1"], params["b1"], params["w2"], params["b2"],
        params["ln1_g"], params["ln1_b"], params["ln2_g"], params["ln2_b"],
    )

    def const_spec(shape):
        # Same (only) block at every grid step. Default double-buffering of the
        # ~100 KB of weights is harmless, so we keep the default pipeline mode.
        nd = len(shape)
        return pl.BlockSpec(shape, lambda b, _nd=nd: (0,) * _nd)

    weight_specs = [const_spec(w.shape) for w in weight_args]

    return pl.pallas_call(
        block_kernel,
        out_shape=jax.ShapeDtypeStruct((B, T, C), x.dtype),
        grid_spec=pltpu.PrefetchScalarGridSpec(
            num_scalar_prefetch=0,
            grid=grid,
            in_specs=[pl.BlockSpec((b_blk, T, C), lambda b: (b, 0, 0))] + weight_specs,
            out_specs=pl.BlockSpec((b_blk, T, C), lambda b: (b, 0, 0)),
        ),
        compiler_params=pltpu.CompilerParams(
            dimension_semantics=("parallel",),
            vmem_limit_bytes=32 * 1024 * 1024,   # explicit cap: portable to v7x VMEM
        ),
    )(x, *weight_args)


def init_params(key):
    ks = jax.random.split(key, 8)
    s = 0.05
    return {
        # attention projections: per-head (C, head_size) weights concatenated along out dim
        "wq": jax.random.normal(ks[0], (N_EMBED, N_EMBED), jnp.float32) * s,
        "wk": jax.random.normal(ks[1], (N_EMBED, N_EMBED), jnp.float32) * s,
        "wv": jax.random.normal(ks[2], (N_EMBED, N_EMBED), jnp.float32) * s,
        "wo": jax.random.normal(ks[3], (N_EMBED, N_EMBED), jnp.float32) * s,
        "bo": jax.random.normal(ks[4], (1, N_EMBED), jnp.float32) * s,
        # feed-forward
        "w1": jax.random.normal(ks[5], (N_EMBED, 4 * N_EMBED), jnp.float32) * s,
        "b1": jax.random.normal(ks[6], (1, 4 * N_EMBED), jnp.float32) * s,
        "w2": jax.random.normal(ks[7], (4 * N_EMBED, N_EMBED), jnp.float32) * s,
        "b2": jnp.zeros((1, N_EMBED), jnp.float32),
        # layer norms
        "ln1_g": jnp.ones((1, N_EMBED), jnp.float32),
        "ln1_b": jnp.zeros((1, N_EMBED), jnp.float32),
        "ln2_g": jnp.ones((1, N_EMBED), jnp.float32),
        "ln2_b": jnp.zeros((1, N_EMBED), jnp.float32),
    }


def reference_block(x, p):
    def ln(h, g, b):
        m = jnp.mean(h, axis=-1, keepdims=True)
        v = jnp.mean((h - m) ** 2, axis=-1, keepdims=True)
        return (h - m) / jnp.sqrt(v + LN_EPS) * g + b

    B, T, C = x.shape
    h = ln(x, p["ln1_g"], p["ln1_b"])
    q = h @ p["wq"]
    k = h @ p["wk"]
    v = h @ p["wv"]
    q = q.reshape(B, T, N_HEADS, HEAD_SIZE).transpose(0, 2, 1, 3)
    k = k.reshape(B, T, N_HEADS, HEAD_SIZE).transpose(0, 2, 1, 3)
    v = v.reshape(B, T, N_HEADS, HEAD_SIZE).transpose(0, 2, 1, 3)
    wei = jnp.einsum("bhtd,bhsd->bhts", q, k) * (C ** -0.5)
    mask = jnp.tril(jnp.ones((T, T), bool))
    wei = jnp.where(mask, wei, -jnp.inf)
    wei = jax.nn.softmax(wei, axis=-1)
    sa = jnp.einsum("bhts,bhsd->bhtd", wei, v).transpose(0, 2, 1, 3).reshape(B, T, C)
    sa = sa @ p["wo"] + p["bo"]
    x = x + sa
    h2 = ln(x, p["ln2_g"], p["ln2_b"])
    ff = jnp.maximum(h2 @ p["w1"] + p["b1"], 0.0) @ p["w2"] + p["b2"]
    return x + ff


if __name__ == "__main__":
    key = jax.random.PRNGKey(0)
    k_x, k_p = jax.random.split(key)

    B, T, C = 8, BLOCK_SIZE, N_EMBED
    x = jax.random.normal(k_x, (B, T, C), jnp.float32)
    params = init_params(k_p)

    out = jax.block_until_ready(transformer_block(x, params))

    ref = reference_block(x, params)
    assert out.shape == (B, T, C)
    err = float(jnp.max(jnp.abs(out - ref)))
    # Exact softmax normalization restored -> tight tolerance again
    # (observed error is ~1e-5; real bugs show up at >= 1e-1).
    assert err < 5e-4, f"mismatch vs JAX reference: max abs err = {err}"

    print("KERNEL_OK")
</pallas_src>

<mosaic_0001>
module attributes {stable_mosaic.version = 11 : i64} {
  func.func @block_kernel(%arg0: i32, %arg1: memref<8x16x64xf32, #tpu.memory_space<vmem>>, %arg2: memref<64x192xf32, #tpu.memory_space<vmem>>, %arg3: memref<8x8x64xf32, #tpu.memory_space<vmem>>, %arg4: memref<1x64xf32, #tpu.memory_space<vmem>>, %arg5: memref<64x256xf32, #tpu.memory_space<vmem>>, %arg6: memref<1x256xf32, #tpu.memory_space<vmem>>, %arg7: memref<256x64xf32, #tpu.memory_space<vmem>>, %arg8: memref<1x64xf32, #tpu.memory_space<vmem>>, %arg9: memref<1x64xf32, #tpu.memory_space<vmem>>, %arg10: memref<1x64xf32, #tpu.memory_space<vmem>>, %arg11: memref<1x64xf32, #tpu.memory_space<vmem>>, %arg12: memref<1x64xf32, #tpu.memory_space<vmem>>, %arg13: memref<8x16x64xf32, #tpu.memory_space<vmem>>) attributes {dimension_semantics = [#tpu.dimension_semantics<parallel>], iteration_bounds = array<i64: 1>, scalar_prefetch = 0 : i64, scratch_operands = 0 : i64, tpu.core_type = #tpu.core_type<tc>, window_params = [{transform_indices = @transform_0, window_bounds = array<i64: 8, 16, 64>}, {pipeline_mode = #tpu.pipeline_mode<synchronous>, transform_indices = @transform_1, window_bounds = array<i64: 64, 192>}, {pipeline_mode = #tpu.pipeline_mode<synchronous>, transform_indices = @transform_2, window_bounds = array<i64: 8, 8, 64>}, {pipeline_mode = #tpu.pipeline_mode<synchronous>, transform_indices = @transform_3, window_bounds = array<i64: 1, 64>}, {pipeline_mode = #tpu.pipeline_mode<synchronous>, transform_indices = @transform_4, window_bounds = array<i64: 64, 256>}, {pipeline_mode = #tpu.pipeline_mode<synchronous>, transform_indices = @transform_5, window_bounds = array<i64: 1, 256>}, {pipeline_mode = #tpu.pipeline_mode<synchronous>, transform_indices = @transform_6, window_bounds = array<i64: 256, 64>}, {pipeline_mode = #tpu.pipeline_mode<synchronous>, transform_indices = @transform_7, window_bounds = array<i64: 1, 64>}, {pipeline_mode = #tpu.pipeline_mode<synchronous>, transform_indices = @transform_8, window_bounds = array<i64: 1, 64>}, {pipeline_mode = #tpu.pipeline_mode<synchronous>, transform_indices = @transform_9, window_bounds = array<i64: 1, 64>}, {pipeline_mode = #tpu.pipeline_mode<synchronous>, transform_indices = @transform_10, window_bounds = array<i64: 1, 64>}, {pipeline_mode = #tpu.pipeline_mode<synchronous>, transform_indices = @transform_11, window_bounds = array<i64: 1, 64>}, {transform_indices = @transform_12, window_bounds = array<i64: 8, 16, 64>}]} {
    %c0 = arith.constant 0 : index
    %c0_0 = arith.constant 0 : index
    %c0_1 = arith.constant 0 : index
    %0 = vector.load %arg1[%c0, %c0_0, %c0_1] : memref<8x16x64xf32, #tpu.memory_space<vmem>>, vector<8x16x64xf32>
    %1 = vector.shape_cast %0 : vector<8x16x64xf32> to vector<128x64xf32>
    %c0_2 = arith.constant 0 : index
    %c0_3 = arith.constant 0 : index
    %2 = vector.load %arg9[%c0_2, %c0_3] : memref<1x64xf32, #tpu.memory_space<vmem>>, vector<1x64xf32>
    %c0_4 = arith.constant 0 : index
    %c0_5 = arith.constant 0 : index
    %3 = vector.load %arg10[%c0_4, %c0_5] : memref<1x64xf32, #tpu.memory_space<vmem>>, vector<1x64xf32>
    %cst = arith.constant dense<0.000000e+00> : vector<128xf32>
    %4 = vector.multi_reduction <add>, %1, %cst [1] : vector<128x64xf32> to vector<128xf32>
    %5 = vector.shape_cast %4 : vector<128xf32> to vector<128x1xf32>
    %cst_6 = arith.constant 6.400000e+01 : f32
    %6 = vector.broadcast %cst_6 : f32 to vector<128x1xf32>
    %7 = arith.divf %5, %6 : vector<128x1xf32>
    %8 = vector.broadcast %7 : vector<128x1xf32> to vector<128x64xf32>
    %9 = arith.subf %1, %8 : vector<128x64xf32>
    %10 = arith.mulf %9, %9 : vector<128x64xf32>
    %cst_7 = arith.constant dense<0.000000e+00> : vector<128xf32>
    %11 = vector.multi_reduction <add>, %10, %cst_7 [1] : vector<128x64xf32> to vector<128xf32>
    %12 = vector.shape_cast %11 : vector<128xf32> to vector<128x1xf32>
    %cst_8 = arith.constant 6.400000e+01 : f32
    %13 = vector.broadcast %cst_8 : f32 to vector<128x1xf32>
    %14 = arith.divf %12, %13 : vector<128x1xf32>
    %15 = vector.broadcast %7 : vector<128x1xf32> to vector<128x64xf32>
    %16 = arith.subf %1, %15 : vector<128x64xf32>
    %cst_9 = arith.constant 9.99999974E-6 : f32
    %17 = vector.broadcast %cst_9 : f32 to vector<128x1xf32>
    %18 = arith.addf %14, %17 : vector<128x1xf32>
    %19 = math.rsqrt %18 : vector<128x1xf32>
    %20 = vector.broadcast %19 : vector<128x1xf32> to vector<128x64xf32>
    %21 = arith.mulf %16, %20 : vector<128x64xf32>
    %22 = vector.broadcast %2 : vector<1x64xf32> to vector<128x64xf32>
    %23 = arith.mulf %21, %22 : vector<128x64xf32>
    %24 = vector.broadcast %3 : vector<1x64xf32> to vector<128x64xf32>
    %25 = arith.addf %23, %24 : vector<128x64xf32>
    %c0_10 = arith.constant 0 : index
    %c0_11 = arith.constant 0 : index
    %26 = vector.load %arg2[%c0_10, %c0_11] : memref<64x192xf32, #tpu.memory_space<vmem>>, vector<64x192xf32>
    %cst_12 = arith.constant dense<0.000000e+00> : vector<128x192xf32>
    %27 = tpu.matmul %25, %26, %cst_12 {dimension_numbers = #tpu.dot_dimension_numbers<[1], [0], [0], [1], [0, 0, 1, 1], [], []>} : vector<128x64xf32>, vector<64x192xf32>, vector<128x192xf32> -> vector<128x192xf32>
    %28 = tpu.iota {dimensions = array<i32: 0>} : vector<16x16xi32>
    %29 = tpu.iota {dimensions = array<i32: 1>} : vector<16x16xi32>
    %30 = arith.cmpi sle, %29, %28 : vector<16x16xi32>
    %31 = vector.shape_cast %30 : vector<16x16xi1> to vector<1x16x16xi1>
    %cst_13 = arith.constant 0.000000e+00 : f32
    %32 = vector.broadcast %cst_13 : f32 to vector<128x64xf32>
    %33 = vector.extract_strided_slice %27 {offsets = [0, 0], sizes = [128, 8], strides = [1, 1]} : vector<128x192xf32> to vector<128x8xf32>
    %34 = vector.shape_cast %33 : vector<128x8xf32> to vector<8x16x8xf32>
    %35 = vector.extract_strided_slice %27 {offsets = [0, 64], sizes = [128, 8], strides = [1, 1]} : vector<128x192xf32> to vector<128x8xf32>
    %36 = vector.shape_cast %35 : vector<128x8xf32> to vector<8x16x8xf32>
    %37 = vector.extract_strided_slice %27 {offsets = [0, 128], sizes = [128, 8], strides = [1, 1]} : vector<128x192xf32> to vector<128x8xf32>
    %38 = vector.shape_cast %37 : vector<128x8xf32> to vector<8x16x8xf32>
    "tpu.trace_start"() <{level = 10 : i32, message = "btd,bsd->bts"}> : () -> ()
    %cst_14 = arith.constant dense<0.000000e+00> : vector<8x16x16xf32>
    %39 = tpu.matmul %34, %36, %cst_14 {dimension_numbers = #tpu.dot_dimension_numbers<[2], [2], [1], [1], [0, 0, 0, 1, 1, 1], [0], [0]>} : vector<8x16x8xf32>, vector<8x16x8xf32>, vector<8x16x16xf32> -> vector<8x16x16xf32>
    "tpu.trace_stop"() : () -> ()
    %cst_15 = arith.constant 1.250000e-01 : f32
    %40 = vector.broadcast %cst_15 : f32 to vector<8x16x16xf32>
    %41 = arith.mulf %39, %40 : vector<8x16x16xf32>
    %cst_16 = arith.constant 0xFF800000 : f32
    %42 = vector.shape_cast %31 : vector<1x16x16xi1> to vector<1x16x16xi1>
    %43 = vector.broadcast %42 : vector<1x16x16xi1> to vector<8x16x16xi1>
    %44 = vector.broadcast %cst_16 : f32 to vector<8x16x16xf32>
    %45 = arith.select %43, %41, %44 : vector<8x16x16xi1>, vector<8x16x16xf32>
    %cst_17 = arith.constant dense<0xFF800000> : vector<8x16xf32>
    %46 = vector.multi_reduction <maximumf>, %45, %cst_17 [2] : vector<8x16x16xf32> to vector<8x16xf32>
    %47 = vector.shape_cast %46 : vector<8x16xf32> to vector<8x16x1xf32>
    %48 = vector.broadcast %47 : vector<8x16x1xf32> to vector<8x16x16xf32>
    %49 = arith.subf %45, %48 : vector<8x16x16xf32>
    %50 = math.exp %49 : vector<8x16x16xf32>
    %cst_18 = arith.constant dense<0.000000e+00> : vector<8x16xf32>
    %51 = vector.multi_reduction <add>, %50, %cst_18 [2] : vector<8x16x16xf32> to vector<8x16xf32>
    %52 = vector.shape_cast %51 : vector<8x16xf32> to vector<8x16x1xf32>
    %53 = vector.broadcast %52 : vector<8x16x1xf32> to vector<8x16x16xf32>
    %54 = arith.divf %50, %53 : vector<8x16x16xf32>
    "tpu.trace_start"() <{level = 10 : i32, message = "bts,bsd->btd"}> : () -> ()
    %cst_19 = arith.constant dense<0.000000e+00> : vector<8x16x8xf32>
    %55 = tpu.matmul %54, %38, %cst_19 {dimension_numbers = #tpu.dot_dimension_numbers<[2], [1], [1], [2], [0, 0, 0, 1, 1, 2], [0], [0]>} : vector<8x16x16xf32>, vector<8x16x8xf32>, vector<8x16x8xf32> -> vector<8x16x8xf32>
    "tpu.trace_stop"() : () -> ()
    %56 = vector.shape_cast %55 : vector<8x16x8xf32> to vector<128x8xf32>
    %c0_20 = arith.constant 0 : index
    %c0_21 = arith.constant 0 : index
    %c0_22 = arith.constant 0 : index
    %57 = vector.load %arg3[%c0_20, %c0_21, %c0_22] : memref<8x8x64xf32, #tpu.memory_space<vmem>>, vector<1x8x64xf32>
    %58 = vector.shape_cast %57 : vector<1x8x64xf32> to vector<8x64xf32>
    %cst_23 = arith.constant dense<0.000000e+00> : vector<128x64xf32>
    %59 = tpu.matmul %56, %58, %cst_23 {dimension_numbers = #tpu.dot_dimension_numbers<[1], [0], [0], [1], [0, 0, 1, 1], [], []>} : vector<128x8xf32>, vector<8x64xf32>, vector<128x64xf32> -> vector<128x64xf32>
    %60 = arith.addf %32, %59 : vector<128x64xf32>
    %61 = vector.extract_strided_slice %27 {offsets = [0, 8], sizes = [128, 8], strides = [1, 1]} : vector<128x192xf32> to vector<128x8xf32>
    %62 = vector.shape_cast %61 : vector<128x8xf32> to vector<8x16x8xf32>
    %63 = vector.extract_strided_slice %27 {offsets = [0, 72], sizes = [128, 8], strides = [1, 1]} : vector<128x192xf32> to vector<128x8xf32>
    %64 = vector.shape_cast %63 : vector<128x8xf32> to vector<8x16x8xf32>
    %65 = vector.extract_strided_slice %27 {offsets = [0, 136], sizes = [128, 8], strides = [1, 1]} : vector<128x192xf32> to vector<128x8xf32>
    %66 = vector.shape_cast %65 : vector<128x8xf32> to vector<8x16x8xf32>
    "tpu.trace_start"() <{level = 10 : i32, message = "btd,bsd->bts"}> : () -> ()
    %cst_24 = arith.constant dense<0.000000e+00> : vector<8x16x16xf32>
    %67 = tpu.matmul %62, %64, %cst_24 {dimension_numbers = #tpu.dot_dimension_numbers<[2], [2], [1], [1], [0, 0, 0, 1, 1, 1], [0], [0]>} : vector<8x16x8xf32>, vector<8x16x8xf32>, vector<8x16x16xf32> -> vector<8x16x16xf32>
    "tpu.trace_stop"() : () -> ()
    %cst_25 = arith.constant 1.250000e-01 : f32
    %68 = vector.broadcast %cst_25 : f32 to vector<8x16x16xf32>
    %69 = arith.mulf %67, %68 : vector<8x16x16xf32>
    %cst_26 = arith.constant 0xFF800000 : f32
    %70 = vector.shape_cast %31 : vector<1x16x16xi1> to vector<1x16x16xi1>
    %71 = vector.broadcast %70 : vector<1x16x16xi1> to vector<8x16x16xi1>
    %72 = vector.broadcast %cst_26 : f32 to vector<8x16x16xf32>
    %73 = arith.select %71, %69, %72 : vector<8x16x16xi1>, vector<8x16x16xf32>
    %cst_27 = arith.constant dense<0xFF800000> : vector<8x16xf32>
    %74 = vector.multi_reduction <maximumf>, %73, %cst_27 [2] : vector<8x16x16xf32> to vector<8x16xf32>
    %75 = vector.shape_cast %74 : vector<8x16xf32> to vector<8x16x1xf32>
    %76 = vector.broadcast %75 : vector<8x16x1xf32> to vector<8x16x16xf32>
    %77 = arith.subf %73, %76 : vector<8x16x16xf32>
    %78 = math.exp %77 : vector<8x16x16xf32>
    %cst_28 = arith.constant dense<0.000000e+00> : vector<8x16xf32>
    %79 = vector.multi_reduction <add>, %78, %cst_28 [2] : vector<8x16x16xf32> to vector<8x16xf32>
    %80 = vector.shape_cast %79 : vector<8x16xf32> to vector<8x16x1xf32>
    %81 = vector.broadcast %80 : vector<8x16x1xf32> to vector<8x16x16xf32>
    %82 = arith.divf %78, %81 : vector<8x16x16xf32>
    "tpu.trace_start"() <{level = 10 : i32, message = "bts,bsd->btd"}> : () -> ()
    %cst_29 = arith.constant dense<0.000000e+00> : vector<8x16x8xf32>
    %83 = tpu.matmul %82, %66, %cst_29 {dimension_numbers = #tpu.dot_dimension_numbers<[2], [1], [1], [2], [0, 0, 0, 1, 1, 2], [0], [0]>} : vector<8x16x16xf32>, vector<8x16x8xf32>, vector<8x16x8xf32> -> vector<8x16x8xf32>
    "tpu.trace_stop"() : () -> ()
    %84 = vector.shape_cast %83 : vector<8x16x8xf32> to vector<128x8xf32>
    %c1 = arith.constant 1 : index
    %c0_30 = arith.constant 0 : index
    %c0_31 = arith.constant 0 : index
    %85 = vector.load %arg3[%c1, %c0_30, %c0_31] : memref<8x8x64xf32, #tpu.memory_space<vmem>>, vector<1x8x64xf32>
    %86 = vector.shape_cast %85 : vector<1x8x64xf32> to vector<8x64xf32>
    %cst_32 = arith.constant dense<0.000000e+00> : vector<128x64xf32>
    %87 = tpu.matmul %84, %86, %cst_32 {dimension_numbers = #tpu.dot_dimension_numbers<[1], [0], [0], [1], [0, 0, 1, 1], [], []>} : vector<128x8xf32>, vector<8x64xf32>, vector<128x64xf32> -> vector<128x64xf32>
    %88 = arith.addf %60, %87 : vector<128x64xf32>
    %89 = vector.extract_strided_slice %27 {offsets = [0, 16], sizes = [128, 8], strides = [1, 1]} : vector<128x192xf32> to vector<128x8xf32>
    %90 = vector.shape_cast %89 : vector<128x8xf32> to vector<8x16x8xf32>
    %91 = vector.extract_strided_slice %27 {offsets = [0, 80], sizes = [128, 8], strides = [1, 1]} : vector<128x192xf32> to vector<128x8xf32>
    %92 = vector.shape_cast %91 : vector<128x8xf32> to vector<8x16x8xf32>
    %93 = vector.extract_strided_slice %27 {offsets = [0, 144], sizes = [128, 8], strides = [1, 1]} : vector<128x192xf32> to vector<128x8xf32>
    %94 = vector.shape_cast %93 : vector<128x8xf32> to vector<8x16x8xf32>
    "tpu.trace_start"() <{level = 10 : i32, message = "btd,bsd->bts"}> : () -> ()
    %cst_33 = arith.constant dense<0.000000e+00> : vector<8x16x16xf32>
    %95 = tpu.matmul %90, %92, %cst_33 {dimension_numbers = #tpu.dot_dimension_numbers<[2], [2], [1], [1], [0, 0, 0, 1, 1, 1], [0], [0]>} : vector<8x16x8xf32>, vector<8x16x8xf32>, vector<8x16x16xf32> -> vector<8x16x16xf32>
    "tpu.trace_stop"() : () -> ()
    %cst_34 = arith.constant 1.250000e-01 : f32
    %96 = vector.broadcast %cst_34 : f32 to vector<8x16x16xf32>
    %97 = arith.mulf %95, %96 : vector<8x16x16xf32>
    %cst_35 = arith.constant 0xFF800000 : f32
    %98 = vector.shape_cast %31 : vector<1x16x16xi1> to vector<1x16x16xi1>
    %99 = vector.broadcast %98 : vector<1x16x16xi1> to vector<8x16x16xi1>
    %100 = vector.broadcast %cst_35 : f32 to vector<8x16x16xf32>
    %101 = arith.select %99, %97, %100 : vector<8x16x16xi1>, vector<8x16x16xf32>
    %cst_36 = arith.constant dense<0xFF800000> : vector<8x16xf32>
    %102 = vector.multi_reduction <maximumf>, %101, %cst_36 [2] : vector<8x16x16xf32> to vector<8x16xf32>
    %103 = vector.shape_cast %102 : vector<8x16xf32> to vector<8x16x1xf32>
    %104 = vector.broadcast %103 : vector<8x16x1xf32> to vector<8x16x16xf32>
    %105 = arith.subf %101, %104 : vector<8x16x16xf32>
    %106 = math.exp %105 : vector<8x16x16xf32>
    %cst_37 = arith.constant dense<0.000000e+00> : vector<8x16xf32>
    %107 = vector.multi_reduction <add>, %106, %cst_37 [2] : vector<8x16x16xf32> to vector<8x16xf32>
    %108 = vector.shape_cast %107 : vector<8x16xf32> to vector<8x16x1xf32>
    %109 = vector.broadcast %108 : vector<8x16x1xf32> to vector<8x16x16xf32>
    %110 = arith.divf %106, %109 : vector<8x16x16xf32>
    "tpu.trace_start"() <{level = 10 : i32, message = "bts,bsd->btd"}> : () -> ()
    %cst_38 = arith.constant dense<0.000000e+00> : vector<8x16x8xf32>
    %111 = tpu.matmul %110, %94, %cst_38 {dimension_numbers = #tpu.dot_dimension_numbers<[2], [1], [1], [2], [0, 0, 0, 1, 1, 2], [0], [0]>} : vector<8x16x16xf32>, vector<8x16x8xf32>, vector<8x16x8xf32> -> vector<8x16x8xf32>
    "tpu.trace_stop"() : () -> ()
    %112 = vector.shape_cast %111 : vector<8x16x8xf32> to vector<128x8xf32>
    %c2 = arith.constant 2 : index
    %c0_39 = arith.constant 0 : index
    %c0_40 = arith.constant 0 : index
    %113 = vector.load %arg3[%c2, %c0_39, %c0_40] : memref<8x8x64xf32, #tpu.memory_space<vmem>>, vector<1x8x64xf32>
    %114 = vector.shape_cast %113 : vector<1x8x64xf32> to vector<8x64xf32>
    %cst_41 = arith.constant dense<0.000000e+00> : vector<128x64xf32>
    %115 = tpu.matmul %112, %114, %cst_41 {dimension_numbers = #tpu.dot_dimension_numbers<[1], [0], [0], [1], [0, 0, 1, 1], [], []>} : vector<128x8xf32>, vector<8x64xf32>, vector<128x64xf32> -> vector<128x64xf32>
    %116 = arith.addf %88, %115 : vector<128x64xf32>
    %117 = vector.extract_strided_slice %27 {offsets = [0, 24], sizes = [128, 8], strides = [1, 1]} : vector<128x192xf32> to vector<128x8xf32>
    %118 = vector.shape_cast %117 : vector<128x8xf32> to vector<8x16x8xf32>
    %119 = vector.extract_strided_slice %27 {offsets = [0, 88], sizes = [128, 8], strides = [1, 1]} : vector<128x192xf32> to vector<128x8xf32>
    %120 = vector.shape_cast %119 : vector<128x8xf32> to vector<8x16x8xf32>
    %121 = vector.extract_strided_slice %27 {offsets = [0, 152], sizes = [128, 8], strides = [1, 1]} : vector<128x192xf32> to vector<128x8xf32>
    %122 = vector.shape_cast %121 : vector<128x8xf32> to vector<8x16x8xf32>
    "tpu.trace_start"() <{level = 10 : i32, message = "btd,bsd->bts"}> : () -> ()
    %cst_42 = arith.constant dense<0.000000e+00> : vector<8x16x16xf32>
    %123 = tpu.matmul %118, %120, %cst_42 {dimension_numbers = #tpu.dot_dimension_numbers<[2], [2], [1], [1], [0, 0, 0, 1, 1, 1], [0], [0]>} : vector<8x16x8xf32>, vector<8x16x8xf32>, vector<8x16x16xf32> -> vector<8x16x16xf32>
    "tpu.trace_stop"() : () -> ()
    %cst_43 = arith.constant 1.250000e-01 : f32
    %124 = vector.broadcast %cst_43 : f32 to vector<8x16x16xf32>
    %125 = arith.mulf %123, %124 : vector<8x16x16xf32>
    %cst_44 = arith.constant 0xFF800000 : f32
    %126 = vector.shape_cast %31 : vector<1x16x16xi1> to vector<1x16x16xi1>
    %127 = vector.broadcast %126 : vector<1x16x16xi1> to vector<8x16x16xi1>
    %128 = vector.broadcast %cst_44 : f32 to vector<8x16x16xf32>
    %129 = arith.select %127, %125, %128 : vector<8x16x16xi1>, vector<8x16x16xf32>
    %cst_45 = arith.constant dense<0xFF800000> : vector<8x16xf32>
    %130 = vector.multi_reduction <maximumf>, %129, %cst_45 [2] : vector<8x16x16xf32> to vector<8x16xf32>
    %131 = vector.shape_cast %130 : vector<8x16xf32> to vector<8x16x1xf32>
    %132 = vector.broadcast %131 : vector<8x16x1xf32> to vector<8x16x16xf32>
    %133 = arith.subf %129, %132 : vector<8x16x16xf32>
    %134 = math.exp %133 : vector<8x16x16xf32>
    %cst_46 = arith.constant dense<0.000000e+00> : vector<8x16xf32>
    %135 = vector.multi_reduction <add>, %134, %cst_46 [2] : vector<8x16x16xf32> to vector<8x16xf32>
    %136 = vector.shape_cast %135 : vector<8x16xf32> to vector<8x16x1xf32>
    %137 = vector.broadcast %136 : vector<8x16x1xf32> to vector<8x16x16xf32>
    %138 = arith.divf %134, %137 : vector<8x16x16xf32>
    "tpu.trace_start"() <{level = 10 : i32, message = "bts,bsd->btd"}> : () -> ()
    %cst_47 = arith.constant dense<0.000000e+00> : vector<8x16x8xf32>
    %139 = tpu.matmul %138, %122, %cst_47 {dimension_numbers = #tpu.dot_dimension_numbers<[2], [1], [1], [2], [0, 0, 0, 1, 1, 2], [0], [0]>} : vector<8x16x16xf32>, vector<8x16x8xf32>, vector<8x16x8xf32> -> vector<8x16x8xf32>
    "tpu.trace_stop"() : () -> ()
    %140 = vector.shape_cast %139 : vector<8x16x8xf32> to vector<128x8xf32>
    %c3 = arith.constant 3 : index
    %c0_48 = arith.constant 0 : index
    %c0_49 = arith.constant 0 : index
    %141 = vector.load %arg3[%c3, %c0_48, %c0_49] : memref<8x8x64xf32, #tpu.memory_space<vmem>>, vector<1x8x64xf32>
    %142 = vector.shape_cast %141 : vector<1x8x64xf32> to vector<8x64xf32>
    %cst_50 = arith.constant dense<0.000000e+00> : vector<128x64xf32>
    %143 = tpu.matmul %140, %142, %cst_50 {dimension_numbers = #tpu.dot_dimension_numbers<[1], [0], [0], [1], [0, 0, 1, 1], [], []>} : vector<128x8xf32>, vector<8x64xf32>, vector<128x64xf32> -> vector<128x64xf32>
    %144 = arith.addf %116, %143 : vector<128x64xf32>
    %145 = vector.extract_strided_slice %27 {offsets = [0, 32], sizes = [128, 8], strides = [1, 1]} : vector<128x192xf32> to vector<128x8xf32>
    %146 = vector.shape_cast %145 : vector<128x8xf32> to vector<8x16x8xf32>
    %147 = vector.extract_strided_slice %27 {offsets = [0, 96], sizes = [128, 8], strides = [1, 1]} : vector<128x192xf32> to vector<128x8xf32>
    %148 = vector.shape_cast %147 : vector<128x8xf32> to vector<8x16x8xf32>
    %149 = vector.extract_strided_slice %27 {offsets = [0, 160], sizes = [128, 8], strides = [1, 1]} : vector<128x192xf32> to vector<128x8xf32>
    %150 = vector.shape_cast %149 : vector<128x8xf32> to vector<8x16x8xf32>
    "tpu.trace_start"() <{level = 10 : i32, message = "btd,bsd->bts"}> : () -> ()
    %cst_51 = arith.constant dense<0.000000e+00> : vector<8x16x16xf32>
    %151 = tpu.matmul %146, %148, %cst_51 {dimension_numbers = #tpu.dot_dimension_numbers<[2], [2], [1], [1], [0, 0, 0, 1, 1, 1], [0], [0]>} : vector<8x16x8xf32>, vector<8x16x8xf32>, vector<8x16x16xf32> -> vector<8x16x16xf32>
    "tpu.trace_stop"() : () -> ()
    %cst_52 = arith.constant 1.250000e-01 : f32
    %152 = vector.broadcast %cst_52 : f32 to vector<8x16x16xf32>
    %153 = arith.mulf %151, %152 : vector<8x16x16xf32>
    %cst_53 = arith.constant 0xFF800000 : f32
    %154 = vector.shape_cast %31 : vector<1x16x16xi1> to vector<1x16x16xi1>
    %155 = vector.broadcast %154 : vector<1x16x16xi1> to vector<8x16x16xi1>
    %156 = vector.broadcast %cst_53 : f32 to vector<8x16x16xf32>
    %157 = arith.select %155, %153, %156 : vector<8x16x16xi1>, vector<8x16x16xf32>
    %cst_54 = arith.constant dense<0xFF800000> : vector<8x16xf32>
    %158 = vector.multi_reduction <maximumf>, %157, %cst_54 [2] : vector<8x16x16xf32> to vector<8x16xf32>
    %159 = vector.shape_cast %158 : vector<8x16xf32> to vector<8x16x1xf32>
    %160 = vector.broadcast %159 : vector<8x16x1xf32> to vector<8x16x16xf32>
    %161 = arith.subf %157, %160 : vector<8x16x16xf32>
    %162 = math.exp %161 : vector<8x16x16xf32>
    %cst_55 = arith.constant dense<0.000000e+00> : vector<8x16xf32>
    %163 = vector.multi_reduction <add>, %162, %cst_55 [2] : vector<8x16x16xf32> to vector<8x16xf32>
    %164 = vector.shape_cast %163 : vector<8x16xf32> to vector<8x16x1xf32>
    %165 = vector.broadcast %164 : vector<8x16x1xf32> to vector<8x16x16xf32>
    %166 = arith.divf %162, %165 : vector<8x16x16xf32>
    "tpu.trace_start"() <{level = 10 : i32, message = "bts,bsd->btd"}> : () -> ()
    %cst_56 = arith.constant dense<0.000000e+00> : vector<8x16x8xf32>
    %167 = tpu.matmul %166, %150, %cst_56 {dimension_numbers = #tpu.dot_dimension_numbers<[2], [1], [1], [2], [0, 0, 0, 1, 1, 2], [0], [0]>} : vector<8x16x16xf32>, vector<8x16x8xf32>, vector<8x16x8xf32> -> vector<8x16x8xf32>
    "tpu.trace_stop"() : () -> ()
    %168 = vector.shape_cast %167 : vector<8x16x8xf32> to vector<128x8xf32>
    %c4 = arith.constant 4 : index
    %c0_57 = arith.constant 0 : index
    %c0_58 = arith.constant 0 : index
    %169 = vector.load %arg3[%c4, %c0_57, %c0_58] : memref<8x8x64xf32, #tpu.memory_space<vmem>>, vector<1x8x64xf32>
    %170 = vector.shape_cast %169 : vector<1x8x64xf32> to vector<8x64xf32>
    %cst_59 = arith.constant dense<0.000000e+00> : vector<128x64xf32>
    %171 = tpu.matmul %168, %170, %cst_59 {dimension_numbers = #tpu.dot_dimension_numbers<[1], [0], [0], [1], [0, 0, 1, 1], [], []>} : vector<128x8xf32>, vector<8x64xf32>, vector<128x64xf32> -> vector<128x64xf32>
    %172 = arith.addf %144, %171 : vector<128x64xf32>
    %173 = vector.extract_strided_slice %27 {offsets = [0, 40], sizes = [128, 8], strides = [1, 1]} : vector<128x192xf32> to vector<128x8xf32>
    %174 = vector.shape_cast %173 : vector<128x8xf32> to vector<8x16x8xf32>
    %175 = vector.extract_strided_slice %27 {offsets = [0, 104], sizes = [128, 8], strides = [1, 1]} : vector<128x192xf32> to vector<128x8xf32>
    %176 = vector.shape_cast %175 : vector<128x8xf32> to vector<8x16x8xf32>
    %177 = vector.extract_strided_slice %27 {offsets = [0, 168], sizes = [128, 8], strides = [1, 1]} : vector<128x192xf32> to vector<128x8xf32>
    %178 = vector.shape_cast %177 : vector<128x8xf32> to vector<8x16x8xf32>
    "tpu.trace_start"() <{level = 10 : i32, message = "btd,bsd->bts"}> : () -> ()
    %cst_60 = arith.constant dense<0.000000e+00> : vector<8x16x16xf32>
    %179 = tpu.matmul %174, %176, %cst_60 {dimension_numbers = #tpu.dot_dimension_numbers<[2], [2], [1], [1], [0, 0, 0, 1, 1, 1], [0], [0]>} : vector<8x16x8xf32>, vector<8x16x8xf32>, vector<8x16x16xf32> -> vector<8x16x16xf32>
    "tpu.trace_stop"() : () -> ()
    %cst_61 = arith.constant 1.250000e-01 : f32
    %180 = vector.broadcast %cst_61 : f32 to vector<8x16x16xf32>
    %181 = arith.mulf %179, %180 : vector<8x16x16xf32>
    %cst_62 = arith.constant 0xFF800000 : f32
    %182 = vector.shape_cast %31 : vector<1x16x16xi1> to vector<1x16x16xi1>
    %183 = vector.broadcast %182 : vector<1x16x16xi1> to vector<8x16x16xi1>
    %184 = vector.broadcast %cst_62 : f32 to vector<8x16x16xf32>
    %185 = arith.select %183, %181, %184 : vector<8x16x16xi1>, vector<8x16x16xf32>
    %cst_63 = arith.constant dense<0xFF800000> : vector<8x16xf32>
    %186 = vector.multi_reduction <maximumf>, %185, %cst_63 [2] : vector<8x16x16xf32> to vector<8x16xf32>
    %187 = vector.shape_cast %186 : vector<8x16xf32> to vector<8x16x1xf32>
    %188 = vector.broadcast %187 : vector<8x16x1xf32> to vector<8x16x16xf32>
    %189 = arith.subf %185, %188 : vector<8x16x16xf32>
    %190 = math.exp %189 : vector<8x16x16xf32>
    %cst_64 = arith.constant dense<0.000000e+00> : vector<8x16xf32>
    %191 = vector.multi_reduction <add>, %190, %cst_64 [2] : vector<8x16x16xf32> to vector<8x16xf32>
    %192 = vector.shape_cast %191 : vector<8x16xf32> to vector<8x16x1xf32>
    %193 = vector.broadcast %192 : vector<8x16x1xf32> to vector<8x16x16xf32>
    %194 = arith.divf %190, %193 : vector<8x16x16xf32>
    "tpu.trace_start"() <{level = 10 : i32, message = "bts,bsd->btd"}> : () -> ()
    %cst_65 = arith.constant dense<0.000000e+00> : vector<8x16x8xf32>
    %195 = tpu.matmul %194, %178, %cst_65 {dimension_numbers = #tpu.dot_dimension_numbers<[2], [1], [1], [2], [0, 0, 0, 1, 1, 2], [0], [0]>} : vector<8x16x16xf32>, vector<8x16x8xf32>, vector<8x16x8xf32> -> vector<8x16x8xf32>
    "tpu.trace_stop"() : () -> ()
    %196 = vector.shape_cast %195 : vector<8x16x8xf32> to vector<128x8xf32>
    %c5 = arith.constant 5 : index
    %c0_66 = arith.constant 0 : index
    %c0_67 = arith.constant 0 : index
    %197 = vector.load %arg3[%c5, %c0_66, %c0_67] : memref<8x8x64xf32, #tpu.memory_space<vmem>>, vector<1x8x64xf32>
    %198 = vector.shape_cast %197 : vector<1x8x64xf32> to vector<8x64xf32>
    %cst_68 = arith.constant dense<0.000000e+00> : vector<128x64xf32>
    %199 = tpu.matmul %196, %198, %cst_68 {dimension_numbers = #tpu.dot_dimension_numbers<[1], [0], [0], [1], [0, 0, 1, 1], [], []>} : vector<128x8xf32>, vector<8x64xf32>, vector<128x64xf32> -> vector<128x64xf32>
    %200 = arith.addf %172, %199 : vector<128x64xf32>
    %201 = vector.extract_strided_slice %27 {offsets = [0, 48], sizes = [128, 8], strides = [1, 1]} : vector<128x192xf32> to vector<128x8xf32>
    %202 = vector.shape_cast %201 : vector<128x8xf32> to vector<8x16x8xf32>
    %203 = vector.extract_strided_slice %27 {offsets = [0, 112], sizes = [128, 8], strides = [1, 1]} : vector<128x192xf32> to vector<128x8xf32>
    %204 = vector.shape_cast %203 : vector<128x8xf32> to vector<8x16x8xf32>
    %205 = vector.extract_strided_slice %27 {offsets = [0, 176], sizes = [128, 8], strides = [1, 1]} : vector<128x192xf32> to vector<128x8xf32>
    %206 = vector.shape_cast %205 : vector<128x8xf32> to vector<8x16x8xf32>
    "tpu.trace_start"() <{level = 10 : i32, message = "btd,bsd->bts"}> : () -> ()
    %cst_69 = arith.constant dense<0.000000e+00> : vector<8x16x16xf32>
    %207 = tpu.matmul %202, %204, %cst_69 {dimension_numbers = #tpu.dot_dimension_numbers<[2], [2], [1], [1], [0, 0, 0, 1, 1, 1], [0], [0]>} : vector<8x16x8xf32>, vector<8x16x8xf32>, vector<8x16x16xf32> -> vector<8x16x16xf32>
    "tpu.trace_stop"() : () -> ()
    %cst_70 = arith.constant 1.250000e-01 : f32
    %208 = vector.broadcast %cst_70 : f32 to vector<8x16x16xf32>
    %209 = arith.mulf %207, %208 : vector<8x16x16xf32>
    %cst_71 = arith.constant 0xFF800000 : f32
    %210 = vector.shape_cast %31 : vector<1x16x16xi1> to vector<1x16x16xi1>
    %211 = vector.broadcast %210 : vector<1x16x16xi1> to vector<8x16x16xi1>
    %212 = vector.broadcast %cst_71 : f32 to vector<8x16x16xf32>
    %213 = arith.select %211, %209, %212 : vector<8x16x16xi1>, vector<8x16x16xf32>
    %cst_72 = arith.constant dense<0xFF800000> : vector<8x16xf32>
    %214 = vector.multi_reduction <maximumf>, %213, %cst_72 [2] : vector<8x16x16xf32> to vector<8x16xf32>
    %215 = vector.shape_cast %214 : vector<8x16xf32> to vector<8x16x1xf32>
    %216 = vector.broadcast %215 : vector<8x16x1xf32> to vector<8x16x16xf32>
    %217 = arith.subf %213, %216 : vector<8x16x16xf32>
    %218 = math.exp %217 : vector<8x16x16xf32>
    %cst_73 = arith.constant dense<0.000000e+00> : vector<8x16xf32>
    %219 = vector.multi_reduction <add>, %218, %cst_73 [2] : vector<8x16x16xf32> to vector<8x16xf32>
    %220 = vector.shape_cast %219 : vector<8x16xf32> to vector<8x16x1xf32>
    %221 = vector.broadcast %220 : vector<8x16x1xf32> to vector<8x16x16xf32>
    %222 = arith.divf %218, %221 : vector<8x16x16xf32>
    "tpu.trace_start"() <{level = 10 : i32, message = "bts,bsd->btd"}> : () -> ()
    %cst_74 = arith.constant dense<0.000000e+00> : vector<8x16x8xf32>
    %223 = tpu.matmul %222, %206, %cst_74 {dimension_numbers = #tpu.dot_dimension_numbers<[2], [1], [1], [2], [0, 0, 0, 1, 1, 2], [0], [0]>} : vector<8x16x16xf32>, vector<8x16x8xf32>, vector<8x16x8xf32> -> vector<8x16x8xf32>
    "tpu.trace_stop"() : () -> ()
    %224 = vector.shape_cast %223 : vector<8x16x8xf32> to vector<128x8xf32>
    %c6 = arith.constant 6 : index
    %c0_75 = arith.constant 0 : index
    %c0_76 = arith.constant 0 : index
    %225 = vector.load %arg3[%c6, %c0_75, %c0_76] : memref<8x8x64xf32, #tpu.memory_space<vmem>>, vector<1x8x64xf32>
    %226 = vector.shape_cast %225 : vector<1x8x64xf32> to vector<8x64xf32>
    %cst_77 = arith.constant dense<0.000000e+00> : vector<128x64xf32>
    %227 = tpu.matmul %224, %226, %cst_77 {dimension_numbers = #tpu.dot_dimension_numbers<[1], [0], [0], [1], [0, 0, 1, 1], [], []>} : vector<128x8xf32>, vector<8x64xf32>, vector<128x64xf32> -> vector<128x64xf32>
    %228 = arith.addf %200, %227 : vector<128x64xf32>
    %229 = vector.extract_strided_slice %27 {offsets = [0, 56], sizes = [128, 8], strides = [1, 1]} : vector<128x192xf32> to vector<128x8xf32>
    %230 = vector.shape_cast %229 : vector<128x8xf32> to vector<8x16x8xf32>
    %231 = vector.extract_strided_slice %27 {offsets = [0, 120], sizes = [128, 8], strides = [1, 1]} : vector<128x192xf32> to vector<128x8xf32>
    %232 = vector.shape_cast %231 : vector<128x8xf32> to vector<8x16x8xf32>
    %233 = vector.extract_strided_slice %27 {offsets = [0, 184], sizes = [128, 8], strides = [1, 1]} : vector<128x192xf32> to vector<128x8xf32>
    %234 = vector.shape_cast %233 : vector<128x8xf32> to vector<8x16x8xf32>
    "tpu.trace_start"() <{level = 10 : i32, message = "btd,bsd->bts"}> : () -> ()
    %cst_78 = arith.constant dense<0.000000e+00> : vector<8x16x16xf32>
    %235 = tpu.matmul %230, %232, %cst_78 {dimension_numbers = #tpu.dot_dimension_numbers<[2], [2], [1], [1], [0, 0, 0, 1, 1, 1], [0], [0]>} : vector<8x16x8xf32>, vector<8x16x8xf32>, vector<8x16x16xf32> -> vector<8x16x16xf32>
    "tpu.trace_stop"() : () -> ()
    %cst_79 = arith.constant 1.250000e-01 : f32
    %236 = vector.broadcast %cst_79 : f32 to vector<8x16x16xf32>
    %237 = arith.mulf %235, %236 : vector<8x16x16xf32>
    %cst_80 = arith.constant 0xFF800000 : f32
    %238 = vector.shape_cast %31 : vector<1x16x16xi1> to vector<1x16x16xi1>
    %239 = vector.broadcast %238 : vector<1x16x16xi1> to vector<8x16x16xi1>
    %240 = vector.broadcast %cst_80 : f32 to vector<8x16x16xf32>
    %241 = arith.select %239, %237, %240 : vector<8x16x16xi1>, vector<8x16x16xf32>
    %cst_81 = arith.constant dense<0xFF800000> : vector<8x16xf32>
    %242 = vector.multi_reduction <maximumf>, %241, %cst_81 [2] : vector<8x16x16xf32> to vector<8x16xf32>
    %243 = vector.shape_cast %242 : vector<8x16xf32> to vector<8x16x1xf32>
    %244 = vector.broadcast %243 : vector<8x16x1xf32> to vector<8x16x16xf32>
    %245 = arith.subf %241, %244 : vector<8x16x16xf32>
    %246 = math.exp %245 : vector<8x16x16xf32>
    %cst_82 = arith.constant dense<0.000000e+00> : vector<8x16xf32>
    %247 = vector.multi_reduction <add>, %246, %cst_82 [2] : vector<8x16x16xf32> to vector<8x16xf32>
    %248 = vector.shape_cast %247 : vector<8x16xf32> to vector<8x16x1xf32>
    %249 = vector.broadcast %248 : vector<8x16x1xf32> to vector<8x16x16xf32>
    %250 = arith.divf %246, %249 : vector<8x16x16xf32>
    "tpu.trace_start"() <{level = 10 : i32, message = "bts,bsd->btd"}> : () -> ()
    %cst_83 = arith.constant dense<0.000000e+00> : vector<8x16x8xf32>
    %251 = tpu.matmul %250, %234, %cst_83 {dimension_numbers = #tpu.dot_dimension_numbers<[2], [1], [1], [2], [0, 0, 0, 1, 1, 2], [0], [0]>} : vector<8x16x16xf32>, vector<8x16x8xf32>, vector<8x16x8xf32> -> vector<8x16x8xf32>
    "tpu.trace_stop"() : () -> ()
    %252 = vector.shape_cast %251 : vector<8x16x8xf32> to vector<128x8xf32>
    %c7 = arith.constant 7 : index
    %c0_84 = arith.constant 0 : index
    %c0_85 = arith.constant 0 : index
    %253 = vector.load %arg3[%c7, %c0_84, %c0_85] : memref<8x8x64xf32, #tpu.memory_space<vmem>>, vector<1x8x64xf32>
    %254 = vector.shape_cast %253 : vector<1x8x64xf32> to vector<8x64xf32>
    %cst_86 = arith.constant dense<0.000000e+00> : vector<128x64xf32>
    %255 = tpu.matmul %252, %254, %cst_86 {dimension_numbers = #tpu.dot_dimension_numbers<[1], [0], [0], [1], [0, 0, 1, 1], [], []>} : vector<128x8xf32>, vector<8x64xf32>, vector<128x64xf32> -> vector<128x64xf32>
    %256 = arith.addf %228, %255 : vector<128x64xf32>
    %c0_87 = arith.constant 0 : index
    %c0_88 = arith.constant 0 : index
    %257 = vector.load %arg4[%c0_87, %c0_88] : memref<1x64xf32, #tpu.memory_space<vmem>>, vector<1x64xf32>
    %258 = vector.broadcast %257 : vector<1x64xf32> to vector<128x64xf32>
    %259 = arith.addf %256, %258 : vector<128x64xf32>
    %260 = arith.addf %1, %259 : vector<128x64xf32>
    %c0_89 = arith.constant 0 : index
    %c0_90 = arith.constant 0 : index
    %261 = vector.load %arg11[%c0_89, %c0_90] : memref<1x64xf32, #tpu.memory_space<vmem>>, vector<1x64xf32>
    %c0_91 = arith.constant 0 : index
    %c0_92 = arith.constant 0 : index
    %262 = vector.load %arg12[%c0_91, %c0_92] : memref<1x64xf32, #tpu.memory_space<vmem>>, vector<1x64xf32>
    %cst_93 = arith.constant dense<0.000000e+00> : vector<128xf32>
    %263 = vector.multi_reduction <add>, %260, %cst_93 [1] : vector<128x64xf32> to vector<128xf32>
    %264 = vector.shape_cast %263 : vector<128xf32> to vector<128x1xf32>
    %cst_94 = arith.constant 6.400000e+01 : f32
    %265 = vector.broadcast %cst_94 : f32 to vector<128x1xf32>
    %266 = arith.divf %264, %265 : vector<128x1xf32>
    %267 = vector.broadcast %266 : vector<128x1xf32> to vector<128x64xf32>
    %268 = arith.subf %260, %267 : vector<128x64xf32>
    %269 = arith.mulf %268, %268 : vector<128x64xf32>
    %cst_95 = arith.constant dense<0.000000e+00> : vector<128xf32>
    %270 = vector.multi_reduction <add>, %269, %cst_95 [1] : vector<128x64xf32> to vector<128xf32>
    %271 = vector.shape_cast %270 : vector<128xf32> to vector<128x1xf32>
    %cst_96 = arith.constant 6.400000e+01 : f32
    %272 = vector.broadcast %cst_96 : f32 to vector<128x1xf32>
    %273 = arith.divf %271, %272 : vector<128x1xf32>
    %274 = vector.broadcast %266 : vector<128x1xf32> to vector<128x64xf32>
    %275 = arith.subf %260, %274 : vector<128x64xf32>
    %cst_97 = arith.constant 9.99999974E-6 : f32
    %276 = vector.broadcast %cst_97 : f32 to vector<128x1xf32>
    %277 = arith.addf %273, %276 : vector<128x1xf32>
    %278 = math.rsqrt %277 : vector<128x1xf32>
    %279 = vector.broadcast %278 : vector<128x1xf32> to vector<128x64xf32>
    %280 = arith.mulf %275, %279 : vector<128x64xf32>
    %281 = vector.broadcast %261 : vector<1x64xf32> to vector<128x64xf32>
    %282 = arith.mulf %280, %281 : vector<128x64xf32>
    %283 = vector.broadcast %262 : vector<1x64xf32> to vector<128x64xf32>
    %284 = arith.addf %282, %283 : vector<128x64xf32>
    %c0_98 = arith.constant 0 : index
    %c0_99 = arith.constant 0 : index
    %285 = vector.load %arg5[%c0_98, %c0_99] : memref<64x256xf32, #tpu.memory_space<vmem>>, vector<64x256xf32>
    %cst_100 = arith.constant dense<0.000000e+00> : vector<128x256xf32>
    %286 = tpu.matmul %284, %285, %cst_100 {dimension_numbers = #tpu.dot_dimension_numbers<[1], [0], [0], [1], [0, 0, 1, 1], [], []>} : vector<128x64xf32>, vector<64x256xf32>, vector<128x256xf32> -> vector<128x256xf32>
    %c0_101 = arith.constant 0 : index
    %c0_102 = arith.constant 0 : index
    %287 = vector.load %arg6[%c0_101, %c0_102] : memref<1x256xf32, #tpu.memory_space<vmem>>, vector<1x256xf32>
    %288 = vector.broadcast %287 : vector<1x256xf32> to vector<128x256xf32>
    %289 = arith.addf %286, %288 : vector<128x256xf32>
    %cst_103 = arith.constant 0.000000e+00 : f32
    %290 = vector.broadcast %cst_103 : f32 to vector<128x256xf32>
    %291 = arith.maximumf %289, %290 : vector<128x256xf32>
    %c0_104 = arith.constant 0 : index
    %c0_105 = arith.constant 0 : index
    %292 = vector.load %arg7[%c0_104, %c0_105] : memref<256x64xf32, #tpu.memory_space<vmem>>, vector<256x64xf32>
    %cst_106 = arith.constant dense<0.000000e+00> : vector<128x64xf32>
    %293 = tpu.matmul %291, %292, %cst_106 {dimension_numbers = #tpu.dot_dimension_numbers<[1], [0], [0], [1], [0, 0, 1, 1], [], []>} : vector<128x256xf32>, vector<256x64xf32>, vector<128x64xf32> -> vector<128x64xf32>
    %c0_107 = arith.constant 0 : index
    %c0_108 = arith.constant 0 : index
    %294 = vector.load %arg8[%c0_107, %c0_108] : memref<1x64xf32, #tpu.memory_space<vmem>>, vector<1x64xf32>
    %295 = vector.broadcast %294 : vector<1x64xf32> to vector<128x64xf32>
    %296 = arith.addf %293, %295 : vector<128x64xf32>
    %297 = arith.addf %260, %296 : vector<128x64xf32>
    %298 = vector.shape_cast %297 : vector<128x64xf32> to vector<8x16x64xf32>
    %c0_109 = arith.constant 0 : index
    %c0_110 = arith.constant 0 : index
    %c0_111 = arith.constant 0 : index
    %299 = vector.load %arg13[%c0_109, %c0_110, %c0_111] : memref<8x16x64xf32, #tpu.memory_space<vmem>>, vector<8x16x64xf32>
    tpu.vector_store %arg13[%c0_109, %c0_110, %c0_111], %298 {strides = array<i32>} : memref<8x16x64xf32, #tpu.memory_space<vmem>>, vector<8x16x64xf32>,
    return
  }
  func.func @transform_0(%arg0: i32) -> (i32, i32, i32) {
    %c0_i32 = arith.constant 0 : i32
    %c0_i32_0 = arith.constant 0 : i32
    %c0_i32_1 = arith.constant 0 : i32
    return %arg0, %c0_i32, %c0_i32_0 : i32, i32, i32
  }
  func.func @transform_1(%arg0: i32) -> (i32, i32) {
    %c0_i32 = arith.constant 0 : i32
    %c0_i32_0 = arith.constant 0 : i32
    %c0_i32_1 = arith.constant 0 : i32
    return %c0_i32, %c0_i32_0 : i32, i32
  }
  func.func @transform_2(%arg0: i32) -> (i32, i32, i32) {
    %c0_i32 = arith.constant 0 : i32
    %c0_i32_0 = arith.constant 0 : i32
    %c0_i32_1 = arith.constant 0 : i32
    %c0_i32_2 = arith.constant 0 : i32
    return %c0_i32, %c0_i32_0, %c0_i32_1 : i32, i32, i32
  }
  func.func @transform_3(%arg0: i32) -> (i32, i32) {
    %c0_i32 = arith.constant 0 : i32
    %c0_i32_0 = arith.constant 0 : i32
    %c0_i32_1 = arith.constant 0 : i32
    return %c0_i32, %c0_i32_0 : i32, i32
  }
  func.func @transform_4(%arg0: i32) -> (i32, i32) {
    %c0_i32 = arith.constant 0 : i32
    %c0_i32_0 = arith.constant 0 : i32
    %c0_i32_1 = arith.constant 0 : i32
    return %c0_i32, %c0_i32_0 : i32, i32
  }
  func.func @transform_5(%arg0: i32) -> (i32, i32) {
    %c0_i32 = arith.constant 0 : i32
    %c0_i32_0 = arith.constant 0 : i32
    %c0_i32_1 = arith.constant 0 : i32
    return %c0_i32, %c0_i32_0 : i32, i32
  }
  func.func @transform_6(%arg0: i32) -> (i32, i32) {
    %c0_i32 = arith.constant 0 : i32
    %c0_i32_0 = arith.constant 0 : i32
    %c0_i32_1 = arith.constant 0 : i32
    return %c0_i32, %c0_i32_0 : i32, i32
  }
  func.func @transform_7(%arg0: i32) -> (i32, i32) {
    %c0_i32 = arith.constant 0 : i32
    %c0_i32_0 = arith.constant 0 : i32
    %c0_i32_1 = arith.constant 0 : i32
    return %c0_i32, %c0_i32_0 : i32, i32
  }
  func.func @transform_8(%arg0: i32) -> (i32, i32) {
    %c0_i32 = arith.constant 0 : i32
    %c0_i32_0 = arith.constant 0 : i32
    %c0_i32_1 = arith.constant 0 : i32
    return %c0_i32, %c0_i32_0 : i32, i32
  }
  func.func @transform_9(%arg0: i32) -> (i32, i32) {
    %c0_i32 = arith.constant 0 : i32
    %c0_i32_0 = arith.constant 0 : i32
    %c0_i32_1 = arith.constant 0 : i32
    return %c0_i32, %c0_i32_0 : i32, i32
  }
  func.func @transform_10(%arg0: i32) -> (i32, i32) {
    %c0_i32 = arith.constant 0 : i32
    %c0_i32_0 = arith.constant 0 : i32
    %c0_i32_1 = arith.constant 0 : i32
    return %c0_i32, %c0_i32_0 : i32, i32
  }
  func.func @transform_11(%arg0: i32) -> (i32, i32) {
    %c0_i32 = arith.constant 0 : i32
    %c0_i32_0 = arith.constant 0 : i32
    %c0_i32_1 = arith.constant 0 : i32
    return %c0_i32, %c0_i32_0 : i32, i32
  }
  func.func @transform_12(%arg0: i32) -> (i32, i32, i32) {
    %c0_i32 = arith.constant 0 : i32
    %c0_i32_0 = arith.constant 0 : i32
    %c0_i32_1 = arith.constant 0 : i32
    return %arg0, %c0_i32, %c0_i32_0 : i32, i32, i32
  }
}

</mosaic_0001>

<bundles_post_ra>
// kernel: tpu_custom_call.1
= control target key start
LH: loop header
LB: loop body
LE: loop exit
PB: predicated region body
PF: predicated region fallthrough
CT: control target
= control target key end

     0   :  { %17 = vsyncpa [#allocation3], 0  ;;  %s24341_s0 = inlined_call_operand.vmem [shape: f32[8,16,64], index: 0, kind: input, shape index: {}]   ;;  %s24342_s1 = inlined_call_operand.vmem [shape: f32[64,192], index: 1, kind: input, shape index: {}]   ;;  %s24343_s2 = inlined_call_operand.hbm [shape: f32[8,8,64], index: 2, kind: input, shape index: {}]   ;;  %s24344_s3 = inlined_call_operand.vmem [shape: f32[1,64], index: 3, kind: input, shape index: {}]   ;;  %s24345_s4 = inlined_call_operand.vmem [shape: f32[64,256], index: 4, kind: input, shape index: {}]   ;;  %s24346_s5 = inlined_call_operand.vmem [shape: f32[1,256], index: 5, kind: input, shape index: {}]   ;;  %s24347_s6 = inlined_call_operand.vmem [shape: f32[256,64], index: 6, kind: input, shape index: {}]   ;;  %s24348_s7 = inlined_call_operand.vmem [shape: f32[1,64], index: 7, kind: input, shape index: {}]   ;;  %s24349_s8 = inlined_call_operand.vmem [shape: f32[1,64], index: 8, kind: input, shape index: {}]   ;;  %s24350_s9 = inlined_call_operand.vmem [shape: f32[1,64], index: 9, kind: input, shape index: {}]   ;;  %s24351_s10 = inlined_call_operand.vmem [shape: f32[1,64], index: 10, kind: input, shape index: {}]   ;;  %s24352_s11 = inlined_call_operand.vmem [shape: f32[1,64], index: 11, kind: input, shape index: {}]   ;;  %s24353_s12 = inlined_call_operand.hbm [shape: f32[8,16,64], index: 12, kind: output, shape index: {}]  }
   0x1   :  { %18 = vsyncpa [#allocation4], 0  ;;  %s20483_s21 = smov [#allocation2]   ;;  %s20435_s25 = scalar_lea.hbm %s24343_s2, 1024 }
   0x2   :  { %s28_s22 = sshll.u32 %s20483_s21, 4  ;;  %p20436_p0 = scmp.ne.s32.totalorder %s24343_s2, %s20435_s25  ;;  %s29_s22 = int_to_ptr.vmem [resolvable:$true] %s28_s22 }
   0x3   :  { %p20439_p1 = scmp.lt.u32.totalorder %s20435_s25, %s24343_s2 }
   0x5   :  { %p20441_p2 = pnand %p20439_p1, %p20436_p0 }
   0x7   :  { %20444 = shalt.err (!%p20441_p2)
}
   0x8   :  { %s20445_s30 = scalar_lea.vmem %s29_s22, 1024  ;;  %p20450_p4 = scmp.lt.s32.totalorder %s29_s22, %s29_s22 }
   0x9   :  { %p20446_p3 = scmp.ne.s32.totalorder %s29_s22, %s20445_s30  ;;  %p20451_p5 = scmp.lt.s32.totalorder %s20445_s30, %s20445_s30 }
   0xb   :  { %p20452_p6 = por %p20451_p5, %p20450_p4 }
   0xd   :  { %p20453_p7 = pnand %p20452_p6, %p20446_p3 }
   0xf   :  { %20456 = shalt.err (!%p20453_p7)
}
  0x10   :  { %s20484_s13 = smov 128   ;;  %s20485_s14 = smov 8  }
  0x11   :  { %34 = dma.hbm_to_vmem [thread:$0]  %s24343_s2, 1024, %s29_s22, [#allocation3], %s20484_s13, %s20484_s13, %s20485_s14  }
  0x12   :  { %20479 = dma.done.wait [#allocation3], 1024  }
  0x13   :  { %20480 = vsyncadd [#allocation3], 4294966272  ;;  %vm74_vm0 = vcmask 523264   ;;  %v56_v0 = vld [vmem:[%s24341_s0] sm:$0xff]  ;;  %v58_v1 = vld [vmem:[%s24341_s0 + $0x10] sm:$0xff]  ;;  %vm566_vm1 = vcmask 64512  }
  0x14   :  { %v57_v2 = vld [vmem:[%s24341_s0 + $0x8] sm:$0xff]  ;;  %v75_v3 = vsel %vm74_vm0, %v56_v0, 0.0  ;;  %v81_v4 = vsel %vm74_vm0, %v58_v1, 0.0  ;;  %v59_v5 = vld [vmem:[%s24341_s0 + $0x18] sm:$0xff]  ;;  %v60_v8 = vld [vmem:[%s24341_s0 + $0x20] sm:$0xff]  ;;  %vm1309_vm4 = vcmask 130048  }
  0x15   :  { %76 = vadd.xlane.f32.xlu0 %v75_v3  ;;  %82 = vadd.xlane.f32.xlu1 %v81_v4  ;;  %v78_v6 = vsel %vm74_vm0, %v57_v2, 0.0  ;;  %v84_v7 = vsel %vm74_vm0, %v59_v5, 0.0  ;;  %v61_v9 = vld [vmem:[%s24341_s0 + $0x28] sm:$0xff]  ;;  %v87_v10 = vsel %vm74_vm0, %v60_v8, 0.0  ;;  %v20609_v12 = vld [vmem:[%s24341_s0 + $0x30] sm:$0xff]  ;;  %v20614_v13 = vld [vmem:[%s24341_s0 + $0x38] sm:$0xff] }
  0x16   :  { %v90_v11 = vsel %vm74_vm0, %v61_v9, 0.0  ;;  %v93_v14 = vsel %vm74_vm0, %v20609_v12, 0.0  ;;  %v96_v15 = vsel %vm74_vm0, %v20614_v13, 0.0  ;;  %v20623_v16 = vld [vmem:[%s24341_s0 + $0x40] sm:$0xff]  ;;  %v20628_v17 = vld [vmem:[%s24341_s0 + $0x48] sm:$0xff]  ;;  %v20637_v20 = vld [vmem:[%s24341_s0 + $0x50] sm:$0xff] }
  0x17   :  { %v99_v18 = vsel %vm74_vm0, %v20623_v16, 0.0  ;;  %v102_v19 = vsel %vm74_vm0, %v20628_v17, 0.0  ;;  %v20642_v21 = vld [vmem:[%s24341_s0 + $0x58] sm:$0xff]  ;;  %v105_v22 = vsel %vm74_vm0, %v20637_v20, 0.0  ;;  %v20651_v24 = vld [vmem:[%s24341_s0 + $0x60] sm:$0xff]  ;;  %v20656_v25 = vld [vmem:[%s24341_s0 + $0x68] sm:$0xff] }
  0x18   :  { %v108_v23 = vsel %vm74_vm0, %v20642_v21, 0.0  ;;  %v111_v26 = vsel %vm74_vm0, %v20651_v24, 0.0  ;;  %v114_v27 = vsel %vm74_vm0, %v20656_v25, 0.0  ;;  %v20665_v28 = vld [vmem:[%s24341_s0 + $0x70] sm:$0xff]  ;;  %v20670_v29 = vld [vmem:[%s24341_s0 + $0x78] sm:$0xff]  ;;  %vm21019_vm2 = vmpackc.low %vm566_vm1, %vm566_vm1  ;;  %s20489_s16 = smov 120  }
  0x19   :  { %79 = vadd.xlane.f32.xlu0 %v78_v6  ;;  %85 = vadd.xlane.f32.xlu1 %v84_v7  ;;  %v117_v30 = vsel %vm74_vm0, %v20665_v28, 0.0  ;;  %v120_v31 = vsel %vm74_vm0, %v20670_v29, 0.0  ;;  %s20490_s17 = smov 48   ;;  %s20491_s18 = smov 112  }
  0x1a   :  { %s20492_s19 = smov 40   ;;  %s20493_s20 = smov 104  }
  0x1b   :  { %s20494_s21 = smov 32   ;;  %s20495_s23 = smov 96  }
  0x1c   :  { %s20496_s2 = smov 24   ;;  %s20497_s22 = smov 88  }
  0x1d   :  { %88 = vadd.xlane.f32.xlu0 %v87_v10  ;;  %91 = vadd.xlane.f32.xlu1 %v90_v11  ;;  %s20498_s24 = smov 16   ;;  %s20499_s25 = smov 80  }
  0x1e   :  { %s20500_s26 = smov 72  }
  0x21   :  { %94 = vadd.xlane.f32.xlu0 %v93_v14  ;;  %97 = vadd.xlane.f32.xlu1 %v96_v15 }
  0x25   :  { %100 = vadd.xlane.f32.xlu0 %v99_v18  ;;  %103 = vadd.xlane.f32.xlu1 %v102_v19 }
  0x29   :  { %106 = vadd.xlane.f32.xlu0 %v105_v22  ;;  %109 = vadd.xlane.f32.xlu1 %v108_v23 }
  0x2d   :  { %112 = vadd.xlane.f32.xlu0 %v111_v26  ;;  %115 = vadd.xlane.f32.xlu1 %v114_v27 }
  0x31   :  { %118 = vadd.xlane.f32.xlu0 %v117_v30  ;;  %121 = vadd.xlane.f32.xlu1 %v120_v31 }
  0xa2   :  { %v77_v32 = vpop.xlane.xlu0 %76  ;;  %v83_v33 = vpop.xlane.xlu1 %82 }
  0xa3   :  { %v124_v34 = vmul.f32 0.015625, %v77_v32  ;;  %v126_v35 = vmul.f32 0.015625, %v83_v33 }
  0xa5   :  { %v20676_v36 = vsub.f32 %v56_v0, %v124_v34  ;;  %v20678_v37 = vsub.f32 %v58_v1, %v126_v35  ;;  %v331_v35 = vld [vmem:[%s24342_s1 + $0x18] sm:$0xff] }
  0xa6   :  { %v80_v38 = vpop.xlane.xlu0 %79  ;;  %v86_v39 = vpop.xlane.xlu1 %85 }
  0xa7   :  { %v125_v40 = vmul.f32 0.015625, %v80_v38  ;;  %v127_v41 = vmul.f32 0.015625, %v86_v39  ;;  %v156_v42 = vmul.f32 %v20676_v36, %v20676_v36  ;;  %v158_v43 = vmul.f32 %v20678_v37, %v20678_v37  ;;  %v328_v39 = vld [vmem:[%s24342_s1] sm:$0xff] }
  0xa9   :  { %v20684_v44 = vsub.f32 %v57_v2, %v125_v40  ;;  %v20686_v45 = vsub.f32 %v59_v5, %v127_v41  ;;  %v172_v46 = vsel %vm74_vm0, %v156_v42, 0.0  ;;  %v178_v49 = vsel %vm74_vm0, %v158_v43, 0.0  ;;  %v330_v40 = vld [vmem:[%s24342_s1 + $0x10] sm:$0xff] }
  0xaa   :  { %173 = vadd.xlane.f32.xlu0 %v172_v46  ;;  %v89_v47 = vpop.xlane.xlu0 %88  ;;  %v92_v48 = vpop.xlane.xlu1 %91 }
  0xab   :  { %v128_v50 = vmul.f32 0.015625, %v89_v47  ;;  %v129_v51 = vmul.f32 0.015625, %v92_v48  ;;  %v157_v52 = vmul.f32 %v20684_v44, %v20684_v44  ;;  %v159_v53 = vmul.f32 %v20686_v45, %v20686_v45 }
  0xad   :  { %v20694_v54 = vsub.f32 %v60_v8, %v128_v50  ;;  %v20696_v55 = vsub.f32 %v61_v9, %v129_v51  ;;  %v175_v56 = vsel %vm74_vm0, %v157_v52, 0.0  ;;  %v181_v59 = vsel %vm74_vm0, %v159_v53, 0.0  ;;  %v335_v53 = vld [vmem:[%s24342_s1 + $0x38] sm:$0xff] }
  0xae   :  { %179 = vadd.xlane.f32.xlu0 %v178_v49  ;;  %176 = vadd.xlane.f32.xlu1 %v175_v56  ;;  %v95_v57 = vpop.xlane.xlu0 %94  ;;  %v98_v58 = vpop.xlane.xlu1 %97  ;;  %v18408_v49 = vpack.c.bf16 %v330_v40, %v328_v39 }
  0xaf   :  { %v130_v60 = vmul.f32 0.015625, %v95_v57  ;;  %v131_v61 = vmul.f32 0.015625, %v98_v58  ;;  %v160_v62 = vmul.f32 %v20694_v54, %v20694_v54  ;;  %v161_v63 = vmul.f32 %v20696_v55, %v20696_v55  ;;  %v332_v57 = vld [vmem:[%s24342_s1 + $0x20] sm:$0xff]  ;;  %v334_v58 = vld [vmem:[%s24342_s1 + $0x30] sm:$0xff] }
  0xb1   :  { %v20705_v0 = vsub.f32 %v20609_v12, %v130_v60  ;;  %v20708_v1 = vsub.f32 %v20614_v13, %v131_v61  ;;  %v184_v2 = vsel %vm74_vm0, %v160_v62, 0.0  ;;  %v187_v5 = vsel %vm74_vm0, %v161_v63, 0.0 }
  0xb2   :  { %182 = vadd.xlane.f32.xlu1 %v181_v59  ;;  %185 = vadd.xlane.f32.xlu0 %v184_v2  ;;  %v101_v3 = vpop.xlane.xlu0 %100  ;;  %v104_v4 = vpop.xlane.xlu1 %103  ;;  %v18412_v62 = vpack.c.bf16 %v334_v58, %v332_v57 }
  0xb3   :  { %v132_v6 = vmul.f32 0.015625, %v101_v3  ;;  %v133_v7 = vmul.f32 0.015625, %v104_v4  ;;  %v162_v8 = vmul.f32 %v20705_v0, %v20705_v0  ;;  %v163_v9 = vmul.f32 %v20708_v1, %v20708_v1 }
  0xb5   :  { %v20717_v10 = vsub.f32 %v20623_v16, %v132_v6  ;;  %v20720_v11 = vsub.f32 %v20628_v17, %v133_v7  ;;  %v190_v12 = vsel %vm74_vm0, %v162_v8, 0.0  ;;  %v193_v15 = vsel %vm74_vm0, %v163_v9, 0.0  ;;  %v338_v6 = vld [vmem:[%s24342_s1 + $0x50] sm:$0xff] }
  0xb6   :  { %188 = vadd.xlane.f32.xlu1 %v187_v5  ;;  %191 = vadd.xlane.f32.xlu0 %v190_v12  ;;  %v107_v13 = vpop.xlane.xlu0 %106  ;;  %v110_v14 = vpop.xlane.xlu1 %109  ;;  %v336_v5 = vld [vmem:[%s24342_s1 + $0x40] sm:$0xff]  ;;  %v341_v12 = vld [vmem:[%s24342_s1 + $0x68] sm:$0xff] }
  0xb7   :  { %v134_v18 = vmul.f32 0.015625, %v107_v13  ;;  %v135_v19 = vmul.f32 0.015625, %v110_v14  ;;  %v164_v22 = vmul.f32 %v20717_v10, %v20717_v10  ;;  %v165_v16 = vmul.f32 %v20720_v11, %v20720_v11  ;;  %v343_v13 = vld [vmem:[%s24342_s1 + $0x78] sm:$0xff] }
  0xb8   :  { %v18416_v8 = vpack.c.bf16 %v338_v6, %v336_v5  ;;  %v18418_v14 = vpack.c.bf16 %v343_v13, %v341_v12 }
  0xb9   :  { %v20729_v23 = vsub.f32 %v20637_v20, %v134_v18  ;;  %v20732_v17 = vsub.f32 %v20642_v21, %v135_v19  ;;  %v196_v26 = vsel %vm74_vm0, %v164_v22, 0.0  ;;  %v199_v31 = vsel %vm74_vm0, %v165_v16, 0.0  ;;  %v329_v21 = vld [vmem:[%s24342_s1 + $0x8] sm:$0xff]  ;;  %v342_v18 = vld [vmem:[%s24342_s1 + $0x70] sm:$0xff] }
  0xba   :  { %194 = vadd.xlane.f32.xlu1 %v193_v15  ;;  %197 = vadd.xlane.f32.xlu0 %v196_v26  ;;  %v113_v27 = vpop.xlane.xlu0 %112  ;;  %v116_v30 = vpop.xlane.xlu1 %115  ;;  %v18406_v38 = vpack.c.bf16 %v331_v35, %v329_v21  ;;  %v340_v15 = vld [vmem:[%s24342_s1 + $0x60] sm:$0xff]  ;;  %v24354_v22 = vmov 0.0  }
  0xbb   :  { %v136_v32 = vmul.f32 0.015625, %v113_v27  ;;  %v137_v33 = vmul.f32 0.015625, %v116_v30  ;;  %v166_v34 = vmul.f32 %v20729_v23, %v20729_v23  ;;  %v167_v20 = vmul.f32 %v20732_v17, %v20732_v17  ;;  %456 = vmatprep.mubr.f32.mxu0 %v24354_v22 }
  0xbc   :  { %18407 = vmatprep.subr.bf16.mxu0 %v18406_v38  ;;  %v18420_v19 = vpack.c.bf16 %v342_v18, %v340_v15 }
  0xbd   :  { %v20753_v41 = vsub.f32 %v20651_v24, %v136_v32  ;;  %v20756_v42 = vsub.f32 %v20656_v25, %v137_v33  ;;  %v202_v43 = vsel %vm74_vm0, %v166_v34, 0.0  ;;  %v205_v48 = vsel %vm74_vm0, %v167_v20, 0.0  ;;  %v333_v25 = vld [vmem:[%s24342_s1 + $0x28] sm:$0xff]  ;;  %18409 = vmatpush1.bf16.msra.mxu0 %v18408_v49 }
  0xbe   :  { %200 = vadd.xlane.f32.xlu1 %v199_v31  ;;  %203 = vadd.xlane.f32.xlu0 %v202_v43  ;;  %v119_v46 = vpop.xlane.xlu0 %118  ;;  %v122_v47 = vpop.xlane.xlu1 %121  ;;  %v18410_v56 = vpack.c.bf16 %v335_v53, %v333_v25  ;;  %v20824_v53 = vld [vmem:[%s24350_s9] ss:$0 sm:$0xff]  ;;  %s20488_s9 = smov 56  }
  0xbf   :  { %v138_v50 = vmul.f32 0.015625, %v119_v46  ;;  %v139_v51 = vmul.f32 0.015625, %v122_v47  ;;  %v168_v52 = vmul.f32 %v20753_v41, %v20753_v41  ;;  %v169_v24 = vmul.f32 %v20756_v42, %v20756_v42 }
  0xc0   :  { %18411 = vmatprep.subr.bf16.mxu0 %v18410_v56 }
  0xc1   :  { %v20777_v59 = vsub.f32 %v20665_v28, %v138_v50  ;;  %v20780_v60 = vsub.f32 %v20670_v29, %v139_v51  ;;  %v208_v61 = vsel %vm74_vm0, %v168_v52, 0.0  ;;  %v211_v63 = vsel %vm74_vm0, %v169_v24, 0.0  ;;  %v337_v28 = vld [vmem:[%s24342_s1 + $0x48] sm:$0xff]  ;;  %v339_v29 = vld [vmem:[%s24342_s1 + $0x58] sm:$0xff]  ;;  %18413 = vmatpush1.bf16.msra.mxu0 %v18412_v62  ;;  %v20818_v52 = vld [vmem:[%s24349_s8] ss:$0 sm:$0xff] }
  0xc2   :  { %206 = vadd.xlane.f32.xlu1 %v205_v48  ;;  %209 = vadd.xlane.f32.xlu0 %v208_v61  ;;  %v18414_v4 = vpack.c.bf16 %v339_v29, %v337_v28  ;;  %s20487_s8 = smov 64  }
  0xc3   :  { %v170_v2 = vmul.f32 %v20777_v59, %v20777_v59  ;;  %v171_v3 = vmul.f32 %v20780_v60, %v20780_v60 }
  0xc4   :  { %18415 = vmatprep.subr.bf16.mxu0 %v18414_v4 }
  0xc5   :  { %v214_v7 = vsel %vm74_vm0, %v170_v2, 0.0  ;;  %v217_v9 = vsel %vm74_vm0, %v171_v3, 0.0  ;;  %18417 = vmatpush1.bf16.msra.mxu0 %v18416_v8 }
  0xc6   :  { %212 = vadd.xlane.f32.xlu1 %v211_v63  ;;  %215 = vadd.xlane.f32.xlu0 %v214_v7 }
  0xc7   :  { %18419 = vmatprep.subr.bf16.mxu0 %v18418_v14 }
  0xc9   :  { %18421 = vmatpush1.bf16.msra.mxu0 %v18420_v19 }
  0xca   :  { %218 = vadd.xlane.f32.xlu1 %v217_v9 }
 0x137   :  { %v174_v16 = vpop.xlane.xlu0 %173 }
 0x138   :  { %v220_v26 = vmul.f32 0.015625, %v174_v16 }
 0x13a   :  { %v236_v27 = vadd.f32 1e-05, %v220_v26 }
 0x13b   :  { %v177_v30 = vpop.xlane.xlu1 %176  ;;  %v180_v31 = vpop.xlane.xlu0 %179 }
 0x13c   :  { %19843 = vrsqrt.f32 %v236_v27  ;;  %v221_v32 = vmul.f32 0.015625, %v177_v30  ;;  %v222_v33 = vmul.f32 0.015625, %v180_v31 }
 0x13e   :  { %v237_v34 = vadd.f32 1e-05, %v221_v32  ;;  %v238_v20 = vadd.f32 1e-05, %v222_v33 }
 0x13f   :  { %v183_v21 = vpop.xlane.xlu1 %182  ;;  %v186_v35 = vpop.xlane.xlu0 %185 }
 0x140   :  { %19845 = vrsqrt.f32 %v237_v34  ;;  %v223_v38 = vmul.f32 0.015625, %v183_v21  ;;  %v224_v39 = vmul.f32 0.015625, %v186_v35 }
 0x141   :  { %19847 = vrsqrt.f32 %v238_v20 }
 0x142   :  { %v239_v40 = vadd.f32 1e-05, %v223_v38  ;;  %v240_v43 = vadd.f32 1e-05, %v224_v39 }
 0x143   :  { %v189_v46 = vpop.xlane.xlu1 %188  ;;  %v192_v47 = vpop.xlane.xlu0 %191 }
 0x144   :  { %19849 = vrsqrt.f32 %v239_v40  ;;  %v225_v48 = vmul.f32 0.015625, %v189_v46  ;;  %v226_v51 = vmul.f32 0.015625, %v192_v47 }
 0x145   :  { %19851 = vrsqrt.f32 %v240_v43 }
 0x146   :  { %v19844_v49 = vpop.eup %19843  ;;  %v241_v50 = vadd.f32 1e-05, %v225_v48  ;;  %v242_v58 = vadd.f32 1e-05, %v226_v51 }
 0x147   :  { %v195_v24 = vpop.xlane.xlu1 %194  ;;  %v268_v25 = vmul.f32 %v19844_v49, %v20676_v36  ;;  %v198_v63 = vpop.xlane.xlu0 %197 }
 0x148   :  { %19853 = vrsqrt.f32 %v241_v50  ;;  %v227_v61 = vmul.f32 0.015625, %v195_v24  ;;  %v228_v5 = vmul.f32 0.015625, %v198_v63 }
 0x149   :  { %v290_v56 = vmul.f32 %v20818_v52, %v268_v25  ;;  %19855 = vrsqrt.f32 %v242_v58 }
 0x14a   :  { %v19846_v57 = vpop.eup %19845  ;;  %v243_v4 = vadd.f32 1e-05, %v227_v61 }
 0x14b   :  { %v19848_v62 = vpop.eup %19847  ;;  %v312_v2 = vadd.f32 %v20824_v53, %v290_v56  ;;  %v269_v3 = vmul.f32 %v19846_v57, %v20684_v44  ;;  %v201_v6 = vpop.xlane.xlu1 %200 }
 0x14c   :  { %v270_v28 = vmul.f32 %v19848_v62, %v20678_v37  ;;  %19857 = vrsqrt.f32 %v243_v4  ;;  %v244_v37 = vadd.f32 1e-05, %v228_v5  ;;  %v229_v12 = vmul.f32 0.015625, %v201_v6  ;;  %v204_v13 = vpop.xlane.xlu0 %203 }
 0x14d   :  { %16026 = vmatmul.mubr.msk.f32.vlgmr.msra.gmra.mrb[0].mxu0 %vm74_vm0, %v312_v2  ;;  %v291_v36 = vmul.f32 %v20818_v52, %v269_v3  ;;  %v230_v16 = vmul.f32 0.015625, %v204_v13 }
 0x14e   :  { %v19850_v29 = vpop.eup %19849  ;;  %462 = vmatprep.mubr.f32.mxu0 %v24354_v22  ;;  %v292_v8 = vmul.f32 %v20818_v52, %v270_v28  ;;  %19859 = vrsqrt.f32 %v244_v37 }
 0x14f   :  { %v313_v7 = vadd.f32 %v20824_v53, %v291_v36  ;;  %v271_v9 = vmul.f32 %v19850_v29, %v20686_v45  ;;  %v19852_v44 = vpop.eup %19851  ;;  %v245_v45 = vadd.f32 1e-05, %v229_v12  ;;  %v207_v26 = vpop.xlane.xlu1 %206 }
 0x150   :  { %v314_v14 = vadd.f32 %v20824_v53, %v292_v8  ;;  %v272_v18 = vmul.f32 %v19852_v44, %v20694_v54  ;;  %v246_v54 = vadd.f32 1e-05, %v230_v16  ;;  %v231_v33 = vmul.f32 0.015625, %v207_v26  ;;  %v210_v34 = vpop.xlane.xlu0 %209 }
 0x151   :  { %16027 = vmatmul.mubr.msk.f32.gmra.mrb[2].mxu0 %vm74_vm0, %v313_v7  ;;  %v293_v15 = vmul.f32 %v20818_v52, %v271_v9  ;;  %19861 = vrsqrt.f32 %v245_v45  ;;  %v232_v39 = vmul.f32 0.015625, %v210_v34 }
 0x152   :  { %468 = vmatprep.mubr.f32.mxu0 %v24354_v22  ;;  %v19854_v19 = vpop.eup %19853  ;;  %v294_v30 = vmul.f32 %v20818_v52, %v272_v18  ;;  %19863 = vrsqrt.f32 %v246_v54 }
 0x153   :  { %v315_v27 = vadd.f32 %v20824_v53, %v293_v15  ;;  %v273_v31 = vmul.f32 %v19854_v19, %v20696_v55  ;;  %v19856_v32 = vpop.eup %19855  ;;  %v247_v55 = vadd.f32 1e-05, %v231_v33  ;;  %v213_v40 = vpop.xlane.xlu1 %212 }
 0x154   :  { %v316_v20 = vadd.f32 %v20824_v53, %v294_v30  ;;  %v274_v35 = vmul.f32 %v19856_v32, %v20705_v0  ;;  %v248_v0 = vadd.f32 1e-05, %v232_v39  ;;  %v233_v49 = vmul.f32 0.015625, %v213_v40  ;;  %v216_v50 = vpop.xlane.xlu0 %215 }
 0x155   :  { %16028 = vmatmul.mubr.msk.f32.gmra.mrb[4].mxu0 %vm74_vm0, %v314_v14  ;;  %v295_v21 = vmul.f32 %v20818_v52, %v273_v31  ;;  %19865 = vrsqrt.f32 %v247_v55  ;;  %v234_v57 = vmul.f32 0.015625, %v216_v50 }
 0x156   :  { %474 = vmatprep.mubr.f32.mxu0 %v24354_v22  ;;  %v19858_v38 = vpop.eup %19857  ;;  %v296_v46 = vmul.f32 %v20818_v52, %v274_v35  ;;  %19867 = vrsqrt.f32 %v248_v0 }
 0x157   :  { %v317_v43 = vadd.f32 %v20824_v53, %v295_v21  ;;  %v275_v47 = vmul.f32 %v19858_v38, %v20708_v1  ;;  %v249_v1 = vadd.f32 1e-05, %v233_v49  ;;  %v219_v58 = vpop.xlane.xlu1 %218 }
 0x158   :  { %v19860_v48 = vpop.eup %19859  ;;  %v318_v51 = vadd.f32 %v20824_v53, %v296_v46  ;;  %v235_v3 = vmul.f32 0.015625, %v219_v58 }
 0x159   :  { %16029 = vmatmul.mubr.msk.f32.gmra.mrb[6].mxu0 %vm74_vm0, %v315_v27  ;;  %v297_v24 = vmul.f32 %v20818_v52, %v275_v47  ;;  %v276_v25 = vmul.f32 %v19860_v48, %v20717_v10  ;;  %19869 = vrsqrt.f32 %v249_v1  ;;  %v250_v10 = vadd.f32 1e-05, %v234_v57 }
 0x15a   :  { %480 = vmatprep.mubr.f32.mxu0 %v24354_v22  ;;  %v251_v5 = vadd.f32 1e-05, %v235_v3 }
 0x15b   :  { %v19862_v56 = vpop.eup %19861  ;;  %v319_v61 = vadd.f32 %v20824_v53, %v297_v24  ;;  %v298_v62 = vmul.f32 %v20818_v52, %v276_v25  ;;  %19871 = vrsqrt.f32 %v250_v10 }
 0x15c   :  { %v277_v63 = vmul.f32 %v19862_v56, %v20720_v11  ;;  %v19864_v2 = vpop.eup %19863  ;;  %19873 = vrsqrt.f32 %v251_v5 }
 0x15d   :  { %16030 = vmatmul.mubr.msk.f32.gmra.mrb[8].mxu0 %vm74_vm0, %v316_v20  ;;  %v320_v28 = vadd.f32 %v20824_v53, %v298_v62  ;;  %v278_v29 = vmul.f32 %v19864_v2, %v20729_v23 }
 0x15e   :  { %486 = vmatprep.mubr.f32.mxu0 %v24354_v22  ;;  %v299_v36 = vmul.f32 %v20818_v52, %v277_v63 }
 0x15f   :  { %v19866_v4 = vpop.eup %19865  ;;  %v300_v6 = vmul.f32 %v20818_v52, %v278_v29 }
 0x160   :  { %v321_v11 = vadd.f32 %v20824_v53, %v299_v36  ;;  %v279_v7 = vmul.f32 %v19866_v4, %v20732_v17  ;;  %v19868_v8 = vpop.eup %19867 }
 0x161   :  { %16031 = vmatmul.mubr.msk.f32.gmra.mrb[10].mxu0 %vm74_vm0, %v317_v43  ;;  %v322_v23 = vadd.f32 %v20824_v53, %v300_v6  ;;  %v280_v44 = vmul.f32 %v19868_v8, %v20753_v41 }
 0x162   :  { %492 = vmatprep.mubr.f32.mxu0 %v24354_v22  ;;  %v301_v9 = vmul.f32 %v20818_v52, %v279_v7 }
 0x163   :  { %v19870_v37 = vpop.eup %19869  ;;  %v302_v17 = vmul.f32 %v20818_v52, %v280_v44 }
 0x164   :  { %v323_v12 = vadd.f32 %v20824_v53, %v301_v9  ;;  %v281_v13 = vmul.f32 %v19870_v37, %v20756_v42 }
 0x165   :  { %16032 = vmatmul.mubr.msk.f32.gmra.mrb[12].mxu0 %vm74_vm0, %v318_v51  ;;  %v19872_v14 = vpop.eup %19871  ;;  %v324_v15 = vadd.f32 %v20824_v53, %v302_v17 }
 0x166   :  { %498 = vmatprep.mubr.f32.mxu0 %v24354_v22  ;;  %v303_v41 = vmul.f32 %v20818_v52, %v281_v13  ;;  %v282_v18 = vmul.f32 %v19872_v14, %v20777_v59  ;;  %v19874_v19 = vpop.eup %19873 }
 0x167   :  { %v283_v16 = vmul.f32 %v19874_v19, %v20780_v60 }
 0x168   :  { %v325_v45 = vadd.f32 %v20824_v53, %v303_v41  ;;  %v304_v42 = vmul.f32 %v20818_v52, %v282_v18 }
 0x169   :  { %16033 = vmatmul.mubr.msk.f32.gmra.mrb[14].mxu0 %vm74_vm0, %v319_v61  ;;  %v305_v27 = vmul.f32 %v20818_v52, %v283_v16 }
 0x16a   :  { %504 = vmatprep.mubr.f32.mxu0 %v24354_v22  ;;  %v326_v26 = vadd.f32 %v20824_v53, %v304_v42 }
 0x16b   :  { %v327_v59 = vadd.f32 %v20824_v53, %v305_v27 }
 0x16d   :  { %16034 = vmatmul.mubr.msk.f32.gmra.mrb[16].mxu0 %vm74_vm0, %v320_v28 }
 0x16e   :  { %510 = vmatprep.mubr.f32.mxu0 %v24354_v22 }
 0x171   :  { %16035 = vmatmul.mubr.msk.f32.gmra.mrb[18].mxu0 %vm74_vm0, %v321_v11 }
 0x172   :  { %516 = vmatprep.mubr.f32.mxu0 %v24354_v22 }
 0x175   :  { %16036 = vmatmul.mubr.msk.f32.gmra.mrb[20].mxu0 %vm74_vm0, %v322_v23 }
 0x176   :  { %522 = vmatprep.mubr.f32.mxu0 %v24354_v22 }
 0x179   :  { %16037 = vmatmul.mubr.msk.f32.gmra.mrb[22].mxu0 %vm74_vm0, %v323_v12 }
 0x17a   :  { %528 = vmatprep.mubr.f32.mxu0 %v24354_v22 }
 0x17d   :  { %16038 = vmatmul.mubr.msk.f32.gmra.mrb[24].mxu0 %vm74_vm0, %v324_v15 }
 0x17e   :  { %534 = vmatprep.mubr.f32.mxu0 %v24354_v22 }
 0x181   :  { %16039 = vmatmul.mubr.msk.f32.gmra.mrb[26].mxu0 %vm74_vm0, %v325_v45 }
 0x182   :  { %540 = vmatprep.mubr.f32.mxu0 %v24354_v22 }
 0x185   :  { %16040 = vmatmul.mubr.msk.f32.gmra.mrb[28].mxu0 %vm74_vm0, %v326_v26 }
 0x186   :  { %546 = vmatprep.mubr.f32.mxu0 %v24354_v22 }
 0x189   :  { %16041 = vmatmul.mubr.msk.f32.gmra.mrb[30].mxu0 %vm74_vm0, %v327_v59 }
 0x220   :  { %v20904_v30 = vpop.f32.mrb[0].mxu0 }
 0x221   :  { %v460_v60 = vpop.f32.mrb[1].mxu0  ;;  %17306 = vmatprep.mubr.msk.f32.mxu1 %vm566_vm1, %v20904_v30 }
 0x224   :  { %v20908_v31 = vpop.f32.mrb[2].mxu0 }
 0x225   :  { %v466_v32 = vpop.f32.mrb[3].mxu0  ;;  %v20912_v52 = vpack.i.bf16 %v20908_v31, %v20904_v30 }
 0x226   :  { %v20914_v54 = vpack.c.bf16 %v466_v32, %v460_v60  ;;  %v20916_v33 = vpack.i.bf16 %v466_v32, %v460_v60 }
 0x227   :  { %19244 = vrot.lane.b32.xlu0 %v20912_v52, %s20487_s8 }
 0x228   :  { %24413 = vst [vmem:[#allocation8_spill] sm:$0xff] %v20916_v33  ;;  %v20920_v53 = vpop.f32.mrb[4].mxu0 }
 0x229   :  { %v472_v34 = vpop.f32.mrb[5].mxu0 }
 0x22c   :  { %v20922_v20 = vpop.f32.mrb[6].mxu0 }
 0x22d   :  { %24414 = vst [vmem:[#allocation9_spill] sm:$0xff] %v20922_v20  ;;  %v478_v21 = vpop.f32.mrb[7].mxu0  ;;  %v20926_v35 = vpack.i.bf16 %v20922_v20, %v20920_v53 }
 0x22e   :  { %v20928_v38 = vpack.c.bf16 %v478_v21, %v472_v34  ;;  %v20930_v55 = vpack.i.bf16 %v478_v21, %v472_v34 }
 0x22f   :  { %19249 = vrot.lane.b32.xlu1 %v20926_v35, %s20487_s8 }
 0x230   :  { %24415 = vst [vmem:[#allocation10_spill] sm:$0xff] %v20930_v55  ;;  %v20934_v39 = vpop.f32.mrb[8].mxu0 }
 0x231   :  { %24416 = vst [vmem:[#allocation11_spill] sm:$0xff] %v20934_v39  ;;  %v484_v40 = vpop.f32.mrb[9].mxu0 }
 0x234   :  { %v20936_v43 = vpop.f32.mrb[10].mxu0 }
 0x235   :  { %24417 = vst [vmem:[#allocation12_spill] sm:$0xff] %v20936_v43  ;;  %v490_v46 = vpop.f32.mrb[11].mxu0  ;;  %v20940_v47 = vpack.i.bf16 %v20936_v43, %v20934_v39 }
 0x236   :  { %v20942_v48 = vpack.c.bf16 %v490_v46, %v484_v40  ;;  %v20944_v0 = vpack.i.bf16 %v490_v46, %v484_v40 }
 0x237   :  { %19254 = vrot.lane.b32.xlu1 %v20940_v47, %s20487_s8 }
 0x238   :  { %24418 = vst [vmem:[#allocation13_spill] sm:$0xff] %v20944_v0  ;;  %v20948_v49 = vpop.f32.mrb[12].mxu0 }
 0x239   :  { %24419 = vst [vmem:[#allocation14_spill] sm:$0xff] %v20948_v49  ;;  %v496_v50 = vpop.f32.mrb[13].mxu0 }
 0x23c   :  { %v20950_v51 = vpop.f32.mrb[14].mxu0 }
 0x23d   :  { %24420 = vst [vmem:[#allocation15_spill] sm:$0xff] %v20950_v51  ;;  %v502_v24 = vpop.f32.mrb[15].mxu0  ;;  %v20954_v25 = vpack.i.bf16 %v20950_v51, %v20948_v49 }
 0x23e   :  { %v18482_v56 = vpack.c.bf16 %v502_v24, %v496_v50  ;;  %v20956_v1 = vpack.i.bf16 %v502_v24, %v496_v50 }
 0x23f   :  { %19259 = vrot.lane.b32.xlu1 %v20954_v25, %s20487_s8 }
 0x240   :  { %24421 = vst [vmem:[#allocation16_spill] sm:$0xff] %v20956_v1  ;;  %v20960_v57 = vpop.f32.mrb[16].mxu0  ;;  %18483 = vmatprep.subr.bf16.mxu0 %v18482_v56 }
 0x241   :  { %24422 = vst [vmem:[#allocation17_spill] sm:$0xff] %v20960_v57  ;;  %v508_v58 = vpop.f32.mrb[17].mxu0  ;;  %18485 = vmatpush3.bf16.msra.mxu0 %v18482_v56 }
 0x244   :  { %v20962_v61 = vpop.f32.mrb[18].mxu0 }
 0x245   :  { %24423 = vst [vmem:[#allocation18_spill] sm:$0xff] %v20962_v61  ;;  %v514_v62 = vpop.f32.mrb[19].mxu0  ;;  %v20966_v63 = vpack.i.bf16 %v20962_v61, %v20960_v57 }
 0x246   :  { %v20968_v2 = vpack.c.bf16 %v514_v62, %v508_v58  ;;  %v20970_v10 = vpack.i.bf16 %v514_v62, %v508_v58 }
 0x247   :  { %24424 = vst [vmem:[#allocation19_spill] sm:$0xff] %v20966_v63  ;;  %19264 = vrot.lane.b32.xlu0 %v20966_v63, %s20487_s8 }
 0x248   :  { %24425 = vst [vmem:[#allocation20_spill] sm:$0xff] %v20970_v10  ;;  %v20974_v3 = vpop.f32.mrb[20].mxu0 }
 0x249   :  { %24426 = vst [vmem:[#allocation21_spill] sm:$0xff] %v20974_v3  ;;  %v520_v28 = vpop.f32.mrb[21].mxu0 }
 0x24c   :  { %v20976_v36 = vpop.f32.mrb[22].mxu0 }
 0x24d   :  { %24427 = vst [vmem:[#allocation22_spill] sm:$0xff] %v20976_v36  ;;  %v526_v29 = vpop.f32.mrb[23].mxu0  ;;  %v20980_v4 = vpack.i.bf16 %v20976_v36, %v20974_v3 }
 0x24e   :  { %v20982_v5 = vpack.c.bf16 %v526_v29, %v520_v28  ;;  %v20984_v11 = vpack.i.bf16 %v526_v29, %v520_v28 }
 0x24f   :  { %24428 = vst [vmem:[#allocation23_spill] sm:$0xff] %v20980_v4  ;;  %19269 = vrot.lane.b32.xlu1 %v20980_v4, %s20487_s8 }
 0x250   :  { %24429 = vst [vmem:[#allocation24_spill] sm:$0xff] %v20984_v11  ;;  %v20988_v6 = vpop.f32.mrb[24].mxu0  ;;  %18491 = vmatprep.subr.bf16.mxu0 %v20982_v5 }
 0x251   :  { %24430 = vst [vmem:[#allocation25_spill] sm:$0xff] %v20988_v6  ;;  %v532_v7 = vpop.f32.mrb[25].mxu0 }
 0x254   :  { %v20991_v8 = vpop.f32.mrb[26].mxu0 }
 0x255   :  { %24431 = vst [vmem:[#allocation26_spill] sm:$0xff] %v20991_v8  ;;  %v538_v23 = vpop.f32.mrb[27].mxu0  ;;  %v20995_v9 = vpack.i.bf16 %v20991_v8, %v20988_v6 }
 0x256   :  { %v20997_v44 = vpack.c.bf16 %v538_v23, %v532_v7  ;;  %v20999_v37 = vpack.i.bf16 %v538_v23, %v532_v7 }
 0x257   :  { %24432 = vst [vmem:[#allocation27_spill] sm:$0xff] %v20995_v9  ;;  %19274 = vrot.lane.b32.xlu0 %v20995_v9, %s20487_s8 }
 0x258   :  { %24433 = vst [vmem:[#allocation28_spill] sm:$0xff] %v20999_v37  ;;  %v21003_v12 = vpop.f32.mrb[28].mxu0 }
 0x259   :  { %24434 = vst [vmem:[#allocation29_spill] sm:$0xff] %v21003_v12  ;;  %v544_v17 = vpop.f32.mrb[29].mxu0 }
 0x25c   :  { %v21005_v13 = vpop.f32.mrb[30].mxu0 }
 0x25d   :  { %24435 = vst [vmem:[#allocation30_spill] sm:$0xff] %v21005_v13  ;;  %v550_v14 = vpop.f32.mrb[31].mxu0  ;;  %v21009_v15 = vpack.i.bf16 %v21005_v13, %v21003_v12 }
 0x25e   :  { %v21011_v41 = vpack.c.bf16 %v550_v14, %v544_v17  ;;  %v21013_v18 = vpack.i.bf16 %v550_v14, %v544_v17 }
 0x25f   :  { %24436 = vst [vmem:[#allocation31_spill] sm:$0xff] %v21009_v15  ;;  %19279 = vrot.lane.b32.xlu1 %v21009_v15, %s20487_s8 }
 0x260   :  { %24437 = vst [vmem:[#allocation32_spill] sm:$0xff] %v21013_v18 }
 0x299   :  { %v19245_v19 = vpop.permute.xlu0 %19244 }
 0x29a   :  { %v19247_v45 = vunpack.i.h.bf16 %v19245_v19  ;;  %v19246_v42 = vunpack.i.l.bf16 %v19245_v19 }
 0x29c   :  { %v18422_v26 = vpack.c.bf16 %v19247_v45, %v19246_v42 }
 0x29e   :  { %18424 = vmatprep.subr.msk.bf16.mxu1 %vm21019_vm2, %v18422_v26 }
 0x29f   :  { %18427 = vmatpush3.bf16.xpose.msk.msra.mxu1 %vm21019_vm2, %v18422_v26 }
 0x2a1   :  { %v19250_v27 = vpop.permute.xlu1 %19249 }
 0x2a2   :  { %v19252_v59 = vunpack.i.h.bf16 %v19250_v27  ;;  %v19251_v60 = vunpack.i.l.bf16 %v19250_v27 }
 0x2a4   :  { %v18428_v32 = vpack.c.bf16 %v19252_v59, %v19251_v60 }
 0x2a6   :  { %17307 = vmatmul.mubr.msk.f32.vlgmr.msra.gmra.mrb[0].mxu1 %vm566_vm1, %v20908_v31  ;;  %18430 = vmatprep.subr.msk.bf16.mxu1 %vm21019_vm2, %v18428_v32 }
 0x2a7   :  { %18433 = vmatpush3.bf16.xpose.msk.msra.mxu1 %vm21019_vm2, %v18428_v32  ;;  %17313 = vmatprep.mubr.msk.f32.mxu1 %vm566_vm1, %v20920_v53 }
 0x2a9   :  { %v19255_v34 = vpop.permute.xlu1 %19254 }
 0x2aa   :  { %v19257_v21 = vunpack.i.h.bf16 %v19255_v34  ;;  %v19256_v40 = vunpack.i.l.bf16 %v19255_v34 }
 0x2ac   :  { %v18434_v46 = vpack.c.bf16 %v19257_v21, %v19256_v40  ;;  %v553_v21 = vlaneseq }
 0x2ae   :  { %17314 = vmatmul.mubr.msk.f32.vlgmr.msra.gmra.mrb[2].mxu1 %vm566_vm1, %v20922_v20  ;;  %18436 = vmatprep.subr.msk.bf16.mxu1 %vm21019_vm2, %v18434_v46  ;;  %v21088_v40 = vshrl.u32 %v553_v21, 7 }
 0x2af   :  { %18439 = vmatpush3.bf16.xpose.msk.msra.mxu1 %vm21019_vm2, %v18434_v46  ;;  %17320 = vmatprep.mubr.msk.f32.mxu1 %vm566_vm1, %v20934_v39 }
 0x2b0   :  { %24440 = vst [vmem:[#allocation33_spill] sm:$0xff] %v21088_v40  ;;  %v555_v46 = vadd.s32 8, %v21088_v40 }
 0x2b1   :  { %v19260_v50 = vpop.permute.xlu1 %19259 }
 0x2b2   :  { %v19262_v24 = vunpack.i.h.bf16 %v19260_v50  ;;  %v19261_v56 = vunpack.i.l.bf16 %v19260_v50  ;;  %v557_v50 = vand.u32 127, %v553_v21 }
 0x2b4   :  { %v18440_v58 = vpack.c.bf16 %v19262_v24, %v19261_v56  ;;  %vm21091_vm3 = vcmp.le.s32.totalorder %v557_v50, %v555_v46  ;;  %v24441_v56 = vmov 0  ;;  %vm21096_vm5 = vcmp.le.s32.totalorder %v557_v50, %v21088_v40 }
 0x2b5   :  { %v24442_v56 = vsel %vm21091_vm3, 4294967295, %v24441_v56 }
 0x2b6   :  { %17321 = vmatmul.mubr.msk.f32.vlgmr.msra.gmra.mrb[4].mxu1 %vm566_vm1, %v20936_v43  ;;  %18442 = vmatprep.subr.msk.bf16.mxu1 %vm21019_vm2, %v18440_v58  ;;  %24443 = vst [vmem:[#allocation34_spill] sm:$0xff] %v24442_v56 }
 0x2b7   :  { %18445 = vmatpush3.bf16.xpose.msk.msra.mxu1 %vm21019_vm2, %v18440_v58  ;;  %17327 = vmatprep.mubr.msk.f32.mxu1 %vm566_vm1, %v20948_v49 }
 0x2b9   :  { %v19265_v62 = vpop.permute.xlu0 %19264 }
 0x2ba   :  { %v19267_v28 = vunpack.i.h.bf16 %v19265_v62  ;;  %v19266_v29 = vunpack.i.l.bf16 %v19265_v62 }
 0x2bc   :  { %v18446_v7 = vpack.c.bf16 %v19267_v28, %v19266_v29  ;;  %v24444_v28 = vmov 0 }
 0x2bd   :  { %v24445_v28 = vsel %vm21096_vm5, 4294967295, %v24444_v28 }
 0x2be   :  { %17328 = vmatmul.mubr.msk.f32.vlgmr.msra.gmra.mrb[6].mxu1 %vm566_vm1, %v20950_v51  ;;  %18448 = vmatprep.subr.msk.bf16.mxu1 %vm21019_vm2, %v18446_v7  ;;  %24446 = vst [vmem:[#allocation35_spill] sm:$0xff] %v24445_v28 }
 0x2bf   :  { %18451 = vmatpush3.bf16.xpose.msk.msra.mxu1 %vm21019_vm2, %v18446_v7  ;;  %17334 = vmatprep.mubr.msk.f32.mxu1 %vm566_vm1, %v20960_v57 }
 0x2c1   :  { %v19270_v23 = vpop.permute.xlu1 %19269 }
 0x2c2   :  { %v19272_v17 = vunpack.i.h.bf16 %v19270_v23  ;;  %v19271_v14 = vunpack.i.l.bf16 %v19270_v23 }
 0x2c4   :  { %v18452_v19 = vpack.c.bf16 %v19272_v17, %v19271_v14 }
 0x2c6   :  { %17335 = vmatmul.mubr.msk.f32.vlgmr.msra.gmra.mrb[8].mxu1 %vm566_vm1, %v20962_v61  ;;  %18454 = vmatprep.subr.msk.bf16.mxu1 %vm21019_vm2, %v18452_v19 }
 0x2c7   :  { %18457 = vmatpush3.bf16.xpose.msk.msra.mxu1 %vm21019_vm2, %v18452_v19  ;;  %17341 = vmatprep.mubr.msk.f32.mxu1 %vm566_vm1, %v20974_v3 }
 0x2c9   :  { %v19275_v45 = vpop.permute.xlu0 %19274 }
 0x2ca   :  { %v19277_v42 = vunpack.i.h.bf16 %v19275_v45  ;;  %v19276_v26 = vunpack.i.l.bf16 %v19275_v45 }
 0x2cc   :  { %v18458_v27 = vpack.c.bf16 %v19277_v42, %v19276_v26 }
 0x2ce   :  { %17342 = vmatmul.mubr.msk.f32.vlgmr.msra.gmra.mrb[10].mxu1 %vm566_vm1, %v20976_v36  ;;  %18460 = vmatprep.subr.msk.bf16.mxu1 %vm21019_vm2, %v18458_v27 }
 0x2cf   :  { %18463 = vmatpush3.bf16.xpose.msk.msra.mxu1 %vm21019_vm2, %v18458_v27  ;;  %17348 = vmatprep.mubr.msk.f32.mxu1 %vm566_vm1, %v20988_v6 }
 0x2d1   :  { %v19280_v59 = vpop.permute.xlu1 %19279 }
 0x2d2   :  { %v19282_v60 = vunpack.i.h.bf16 %v19280_v59  ;;  %v19281_v32 = vunpack.i.l.bf16 %v19280_v59 }
 0x2d4   :  { %v18464_v34 = vpack.c.bf16 %v19282_v60, %v19281_v32 }
 0x2d6   :  { %17349 = vmatmul.mubr.msk.f32.vlgmr.msra.gmra.mrb[12].mxu1 %vm566_vm1, %v20991_v8  ;;  %18466 = vmatprep.subr.msk.bf16.mxu1 %vm21019_vm2, %v18464_v34 }
 0x2d7   :  { %18469 = vmatpush3.bf16.xpose.msk.msra.mxu1 %vm21019_vm2, %v18464_v34  ;;  %17355 = vmatprep.mubr.msk.f32.mxu1 %vm566_vm1, %v21003_v12 }
 0x2d8   :  { %18471 = vmatprep.subr.bf16.mxu1 %v20914_v54 }
 0x2de   :  { %17356 = vmatmul.mubr.msk.f32.vlgmr.msra.gmra.mrb[14].mxu1 %vm566_vm1, %v21005_v13 }
 0x2df   :  { %18473 = vmatpush3.bf16.msra.mxu1 %v20914_v54 }
 0x2e0   :  { %18475 = vmatprep.subr.bf16.mxu1 %v20928_v38 }
 0x379   :  { %v17308_v24 = vpop.f32.mrb[0].mxu1 }
 0x37a   :  { %v1274_v58 = vmul.f32 0.125, %v17308_v24  ;;  %v641_v62 = vpop.f32.mrb[1].mxu1 }
 0x37b   :  { %v1273_v54 = vmul.f32 0.125, %v641_v62 }
 0x37c   :  { %v21102_v29 = vsel %vm21091_vm3, %v1274_v58, -inf }
 0x37d   :  { %v1313_v7 = vsel %vm1309_vm4, %v21102_v29, -inf  ;;  %v21108_v23 = vsel %vm21096_vm5, %v1273_v54, -inf }
 0x37e   :  { %1314 = vmax.xlane.f32.xlu1 %v1313_v7  ;;  %v1310_v17 = vsel %vm1309_vm4, %v21108_v23, -inf }
 0x37f   :  { %1311 = vmax.xlane.f32.xlu0 %v1310_v17 }
 0x381   :  { %v17315_v14 = vpop.f32.mrb[2].mxu1 }
 0x382   :  { %v1276_v19 = vmul.f32 0.125, %v17315_v14  ;;  %v730_v45 = vpop.f32.mrb[3].mxu1 }
 0x383   :  { %v1275_v42 = vmul.f32 0.125, %v730_v45 }
 0x384   :  { %v21114_v26 = vsel %vm21091_vm3, %v1276_v19, -inf }
 0x385   :  { %v1319_v27 = vsel %vm1309_vm4, %v21114_v26, -inf  ;;  %v21120_v59 = vsel %vm21096_vm5, %v1275_v42, -inf }
 0x386   :  { %1320 = vmax.xlane.f32.xlu0 %v1319_v27  ;;  %v1316_v32 = vsel %vm1309_vm4, %v21120_v59, -inf }
 0x389   :  { %v17322_v60 = vpop.f32.mrb[4].mxu1 }
 0x38a   :  { %v1278_v34 = vmul.f32 0.125, %v17322_v60  ;;  %1317 = vmax.xlane.f32.xlu0 %v1316_v32  ;;  %v819_v21 = vpop.f32.mrb[5].mxu1 }
 0x38b   :  { %v1277_v46 = vmul.f32 0.125, %v819_v21 }
 0x38c   :  { %v21126_v50 = vsel %vm21091_vm3, %v1278_v34, -inf }
 0x38d   :  { %v1325_v24 = vsel %vm1309_vm4, %v21126_v50, -inf  ;;  %v21132_v58 = vsel %vm21096_vm5, %v1277_v46, -inf }
 0x38e   :  { %1326 = vmax.xlane.f32.xlu1 %v1325_v24  ;;  %v1322_v62 = vsel %vm1309_vm4, %v21132_v58, -inf }
 0x38f   :  { %1323 = vmax.xlane.f32.xlu0 %v1322_v62 }
 0x391   :  { %v17329_v54 = vpop.f32.mrb[6].mxu1 }
 0x392   :  { %v1280_v7 = vmul.f32 0.125, %v17329_v54  ;;  %v908_v17 = vpop.f32.mrb[7].mxu1 }
 0x393   :  { %v1279_v14 = vmul.f32 0.125, %v908_v17 }
 0x394   :  { %v21138_v19 = vsel %vm21091_vm3, %v1280_v7, -inf }
 0x395   :  { %v1331_v45 = vsel %vm1309_vm4, %v21138_v19, -inf  ;;  %v21144_v42 = vsel %vm21096_vm5, %v1279_v14, -inf }
 0x396   :  { %1332 = vmax.xlane.f32.xlu0 %v1331_v45  ;;  %v1328_v60 = vsel %vm1309_vm4, %v21144_v42, -inf }
 0x399   :  { %v17336_v27 = vpop.f32.mrb[8].mxu1 }
 0x39a   :  { %v1282_v32 = vmul.f32 0.125, %v17336_v27  ;;  %1329 = vmax.xlane.f32.xlu0 %v1328_v60  ;;  %v997_v34 = vpop.f32.mrb[9].mxu1 }
 0x39b   :  { %v1281_v21 = vmul.f32 0.125, %v997_v34 }
 0x39c   :  { %v21150_v46 = vsel %vm21091_vm3, %v1282_v32, -inf }
 0x39d   :  { %v1337_v24 = vsel %vm1309_vm4, %v21150_v46, -inf  ;;  %v21156_v62 = vsel %vm21096_vm5, %v1281_v21, -inf }
 0x39e   :  { %1338 = vmax.xlane.f32.xlu1 %v1337_v24  ;;  %v1334_v7 = vsel %vm1309_vm4, %v21156_v62, -inf }
 0x3a1   :  { %v17343_v54 = vpop.f32.mrb[10].mxu1 }
 0x3a2   :  { %v1284_v17 = vmul.f32 0.125, %v17343_v54  ;;  %1335 = vmax.xlane.f32.xlu1 %v1334_v7  ;;  %v1086_v14 = vpop.f32.mrb[11].mxu1 }
 0x3a3   :  { %v1283_v45 = vmul.f32 0.125, %v1086_v14 }
 0x3a4   :  { %v21162_v27 = vsel %vm21091_vm3, %v1284_v17, -inf }
 0x3a5   :  { %v1343_v60 = vsel %vm1309_vm4, %v21162_v27, -inf  ;;  %v21168_v32 = vsel %vm21096_vm5, %v1283_v45, -inf }
 0x3a6   :  { %1344 = vmax.xlane.f32.xlu1 %v1343_v60  ;;  %v1340_v34 = vsel %vm1309_vm4, %v21168_v32, -inf }
 0x3a7   :  { %1341 = vmax.xlane.f32.xlu0 %v1340_v34 }
 0x3a9   :  { %v17350_v21 = vpop.f32.mrb[12].mxu1 }
 0x3aa   :  { %v1286_v24 = vmul.f32 0.125, %v17350_v21  ;;  %v1175_v54 = vpop.f32.mrb[13].mxu1 }
 0x3ab   :  { %v1285_v7 = vmul.f32 0.125, %v1175_v54 }
 0x3ac   :  { %v21174_v17 = vsel %vm21091_vm3, %v1286_v24, -inf }
 0x3ad   :  { %v1349_v14 = vsel %vm1309_vm4, %v21174_v17, -inf  ;;  %v21180_v45 = vsel %vm21096_vm5, %v1285_v7, -inf }
 0x3ae   :  { %1350 = vmax.xlane.f32.xlu1 %v1349_v14  ;;  %v1346_v60 = vsel %vm1309_vm4, %v21180_v45, -inf }
 0x3af   :  { %1347 = vmax.xlane.f32.xlu0 %v1346_v60 }
 0x3b1   :  { %v17357_v34 = vpop.f32.mrb[14].mxu1 }
 0x3b2   :  { %v1288_v21 = vmul.f32 0.125, %v17357_v34  ;;  %v1264_v22 = vpop.f32.mrb[15].mxu1 }
 0x3b3   :  { %v1287_v54 = vmul.f32 0.125, %v1264_v22 }
 0x3b4   :  { %v21186_v24 = vsel %vm21091_vm3, %v1288_v21, -inf }
 0x3b5   :  { %v1355_v40 = vsel %vm1309_vm4, %v21186_v24, -inf  ;;  %v21192_v7 = vsel %vm21096_vm5, %v1287_v54, -inf }
 0x3b6   :  { %1356 = vmax.xlane.f32.xlu1 %v1355_v40  ;;  %v1352_v14 = vsel %vm1309_vm4, %v21192_v7, -inf }
 0x3b7   :  { %1353 = vmax.xlane.f32.xlu0 %v1352_v14 }
 0x40b   :  { %v1315_v60 = vpop.xlane.xlu1 %1314 }
 0x40c   :  { %v1359_v34 = vsub.f32 %v21102_v29, %v1315_v60  ;;  %v1312_v22 = vpop.xlane.xlu0 %1311 }
 0x40d   :  { %v1358_v10 = vsub.f32 %v21108_v23, %v1312_v22 }
 0x40e   :  { %v1376_v21 = vmul.f32 1.442695, %v1359_v34 }
 0x40f   :  { %v1374_v37 = vmul.f32 1.442695, %v1358_v10 }
 0x410   :  { %19875 = vpow2.f32 %v1376_v21 }
 0x411   :  { %19877 = vpow2.f32 %v1374_v37 }
 0x413   :  { %v1321_v11 = vpop.xlane.xlu0 %1320 }
 0x414   :  { %v1361_v18 = vsub.f32 %v21114_v26, %v1321_v11 }
 0x416   :  { %v1380_v54 = vmul.f32 1.442695, %v1361_v18 }
 0x417   :  { %v1318_v1 = vpop.xlane.xlu0 %1317 }
 0x418   :  { %19879 = vpow2.f32 %v1380_v54  ;;  %v1360_v40 = vsub.f32 %v21120_v59, %v1318_v1 }
 0x41a   :  { %v21200_v0 = vpop.eup %19875  ;;  %v1378_v14 = vmul.f32 1.442695, %v1360_v40 }
 0x41b   :  { %v21202_v8 = vpop.eup %19877  ;;  %v1327_v29 = vpop.xlane.xlu1 %1326  ;;  %v1409_v23 = vsel %vm1309_vm4, %v21200_v0, 0.0 }
 0x41c   :  { %19881 = vpow2.f32 %v1378_v14  ;;  %v1363_v10 = vsub.f32 %v21126_v50, %v1327_v29  ;;  %v1324_v37 = vpop.xlane.xlu0 %1323  ;;  %1410 = vadd.xlane.f32.xlu1 %v1409_v23  ;;  %v1406_v11 = vsel %vm1309_vm4, %v21202_v8, 0.0 }
 0x41d   :  { %v1362_v18 = vsub.f32 %v21132_v58, %v1324_v37  ;;  %1407 = vadd.xlane.f32.xlu0 %v1406_v11 }
 0x41e   :  { %v1384_v1 = vmul.f32 1.442695, %v1363_v10 }
 0x41f   :  { %v1382_v26 = vmul.f32 1.442695, %v1362_v18 }
 0x420   :  { %19883 = vpow2.f32 %v1384_v1 }
 0x421   :  { %19885 = vpow2.f32 %v1382_v26 }
 0x422   :  { %v21210_v59 = vpop.eup %19879 }
 0x423   :  { %v1333_v60 = vpop.xlane.xlu0 %1332  ;;  %v1415_v34 = vsel %vm1309_vm4, %v21210_v59, 0.0 }
 0x424   :  { %v1365_v50 = vsub.f32 %v21138_v19, %v1333_v60  ;;  %1416 = vadd.xlane.f32.xlu1 %v1415_v34 }
 0x426   :  { %v21215_v22 = vpop.eup %19881  ;;  %v1388_v21 = vmul.f32 1.442695, %v1365_v50 }
 0x427   :  { %v1330_v54 = vpop.xlane.xlu0 %1329  ;;  %v1412_v58 = vsel %vm1309_vm4, %v21215_v22, 0.0 }
 0x428   :  { %19887 = vpow2.f32 %v1388_v21  ;;  %v1364_v40 = vsub.f32 %v21144_v42, %v1330_v54  ;;  %1413 = vadd.xlane.f32.xlu0 %v1412_v58 }
 0x42a   :  { %v21220_v14 = vpop.eup %19883  ;;  %v1386_v29 = vmul.f32 1.442695, %v1364_v40 }
 0x42b   :  { %v21222_v23 = vpop.eup %19885  ;;  %v1339_v10 = vpop.xlane.xlu1 %1338  ;;  %v1421_v19 = vsel %vm1309_vm4, %v21220_v14, 0.0 }
 0x42c   :  { %19889 = vpow2.f32 %v1386_v29  ;;  %v1367_v37 = vsub.f32 %v21150_v46, %v1339_v10  ;;  %1422 = vadd.xlane.f32.xlu1 %v1421_v19  ;;  %v1418_v11 = vsel %vm1309_vm4, %v21222_v23, 0.0 }
 0x42d   :  { %1419 = vadd.xlane.f32.xlu0 %v1418_v11 }
 0x42e   :  { %v1392_v18 = vmul.f32 1.442695, %v1367_v37 }
 0x42f   :  { %v1336_v42 = vpop.xlane.xlu1 %1335 }
 0x430   :  { %19891 = vpow2.f32 %v1392_v18  ;;  %v1366_v1 = vsub.f32 %v21156_v62, %v1336_v42 }
 0x432   :  { %v21230_v26 = vpop.eup %19887  ;;  %v1390_v60 = vmul.f32 1.442695, %v1366_v1 }
 0x433   :  { %v1345_v34 = vpop.xlane.xlu1 %1344  ;;  %v1427_v50 = vsel %vm1309_vm4, %v21230_v26, 0.0 }
 0x434   :  { %19893 = vpow2.f32 %v1390_v60  ;;  %v1369_v46 = vsub.f32 %v21162_v27, %v1345_v34  ;;  %v1342_v21 = vpop.xlane.xlu0 %1341  ;;  %1428 = vadd.xlane.f32.xlu0 %v1427_v50 }
 0x435   :  { %v1368_v54 = vsub.f32 %v21168_v32, %v1342_v21 }
 0x436   :  { %v21236_v58 = vpop.eup %19889  ;;  %v1396_v40 = vmul.f32 1.442695, %v1369_v46 }
 0x437   :  { %v1394_v29 = vmul.f32 1.442695, %v1368_v54  ;;  %v1424_v62 = vsel %vm1309_vm4, %v21236_v58, 0.0 }
 0x438   :  { %19895 = vpow2.f32 %v1396_v40  ;;  %1425 = vadd.xlane.f32.xlu0 %v1424_v62 }
 0x439   :  { %19897 = vpow2.f32 %v1394_v29 }
 0x43a   :  { %v21240_v10 = vpop.eup %19891 }
 0x43b   :  { %v1433_v19 = vsel %vm1309_vm4, %v21240_v10, 0.0  ;;  %v1351_v50 = vpop.xlane.xlu1 %1350 }
 0x43c   :  { %1434 = vadd.xlane.f32.xlu1 %v1433_v19  ;;  %v1348_v1 = vpop.xlane.xlu0 %1347  ;;  %v1371_v54 = vsub.f32 %v21174_v17, %v1351_v50 }
 0x43d   :  { %v1370_v60 = vsub.f32 %v21180_v45, %v1348_v1 }
 0x43e   :  { %v21244_v27 = vpop.eup %19893  ;;  %v1400_v62 = vmul.f32 1.442695, %v1371_v54 }
 0x43f   :  { %v1430_v32 = vsel %vm1309_vm4, %v21244_v27, 0.0  ;;  %v1398_v46 = vmul.f32 1.442695, %v1370_v60 }
 0x440   :  { %1431 = vadd.xlane.f32.xlu1 %v1430_v32 }
 0x441   :  { %19899 = vpow2.f32 %v1398_v46 }
 0x442   :  { %v21248_v37 = vpop.eup %19895 }
 0x443   :  { %v21250_v11 = vpop.eup %19897  ;;  %v1439_v18 = vsel %vm1309_vm4, %v21248_v37, 0.0  ;;  %v1357_v40 = vpop.xlane.xlu1 %1356 }
 0x444   :  { %1440 = vadd.xlane.f32.xlu1 %v1439_v18  ;;  %v1436_v42 = vsel %vm1309_vm4, %v21250_v11, 0.0  ;;  %v1354_v34 = vpop.xlane.xlu0 %1353  ;;  %v1373_v19 = vsub.f32 %v21186_v24, %v1357_v40 }
 0x445   :  { %1437 = vadd.xlane.f32.xlu0 %v1436_v42  ;;  %v1372_v21 = vsub.f32 %v21192_v7, %v1354_v34 }
 0x446   :  { %v1404_v32 = vmul.f32 1.442695, %v1373_v19 }
 0x447   :  { %v1402_v29 = vmul.f32 1.442695, %v1372_v21 }
 0x449   :  { %19901 = vpow2.f32 %v1402_v29 }
 0x44a   :  { %19903 = vpow2.f32 %v1400_v62 }
 0x44b   :  { %v21268_v18 = vpop.eup %19899  ;;  %19905 = vpow2.f32 %v1404_v32 }
 0x44c   :  { %v1442_v45 = vsel %vm1309_vm4, %v21268_v18, 0.0 }
 0x453   :  { %v21272_v42 = vpop.eup %19901 }
 0x454   :  { %v21274_v7 = vpop.eup %19903  ;;  %v1448_v17 = vsel %vm1309_vm4, %v21272_v42, 0.0 }
 0x455   :  { %19289 = vrot.lane.b32.xlu1 %v20926_v35, %s20488_s9  ;;  %v1445_v24 = vsel %vm1309_vm4, %v21274_v7, 0.0  ;;  %v21280_v1 = vpop.eup %19905 }
 0x456   :  { %v1451_v60 = vsel %vm1309_vm4, %v21280_v1, 0.0 }
 0x459   :  { %19294 = vrot.lane.b32.xlu1 %v20940_v47, %s20488_s9 }
 0x45b   :  { %19284 = vrot.lane.b32.xlu0 %v20912_v52, %s20488_s9 }
 0x45d   :  { %2135 = vrot.lane.b32.xlu1 %v20904_v30, %s20489_s16 }
 0x47a   :  { %1443 = vadd.xlane.f32.xlu0 %v1442_v45 }
 0x47e   :  { %1449 = vadd.xlane.f32.xlu0 %v1448_v17 }
 0x481   :  { %1446 = vadd.xlane.f32.xlu1 %v1445_v24 }
 0x485   :  { %1452 = vadd.xlane.f32.xlu1 %v1451_v60 }
 0x494   :  { %2137 = vrot.lane.b32.xlu0 %v20908_v31, %s20489_s16 }
 0x496   :  { %2226 = vrot.lane.b32.xlu1 %v20920_v53, %s20489_s16 }
 0x498   :  { %2228 = vrot.lane.b32.xlu0 %v20922_v20, %s20489_s16 }
 0x49a   :  { %2317 = vrot.lane.b32.xlu1 %v20934_v39, %s20489_s16 }
 0x49c   :  { %2319 = vrot.lane.b32.xlu0 %v20936_v43, %s20489_s16 }
 0x49e   :  { %19299 = vrot.lane.b32.xlu1 %v20954_v25, %s20488_s9 }
 0x4a0   :  { %19304 = vrot.lane.b32.xlu0 %v20980_v4, %s20488_s9 }
 0x4a2   :  { %2408 = vrot.lane.b32.xlu1 %v20948_v49, %s20489_s16 }
 0x4a4   :  { %2410 = vrot.lane.b32.xlu0 %v20950_v51, %s20489_s16 }
 0x4a6   :  { %19309 = vrot.lane.b32.xlu1 %v21009_v15, %s20488_s9 }
 0x4a8   :  { %2590 = vrot.lane.b32.xlu0 %v20974_v3, %s20489_s16 }
 0x4a9   :  { %v1411_v34 = vpop.xlane.xlu1 %1410 }
 0x4aa   :  { %19907 = vrcp.f32 %v1411_v34  ;;  %2592 = vrot.lane.b32.xlu1 %v20976_v36, %s20489_s16  ;;  %v1408_v50 = vpop.xlane.xlu0 %1407 }
 0x4ab   :  { %19909 = vrcp.f32 %v1408_v50 }
 0x4ac   :  { %2772 = vrot.lane.b32.xlu0 %v21003_v12, %s20489_s16 }
 0x4ae   :  { %2774 = vrot.lane.b32.xlu1 %v21005_v13, %s20489_s16 }
 0x4b1   :  { %v1417_v46 = vpop.xlane.xlu1 %1416 }
 0x4b2   :  { %19911 = vrcp.f32 %v1417_v46 }
 0x4b4   :  { %v19908_v21 = vpop.eup %19907 }
 0x4b5   :  { %v19910_v54 = vpop.eup %19909  ;;  %v1414_v40 = vpop.xlane.xlu0 %1413  ;;  %v1457_v62 = vmul.f32 %v19908_v21, %v21200_v0 }
 0x4b6   :  { %19913 = vrcp.f32 %v1414_v40  ;;  %v1455_v29 = vmul.f32 %v19910_v54, %v21202_v8 }
 0x4b8   :  { %17362 = vmatprep.mubr.msk.f32.mxu1 %vm1309_vm4, %v1455_v29 }
 0x4b9   :  { %v1423_v19 = vpop.xlane.xlu1 %1422  ;;  %17363 = vmatmul.mubr.msk.f32.vlgmr.msra.gmra.mrb[16].mxu1 %vm1309_vm4, %v1457_v62 }
 0x4ba   :  { %19915 = vrcp.f32 %v1423_v19  ;;  %18477 = vmatpush3.bf16.msra.mxu1 %v20928_v38  ;;  %v1420_v32 = vpop.xlane.xlu0 %1419 }
 0x4bb   :  { %18479 = vmatprep.subr.bf16.mxu1 %v20942_v48  ;;  %19917 = vrcp.f32 %v1420_v32 }
 0x4bc   :  { %v19912_v45 = vpop.eup %19911 }
 0x4bd   :  { %v1461_v8 = vmul.f32 %v19912_v45, %v21210_v59 }
 0x4c0   :  { %v19914_v17 = vpop.eup %19913 }
 0x4c1   :  { %v1429_v24 = vpop.xlane.xlu0 %1428  ;;  %v1459_v60 = vmul.f32 %v19914_v17, %v21215_v22 }
 0x4c2   :  { %19919 = vrcp.f32 %v1429_v24 }
 0x4c3   :  { %17369 = vmatprep.mubr.msk.f32.mxu1 %vm1309_vm4, %v1459_v60 }
 0x4c4   :  { %v19916_v0 = vpop.eup %19915  ;;  %17370 = vmatmul.mubr.msk.f32.vlgmr.msra.gmra.mrb[18].mxu1 %vm1309_vm4, %v1461_v8 }
 0x4c5   :  { %v19918_v34 = vpop.eup %19917  ;;  %18481 = vmatpush3.bf16.msra.mxu1 %v20942_v48  ;;  %v1426_v38 = vpop.xlane.xlu0 %1425  ;;  %v1465_v46 = vmul.f32 %v19916_v0, %v21220_v14 }
 0x4c6   :  { %18487 = vmatprep.subr.bf16.mxu1 %v20968_v2  ;;  %19921 = vrcp.f32 %v1426_v38  ;;  %v1463_v50 = vmul.f32 %v19918_v34, %v21222_v23 }
 0x4c8   :  { %17376 = vmatprep.mubr.msk.f32.mxu1 %vm1309_vm4, %v1463_v50 }
 0x4c9   :  { %v1435_v59 = vpop.xlane.xlu1 %1434  ;;  %17377 = vmatmul.mubr.msk.f32.vlgmr.msra.gmra.mrb[20].mxu1 %vm1309_vm4, %v1465_v46 }
 0x4ca   :  { %18489 = vmatpush3.bf16.msra.mxu1 %v20968_v2  ;;  %19923 = vrcp.f32 %v1435_v59 }
 0x4cb   :  { %18495 = vmatprep.subr.bf16.mxu1 %v20997_v44 }
 0x4cc   :  { %v19920_v48 = vpop.eup %19919 }
 0x4cd   :  { %v1432_v22 = vpop.xlane.xlu1 %1431  ;;  %v1469_v23 = vmul.f32 %v19920_v48, %v21230_v26 }
 0x4ce   :  { %19925 = vrcp.f32 %v1432_v22 }
 0x4d0   :  { %v19922_v21 = vpop.eup %19921 }
 0x4d1   :  { %v1441_v54 = vpop.xlane.xlu1 %1440  ;;  %v1467_v40 = vmul.f32 %v19922_v21, %v21236_v58 }
 0x4d2   :  { %19927 = vrcp.f32 %v1441_v54  ;;  %v1438_v14 = vpop.xlane.xlu0 %1437 }
 0x4d3   :  { %19929 = vrcp.f32 %v1438_v14  ;;  %17383 = vmatprep.mubr.msk.f32.mxu0 %vm1309_vm4, %v1467_v40 }
 0x4d4   :  { %17384 = vmatmul.mubr.msk.f32.vlgmr.msra.gmra.mrb[32].mxu0 %vm1309_vm4, %v1469_v23  ;;  %v19924_v29 = vpop.eup %19923 }
 0x4d5   :  { %18493 = vmatpush3.bf16.msra.mxu0 %v20982_v5  ;;  %v19290_v45 = vpop.permute.xlu1 %19289  ;;  %v1473_v26 = vmul.f32 %v19924_v29, %v21240_v10 }
 0x4d6   :  { %18499 = vmatprep.subr.bf16.mxu0 %v21011_v41  ;;  %v19285_v2 = vpop.permute.xlu0 %19284  ;;  %v19292_v5 = vunpack.i.h.bf16 %v19290_v45  ;;  %v19291_v8 = vunpack.i.l.bf16 %v19290_v45 }
 0x4d7   :  { %v19287_v19 = vunpack.i.h.bf16 %v19285_v2  ;;  %v19286_v32 = vunpack.i.l.bf16 %v19285_v2 }
 0x4d8   :  { %v19926_v62 = vpop.eup %19925  ;;  %v18508_v10 = vpack.c.bf16 %v19292_v5, %v19291_v8 }
 0x4d9   :  { %v1471_v58 = vmul.f32 %v19926_v62, %v21244_v27  ;;  %v18502_v24 = vpack.c.bf16 %v19287_v19, %v19286_v32  ;;  %v19295_v34 = vpop.permute.xlu1 %19294 }
 0x4da   :  { %v19297_v40 = vunpack.i.h.bf16 %v19295_v34  ;;  %v19296_v23 = vunpack.i.l.bf16 %v19295_v34 }
 0x4db   :  { %17390 = vmatprep.mubr.msk.f32.mxu1 %vm1309_vm4, %v1471_v58 }
 0x4dc   :  { %v19928_v17 = vpop.eup %19927  ;;  %17391 = vmatmul.mubr.msk.f32.vlgmr.msra.gmra.mrb[22].mxu1 %vm1309_vm4, %v1473_v26  ;;  %v18514_v19 = vpack.c.bf16 %v19297_v40, %v19296_v23 }
 0x4dd   :  { %v19930_v60 = vpop.eup %19929  ;;  %18497 = vmatpush3.bf16.msra.mxu1 %v20997_v44  ;;  %v1477_v27 = vmul.f32 %v19928_v17, %v21248_v37  ;;  %v2136_v44 = vpop.permute.xlu1 %2135 }
 0x4de   :  { %18504 = vmatprep.subr.msk.bf16.mxu1 %vm21019_vm2, %v18502_v24  ;;  %v1475_v0 = vmul.f32 %v19930_v60, %v21250_v11 }
 0x4e0   :  { %17397 = vmatprep.mubr.msk.f32.mxu0 %vm1309_vm4, %v1475_v0 }
 0x4e1   :  { %17398 = vmatmul.mubr.msk.f32.vlgmr.msra.gmra.mrb[34].mxu0 %vm1309_vm4, %v1477_v27 }
 0x4e2   :  { %18501 = vmatpush3.bf16.msra.mxu0 %v21011_v41 }
 0x4e3   :  { %18510 = vmatprep.subr.msk.bf16.mxu0 %vm21019_vm2, %v18508_v10 }
 0x507   :  { %v1444_v38 = vpop.xlane.xlu0 %1443 }
 0x508   :  { %19931 = vrcp.f32 %v1444_v38 }
 0x50b   :  { %v1450_v50 = vpop.xlane.xlu0 %1449 }
 0x50c   :  { %19933 = vrcp.f32 %v1450_v50 }
 0x50e   :  { %v1447_v46 = vpop.xlane.xlu1 %1446 }
 0x50f   :  { %19935 = vrcp.f32 %v1447_v46  ;;  %v2138_v11 = vpop.permute.xlu0 %2137 }
 0x512   :  { %v19932_v37 = vpop.eup %19931  ;;  %v1453_v59 = vpop.xlane.xlu1 %1452 }
 0x513   :  { %19937 = vrcp.f32 %v1453_v59  ;;  %v1479_v22 = vmul.f32 %v19932_v37, %v21268_v18  ;;  %v2229_v48 = vpop.permute.xlu0 %2228 }
 0x515   :  { %17404 = vmatprep.mubr.msk.f32.mxu1 %vm1309_vm4, %v1479_v22 }
 0x516   :  { %v19934_v41 = vpop.eup %19933  ;;  %v2227_v21 = vpop.permute.xlu1 %2226 }
 0x517   :  { %v1483_v54 = vmul.f32 %v19934_v41, %v21272_v42  ;;  %v2320_v62 = vpop.permute.xlu0 %2319 }
 0x519   :  { %v19936_v14 = vpop.eup %19935  ;;  %17411 = vmatprep.mubr.msk.f32.mxu0 %vm1309_vm4, %v1483_v54 }
 0x51a   :  { %v2318_v2 = vpop.permute.xlu1 %2317  ;;  %v1481_v29 = vmul.f32 %v19936_v14, %v21274_v7 }
 0x51b   :  { %v19305_v7 = vpop.permute.xlu0 %19304 }
 0x51c   :  { %17405 = vmatmul.mubr.msk.f32.vlgmr.msra.gmra.mrb[24].mxu1 %vm1309_vm4, %v1481_v29  ;;  %v19306_v60 = vunpack.i.l.bf16 %v19305_v7 }
 0x51d   :  { %v19938_v18 = vpop.eup %19937  ;;  %18507 = vmatpush3.bf16.xpose.msk.msra.mxu1 %vm21019_vm2, %v18502_v24  ;;  %17418 = vmatprep.mubr.msk.f32.mxu1 %vm566_vm1, %v2136_v44  ;;  %v19307_v24 = vunpack.i.h.bf16 %v19305_v7 }
 0x51e   :  { %18516 = vmatprep.subr.msk.bf16.mxu1 %vm21019_vm2, %v18514_v19  ;;  %v19300_v42 = vpop.permute.xlu1 %19299  ;;  %v1485_v32 = vmul.f32 %v19938_v18, %v21280_v1 }
 0x51f   :  { %v19302_v58 = vunpack.i.h.bf16 %v19300_v42  ;;  %v19301_v45 = vunpack.i.l.bf16 %v19300_v42  ;;  %v18532_v1 = vpack.c.bf16 %v19307_v24, %v19306_v60  ;;  %v2411_v8 = vpop.permute.xlu0 %2410 }
 0x520   :  { %17412 = vmatmul.mubr.msk.f32.vlgmr.msra.gmra.mrb[36].mxu0 %vm1309_vm4, %v1485_v32 }
 0x521   :  { %v18520_v26 = vpack.c.bf16 %v19302_v58, %v19301_v45  ;;  %18513 = vmatpush3.bf16.xpose.msk.msra.mxu0 %vm21019_vm2, %v18508_v10  ;;  %17425 = vmatprep.mubr.msk.f32.mxu0 %vm566_vm1, %v2227_v21 }
 0x522   :  { %v2409_v17 = vpop.permute.xlu1 %2408 }
 0x523   :  { %18522 = vmatprep.subr.msk.bf16.mxu0 %vm21019_vm2, %v18520_v26  ;;  %v2591_v10 = vpop.permute.xlu0 %2590 }
 0x524   :  { %17419 = vmatmul.mubr.msk.f32.vlgmr.msra.gmra.mrb[26].mxu1 %vm566_vm1, %v2138_v11 }
 0x525   :  { %18519 = vmatpush3.bf16.xpose.msk.msra.mxu1 %vm21019_vm2, %v18514_v19  ;;  %17432 = vmatprep.mubr.msk.f32.mxu1 %vm566_vm1, %v2318_v2 }
 0x526   :  { %v19310_v5 = vpop.permute.xlu1 %19309 }
 0x527   :  { %v19312_v0 = vunpack.i.h.bf16 %v19310_v5  ;;  %v19311_v27 = vunpack.i.l.bf16 %v19310_v5  ;;  %v2773_v44 = vpop.permute.xlu0 %2772 }
 0x528   :  { %17426 = vmatmul.mubr.msk.f32.vlgmr.msra.gmra.mrb[38].mxu0 %vm566_vm1, %v2229_v48 }
 0x529   :  { %18525 = vmatpush3.bf16.xpose.msk.msra.mxu0 %vm21019_vm2, %v18520_v26  ;;  %17439 = vmatprep.mubr.msk.f32.mxu0 %vm566_vm1, %v2409_v17  ;;  %v18544_v34 = vpack.c.bf16 %v19312_v0, %v19311_v27 }
 0x52a   :  { %18534 = vmatprep.subr.msk.bf16.mxu0 %vm21019_vm2, %v18532_v1  ;;  %v2593_v38 = vpop.permute.xlu1 %2592 }
 0x52c   :  { %17433 = vmatmul.mubr.msk.f32.vlgmr.msra.gmra.mrb[28].mxu1 %vm566_vm1, %v2320_v62 }
 0x52e   :  { %v2775_v50 = vpop.permute.xlu1 %2774 }
 0x530   :  { %17440 = vmatmul.mubr.msk.f32.vlgmr.msra.gmra.mrb[40].mxu0 %vm566_vm1, %v2411_v8 }
 0x531   :  { %18537 = vmatpush3.bf16.xpose.msk.msra.mxu0 %vm21019_vm2, %v18532_v1  ;;  %17453 = vmatprep.mubr.msk.f32.mxu0 %vm566_vm1, %v2591_v10 }
 0x532   :  { %18546 = vmatprep.subr.msk.bf16.mxu0 %vm21019_vm2, %v18544_v34 }
 0x538   :  { %17454 = vmatmul.mubr.msk.f32.vlgmr.msra.gmra.mrb[42].mxu0 %vm566_vm1, %v2593_v38 }
 0x539   :  { %18549 = vmatpush3.bf16.xpose.msk.msra.mxu0 %vm21019_vm2, %v18544_v34  ;;  %17467 = vmatprep.mubr.msk.f32.mxu0 %vm566_vm1, %v2773_v44 }
 0x540   :  { %17468 = vmatmul.mubr.msk.f32.vlgmr.msra.gmra.mrb[44].mxu0 %vm566_vm1, %v2775_v50 }
 0x58c   :  { %v21390_v46 = vpop.f32.mrb[16].mxu1 }
 0x58d   :  { %v21392_v11 = vpop.f32.mrb[17].mxu1 }
 0x597   :  { %v21394_v37 = vpop.f32.mrb[18].mxu1 }
 0x598   :  { %v21396_v59 = vpop.f32.mrb[19].mxu1 }
 0x59c   :  { %v21398_v22 = vpop.f32.mrb[20].mxu1 }
 0x59d   :  { %v21400_v48 = vpop.f32.mrb[21].mxu1 }
 0x5a7   :  { %v21402_v41 = vpop.f32.mrb[32].mxu0 }
 0x5a8   :  { %24447 = vst [vmem:[#allocation36_spill] sm:$0xff] %v21402_v41  ;;  %v21404_v21 = vpop.f32.mrb[33].mxu0 }
 0x5a9   :  { %24448 = vst [vmem:[#allocation37_spill] sm:$0xff] %v21404_v21 }
 0x5af   :  { %v21406_v54 = vpop.f32.mrb[22].mxu1 }
 0x5b0   :  { %24449 = vst [vmem:[#allocation38_spill] sm:$0xff] %v21406_v54  ;;  %v21408_v40 = vpop.f32.mrb[23].mxu1 }
 0x5b1   :  { %24450 = vst [vmem:[#allocation39_spill] sm:$0xff] %v21408_v40 }
 0x5b4   :  { %v21410_v23 = vpop.f32.mrb[34].mxu0 }
 0x5b5   :  { %24451 = vst [vmem:[#allocation40_spill] sm:$0xff] %v21410_v23  ;;  %v21412_v14 = vpop.f32.mrb[35].mxu0 }
 0x5b6   :  { %24452 = vst [vmem:[#allocation41_spill] sm:$0xff] %v21412_v14 }
 0x5ef   :  { %v21414_v2 = vpop.f32.mrb[24].mxu1 }
 0x5f0   :  { %24453 = vst [vmem:[#allocation42_spill] sm:$0xff] %v21414_v2  ;;  %v21416_v29 = vpop.f32.mrb[25].mxu1 }
 0x5f1   :  { %24454 = vst [vmem:[#allocation43_spill] sm:$0xff] %v21416_v29 }
 0x5f3   :  { %v21418_v62 = vpop.f32.mrb[36].mxu0 }
 0x5f4   :  { %24455 = vst [vmem:[#allocation44_spill] sm:$0xff] %v21418_v62  ;;  %v21420_v19 = vpop.f32.mrb[37].mxu0 }
 0x5f5   :  { %24456 = vst [vmem:[#allocation45_spill] sm:$0xff] %v21420_v19 }
 0x5f7   :  { %v17420_v18 = vpop.f32.mrb[26].mxu1 }
 0x5f8   :  { %v2864_v42 = vmul.f32 0.125, %v17420_v18  ;;  %v2217_v32 = vpop.f32.mrb[27].mxu1 }
 0x5f9   :  { %v2863_v58 = vmul.f32 0.125, %v2217_v32 }
 0x5fa   :  { %v2880_v45 = vsel %vm21091_vm3, %v2864_v42, -inf }
 0x5fb   :  { %v17427_v7 = vpop.f32.mrb[38].mxu0  ;;  %v2898_v26 = vsel %vm1309_vm4, %v2880_v45, -inf  ;;  %v2879_v17 = vsel %vm21096_vm5, %v2863_v58, -inf }
 0x5fc   :  { %v2866_v24 = vmul.f32 0.125, %v17427_v7  ;;  %v2308_v60 = vpop.f32.mrb[39].mxu0  ;;  %2899 = vmax.xlane.f32.xlu1 %v2898_v26  ;;  %v2895_v1 = vsel %vm1309_vm4, %v2879_v17, -inf }
 0x5fd   :  { %v2865_v5 = vmul.f32 0.125, %v2308_v60  ;;  %2896 = vmax.xlane.f32.xlu0 %v2895_v1 }
 0x5fe   :  { %v2882_v8 = vsel %vm21091_vm3, %v2866_v24, -inf }
 0x5ff   :  { %v17434_v0 = vpop.f32.mrb[28].mxu1  ;;  %v2904_v27 = vsel %vm1309_vm4, %v2882_v8, -inf  ;;  %v2881_v44 = vsel %vm21096_vm5, %v2865_v5, -inf }
 0x600   :  { %v2868_v10 = vmul.f32 0.125, %v17434_v0  ;;  %v2399_v34 = vpop.f32.mrb[29].mxu1  ;;  %v2901_v58 = vsel %vm1309_vm4, %v2881_v44, -inf  ;;  %v24457_v0 = vld [vmem:[#allocation26_spill] sm:$0xff] }
 0x601   :  { %v2867_v38 = vmul.f32 0.125, %v2399_v34  ;;  %2905 = vmax.xlane.f32.xlu0 %v2904_v27 }
 0x602   :  { %v2884_v50 = vsel %vm21091_vm3, %v2868_v10, -inf }
 0x603   :  { %v21435_v18 = vpop.f32.mrb[40].mxu0  ;;  %v2910_v42 = vsel %vm1309_vm4, %v2884_v50, -inf  ;;  %v2883_v7 = vsel %vm21096_vm5, %v2867_v38, -inf }
 0x604   :  { %v21438_v32 = vpop.f32.mrb[41].mxu0  ;;  %2911 = vmax.xlane.f32.xlu1 %v2910_v42  ;;  %v2907_v26 = vsel %vm1309_vm4, %v2883_v7, -inf }
 0x605   :  { %2902 = vmax.xlane.f32.xlu0 %v2901_v58 }
 0x609   :  { %2908 = vmax.xlane.f32.xlu0 %v2907_v26 }
 0x60b   :  { %v21444_v24 = vpop.f32.mrb[42].mxu0 }
 0x60c   :  { %v21446_v60 = vpop.f32.mrb[43].mxu0 }
 0x613   :  { %v21448_v1 = vpop.f32.mrb[44].mxu0 }
 0x614   :  { %v21450_v5 = vpop.f32.mrb[45].mxu0 }
 0x615   :  { %19319 = vrot.lane.b32.xlu1 %v20995_v9, %s20488_s9 }
 0x619   :  { %2501 = vrot.lane.b32.xlu1 %v20962_v61, %s20489_s16 }
 0x61d   :  { %2681 = vrot.lane.b32.xlu1 %v20988_v6, %s20489_s16 }
 0x61f   :  { %19314 = vrot.lane.b32.xlu0 %v20966_v63, %s20488_s9 }
 0x621   :  { %19329 = vrot.lane.b32.xlu1 %v20930_v55, %s20489_s16 }
 0x623   :  { %2499 = vrot.lane.b32.xlu0 %v20960_v57, %s20489_s16 }
 0x627   :  { %19324 = vrot.lane.b32.xlu0 %v20916_v33, %s20489_s16 }
 0x62b   :  { %2683 = vrot.lane.b32.xlu0 %v24457_v0, %s20489_s16 }
 0x689   :  { %v2900_v27 = vpop.xlane.xlu1 %2899 }
 0x68a   :  { %v2944_v10 = vsub.f32 %v2880_v45, %v2900_v27  ;;  %v2897_v34 = vpop.xlane.xlu0 %2896 }
 0x68b   :  { %v2943_v38 = vsub.f32 %v2879_v17, %v2897_v34 }
 0x68c   :  { %v2961_v42 = vmul.f32 1.442695, %v2944_v10 }
 0x68d   :  { %v2959_v58 = vmul.f32 1.442695, %v2943_v38 }
 0x68e   :  { %19939 = vpow2.f32 %v2961_v42  ;;  %v2906_v26 = vpop.xlane.xlu0 %2905 }
 0x68f   :  { %19941 = vpow2.f32 %v2959_v58  ;;  %v2946_v62 = vsub.f32 %v2882_v8, %v2906_v26 }
 0x691   :  { %v2965_v19 = vmul.f32 1.442695, %v2946_v62  ;;  %v2912_v2 = vpop.xlane.xlu1 %2911 }
 0x692   :  { %v2948_v29 = vsub.f32 %v2884_v50, %v2912_v2  ;;  %v2903_v23 = vpop.xlane.xlu0 %2902 }
 0x693   :  { %19943 = vpow2.f32 %v2965_v19  ;;  %v2945_v14 = vsub.f32 %v2881_v44, %v2903_v23 }
 0x694   :  { %v2969_v54 = vmul.f32 1.442695, %v2948_v29 }
 0x695   :  { %v2963_v40 = vmul.f32 1.442695, %v2945_v14  ;;  %v19320_v41 = vpop.permute.xlu1 %19319 }
 0x696   :  { %19945 = vpow2.f32 %v2969_v54  ;;  %v2909_v21 = vpop.xlane.xlu0 %2908  ;;  %v19322_v2 = vunpack.i.h.bf16 %v19320_v41  ;;  %v19321_v14 = vunpack.i.l.bf16 %v19320_v41 }
 0x697   :  { %19947 = vpow2.f32 %v2963_v40  ;;  %v2947_v45 = vsub.f32 %v2883_v7, %v2909_v21 }
 0x698   :  { %v21468_v17 = vpop.eup %19939  ;;  %v18538_v7 = vpack.c.bf16 %v19322_v2, %v19321_v14  ;;  %v2869_v2 = vmul.f32 0.125, %v21438_v32 }
 0x699   :  { %v21470_v27 = vpop.eup %19941  ;;  %v2967_v10 = vmul.f32 1.442695, %v2947_v45  ;;  %v2502_v34 = vpop.permute.xlu1 %2501  ;;  %v2994_v62 = vsel %vm1309_vm4, %v21468_v17, 0.0 }
 0x69a   :  { %2995 = vadd.xlane.f32.xlu1 %v2994_v62  ;;  %v19315_v19 = vpop.permute.xlu0 %19314  ;;  %v2991_v23 = vsel %vm1309_vm4, %v21470_v27, 0.0 }
 0x69b   :  { %19949 = vpow2.f32 %v2967_v10  ;;  %v19317_v54 = vunpack.i.h.bf16 %v19315_v19  ;;  %v19316_v40 = vunpack.i.l.bf16 %v19315_v19  ;;  %2992 = vadd.xlane.f32.xlu0 %v2991_v23 }
 0x69d   :  { %v21476_v21 = vpop.eup %19943  ;;  %v18526_v29 = vpack.c.bf16 %v19317_v54, %v19316_v40  ;;  %v2682_v8 = vpop.permute.xlu1 %2681 }
 0x69e   :  { %v2500_v44 = vpop.permute.xlu0 %2499  ;;  %v3000_v50 = vsel %vm1309_vm4, %v21476_v21, 0.0 }
 0x69f   :  { %3001 = vadd.xlane.f32.xlu1 %v3000_v50  ;;  %18528 = vmatprep.subr.msk.bf16.mxu1 %vm21019_vm2, %v18526_v29 }
 0x6a0   :  { %v21482_v38 = vpop.eup %19945  ;;  %17446 = vmatprep.mubr.msk.f32.mxu1 %vm566_vm1, %v2500_v44  ;;  %18531 = vmatpush3.bf16.xpose.msk.msra.mxu1 %vm21019_vm2, %v18526_v29  ;;  %v21502_v29 = vsel %vm21096_vm5, %v2869_v2, -inf  ;;  %v2877_v44 = vmul.f32 0.125, %v21450_v5  ;;  %v2874_v2 = vmul.f32 0.125, %v21444_v24 }
 0x6a1   :  { %v21487_v41 = vpop.eup %19947  ;;  %v19330_v42 = vpop.permute.xlu1 %19329  ;;  %18540 = vmatprep.subr.msk.bf16.mxu1 %vm21019_vm2, %v18538_v7  ;;  %v3006_v58 = vsel %vm1309_vm4, %v21482_v38, 0.0  ;;  %v2913_v50 = vsel %vm1309_vm4, %v21502_v29, -inf }
 0x6a2   :  { %v19332_v26 = vunpack.i.h.bf16 %v19330_v42  ;;  %v19331_v45 = vunpack.i.l.bf16 %v19330_v42  ;;  %v19325_v10 = vpop.permute.xlu0 %19324  ;;  %v2997_v62 = vsel %vm1309_vm4, %v21487_v41, 0.0  ;;  %v21513_v42 = vsel %vm21096_vm5, %v2877_v44, -inf }
 0x6a3   :  { %3007 = vadd.xlane.f32.xlu1 %v3006_v58  ;;  %2998 = vadd.xlane.f32.xlu0 %v2997_v62  ;;  %v19327_v19 = vunpack.i.h.bf16 %v19325_v10  ;;  %v19326_v23 = vunpack.i.l.bf16 %v19325_v10  ;;  %v2937_v5 = vsel %vm1309_vm4, %v21513_v42, -inf  ;;  %v2873_v10 = vmul.f32 0.125, %v21446_v60 }
 0x6a4   :  { %v18554_v14 = vpack.c.bf16 %v19332_v26, %v19331_v45  ;;  %v2870_v26 = vmul.f32 0.125, %v21435_v18  ;;  %v21551_v60 = vsel %vm21091_vm3, %v2874_v2, -inf }
 0x6a5   :  { %v21496_v54 = vpop.eup %19949  ;;  %v18550_v32 = vpack.c.bf16 %v19327_v19, %v19326_v23  ;;  %v21543_v18 = vsel %vm21096_vm5, %v2873_v10, -inf  ;;  %v2878_v23 = vmul.f32 0.125, %v21448_v1  ;;  %v2928_v24 = vsel %vm1309_vm4, %v21551_v60, -inf  ;;  %v24461_v1 = vld [vmem:[#allocation24_spill] sm:$0xff] }
 0x6a6   :  { %18555 = vmatprep.subr.bf16.mxu0 %v18554_v14  ;;  %v3003_v40 = vsel %vm1309_vm4, %v21496_v54, 0.0  ;;  %v2684_v58 = vpop.permute.xlu0 %2683  ;;  %v21533_v45 = vsel %vm21091_vm3, %v2870_v26, -inf  ;;  %v2925_v19 = vsel %vm1309_vm4, %v21543_v18, -inf }
 0x6a7   :  { %18557 = vmatpush3.bf16.msra.mxu0 %v18554_v14  ;;  %3004 = vadd.xlane.f32.xlu1 %v3003_v40  ;;  %v2916_v62 = vsel %vm1309_vm4, %v21533_v45, -inf  ;;  %v21560_v14 = vsel %vm21091_vm3, %v2878_v23, -inf }
 0x6a8   :  { %17447 = vmatmul.mubr.msk.f32.vlgmr.msra.gmra.mrb[30].mxu1 %vm566_vm1, %v2502_v34  ;;  %v24458_v34 = vld [vmem:[#allocation13_spill] sm:$0xff]  ;;  %v2940_v40 = vsel %vm1309_vm4, %v21560_v14, -inf }
 0x6a9   :  { %18543 = vmatpush3.bf16.xpose.msk.msra.mxu1 %vm21019_vm2, %v18538_v7  ;;  %17460 = vmatprep.mubr.msk.f32.mxu1 %vm566_vm1, %v2682_v8  ;;  %v24459_v8 = vld [vmem:[#allocation16_spill] sm:$0xff] }
 0x6aa   :  { %18551 = vmatprep.subr.bf16.mxu1 %v18550_v32  ;;  %v24460_v7 = vld [vmem:[#allocation32_spill] sm:$0xff] }
 0x6ab   :  { %2914 = vmax.xlane.f32.xlu1 %v2913_v50 }
 0x6af   :  { %2938 = vmax.xlane.f32.xlu1 %v2937_v5 }
 0x6b0   :  { %17461 = vmatmul.mubr.msk.f32.vlgmr.msra.gmra.mrb[32].mxu1 %vm566_vm1, %v2684_v58 }
 0x6b1   :  { %18553 = vmatpush3.bf16.msra.mxu1 %v18550_v32 }
 0x6b9   :  { %19334 = vrot.lane.b32.xlu0 %v24458_v34, %s20489_s16 }
 0x6c0   :  { %19339 = vrot.lane.b32.xlu1 %v24459_v8, %s20489_s16 }
 0x6c4   :  { %19349 = vrot.lane.b32.xlu1 %v24460_v7, %s20489_s16 }
 0x6c8   :  { %19354 = vrot.lane.b32.xlu1 %v20912_v52, %s20490_s17 }
 0x6cc   :  { %19359 = vrot.lane.b32.xlu1 %v20926_v35, %s20490_s17 }
 0x6d0   :  { %4173 = vrot.lane.b32.xlu1 %v20908_v31, %s20491_s18 }
 0x6d4   :  { %4262 = vrot.lane.b32.xlu1 %v20920_v53, %s20491_s18 }
 0x6d8   :  { %2917 = vmax.xlane.f32.xlu0 %v2916_v62  ;;  %19369 = vrot.lane.b32.xlu1 %v20954_v25, %s20490_s17 }
 0x6dc   :  { %2926 = vmax.xlane.f32.xlu0 %v2925_v19  ;;  %4355 = vrot.lane.b32.xlu1 %v20936_v43, %s20491_s18 }
 0x6e0   :  { %2929 = vmax.xlane.f32.xlu0 %v2928_v24  ;;  %4444 = vrot.lane.b32.xlu1 %v20948_v49, %s20491_s18 }
 0x6e4   :  { %2941 = vmax.xlane.f32.xlu0 %v2940_v40  ;;  %19379 = vrot.lane.b32.xlu1 %v20980_v4, %s20490_s17 }
 0x6e8   :  { %4537 = vrot.lane.b32.xlu1 %v20962_v61, %s20491_s18 }
 0x6fa   :  { %19344 = vrot.lane.b32.xlu0 %v24461_v1, %s20489_s16 }
 0x6fe   :  { %4171 = vrot.lane.b32.xlu0 %v20904_v30, %s20491_s18 }
 0x702   :  { %19364 = vrot.lane.b32.xlu0 %v20940_v47, %s20490_s17 }
 0x706   :  { %4264 = vrot.lane.b32.xlu0 %v20922_v20, %s20491_s18 }
 0x70a   :  { %4353 = vrot.lane.b32.xlu0 %v20934_v39, %s20491_s18 }
 0x70e   :  { %19374 = vrot.lane.b32.xlu0 %v20966_v63, %s20490_s17 }
 0x712   :  { %4446 = vrot.lane.b32.xlu0 %v20950_v51, %s20491_s18 }
 0x716   :  { %4535 = vrot.lane.b32.xlu0 %v20960_v57, %s20491_s18 }
 0x727   :  { %v2996_v44 = vpop.xlane.xlu1 %2995 }
 0x728   :  { %19951 = vrcp.f32 %v2996_v44  ;;  %v2993_v32 = vpop.xlane.xlu0 %2992 }
 0x729   :  { %19953 = vrcp.f32 %v2993_v32 }
 0x72c   :  { %v3002_v50 = vpop.xlane.xlu1 %3001 }
 0x72d   :  { %19955 = vrcp.f32 %v3002_v50 }
 0x730   :  { %v3008_v5 = vpop.xlane.xlu1 %3007  ;;  %v2999_v58 = vpop.xlane.xlu0 %2998 }
 0x731   :  { %19957 = vrcp.f32 %v2999_v58 }
 0x732   :  { %v19952_v26 = vpop.eup %19951  ;;  %19959 = vrcp.f32 %v3008_v5 }
 0x733   :  { %v19954_v10 = vpop.eup %19953  ;;  %v3042_v40 = vmul.f32 %v19952_v26, %v21468_v17 }
 0x734   :  { %v3005_v62 = vpop.xlane.xlu1 %3004  ;;  %v19335_v2 = vpop.permute.xlu0 %19334  ;;  %v3040_v19 = vmul.f32 %v19954_v10, %v21470_v27 }
 0x735   :  { %19961 = vrcp.f32 %v3005_v62  ;;  %v19337_v23 = vunpack.i.h.bf16 %v19335_v2  ;;  %v19336_v24 = vunpack.i.l.bf16 %v19335_v2 }
 0x736   :  { %17474 = vmatprep.mubr.msk.f32.mxu1 %vm1309_vm4, %v3040_v19 }
 0x737   :  { %17475 = vmatmul.mubr.msk.f32.vlgmr.msra.gmra.mrb[34].mxu1 %vm1309_vm4, %v3042_v40  ;;  %v18558_v44 = vpack.c.bf16 %v19337_v23, %v19336_v24  ;;  %v19956_v5 = vpop.eup %19955 }
 0x738   :  { %v2915_v32 = vpop.xlane.xlu1 %2914  ;;  %v3046_v17 = vmul.f32 %v19956_v5, %v21476_v21 }
 0x739   :  { %v2949_v50 = vsub.f32 %v21502_v29, %v2915_v32  ;;  %18559 = vmatprep.subr.bf16.mxu1 %v18558_v44 }
 0x73a   :  { %18561 = vmatpush3.bf16.msra.mxu1 %v18558_v44 }
 0x73b   :  { %v2971_v58 = vmul.f32 1.442695, %v2949_v50  ;;  %v19958_v61 = vpop.eup %19957 }
 0x73c   :  { %v2939_v49 = vpop.xlane.xlu1 %2938  ;;  %v3044_v27 = vmul.f32 %v19958_v61, %v21487_v41  ;;  %v19960_v10 = vpop.eup %19959 }
 0x73d   :  { %19963 = vpow2.f32 %v2971_v58  ;;  %v3050_v23 = vmul.f32 %v19960_v10, %v21482_v38 }
 0x73e   :  { %17481 = vmatprep.mubr.msk.f32.mxu0 %vm1309_vm4, %v3044_v27 }
 0x73f   :  { %v19962_v26 = vpop.eup %19961  ;;  %17482 = vmatmul.mubr.msk.f32.vlgmr.msra.gmra.mrb[46].mxu0 %vm1309_vm4, %v3046_v17 }
 0x740   :  { %v19340_v62 = vpop.permute.xlu1 %19339  ;;  %v3048_v29 = vmul.f32 %v19962_v26, %v21496_v54 }
 0x741   :  { %v19342_v2 = vunpack.i.h.bf16 %v19340_v62  ;;  %v19341_v19 = vunpack.i.l.bf16 %v19340_v62 }
 0x742   :  { %17488 = vmatprep.mubr.msk.f32.mxu1 %vm1309_vm4, %v3048_v29 }
 0x743   :  { %17489 = vmatmul.mubr.msk.f32.vlgmr.msra.gmra.mrb[36].mxu1 %vm1309_vm4, %v3050_v23  ;;  %v18562_v61 = vpack.c.bf16 %v19342_v2, %v19341_v19 }
 0x745   :  { %18563 = vmatprep.subr.bf16.mxu0 %v18562_v61 }
 0x746   :  { %18565 = vmatpush3.bf16.msra.mxu0 %v18562_v61 }
 0x747   :  { %v21599_v21 = vpop.eup %19963 }
 0x748   :  { %v3009_v41 = vsel %vm1309_vm4, %v21599_v21, 0.0 }
 0x749   :  { %3010 = vadd.xlane.f32.xlu1 %v3009_v41 }
 0x765   :  { %v2918_v24 = vpop.xlane.xlu0 %2917 }
 0x766   :  { %v2950_v54 = vsub.f32 %v21533_v45, %v2918_v24 }
 0x768   :  { %v2973_v40 = vmul.f32 1.442695, %v2950_v54 }
 0x769   :  { %v2927_v44 = vpop.xlane.xlu0 %2926 }
 0x76a   :  { %19965 = vpow2.f32 %v2973_v40  ;;  %v2953_v38 = vsub.f32 %v21543_v18, %v2927_v44 }
 0x76c   :  { %v2979_v32 = vmul.f32 1.442695, %v2953_v38  ;;  %v2957_v38 = vsub.f32 %v21513_v42, %v2939_v49 }
 0x76d   :  { %v2930_v50 = vpop.xlane.xlu0 %2929 }
 0x76e   :  { %19967 = vpow2.f32 %v2979_v32  ;;  %v2954_v5 = vsub.f32 %v21551_v60, %v2930_v50  ;;  %v19350_v32 = vpop.permute.xlu1 %19349  ;;  %v2987_v50 = vmul.f32 1.442695, %v2957_v38 }
 0x76f   :  { %v19352_v63 = vunpack.i.h.bf16 %v19350_v32 }
 0x770   :  { %v2981_v58 = vmul.f32 1.442695, %v2954_v5 }
 0x771   :  { %v2942_v27 = vpop.xlane.xlu0 %2941 }
 0x772   :  { %19969 = vpow2.f32 %v2981_v58  ;;  %v2958_v10 = vsub.f32 %v21560_v14, %v2942_v27  ;;  %v21633_v5 = vpop.permute.xlu1 %19354 }
 0x774   :  { %v21607_v17 = vpop.eup %19965  ;;  %v2989_v26 = vmul.f32 1.442695, %v2958_v10 }
 0x775   :  { %v19345_v62 = vpop.permute.xlu0 %19344  ;;  %v3012_v45 = vsel %vm1309_vm4, %v21607_v17, 0.0 }
 0x776   :  { %19971 = vpow2.f32 %v2989_v26  ;;  %v19347_v29 = vunpack.i.h.bf16 %v19345_v62  ;;  %v19346_v18 = vunpack.i.l.bf16 %v19345_v62  ;;  %3013 = vadd.xlane.f32.xlu0 %v3012_v45  ;;  %v21635_v58 = vpop.permute.xlu1 %19359 }
 0x777   :  { %19973 = vpow2.f32 %v2987_v50 }
 0x778   :  { %v21611_v2 = vpop.eup %19967  ;;  %v21613_v19 = vpack.c.bf16 %v19347_v29, %v19346_v18 }
 0x779   :  { %v3021_v60 = vsel %vm1309_vm4, %v21611_v2, 0.0  ;;  %v21665_v38 = vpop.permute.xlu0 %4171 }
 0x77a   :  { %3022 = vadd.xlane.f32.xlu1 %v3021_v60  ;;  %18571 = vmatprep.subr.bf16.mxu0 %v21613_v19  ;;  %v21639_v10 = vpop.permute.xlu1 %4173 }
 0x77b   :  { %v17448_v14 = vpop.f32.mrb[30].mxu1 }
 0x77c   :  { %v21618_v23 = vpop.eup %19969  ;;  %v2581_v61 = vpop.f32.mrb[31].mxu1  ;;  %v2872_v50 = vmul.f32 0.125, %v17448_v14 }
 0x77d   :  { %v3024_v41 = vsel %vm1309_vm4, %v21618_v23, 0.0  ;;  %v2871_v62 = vmul.f32 0.125, %v2581_v61 }
 0x77e   :  { %3025 = vadd.xlane.f32.xlu0 %v3024_v41  ;;  %v21647_v49 = vpop.permute.xlu1 %4262 }
 0x77f   :  { %v21645_v45 = vsel %vm21096_vm5, %v2871_v62, -inf }
 0x780   :  { %v21622_v24 = vpop.eup %19971  ;;  %v2919_v42 = vsel %vm1309_vm4, %v21645_v45, -inf }
 0x781   :  { %v3036_v54 = vsel %vm1309_vm4, %v21622_v24, 0.0  ;;  %v21637_v27 = vpop.eup %19973 }
 0x782   :  { %3037 = vadd.xlane.f32.xlu0 %v3036_v54  ;;  %v3033_v26 = vsel %vm1309_vm4, %v21637_v27, 0.0  ;;  %v21651_v29 = vpop.permute.xlu1 %19369 }
 0x783   :  { %v21626_v40 = vpop.f32.mrb[32].mxu1 }
 0x784   :  { %v2763_v44 = vpop.f32.mrb[33].mxu1  ;;  %v2876_v20 = vmul.f32 0.125, %v21626_v40 }
 0x786   :  { %v21653_v18 = vpop.permute.xlu1 %4355 }
 0x78a   :  { %v21657_v60 = vpop.permute.xlu1 %4444 }
 0x78b   :  { %4626 = vrot.lane.b32.xlu1 %v20974_v3, %s20491_s18 }
 0x78e   :  { %v21659_v61 = vpop.permute.xlu1 %19379 }
 0x792   :  { %v21663_v41 = vpop.permute.xlu1 %4537 }
 0x798   :  { %19384 = vrot.lane.b32.xlu0 %v20995_v9, %s20490_s17  ;;  %v2875_v9 = vmul.f32 0.125, %v2763_v44 }
 0x79a   :  { %v21681_v14 = vsel %vm21096_vm5, %v2875_v9, -inf }
 0x7af   :  { %3034 = vadd.xlane.f32.xlu1 %v3033_v26  ;;  %v21669_v26 = vsel %vm21091_vm3, %v2872_v50, -inf  ;;  %v2931_v50 = vsel %vm1309_vm4, %v21681_v14, -inf }
 0x7b7   :  { %2920 = vmax.xlane.f32.xlu0 %v2919_v42  ;;  %v21671_v42 = vpop.permute.xlu0 %19364 }
 0x7c0   :  { %4628 = vrot.lane.b32.xlu1 %v20976_v36, %s20491_s18  ;;  %v2922_v36 = vsel %vm1309_vm4, %v21669_v26, -inf }
 0x7cd   :  { %19389 = vrot.lane.b32.xlu0 %v21009_v15, %s20490_s17 }
 0x7d6   :  { %v3011_v54 = vpop.xlane.xlu1 %3010 }
 0x7d7   :  { %19975 = vrcp.f32 %v3011_v54  ;;  %v21677_v54 = vpop.permute.xlu0 %4264 }
 0x7db   :  { %v21685_v15 = vpop.permute.xlu0 %4353 }
 0x7e1   :  { %v19976_v62 = vpop.eup %19975 }
 0x7e2   :  { %v3052_v3 = vmul.f32 %v19976_v62, %v21599_v21  ;;  %v21687_v21 = vpop.permute.xlu0 %19374 }
 0x7e4   :  { %17495 = vmatprep.mubr.msk.f32.mxu0 %vm1309_vm4, %v3052_v3  ;;  %2923 = vmax.xlane.f32.xlu1 %v2922_v36 }
 0x7e6   :  { %v21691_v44 = vpop.permute.xlu0 %4446 }
 0x7ea   :  { %v21695_v3 = vpop.permute.xlu0 %4535 }
 0x7ec   :  { %2932 = vmax.xlane.f32.xlu0 %v2931_v50 }
 0x7f5   :  { %4717 = vrot.lane.b32.xlu1 %v20988_v6, %s20491_s18  ;;  %v19351_v6 = vunpack.i.l.bf16 %v19350_v32 }
 0x7f9   :  { %4719 = vrot.lane.b32.xlu1 %v24457_v0, %s20491_s18  ;;  %v18578_v0 = vpack.c.bf16 %v19352_v63, %v19351_v6 }
 0x802   :  { %4808 = vrot.lane.b32.xlu0 %v21003_v12, %s20491_s18 }
 0x803   :  { %v3014_v36 = vpop.xlane.xlu0 %3013 }
 0x804   :  { %19977 = vrcp.f32 %v3014_v36 }
 0x807   :  { %v3023_v9 = vpop.xlane.xlu1 %3022 }
 0x808   :  { %19979 = vrcp.f32 %v3023_v9 }
 0x80a   :  { %v17476_v62 = vpop.f32.mrb[34].mxu1 }
 0x80b   :  { %v3026_v50 = vpop.xlane.xlu0 %3025  ;;  %v3151_v57 = vpop.f32.mrb[35].mxu1 }
 0x80c   :  { %19981 = vrcp.f32 %v3026_v50 }
 0x80e   :  { %v19978_v51 = vpop.eup %19977 }
 0x80f   :  { %v3054_v39 = vmul.f32 %v19978_v51, %v21607_v17  ;;  %v21706_v17 = vld [vmem:[#allocation2 + $0x8] sm:$0xff]  ;;  %v3038_v6 = vpop.xlane.xlu0 %3037 }
 0x810   :  { %19983 = vrcp.f32 %v3038_v6 }
 0x811   :  { %17496 = vmatmul.mubr.msk.f32.vlgmr.msra.gmra.mrb[48].mxu0 %vm1309_vm4, %v3054_v39  ;;  %v21710_v39 = vsel %vm21091_vm3, %v2876_v20, -inf }
 0x812   :  { %v19980_v4 = vpop.eup %19979  ;;  %18573 = vmatpush3.bf16.msra.mxu0 %v21613_v19  ;;  %v17483_v12 = vpop.f32.mrb[46].mxu0  ;;  %v2934_v63 = vsel %vm1309_vm4, %v21710_v39, -inf }
 0x813   :  { %18579 = vmatprep.subr.bf16.mxu0 %v18578_v0  ;;  %v3060_v36 = vmul.f32 %v19980_v4, %v21611_v2  ;;  %v3240_v9 = vpop.f32.mrb[47].mxu0  ;;  %v21718_v4 = vpop.permute.xlu1 %4626 }
 0x814   :  { %v21720_v20 = vpop.permute.xlu0 %19384 }
 0x815   :  { %17509 = vmatprep.mubr.msk.f32.mxu0 %vm1309_vm4, %v3060_v36  ;;  %v19357_v36 = vunpack.i.h.bf16 %v21633_v5 }
 0x816   :  { %v19982_v50 = vpop.eup %19981  ;;  %v17490_v32 = vpop.f32.mrb[36].mxu1 }
 0x817   :  { %v3329_v43 = vpop.f32.mrb[37].mxu1  ;;  %v3062_v51 = vmul.f32 %v19982_v50, %v21618_v23  ;;  %v19356_v50 = vunpack.i.l.bf16 %v21633_v5  ;;  %v19362_v5 = vunpack.i.h.bf16 %v21635_v58 }
 0x819   :  { %17510 = vmatmul.mubr.msk.f32.vlgmr.msra.gmra.mrb[50].mxu0 %vm1309_vm4, %v3062_v51  ;;  %v18582_v6 = vpack.c.bf16 %v19357_v36, %v19356_v50 }
 0x81a   :  { %18581 = vmatpush3.bf16.msra.mxu0 %v18578_v0  ;;  %v19984_v23 = vpop.eup %19983 }
 0x81b   :  { %17526 = vmatprep.subr.mxu0 %v21706_v17 }
 0x81d   :  { %2935 = vmax.xlane.f32.xlu1 %v2934_v63 }
 0x82e   :  { %4810 = vrot.lane.b32.xlu1 %v21005_v13, %s20491_s18  ;;  %v3070_v13 = vmul.f32 %v19984_v23, %v21622_v24 }
 0x83c   :  { %v3035_v2 = vpop.xlane.xlu1 %3034 }
 0x83d   :  { %19985 = vrcp.f32 %v3035_v2 }
 0x844   :  { %v2921_v19 = vpop.xlane.xlu0 %2920 }
 0x845   :  { %v2951_v0 = vsub.f32 %v21645_v45, %v2921_v19  ;;  %v19361_v45 = vunpack.i.l.bf16 %v21635_v58  ;;  %v19366_v58 = vunpack.i.l.bf16 %v21671_v42 }
 0x847   :  { %v19986_v40 = vpop.eup %19985  ;;  %v2975_v51 = vmul.f32 1.442695, %v2951_v0  ;;  %v18588_v24 = vpack.c.bf16 %v19362_v5, %v19361_v45 }
 0x848   :  { %v3068_v63 = vmul.f32 %v19986_v40, %v21637_v27 }
 0x849   :  { %19987 = vpow2.f32 %v2975_v51 }
 0x84a   :  { %17523 = vmatprep.mubr.msk.f32.mxu0 %vm1309_vm4, %v3068_v63  ;;  %v24462_v63 = vld [vmem:[#allocation28_spill] sm:$0xff] }
 0x84b   :  { %17524 = vmatmul.mubr.msk.f32.vlgmr.msra.gmra.mrb[52].mxu0 %vm1309_vm4, %v3070_v13  ;;  %v19367_v13 = vunpack.i.h.bf16 %v21671_v42 }
 0x84c   :  { %17527 = vmatpush3.msra.mxu0 %v21706_v17  ;;  %17528 = vmatprep.mubr.msk.f32.mxu0 %vm566_vm1, %v3151_v57 }
 0x84d   :  { %18584 = vmatprep.subr.msk.bf16.mxu0 %vm21019_vm2, %v18582_v6 }
 0x84f   :  { %17529 = vmatmul.mubr.msk.f32.vlgmr.msra.gmra.mrb[54].mxu0 %vm566_vm1, %v17476_v62  ;;  %v18594_v62 = vpack.c.bf16 %v19367_v13, %v19366_v58  ;;  %v24463_v58 = vld [vmem:[#allocation20_spill] sm:$0xff] }
 0x850   :  { %17531 = vmatprep.mubr.msk.f32.mxu0 %vm566_vm1, %v3240_v9 }
 0x853   :  { %v21737_v27 = vpop.eup %19987  ;;  %18587 = vmatpush3.bf16.xpose.msk.msra.mxu0 %vm21019_vm2, %v18582_v6 }
 0x854   :  { %17532 = vmatmul.mubr.msk.f32.gmra.mrb[56].mxu0 %vm566_vm1, %v17483_v12  ;;  %18590 = vmatprep.subr.msk.bf16.mxu0 %vm21019_vm2, %v18588_v24  ;;  %v3015_v57 = vsel %vm1309_vm4, %v21737_v27, 0.0  ;;  %v19371_v12 = vunpack.i.l.bf16 %v21651_v29 }
 0x855   :  { %17534 = vmatprep.mubr.msk.f32.mxu0 %vm566_vm1, %v3329_v43  ;;  %3016 = vadd.xlane.f32.xlu0 %v3015_v57  ;;  %v19372_v43 = vunpack.i.h.bf16 %v21651_v29  ;;  %v4629_v29 = vpop.permute.xlu1 %4628 }
 0x857   :  { %v18600_v42 = vpack.c.bf16 %v19372_v43, %v19371_v12 }
 0x858   :  { %17535 = vmatmul.mubr.msk.f32.gmra.mrb[58].mxu0 %vm566_vm1, %v17490_v32 }
 0x859   :  { %17582 = vmatprep.mubr.msk.f32.mxu0 %vm566_vm1, %v21665_v38 }
 0x85c   :  { %17583 = vmatmul.mubr.msk.f32.vlgmr.msra.gmra.mrb[60].mxu0 %vm566_vm1, %v21639_v10  ;;  %v19377_v10 = vunpack.i.h.bf16 %v21687_v21 }
 0x85d   :  { %18593 = vmatpush3.bf16.xpose.msk.msra.mxu0 %vm21019_vm2, %v18588_v24  ;;  %17589 = vmatprep.mubr.msk.f32.mxu0 %vm566_vm1, %v21647_v49  ;;  %v19376_v49 = vunpack.i.l.bf16 %v21687_v21 }
 0x85e   :  { %18596 = vmatprep.subr.msk.bf16.mxu0 %vm21019_vm2, %v18594_v62 }
 0x85f   :  { %v18606_v38 = vpack.c.bf16 %v19377_v10, %v19376_v49 }
 0x864   :  { %17590 = vmatmul.mubr.msk.f32.vlgmr.msra.gmra.mrb[62].mxu0 %vm566_vm1, %v21677_v54  ;;  %v19381_v54 = vunpack.i.l.bf16 %v21659_v61 }
 0x865   :  { %18599 = vmatpush3.bf16.xpose.msk.msra.mxu0 %vm21019_vm2, %v18594_v62  ;;  %17596 = vmatprep.mubr.msk.f32.mxu0 %vm566_vm1, %v21685_v15  ;;  %v19382_v15 = vunpack.i.h.bf16 %v21659_v61  ;;  %v19386_v61 = vunpack.i.l.bf16 %v21720_v20 }
 0x866   :  { %18602 = vmatprep.subr.msk.bf16.mxu0 %vm21019_vm2, %v18600_v42 }
 0x867   :  { %v18612_v32 = vpack.c.bf16 %v19382_v15, %v19381_v54 }
 0x86c   :  { %17597 = vmatmul.mubr.msk.f32.vlgmr.msra.gmra.mrb[64].mxu0 %vm566_vm1, %v21653_v18  ;;  %v19390_v18 = vpop.permute.xlu0 %19389 }
 0x86d   :  { %18605 = vmatpush3.bf16.xpose.msk.msra.mxu0 %vm21019_vm2, %v18600_v42  ;;  %17603 = vmatprep.mubr.msk.f32.mxu0 %vm566_vm1, %v21657_v60  ;;  %v19387_v60 = vunpack.i.h.bf16 %v21720_v20  ;;  %v19392_v20 = vunpack.i.h.bf16 %v19390_v18  ;;  %v19391_v23 = vunpack.i.l.bf16 %v19390_v18 }
 0x86e   :  { %18608 = vmatprep.subr.msk.bf16.mxu0 %vm21019_vm2, %v18606_v38 }
 0x86f   :  { %v18618_v0 = vpack.c.bf16 %v19387_v60, %v19386_v61  ;;  %v18624_v40 = vpack.c.bf16 %v19392_v20, %v19391_v23 }
 0x871   :  { %v2924_v9 = vpop.xlane.xlu1 %2923 }
 0x872   :  { %v2952_v21 = vsub.f32 %v21669_v26, %v2924_v9 }
 0x874   :  { %v2977_v2 = vmul.f32 1.442695, %v2952_v21  ;;  %17604 = vmatmul.mubr.msk.f32.vlgmr.msra.gmra.mrb[66].mxu0 %vm566_vm1, %v21691_v44 }
 0x875   :  { %18611 = vmatpush3.bf16.xpose.msk.msra.mxu0 %vm21019_vm2, %v18606_v38  ;;  %17610 = vmatprep.mubr.msk.f32.mxu0 %vm566_vm1, %v21695_v3 }
 0x876   :  { %19989 = vpow2.f32 %v2977_v2  ;;  %18614 = vmatprep.subr.msk.bf16.mxu0 %vm21019_vm2, %v18612_v32 }
 0x879   :  { %v2933_v26 = vpop.xlane.xlu0 %2932 }
 0x87a   :  { %v2955_v19 = vsub.f32 %v21681_v14, %v2933_v26 }
 0x87c   :  { %v2983_v44 = vmul.f32 1.442695, %v2955_v19  ;;  %17611 = vmatmul.mubr.msk.f32.vlgmr.msra.gmra.mrb[68].mxu0 %vm566_vm1, %v21663_v41  ;;  %v4718_v41 = vpop.permute.xlu1 %4717 }
 0x87d   :  { %18617 = vmatpush3.bf16.xpose.msk.msra.mxu0 %vm21019_vm2, %v18612_v32  ;;  %17617 = vmatprep.mubr.msk.f32.mxu0 %vm566_vm1, %v21718_v4  ;;  %v4809_v51 = vpop.permute.xlu0 %4808 }
 0x87e   :  { %19991 = vpow2.f32 %v2983_v44  ;;  %18620 = vmatprep.subr.msk.bf16.mxu0 %vm21019_vm2, %v18618_v0 }
 0x880   :  { %v21802_v3 = vpop.eup %19989  ;;  %v4720_v50 = vpop.permute.xlu1 %4719 }
 0x881   :  { %v3018_v14 = vsel %vm1309_vm4, %v21802_v3, 0.0 }
 0x882   :  { %3019 = vadd.xlane.f32.xlu1 %v3018_v14 }
 0x884   :  { %17618 = vmatmul.mubr.msk.f32.vlgmr.msra.gmra.mrb[70].mxu0 %vm566_vm1, %v4629_v29 }
 0x885   :  { %18623 = vmatpush3.bf16.xpose.msk.msra.mxu0 %vm21019_vm2, %v18618_v0  ;;  %17624 = vmatprep.mubr.msk.f32.mxu0 %vm566_vm1, %v4718_v41 }
 0x886   :  { %18626 = vmatprep.subr.msk.bf16.mxu0 %vm21019_vm2, %v18624_v40 }
 0x888   :  { %v21812_v4 = vpop.eup %19991 }
 0x889   :  { %v3027_v36 = vsel %vm1309_vm4, %v21812_v4, 0.0 }
 0x88a   :  { %3028 = vadd.xlane.f32.xlu0 %v3027_v36 }
 0x88c   :  { %17625 = vmatmul.mubr.msk.f32.vlgmr.msra.gmra.mrb[72].mxu0 %vm566_vm1, %v4720_v50 }
 0x88d   :  { %18629 = vmatpush3.bf16.xpose.msk.msra.mxu0 %vm21019_vm2, %v18624_v40  ;;  %17631 = vmatprep.mubr.msk.f32.mxu0 %vm566_vm1, %v4809_v51 }
 0x893   :  { %19399 = vrot.lane.b32.xlu1 %v24462_v63, %s20489_s16 }
 0x897   :  { %19409 = vrot.lane.b32.xlu1 %v20930_v55, %s20491_s18 }
 0x89b   :  { %19419 = vrot.lane.b32.xlu1 %v24459_v8, %s20491_s18 }
 0x8aa   :  { %v2936_v6 = vpop.xlane.xlu1 %2935 }
 0x8ab   :  { %v2956_v5 = vsub.f32 %v21710_v39, %v2936_v6 }
 0x8ad   :  { %v2985_v45 = vmul.f32 1.442695, %v2956_v5 }
 0x8ae   :  { %v4811_v24 = vpop.permute.xlu1 %4810 }
 0x8af   :  { %19993 = vpow2.f32 %v2985_v45  ;;  %17632 = vmatmul.mubr.msk.f32.vlgmr.msra.gmra.mrb[74].mxu0 %vm566_vm1, %v4811_v24 }
 0x8b9   :  { %v21828_v57 = vpop.eup %19993 }
 0x8ba   :  { %v3030_v13 = vsel %vm1309_vm4, %v21828_v57, 0.0 }
 0x8bb   :  { %3031 = vadd.xlane.f32.xlu0 %v3030_v13 }
 0x8d1   :  { %19394 = vrot.lane.b32.xlu0 %v24463_v58, %s20489_s16 }
 0x8d5   :  { %19404 = vrot.lane.b32.xlu0 %v20916_v33, %s20491_s18 }
 0x8d9   :  { %19414 = vrot.lane.b32.xlu0 %v24458_v34, %s20491_s18 }
 0x8e2   :  { %v3017_v39 = vpop.xlane.xlu0 %3016 }
 0x8e3   :  { %19995 = vrcp.f32 %v3017_v39 }
 0x8e4   :  { %v21838_v62 = vpop.f32.mrb[48].mxu0 }
 0x8e5   :  { %v21840_v43 = vpop.f32.mrb[49].mxu0 }
 0x8ec   :  { %v21842_v12 = vpop.f32.mrb[50].mxu0 }
 0x8ed   :  { %v19996_v42 = vpop.eup %19995  ;;  %v21844_v10 = vpop.f32.mrb[51].mxu0 }
 0x8ee   :  { %v3056_v49 = vmul.f32 %v19996_v42, %v21737_v27 }
 0x8f0   :  { %17502 = vmatprep.mubr.msk.f32.mxu1 %vm1309_vm4, %v3056_v49 }
 0x90f   :  { %v3020_v38 = vpop.xlane.xlu1 %3019 }
 0x910   :  { %19997 = vrcp.f32 %v3020_v38 }
 0x913   :  { %v21848_v29 = vpop.permute.xlu1 %19399 }
 0x917   :  { %v19410_v15 = vpop.permute.xlu1 %19409 }
 0x918   :  { %v19412_v54 = vunpack.i.h.bf16 %v19410_v15  ;;  %v19411_v9 = vunpack.i.l.bf16 %v19410_v15 }
 0x91a   :  { %v18634_v21 = vpack.c.bf16 %v19412_v54, %v19411_v9 }
 0x91b   :  { %v19420_v32 = vpop.permute.xlu1 %19419 }
 0x91c   :  { %v19422_v2 = vunpack.i.h.bf16 %v19420_v32  ;;  %v19421_v18 = vunpack.i.l.bf16 %v19420_v32  ;;  %18635 = vmatprep.subr.bf16.mxu0 %v18634_v21 }
 0x91d   :  { %18637 = vmatpush3.bf16.msra.mxu0 %v18634_v21 }
 0x91e   :  { %v21850_v60 = vpop.f32.mrb[52].mxu0  ;;  %v21852_v61 = vpack.c.bf16 %v19422_v2, %v19421_v18 }
 0x91f   :  { %v21854_v26 = vpop.f32.mrb[53].mxu0 }
 0x920   :  { %18643 = vmatprep.subr.bf16.mxu0 %v21852_v61 }
 0x922   :  { %v21857_v27 = vpop.f32.mrb[54].mxu0 }
 0x923   :  { %24464 = vst [vmem:[#allocation32_spill] sm:$0xff] %v21857_v27  ;;  %v21859_v19 = vpop.f32.mrb[55].mxu0 }
 0x924   :  { %24465 = vst [vmem:[#allocation28_spill] sm:$0xff] %v21859_v19 }
 0x927   :  { %v21861_v0 = vpop.f32.mrb[56].mxu0 }
 0x928   :  { %24466 = vst [vmem:[#allocation46_spill] sm:$0xff] %v21861_v0  ;;  %v21863_v44 = vpop.f32.mrb[57].mxu0 }
 0x929   :  { %24467 = vst [vmem:[#allocation47_spill] sm:$0xff] %v21863_v44 }
 0x92b   :  { %v21865_v20 = vpop.f32.mrb[58].mxu0 }
 0x92c   :  { %24468 = vst [vmem:[#allocation48_spill] sm:$0xff] %v21865_v20  ;;  %v21867_v23 = vpop.f32.mrb[59].mxu0 }
 0x92d   :  { %24469 = vst [vmem:[#allocation49_spill] sm:$0xff] %v21867_v23 }
 0x92f   :  { %v17584_v14 = vpop.f32.mrb[60].mxu0 }
 0x930   :  { %v4900_v40 = vmul.f32 0.125, %v17584_v14  ;;  %v4253_v41 = vpop.f32.mrb[61].mxu0 }
 0x931   :  { %v4899_v36 = vmul.f32 0.125, %v4253_v41  ;;  %v3029_v41 = vpop.xlane.xlu0 %3028 }
 0x932   :  { %v21871_v50 = vsel %vm21091_vm3, %v4900_v40, -inf  ;;  %19999 = vrcp.f32 %v3029_v41 }
 0x933   :  { %v21875_v51 = vsel %vm21096_vm5, %v4899_v36, -inf  ;;  %v4934_v6 = vsel %vm1309_vm4, %v21871_v50, -inf }
 0x934   :  { %4935 = vmax.xlane.f32.xlu1 %v4934_v6  ;;  %v4931_v5 = vsel %vm1309_vm4, %v21875_v51, -inf }
 0x935   :  { %4932 = vmax.xlane.f32.xlu0 %v4931_v5 }
 0x937   :  { %v17591_v45 = vpop.f32.mrb[62].mxu0 }
 0x938   :  { %v4902_v24 = vmul.f32 0.125, %v17591_v45  ;;  %v4344_v13 = vpop.f32.mrb[63].mxu0 }
 0x939   :  { %v4901_v39 = vmul.f32 0.125, %v4344_v13 }
 0x93a   :  { %v21883_v42 = vsel %vm21091_vm3, %v4902_v24, -inf }
 0x93b   :  { %v4940_v49 = vsel %vm1309_vm4, %v21883_v42, -inf  ;;  %v21889_v15 = vsel %vm21096_vm5, %v4901_v39, -inf }
 0x93c   :  { %4941 = vmax.xlane.f32.xlu0 %v4940_v49  ;;  %v4937_v9 = vsel %vm1309_vm4, %v21889_v15, -inf }
 0x93f   :  { %v17598_v54 = vpop.f32.mrb[64].mxu0 }
 0x940   :  { %v4904_v21 = vmul.f32 0.125, %v17598_v54  ;;  %v4435_v32 = vpop.f32.mrb[65].mxu0  ;;  %4938 = vmax.xlane.f32.xlu0 %v4937_v9 }
 0x941   :  { %v4903_v2 = vmul.f32 0.125, %v4435_v32  ;;  %v19401_v32 = vunpack.i.l.bf16 %v21848_v29 }
 0x942   :  { %v21895_v18 = vsel %vm21091_vm3, %v4904_v21, -inf  ;;  %v19402_v21 = vunpack.i.h.bf16 %v21848_v29 }
 0x943   :  { %v21899_v14 = vsel %vm21096_vm5, %v4903_v2, -inf  ;;  %v4946_v40 = vsel %vm1309_vm4, %v21895_v18, -inf }
 0x944   :  { %4947 = vmax.xlane.f32.xlu1 %v4946_v40  ;;  %v4943_v36 = vsel %vm1309_vm4, %v21899_v14, -inf }
 0x945   :  { %4944 = vmax.xlane.f32.xlu0 %v4943_v36 }
 0x947   :  { %v17605_v6 = vpop.f32.mrb[66].mxu0 }
 0x948   :  { %v4906_v5 = vmul.f32 0.125, %v17605_v6  ;;  %v4526_v45 = vpop.f32.mrb[67].mxu0  ;;  %v3032_v24 = vpop.xlane.xlu0 %3031 }
 0x949   :  { %v4905_v13 = vmul.f32 0.125, %v4526_v45  ;;  %20001 = vrcp.f32 %v3032_v24  ;;  %v19998_v6 = vpop.eup %19997 }
 0x94a   :  { %v21907_v39 = vsel %vm21091_vm3, %v4906_v5, -inf  ;;  %v20000_v24 = vpop.eup %19999 }
 0x94b   :  { %v21911_v49 = vsel %vm21096_vm5, %v4905_v13, -inf  ;;  %v4952_v54 = vsel %vm1309_vm4, %v21907_v39, -inf }
 0x94c   :  { %4953 = vmax.xlane.f32.xlu1 %v4952_v54  ;;  %v4949_v38 = vsel %vm1309_vm4, %v21911_v49, -inf  ;;  %v19395_v9 = vpop.permute.xlu0 %19394  ;;  %v18574_v54 = vpack.c.bf16 %v19402_v21, %v19401_v32  ;;  %v3064_v32 = vmul.f32 %v20000_v24, %v21812_v4 }
 0x94d   :  { %4950 = vmax.xlane.f32.xlu0 %v4949_v38  ;;  %v19397_v2 = vunpack.i.h.bf16 %v19395_v9  ;;  %v19396_v40 = vunpack.i.l.bf16 %v19395_v9  ;;  %v3058_v9 = vmul.f32 %v19998_v6, %v21802_v3 }
 0x94f   :  { %v17612_v41 = vpop.f32.mrb[68].mxu0  ;;  %v18566_v36 = vpack.c.bf16 %v19397_v2, %v19396_v40 }
 0x950   :  { %v4908_v5 = vmul.f32 0.125, %v17612_v41  ;;  %v4617_v45 = vpop.f32.mrb[69].mxu0  ;;  %v19405_v40 = vpop.permute.xlu0 %19404 }
 0x951   :  { %v4907_v13 = vmul.f32 0.125, %v4617_v45  ;;  %18567 = vmatprep.subr.bf16.mxu1 %v18566_v36  ;;  %v19407_v45 = vunpack.i.h.bf16 %v19405_v40 }
 0x952   :  { %v21921_v23 = vsel %vm21091_vm3, %v4908_v5, -inf  ;;  %18569 = vmatpush3.bf16.msra.mxu1 %v18566_v36  ;;  %v2134_v5 = vld [vmem:[#allocation2] sm:$0xff] }
 0x953   :  { %v21925_v29 = vsel %vm21096_vm5, %v4907_v13, -inf  ;;  %v4958_v38 = vsel %vm1309_vm4, %v21921_v23, -inf  ;;  %18575 = vmatprep.subr.bf16.mxu1 %v18574_v54  ;;  %v20002_v2 = vpop.eup %20001  ;;  %v19406_v13 = vunpack.i.l.bf16 %v19405_v40 }
 0x954   :  { %4959 = vmax.xlane.f32.xlu1 %v4958_v38  ;;  %v4955_v21 = vsel %vm1309_vm4, %v21925_v29, -inf  ;;  %v3066_v36 = vmul.f32 %v20002_v2, %v21828_v57 }
 0x955   :  { %4956 = vmax.xlane.f32.xlu0 %v4955_v21  ;;  %17503 = vmatmul.mubr.msk.f32.vlgmr.msra.gmra.mrb[38].mxu1 %vm1309_vm4, %v3058_v9  ;;  %v21955_v9 = vpack.c.bf16 %v19407_v45, %v19406_v13 }
 0x956   :  { %18577 = vmatpush3.bf16.msra.mxu1 %v18574_v54  ;;  %17516 = vmatprep.mubr.msk.f32.mxu1 %vm1309_vm4, %v3064_v32 }
 0x957   :  { %v17619_v41 = vpop.f32.mrb[70].mxu0  ;;  %19110 = vmatprep.subr.mxu1 %v21706_v17 }
 0x958   :  { %v4910_v3 = vmul.f32 0.125, %v17619_v41  ;;  %v4708_v6 = vpop.f32.mrb[71].mxu0 }
 0x959   :  { %v4909_v38 = vmul.f32 0.125, %v4708_v6  ;;  %17517 = vmatmul.mubr.msk.f32.vlgmr.msra.gmra.mrb[40].mxu1 %vm1309_vm4, %v3066_v36 }
 0x95a   :  { %v21940_v4 = vsel %vm21091_vm3, %v4910_v3, -inf  ;;  %17537 = vmatprep.mubr.msk.f32.mxu1 %vm566_vm1, %v21840_v43  ;;  %19111 = vmatpush3.msra.mxu1 %v21706_v17 }
 0x95b   :  { %v21947_v57 = vsel %vm21096_vm5, %v4909_v38, -inf  ;;  %v4964_v24 = vsel %vm1309_vm4, %v21940_v4, -inf  ;;  %17552 = vmatprep.subr.mxu1 %v2134_v5 }
 0x95c   :  { %4965 = vmax.xlane.f32.xlu1 %v4964_v24  ;;  %v4961_v54 = vsel %vm1309_vm4, %v21947_v57, -inf }
 0x95d   :  { %4962 = vmax.xlane.f32.xlu0 %v4961_v54  ;;  %17538 = vmatmul.mubr.msk.f32.vlgmr.msra.gmra.mrb[42].mxu1 %vm566_vm1, %v21838_v62  ;;  %v21986_v54 = vpop.permute.xlu0 %19414 }
 0x95e   :  { %17553 = vmatpush3.msra.mxu1 %v2134_v5 }
 0x95f   :  { %v17626_v17 = vpop.f32.mrb[72].mxu0  ;;  %18631 = vmatprep.subr.bf16.mxu1 %v21955_v9 }
 0x960   :  { %v4912_v43 = vmul.f32 0.125, %v17626_v17  ;;  %v4799_v2 = vpop.f32.mrb[73].mxu0 }
 0x961   :  { %v4911_v21 = vmul.f32 0.125, %v4799_v2 }
 0x962   :  { %v21960_v32 = vsel %vm21091_vm3, %v4912_v43, -inf }
 0x963   :  { %v21964_v40 = vsel %vm21096_vm5, %v4911_v21, -inf  ;;  %v4970_v62 = vsel %vm1309_vm4, %v21960_v32, -inf }
 0x964   :  { %4971 = vmax.xlane.f32.xlu1 %v4970_v62  ;;  %v4967_v41 = vsel %vm1309_vm4, %v21964_v40, -inf }
 0x965   :  { %4968 = vmax.xlane.f32.xlu0 %v4967_v41 }
 0x982   :  { %v17633_v36 = vpop.f32.mrb[74].mxu0 }
 0x983   :  { %v4914_v3 = vmul.f32 0.125, %v17633_v36  ;;  %v4890_v6 = vpop.f32.mrb[75].mxu0 }
 0x984   :  { %v4913_v5 = vmul.f32 0.125, %v4890_v6 }
 0x985   :  { %v21972_v45 = vsel %vm21091_vm3, %v4914_v3, -inf }
 0x986   :  { %v21976_v13 = vsel %vm21096_vm5, %v4913_v5, -inf  ;;  %v4976_v38 = vsel %vm1309_vm4, %v21972_v45, -inf }
 0x987   :  { %4977 = vmax.xlane.f32.xlu1 %v4976_v38  ;;  %v4973_v24 = vsel %vm1309_vm4, %v21976_v13, -inf }
 0x988   :  { %4974 = vmax.xlane.f32.xlu0 %v4973_v24 }
 0x998   :  { %19429 = vrot.lane.b32.xlu1 %v24461_v1, %s20491_s18 }
 0x99e   :  { %19424 = vrot.lane.b32.xlu0 %v24463_v58, %s20491_s18 }
 0x9c1   :  { %v4936_v17 = vpop.xlane.xlu1 %4935 }
 0x9c2   :  { %v4980_v43 = vsub.f32 %v21871_v50, %v4936_v17  ;;  %v4933_v2 = vpop.xlane.xlu0 %4932 }
 0x9c3   :  { %v4979_v21 = vsub.f32 %v21875_v51, %v4933_v2 }
 0x9c4   :  { %v4997_v62 = vmul.f32 1.442695, %v4980_v43 }
 0x9c5   :  { %v4995_v41 = vmul.f32 1.442695, %v4979_v21 }
 0x9c6   :  { %20003 = vpow2.f32 %v4997_v62 }
 0x9c7   :  { %20005 = vpow2.f32 %v4995_v41 }
 0x9c9   :  { %v4942_v36 = vpop.xlane.xlu0 %4941 }
 0x9ca   :  { %v4982_v3 = vsub.f32 %v21883_v42, %v4942_v36 }
 0x9cc   :  { %v5001_v6 = vmul.f32 1.442695, %v4982_v3 }
 0x9cd   :  { %v4939_v5 = vpop.xlane.xlu0 %4938 }
 0x9ce   :  { %20007 = vpow2.f32 %v5001_v6  ;;  %v4981_v38 = vsub.f32 %v21889_v15, %v4939_v5 }
 0x9d0   :  { %v21992_v24 = vpop.eup %20003  ;;  %v4999_v20 = vmul.f32 1.442695, %v4981_v38 }
 0x9d1   :  { %v21994_v44 = vpop.eup %20005  ;;  %v4948_v50 = vpop.xlane.xlu1 %4947  ;;  %v5030_v51 = vsel %vm1309_vm4, %v21992_v24, 0.0 }
 0x9d2   :  { %20009 = vpow2.f32 %v4999_v20  ;;  %v4984_v17 = vsub.f32 %v21895_v18, %v4948_v50  ;;  %v4945_v43 = vpop.xlane.xlu0 %4944  ;;  %5031 = vadd.xlane.f32.xlu1 %v5030_v51  ;;  %v5027_v42 = vsel %vm1309_vm4, %v21994_v44, 0.0 }
 0x9d3   :  { %v4983_v2 = vsub.f32 %v21899_v14, %v4945_v43  ;;  %5028 = vadd.xlane.f32.xlu0 %v5027_v42 }
 0x9d4   :  { %v5005_v15 = vmul.f32 1.442695, %v4984_v17 }
 0x9d5   :  { %v5003_v21 = vmul.f32 1.442695, %v4983_v2 }
 0x9d6   :  { %20011 = vpow2.f32 %v5005_v15 }
 0x9d7   :  { %20013 = vpow2.f32 %v5003_v21 }
 0x9d8   :  { %v22002_v62 = vpop.eup %20007 }
 0x9d9   :  { %v4954_v41 = vpop.xlane.xlu1 %4953  ;;  %v5036_v20 = vsel %vm1309_vm4, %v22002_v62, 0.0 }
 0x9da   :  { %v4986_v18 = vsub.f32 %v21907_v39, %v4954_v41  ;;  %5037 = vadd.xlane.f32.xlu1 %v5036_v20  ;;  %v4951_v36 = vpop.xlane.xlu0 %4950 }
 0x9db   :  { %v4985_v3 = vsub.f32 %v21911_v49, %v4951_v36 }
 0x9dc   :  { %v22008_v6 = vpop.eup %20009  ;;  %v5009_v14 = vmul.f32 1.442695, %v4986_v18 }
 0x9dd   :  { %v5007_v5 = vmul.f32 1.442695, %v4985_v3  ;;  %v5033_v38 = vsel %vm1309_vm4, %v22008_v6, 0.0 }
 0x9de   :  { %20015 = vpow2.f32 %v5009_v14  ;;  %5034 = vadd.xlane.f32.xlu0 %v5033_v38 }
 0x9df   :  { %20017 = vpow2.f32 %v5007_v5 }
 0x9e0   :  { %v22012_v50 = vpop.eup %20011 }
 0x9e1   :  { %v22014_v51 = vpop.eup %20013  ;;  %v4960_v17 = vpop.xlane.xlu1 %4959  ;;  %v5042_v39 = vsel %vm1309_vm4, %v22012_v50, 0.0 }
 0x9e2   :  { %v4988_v49 = vsub.f32 %v21921_v23, %v4960_v17  ;;  %5043 = vadd.xlane.f32.xlu1 %v5042_v39  ;;  %v4957_v43 = vpop.xlane.xlu0 %4956  ;;  %v5039_v42 = vsel %vm1309_vm4, %v22014_v51, 0.0 }
 0x9e3   :  { %v4987_v2 = vsub.f32 %v21925_v29, %v4957_v43  ;;  %5040 = vadd.xlane.f32.xlu0 %v5039_v42 }
 0x9e4   :  { %v5013_v15 = vmul.f32 1.442695, %v4988_v49 }
 0x9e5   :  { %v5011_v21 = vmul.f32 1.442695, %v4987_v2 }
 0x9e6   :  { %20019 = vpow2.f32 %v5013_v15 }
 0x9e7   :  { %20021 = vpow2.f32 %v5011_v21 }
 0x9e8   :  { %v22022_v41 = vpop.eup %20015 }
 0x9e9   :  { %v22024_v20 = vpop.eup %20017  ;;  %v4966_v18 = vpop.xlane.xlu1 %4965  ;;  %v5048_v23 = vsel %vm1309_vm4, %v22022_v41, 0.0 }
 0x9ea   :  { %v4990_v36 = vsub.f32 %v21940_v4, %v4966_v18  ;;  %5049 = vadd.xlane.f32.xlu1 %v5048_v23  ;;  %v4963_v3 = vpop.xlane.xlu0 %4962  ;;  %v5045_v29 = vsel %vm1309_vm4, %v22024_v20, 0.0 }
 0x9eb   :  { %v4989_v14 = vsub.f32 %v21947_v57, %v4963_v3  ;;  %5046 = vadd.xlane.f32.xlu0 %v5045_v29 }
 0x9ec   :  { %v5017_v5 = vmul.f32 1.442695, %v4990_v36 }
 0x9ed   :  { %v5015_v38 = vmul.f32 1.442695, %v4989_v14 }
 0x9ee   :  { %20023 = vpow2.f32 %v5017_v5 }
 0x9ef   :  { %20025 = vpow2.f32 %v5015_v38 }
 0x9f0   :  { %v22032_v17 = vpop.eup %20019 }
 0x9f1   :  { %v22034_v39 = vpop.eup %20021  ;;  %v4972_v49 = vpop.xlane.xlu1 %4971  ;;  %v5054_v4 = vsel %vm1309_vm4, %v22032_v17, 0.0 }
 0x9f2   :  { %v4992_v43 = vsub.f32 %v21960_v32, %v4972_v49  ;;  %5055 = vadd.xlane.f32.xlu1 %v5054_v4  ;;  %v4969_v42 = vpop.xlane.xlu0 %4968  ;;  %v5051_v57 = vsel %vm1309_vm4, %v22034_v39, 0.0 }
 0x9f3   :  { %v4991_v2 = vsub.f32 %v21964_v40, %v4969_v42  ;;  %5052 = vadd.xlane.f32.xlu0 %v5051_v57 }
 0x9f4   :  { %v5021_v15 = vmul.f32 1.442695, %v4992_v43 }
 0x9f5   :  { %v5019_v21 = vmul.f32 1.442695, %v4991_v2 }
 0x9f6   :  { %20027 = vpow2.f32 %v5021_v15 }
 0x9f7   :  { %20029 = vpow2.f32 %v5019_v21 }
 0x9f8   :  { %v22042_v18 = vpop.eup %20023 }
 0x9f9   :  { %v22044_v23 = vpop.eup %20025  ;;  %v5060_v36 = vsel %vm1309_vm4, %v22042_v18, 0.0 }
 0x9fa   :  { %5061 = vadd.xlane.f32.xlu1 %v5060_v36  ;;  %v5057_v32 = vsel %vm1309_vm4, %v22044_v23, 0.0 }
 0x9fb   :  { %5058 = vadd.xlane.f32.xlu0 %v5057_v32 }
 0xa00   :  { %v22050_v3 = vpop.eup %20027 }
 0xa01   :  { %v5066_v40 = vsel %vm1309_vm4, %v22050_v3, 0.0  ;;  %v22054_v29 = vpop.eup %20029 }
 0xa02   :  { %5067 = vadd.xlane.f32.xlu1 %v5066_v40  ;;  %v5063_v14 = vsel %vm1309_vm4, %v22054_v29, 0.0  ;;  %v19417_v40 = vunpack.i.h.bf16 %v21986_v54 }
 0xa06   :  { %5064 = vadd.xlane.f32.xlu1 %v5063_v14  ;;  %v19416_v14 = vunpack.i.l.bf16 %v21986_v54  ;;  %v24480_v54 = vld [vmem:[#allocation43_spill] sm:$0xff] }
 0xa14   :  { %v4978_v5 = vpop.xlane.xlu1 %4977 }
 0xa15   :  { %v4994_v38 = vsub.f32 %v21972_v45, %v4978_v5  ;;  %v4975_v49 = vpop.xlane.xlu0 %4974  ;;  %v24481_v5 = vld [vmem:[#allocation15_spill] sm:$0xff] }
 0xa16   :  { %v4993_v4 = vsub.f32 %v21976_v13, %v4975_v49  ;;  %v24483_v49 = vld [vmem:[#allocation19_spill] sm:$0xff] }
 0xa17   :  { %v5025_v43 = vmul.f32 1.442695, %v4994_v38  ;;  %v24482_v38 = vld [vmem:[#allocation42_spill] sm:$0xff] }
 0xa18   :  { %v5023_v42 = vmul.f32 1.442695, %v4993_v4  ;;  %v24484_v4 = vld [vmem:[#allocation45_spill] sm:$0xff] }
 0xa19   :  { %20031 = vpow2.f32 %v5025_v43  ;;  %v24485_v43 = vld [vmem:[#allocation17_spill] sm:$0xff] }
 0xa1a   :  { %20033 = vpow2.f32 %v5023_v42  ;;  %v24486_v42 = vld [vmem:[#allocation44_spill] sm:$0xff] }
 0xa23   :  { %v22060_v57 = vpop.eup %20031 }
 0xa24   :  { %v22062_v2 = vpop.eup %20033  ;;  %v5072_v15 = vsel %vm1309_vm4, %v22060_v57, 0.0 }
 0xa25   :  { %5073 = vadd.xlane.f32.xlu1 %v5072_v15  ;;  %v5069_v21 = vsel %vm1309_vm4, %v22062_v2, 0.0  ;;  %v24487_v15 = vld [vmem:[#allocation14_spill] sm:$0xff] }
 0xa26   :  { %5070 = vadd.xlane.f32.xlu0 %v5069_v21  ;;  %v24488_v21 = vld [vmem:[#allocation31_spill] sm:$0xff] }
 0xa28   :  { %v17504_v45 = vpop.f32.mrb[38].mxu1 }
 0xa29   :  { %v3507_v36 = vpop.f32.mrb[39].mxu1 }
 0xa2a   :  { %17540 = vmatprep.mubr.msk.f32.mxu1 %vm566_vm1, %v3507_v36  ;;  %v19425_v36 = vpop.permute.xlu0 %19424 }
 0xa2b   :  { %17541 = vmatmul.mubr.msk.f32.gmra.mrb[44].mxu1 %vm566_vm1, %v17504_v45  ;;  %v19430_v45 = vpop.permute.xlu1 %19429 }
 0xa2c   :  { %v17518_v13 = vpop.f32.mrb[40].mxu1  ;;  %17543 = vmatprep.mubr.msk.f32.mxu1 %vm566_vm1, %v21844_v10  ;;  %v24476_v10 = vld [vmem:[#allocation41_spill] sm:$0xff] }
 0xa2d   :  { %v3685_v32 = vpop.f32.mrb[41].mxu1 }
 0xa2f   :  { %17544 = vmatmul.mubr.msk.f32.gmra.mrb[46].mxu1 %vm566_vm1, %v21842_v12  ;;  %v22090_v12 = vpack.c.bf16 %v19417_v40, %v19416_v14 }
 0xa30   :  { %17546 = vmatprep.mubr.msk.f32.mxu1 %vm566_vm1, %v3685_v32  ;;  %v24490_v32 = vld [vmem:[#allocation22_spill] sm:$0xff] }
 0xa33   :  { %17547 = vmatmul.mubr.msk.f32.gmra.mrb[48].mxu1 %vm566_vm1, %v17518_v13  ;;  %v24489_v13 = vld [vmem:[#allocation27_spill] sm:$0xff] }
 0xa34   :  { %17549 = vmatprep.mubr.msk.f32.mxu1 %vm566_vm1, %v21854_v26  ;;  %v24478_v26 = vld [vmem:[#allocation40_spill] sm:$0xff] }
 0xa36   :  { %19439 = vrot.lane.b32.xlu1 %v24460_v7, %s20491_s18 }
 0xa37   :  { %17550 = vmatmul.mubr.msk.f32.gmra.mrb[50].mxu1 %vm566_vm1, %v21850_v60  ;;  %v24477_v60 = vld [vmem:[#allocation23_spill] sm:$0xff] }
 0xa38   :  { %17554 = vmatprep.mubr.msk.f32.mxu1 %vm566_vm1, %v21392_v11  ;;  %v24471_v11 = vld [vmem:[#allocation36_spill] sm:$0xff] }
 0xa3a   :  { %19449 = vrot.lane.b32.xlu1 %v20926_v35, %s20492_s19 }
 0xa3b   :  { %17555 = vmatmul.mubr.msk.f32.vlgmr.msra.gmra.mrb[52].mxu1 %vm566_vm1, %v21390_v46  ;;  %v24470_v46 = vld [vmem:[#allocation37_spill] sm:$0xff] }
 0xa3c   :  { %18633 = vmatpush3.bf16.msra.mxu1 %v21955_v9  ;;  %19434 = vrot.lane.b32.xlu0 %v24462_v63, %s20491_s18  ;;  %v24479_v9 = vld [vmem:[#allocation11_spill] sm:$0xff] }
 0xa3d   :  { %17557 = vmatprep.mubr.msk.f32.mxu1 %vm566_vm1, %v21396_v59  ;;  %18639 = vmatprep.subr.bf16.mxu1 %v22090_v12  ;;  %v24473_v59 = vld [vmem:[#allocation12_spill] sm:$0xff] }
 0xa3e   :  { %6016 = vrot.lane.b32.xlu1 %v20908_v31, %s20493_s20 }
 0xa3f   :  { %17558 = vmatmul.mubr.msk.f32.gmra.mrb[54].mxu1 %vm566_vm1, %v21394_v37  ;;  %v24472_v37 = vld [vmem:[#allocation39_spill] sm:$0xff] }
 0xa40   :  { %19444 = vrot.lane.b32.xlu0 %v20912_v52, %s20492_s19  ;;  %17560 = vmatprep.mubr.msk.f32.mxu1 %vm566_vm1, %v21400_v48  ;;  %v24475_v48 = vld [vmem:[#allocation9_spill] sm:$0xff] }
 0xa42   :  { %6105 = vrot.lane.b32.xlu1 %v20920_v53, %s20493_s20 }
 0xa43   :  { %17561 = vmatmul.mubr.msk.f32.gmra.mrb[56].mxu1 %vm566_vm1, %v21398_v22  ;;  %v24474_v22 = vld [vmem:[#allocation38_spill] sm:$0xff] }
 0xa44   :  { %6014 = vrot.lane.b32.xlu0 %v20904_v30, %s20493_s20  ;;  %17563 = vmatprep.mubr.msk.f32.mxu1 %vm566_vm1, %v24470_v46  ;;  %v24491_v46 = vld [vmem:[#allocation18_spill] sm:$0xff] }
 0xa46   :  { %19459 = vrot.lane.b32.xlu1 %v20954_v25, %s20492_s19 }
 0xa47   :  { %17564 = vmatmul.mubr.msk.f32.gmra.mrb[42].mxu1 %vm566_vm1, %v24471_v11  ;;  %v24492_v11 = vld [vmem:[#allocation26_spill] sm:$0xff] }
 0xa48   :  { %19454 = vrot.lane.b32.xlu0 %v20940_v47, %s20492_s19  ;;  %17566 = vmatprep.mubr.msk.f32.mxu1 %vm566_vm1, %v24472_v37  ;;  %v24493_v37 = vld [vmem:[#allocation21_spill] sm:$0xff] }
 0xa4a   :  { %6198 = vrot.lane.b32.xlu1 %v24473_v59, %s20493_s20 }
 0xa4b   :  { %17567 = vmatmul.mubr.msk.f32.gmra.mrb[44].mxu1 %vm566_vm1, %v24474_v22  ;;  %v24494_v22 = vld [vmem:[#allocation30_spill] sm:$0xff] }
 0xa4c   :  { %6107 = vrot.lane.b32.xlu0 %v24475_v48, %s20493_s20  ;;  %17569 = vmatprep.mubr.msk.f32.mxu1 %vm566_vm1, %v24476_v10 }
 0xa4e   :  { %19469 = vrot.lane.b32.xlu1 %v24477_v60, %s20492_s19 }
 0xa4f   :  { %17570 = vmatmul.mubr.msk.f32.gmra.mrb[46].mxu1 %vm566_vm1, %v24478_v26  ;;  %v24495_v26 = vld [vmem:[#allocation25_spill] sm:$0xff] }
 0xa50   :  { %6196 = vrot.lane.b32.xlu0 %v24479_v9, %s20493_s20  ;;  %17572 = vmatprep.mubr.msk.f32.mxu1 %vm566_vm1, %v24480_v54 }
 0xa52   :  { %6289 = vrot.lane.b32.xlu1 %v24481_v5, %s20493_s20 }
 0xa53   :  { %17573 = vmatmul.mubr.msk.f32.gmra.mrb[48].mxu1 %vm566_vm1, %v24482_v38 }
 0xa54   :  { %19464 = vrot.lane.b32.xlu0 %v24483_v49, %s20492_s19  ;;  %17575 = vmatprep.mubr.msk.f32.mxu1 %vm566_vm1, %v24484_v4  ;;  %v19427_v4 = vunpack.i.h.bf16 %v19425_v36 }
 0xa56   :  { %6378 = vrot.lane.b32.xlu1 %v24485_v43, %s20493_s20 }
 0xa57   :  { %17576 = vmatmul.mubr.msk.f32.gmra.mrb[50].mxu1 %vm566_vm1, %v24486_v42  ;;  %v19426_v42 = vunpack.i.l.bf16 %v19425_v36 }
 0xa58   :  { %6287 = vrot.lane.b32.xlu0 %v24487_v15, %s20493_s20 }
 0xa5a   :  { %19479 = vrot.lane.b32.xlu1 %v24488_v21, %s20492_s19 }
 0xa5c   :  { %19474 = vrot.lane.b32.xlu0 %v24489_v13, %s20492_s19 }
 0xa5e   :  { %6471 = vrot.lane.b32.xlu1 %v24490_v32, %s20493_s20 }
 0xa5f   :  { %v5032_v40 = vpop.xlane.xlu1 %5031 }
 0xa60   :  { %20035 = vrcp.f32 %v5032_v40  ;;  %v5029_v14 = vpop.xlane.xlu0 %5028  ;;  %6380 = vrot.lane.b32.xlu0 %v24491_v46, %s20493_s20 }
 0xa61   :  { %20037 = vrcp.f32 %v5029_v14  ;;  %v24496_v14 = vld [vmem:[#allocation29_spill] sm:$0xff] }
 0xa62   :  { %6562 = vrot.lane.b32.xlu1 %v24492_v11, %s20493_s20 }
 0xa64   :  { %6469 = vrot.lane.b32.xlu0 %v24493_v37, %s20493_s20 }
 0xa66   :  { %6653 = vrot.lane.b32.xlu1 %v24494_v22, %s20493_s20  ;;  %v18646_v22 = vpack.c.bf16 %v19427_v4, %v19426_v42 }
 0xa67   :  { %v5038_v10 = vpop.xlane.xlu1 %5037 }
 0xa68   :  { %6560 = vrot.lane.b32.xlu0 %v24495_v26, %s20493_s20  ;;  %20039 = vrcp.f32 %v5038_v10 }
 0xa6a   :  { %v20036_v54 = vpop.eup %20035 }
 0xa6b   :  { %v20038_v38 = vpop.eup %20037  ;;  %v5035_v40 = vpop.xlane.xlu0 %5034  ;;  %v5078_v19 = vmul.f32 %v20036_v54, %v21992_v24 }
 0xa6c   :  { %20041 = vrcp.f32 %v5035_v40  ;;  %6651 = vrot.lane.b32.xlu0 %v24496_v14, %s20493_s20  ;;  %v5076_v0 = vmul.f32 %v20038_v38, %v21994_v44  ;;  %v19432_v40 = vunpack.i.h.bf16 %v19430_v45  ;;  %v19431_v14 = vunpack.i.l.bf16 %v19430_v45 }
 0xa6e   :  { %17638 = vmatprep.mubr.msk.f32.mxu1 %vm1309_vm4, %v5076_v0 }
 0xa6f   :  { %v5044_v27 = vpop.xlane.xlu1 %5043  ;;  %17639 = vmatmul.mubr.msk.f32.vlgmr.msra.gmra.mrb[58].mxu1 %vm1309_vm4, %v5078_v19  ;;  %v18650_v19 = vpack.c.bf16 %v19432_v40, %v19431_v14 }
 0xa70   :  { %20043 = vrcp.f32 %v5044_v27  ;;  %v5041_v11 = vpop.xlane.xlu0 %5040  ;;  %18641 = vmatpush3.bf16.msra.mxu1 %v22090_v12 }
 0xa71   :  { %20045 = vrcp.f32 %v5041_v11  ;;  %18647 = vmatprep.subr.bf16.mxu1 %v18646_v22 }
 0xa72   :  { %v20040_v36 = vpop.eup %20039 }
 0xa73   :  { %v5082_v0 = vmul.f32 %v20040_v36, %v22002_v62 }
 0xa76   :  { %v20042_v10 = vpop.eup %20041 }
 0xa77   :  { %v5050_v32 = vpop.xlane.xlu1 %5049  ;;  %v5080_v44 = vmul.f32 %v20042_v10, %v22008_v6 }
 0xa78   :  { %20047 = vrcp.f32 %v5050_v32  ;;  %v5047_v24 = vpop.xlane.xlu0 %5046 }
 0xa79   :  { %20049 = vrcp.f32 %v5047_v24  ;;  %17645 = vmatprep.mubr.msk.f32.mxu0 %vm1309_vm4, %v5080_v44 }
 0xa7a   :  { %v20044_v27 = vpop.eup %20043  ;;  %17646 = vmatmul.mubr.msk.f32.vlgmr.msra.gmra.mrb[76].mxu0 %vm1309_vm4, %v5082_v0 }
 0xa7b   :  { %v20046_v12 = vpop.eup %20045  ;;  %18645 = vmatpush3.bf16.msra.mxu0 %v21852_v61  ;;  %v5086_v11 = vmul.f32 %v20044_v27, %v22012_v50 }
 0xa7c   :  { %18651 = vmatprep.subr.bf16.mxu0 %v18650_v19  ;;  %v5084_v45 = vmul.f32 %v20046_v12, %v22014_v51 }
 0xa7e   :  { %17652 = vmatprep.mubr.msk.f32.mxu1 %vm1309_vm4, %v5084_v45 }
 0xa7f   :  { %v5056_v6 = vpop.xlane.xlu1 %5055  ;;  %17653 = vmatmul.mubr.msk.f32.vlgmr.msra.gmra.mrb[60].mxu1 %vm1309_vm4, %v5086_v11 }
 0xa80   :  { %20051 = vrcp.f32 %v5056_v6  ;;  %18649 = vmatpush3.bf16.msra.mxu1 %v18646_v22  ;;  %v5053_v62 = vpop.xlane.xlu0 %5052 }
 0xa81   :  { %20053 = vrcp.f32 %v5053_v62 }
 0xa82   :  { %v20048_v32 = vpop.eup %20047 }
 0xa83   :  { %v20050_v54 = vpop.eup %20049  ;;  %v5090_v61 = vmul.f32 %v20048_v32, %v22022_v41 }
 0xa84   :  { %v5088_v38 = vmul.f32 %v20050_v54, %v22024_v20 }
 0xa86   :  { %17659 = vmatprep.mubr.msk.f32.mxu0 %vm1309_vm4, %v5088_v38 }
 0xa87   :  { %v5062_v51 = vpop.xlane.xlu1 %5061  ;;  %17660 = vmatmul.mubr.msk.f32.vlgmr.msra.gmra.mrb[78].mxu0 %vm1309_vm4, %v5090_v61 }
 0xa88   :  { %20055 = vrcp.f32 %v5062_v51  ;;  %18653 = vmatpush3.bf16.msra.mxu0 %v18650_v19  ;;  %v5059_v50 = vpop.xlane.xlu0 %5058 }
 0xa89   :  { %20057 = vrcp.f32 %v5059_v50 }
 0xa8a   :  { %v20052_v4 = vpop.eup %20051 }
 0xa8b   :  { %v20054_v42 = vpop.eup %20053  ;;  %v5094_v14 = vmul.f32 %v20052_v4, %v22032_v17 }
 0xa8c   :  { %v5092_v22 = vmul.f32 %v20054_v42, %v22034_v39 }
 0xa8e   :  { %17666 = vmatprep.mubr.msk.f32.mxu1 %vm1309_vm4, %v5092_v22 }
 0xa8f   :  { %v5068_v20 = vpop.xlane.xlu1 %5067  ;;  %17667 = vmatmul.mubr.msk.f32.vlgmr.msra.gmra.mrb[62].mxu1 %vm1309_vm4, %v5094_v14 }
 0xa92   :  { %v20056_v41 = vpop.eup %20055 }
 0xa93   :  { %v20058_v36 = vpop.eup %20057  ;;  %v5065_v10 = vpop.xlane.xlu1 %5064  ;;  %v5098_v44 = vmul.f32 %v20056_v41, %v22042_v18 }
 0xa94   :  { %20059 = vrcp.f32 %v5065_v10  ;;  %v5096_v40 = vmul.f32 %v20058_v36, %v22044_v23 }
 0xa95   :  { %20061 = vrcp.f32 %v5068_v20 }
 0xa96   :  { %17673 = vmatprep.mubr.msk.f32.mxu0 %vm1309_vm4, %v5096_v40 }
 0xa97   :  { %17674 = vmatmul.mubr.msk.f32.vlgmr.msra.gmra.mrb[80].mxu0 %vm1309_vm4, %v5098_v44 }
 0xa9e   :  { %v20060_v39 = vpop.eup %20059 }
 0xa9f   :  { %v5100_v17 = vmul.f32 %v20060_v39, %v22054_v29  ;;  %v20062_v32 = vpop.eup %20061  ;;  %v5804_v29 = vld [vmem:[#allocation2 + $0x10] sm:$0xff] }
 0xaa0   :  { %v5102_v22 = vmul.f32 %v20062_v32, %v22050_v3 }
 0xaa1   :  { %17680 = vmatprep.mubr.msk.f32.mxu1 %vm1309_vm4, %v5100_v17 }
 0xab2   :  { %v5074_v24 = vpop.xlane.xlu1 %5073 }
 0xab3   :  { %20063 = vrcp.f32 %v5074_v24  ;;  %v5071_v0 = vpop.xlane.xlu0 %5070 }
 0xab4   :  { %20065 = vrcp.f32 %v5071_v0 }
 0xab6   :  { %v19440_v27 = vpop.permute.xlu1 %19439 }
 0xab7   :  { %v19442_v19 = vunpack.i.h.bf16 %v19440_v27  ;;  %v19441_v12 = vunpack.i.l.bf16 %v19440_v27  ;;  %v19435_v23 = vpop.permute.xlu0 %19434 }
 0xab8   :  { %v19437_v45 = vunpack.i.h.bf16 %v19435_v23  ;;  %v19436_v18 = vunpack.i.l.bf16 %v19435_v23 }
 0xab9   :  { %v18658_v11 = vpack.c.bf16 %v19442_v19, %v19441_v12 }
 0xaba   :  { %v19450_v6 = vpop.permute.xlu1 %19449  ;;  %v18654_v62 = vpack.c.bf16 %v19437_v45, %v19436_v18 }
 0xabb   :  { %18659 = vmatprep.subr.bf16.mxu0 %v18658_v11  ;;  %v19445_v54 = vpop.permute.xlu0 %19444  ;;  %v19452_v41 = vunpack.i.h.bf16 %v19450_v6  ;;  %v19451_v36 = vunpack.i.l.bf16 %v19450_v6 }
 0xabc   :  { %v19447_v38 = vunpack.i.h.bf16 %v19445_v54  ;;  %v19446_v61 = vunpack.i.l.bf16 %v19445_v54  ;;  %18655 = vmatprep.subr.bf16.mxu1 %v18654_v62  ;;  %18661 = vmatpush3.bf16.msra.mxu0 %v18658_v11 }
 0xabd   :  { %v20064_v51 = vpop.eup %20063  ;;  %18657 = vmatpush3.bf16.msra.mxu1 %v18654_v62  ;;  %v18668_v44 = vpack.c.bf16 %v19452_v41, %v19451_v36 }
 0xabe   :  { %v20066_v50 = vpop.eup %20065  ;;  %v18662_v4 = vpack.c.bf16 %v19447_v38, %v19446_v61  ;;  %v6017_v42 = vpop.permute.xlu1 %6016  ;;  %17690 = vmatprep.subr.mxu1 %v5804_v29  ;;  %v5106_v10 = vmul.f32 %v20064_v51, %v22060_v57 }
 0xabf   :  { %v6015_v14 = vpop.permute.xlu0 %6014  ;;  %v5104_v20 = vmul.f32 %v20066_v50, %v22062_v2 }
 0xac0   :  { %17681 = vmatmul.mubr.msk.f32.vlgmr.msra.gmra.mrb[64].mxu1 %vm1309_vm4, %v5102_v22  ;;  %18664 = vmatprep.subr.msk.bf16.mxu0 %vm21019_vm2, %v18662_v4 }
 0xac1   :  { %17687 = vmatprep.mubr.msk.f32.mxu0 %vm1309_vm4, %v5104_v20  ;;  %17691 = vmatpush3.msra.mxu1 %v5804_v29 }
 0xac2   :  { %v6106_v40 = vpop.permute.xlu1 %6105  ;;  %17688 = vmatmul.mubr.msk.f32.vlgmr.msra.gmra.mrb[82].mxu0 %vm1309_vm4, %v5106_v10 }
 0xac3   :  { %17720 = vmatprep.mubr.msk.f32.mxu0 %vm566_vm1, %v6015_v14  ;;  %v19455_v3 = vpop.permute.xlu0 %19454 }
 0xac4   :  { %v19457_v17 = vunpack.i.h.bf16 %v19455_v3  ;;  %v19456_v57 = vunpack.i.l.bf16 %v19455_v3 }
 0xac5   :  { %18667 = vmatpush3.bf16.xpose.msk.msra.mxu0 %vm21019_vm2, %v18662_v4 }
 0xac6   :  { %v19460_v2 = vpop.permute.xlu1 %19459  ;;  %18670 = vmatprep.subr.msk.bf16.mxu0 %vm21019_vm2, %v18668_v44  ;;  %v18674_v27 = vpack.c.bf16 %v19457_v17, %v19456_v57 }
 0xac7   :  { %v6108_v39 = vpop.permute.xlu0 %6107  ;;  %v19462_v23 = vunpack.i.h.bf16 %v19460_v2  ;;  %v19461_v45 = vunpack.i.l.bf16 %v19460_v2 }
 0xac9   :  { %v18680_v54 = vpack.c.bf16 %v19462_v23, %v19461_v45 }
 0xaca   :  { %v6199_v24 = vpop.permute.xlu1 %6198 }
 0xacb   :  { %v6197_v0 = vpop.permute.xlu0 %6196 }
 0xacc   :  { %17721 = vmatmul.mubr.msk.f32.vlgmr.msra.gmra.mrb[84].mxu0 %vm566_vm1, %v6017_v42 }
 0xacd   :  { %18673 = vmatpush3.bf16.xpose.msk.msra.mxu0 %vm21019_vm2, %v18668_v44  ;;  %17727 = vmatprep.mubr.msk.f32.mxu0 %vm566_vm1, %v6106_v40 }
 0xace   :  { %v19470_v19 = vpop.permute.xlu1 %19469  ;;  %18676 = vmatprep.subr.msk.bf16.mxu0 %vm21019_vm2, %v18674_v27 }
 0xacf   :  { %v19465_v12 = vpop.permute.xlu0 %19464  ;;  %v19472_v61 = vunpack.i.h.bf16 %v19470_v19  ;;  %v19471_v51 = vunpack.i.l.bf16 %v19470_v19 }
 0xad0   :  { %v19467_v18 = vunpack.i.h.bf16 %v19465_v12  ;;  %v19466_v11 = vunpack.i.l.bf16 %v19465_v12 }
 0xad1   :  { %v18692_v4 = vpack.c.bf16 %v19472_v61, %v19471_v51 }
 0xad2   :  { %v18686_v6 = vpack.c.bf16 %v19467_v18, %v19466_v11  ;;  %v6290_v62 = vpop.permute.xlu1 %6289 }
 0xad3   :  { %v6288_v32 = vpop.permute.xlu0 %6287 }
 0xad4   :  { %17728 = vmatmul.mubr.msk.f32.vlgmr.msra.gmra.mrb[86].mxu0 %vm566_vm1, %v6108_v39  ;;  %18688 = vmatprep.subr.msk.bf16.mxu1 %vm21019_vm2, %v18686_v6 }
 0xad5   :  { %18679 = vmatpush3.bf16.xpose.msk.msra.mxu0 %vm21019_vm2, %v18674_v27  ;;  %17734 = vmatprep.mubr.msk.f32.mxu0 %vm566_vm1, %v6197_v0 }
 0xad6   :  { %18682 = vmatprep.subr.msk.bf16.mxu0 %vm21019_vm2, %v18680_v54  ;;  %v22225_v29 = vpop.permute.xlu1 %6378 }
 0xad7   :  { %v19475_v38 = vpop.permute.xlu0 %19474 }
 0xad8   :  { %v19477_v2 = vunpack.i.h.bf16 %v19475_v38  ;;  %v19476_v39 = vunpack.i.l.bf16 %v19475_v38 }
 0xada   :  { %v19480_v42 = vpop.permute.xlu1 %19479 }
 0xadb   :  { %v6381_v50 = vpop.permute.xlu0 %6380  ;;  %v19482_v22 = vunpack.i.h.bf16 %v19480_v42  ;;  %v19481_v14 = vunpack.i.l.bf16 %v19480_v42 }
 0xadc   :  { %17735 = vmatmul.mubr.msk.f32.vlgmr.msra.gmra.mrb[88].mxu0 %vm566_vm1, %v6199_v24  ;;  %v18698_v24 = vpack.c.bf16 %v19477_v2, %v19476_v39 }
 0xadd   :  { %18685 = vmatpush3.bf16.xpose.msk.msra.mxu0 %vm21019_vm2, %v18680_v54  ;;  %17741 = vmatprep.mubr.msk.f32.mxu0 %vm566_vm1, %v6288_v32  ;;  %v18704_v41 = vpack.c.bf16 %v19482_v22, %v19481_v14 }
 0xade   :  { %18694 = vmatprep.subr.msk.bf16.mxu0 %vm21019_vm2, %v18692_v4  ;;  %v6472_v10 = vpop.permute.xlu1 %6471 }
 0xadf   :  { %v6470_v20 = vpop.permute.xlu0 %6469 }
 0xae2   :  { %v6563_v3 = vpop.permute.xlu1 %6562 }
 0xae3   :  { %v6561_v36 = vpop.permute.xlu0 %6560 }
 0xae4   :  { %17742 = vmatmul.mubr.msk.f32.vlgmr.msra.gmra.mrb[90].mxu0 %vm566_vm1, %v6290_v62 }
 0xae5   :  { %18697 = vmatpush3.bf16.xpose.msk.msra.mxu0 %vm21019_vm2, %v18692_v4  ;;  %17755 = vmatprep.mubr.msk.f32.mxu0 %vm566_vm1, %v6470_v20 }
 0xae6   :  { %18706 = vmatprep.subr.msk.bf16.mxu0 %vm21019_vm2, %v18704_v41  ;;  %v6654_v44 = vpop.permute.xlu1 %6653 }
 0xae7   :  { %v6652_v40 = vpop.permute.xlu0 %6651 }
 0xaec   :  { %17756 = vmatmul.mubr.msk.f32.vlgmr.msra.gmra.mrb[92].mxu0 %vm566_vm1, %v6472_v10 }
 0xaed   :  { %18709 = vmatpush3.bf16.xpose.msk.msra.mxu0 %vm21019_vm2, %v18704_v41  ;;  %17769 = vmatprep.mubr.msk.f32.mxu0 %vm566_vm1, %v6652_v40 }
 0xaf4   :  { %17770 = vmatmul.mubr.msk.f32.vlgmr.msra.gmra.mrb[94].mxu0 %vm566_vm1, %v6654_v44 }
 0xb42   :  { %v17640_v17 = vpop.f32.mrb[58].mxu1 }
 0xb43   :  { %v5185_v57 = vpop.f32.mrb[59].mxu1 }
 0xb44   :  { %17692 = vmatprep.mubr.msk.f32.mxu1 %vm566_vm1, %v5185_v57 }
 0xb45   :  { %17693 = vmatmul.mubr.msk.f32.vlgmr.msra.gmra.mrb[52].mxu1 %vm566_vm1, %v17640_v17 }
 0xb46   :  { %18691 = vmatpush3.bf16.xpose.msk.msra.mxu1 %vm21019_vm2, %v18686_v6 }
 0xb47   :  { %18700 = vmatprep.subr.msk.bf16.mxu1 %vm21019_vm2, %v18698_v24 }
 0xb4d   :  { %v17647_v0 = vpop.f32.mrb[76].mxu0 }
 0xb4e   :  { %v5272_v27 = vpop.f32.mrb[77].mxu0 }
 0xb4f   :  { %17695 = vmatprep.mubr.msk.f32.mxu1 %vm566_vm1, %v5272_v27 }
 0xb50   :  { %17696 = vmatmul.mubr.msk.f32.gmra.mrb[54].mxu1 %vm566_vm1, %v17647_v0 }
 0xb52   :  { %v17654_v19 = vpop.f32.mrb[60].mxu1 }
 0xb53   :  { %v5359_v12 = vpop.f32.mrb[61].mxu1 }
 0xb54   :  { %17698 = vmatprep.mubr.msk.f32.mxu1 %vm566_vm1, %v5359_v12 }
 0xb55   :  { %17699 = vmatmul.mubr.msk.f32.gmra.mrb[56].mxu1 %vm566_vm1, %v17654_v19 }
 0xb5a   :  { %v17661_v23 = vpop.f32.mrb[78].mxu0 }
 0xb5b   :  { %v5446_v45 = vpop.f32.mrb[79].mxu0 }
 0xb5c   :  { %17701 = vmatprep.mubr.msk.f32.mxu1 %vm566_vm1, %v5446_v45 }
 0xb5d   :  { %17702 = vmatmul.mubr.msk.f32.gmra.mrb[42].mxu1 %vm566_vm1, %v17661_v23 }
 0xb62   :  { %v17668_v18 = vpop.f32.mrb[62].mxu1 }
 0xb63   :  { %v5533_v11 = vpop.f32.mrb[63].mxu1 }
 0xb64   :  { %17704 = vmatprep.mubr.msk.f32.mxu1 %vm566_vm1, %v5533_v11 }
 0xb65   :  { %17705 = vmatmul.mubr.msk.f32.gmra.mrb[44].mxu1 %vm566_vm1, %v17668_v18 }
 0xb6a   :  { %v17675_v6 = vpop.f32.mrb[80].mxu0 }
 0xb6b   :  { %v5620_v62 = vpop.f32.mrb[81].mxu0 }
 0xb6c   :  { %17707 = vmatprep.mubr.msk.f32.mxu1 %vm566_vm1, %v5620_v62 }
 0xb6d   :  { %17708 = vmatmul.mubr.msk.f32.gmra.mrb[46].mxu1 %vm566_vm1, %v17675_v6 }
 0xb93   :  { %v17682_v32 = vpop.f32.mrb[64].mxu1 }
 0xb94   :  { %v5707_v54 = vpop.f32.mrb[65].mxu1 }
 0xb95   :  { %v17689_v38 = vpop.f32.mrb[82].mxu0  ;;  %17710 = vmatprep.mubr.msk.f32.mxu1 %vm566_vm1, %v5707_v54 }
 0xb96   :  { %v5794_v61 = vpop.f32.mrb[83].mxu0  ;;  %17711 = vmatmul.mubr.msk.f32.gmra.mrb[48].mxu1 %vm566_vm1, %v17682_v32 }
 0xb97   :  { %17713 = vmatprep.mubr.msk.f32.mxu1 %vm566_vm1, %v5794_v61 }
 0xb9a   :  { %17714 = vmatmul.mubr.msk.f32.gmra.mrb[50].mxu1 %vm566_vm1, %v17689_v38 }
 0xb9b   :  { %17748 = vmatprep.mubr.msk.f32.mxu1 %vm566_vm1, %v22225_v29 }
 0xb9e   :  { %17749 = vmatmul.mubr.msk.f32.vlgmr.msra.gmra.mrb[66].mxu1 %vm566_vm1, %v6381_v50 }
 0xb9f   :  { %18703 = vmatpush3.bf16.xpose.msk.msra.mxu1 %vm21019_vm2, %v18698_v24  ;;  %v17722_v51 = vpop.f32.mrb[84].mxu0  ;;  %17762 = vmatprep.mubr.msk.f32.mxu1 %vm566_vm1, %v6561_v36 }
 0xba0   :  { %v6743_v4 = vmul.f32 0.125, %v17722_v51  ;;  %v6096_v42 = vpop.f32.mrb[85].mxu0 }
 0xba1   :  { %v6742_v22 = vmul.f32 0.125, %v6096_v42 }
 0xba2   :  { %v6759_v14 = vsel %vm21091_vm3, %v6743_v4, -inf }
 0xba3   :  { %v6758_v20 = vsel %vm21096_vm5, %v6742_v22, -inf  ;;  %v6777_v41 = vsel %vm1309_vm4, %v6759_v14, -inf }
 0xba4   :  { %6778 = vmax.xlane.f32.xlu1 %v6777_v41  ;;  %v6774_v29 = vsel %vm1309_vm4, %v6758_v20, -inf }
 0xba5   :  { %6775 = vmax.xlane.f32.xlu0 %v6774_v29 }
 0xba6   :  { %17763 = vmatmul.mubr.msk.f32.vlgmr.msra.gmra.mrb[68].mxu1 %vm566_vm1, %v6563_v3 }
 0xba7   :  { %v17729_v50 = vpop.f32.mrb[86].mxu0 }
 0xba8   :  { %v6745_v10 = vmul.f32 0.125, %v17729_v50  ;;  %v6187_v36 = vpop.f32.mrb[87].mxu0 }
 0xba9   :  { %v6744_v40 = vmul.f32 0.125, %v6187_v36 }
 0xbaa   :  { %v6761_v44 = vsel %vm21091_vm3, %v6745_v10, -inf }
 0xbab   :  { %v6783_v2 = vsel %vm1309_vm4, %v6761_v44, -inf  ;;  %v6760_v39 = vsel %vm21096_vm5, %v6744_v40, -inf }
 0xbac   :  { %6784 = vmax.xlane.f32.xlu0 %v6783_v2  ;;  %v6780_v57 = vsel %vm1309_vm4, %v6760_v39, -inf }
 0xbaf   :  { %v17736_v17 = vpop.f32.mrb[88].mxu0 }
 0xbb0   :  { %v6747_v24 = vmul.f32 0.125, %v17736_v17  ;;  %6781 = vmax.xlane.f32.xlu0 %v6780_v57  ;;  %v6278_v0 = vpop.f32.mrb[89].mxu0 }
 0xbb1   :  { %v6746_v3 = vmul.f32 0.125, %v6278_v0 }
 0xbb2   :  { %v6763_v27 = vsel %vm21091_vm3, %v6747_v24, -inf }
 0xbb3   :  { %v6762_v19 = vsel %vm21096_vm5, %v6746_v3, -inf  ;;  %v6789_v12 = vsel %vm1309_vm4, %v6763_v27, -inf }
 0xbb4   :  { %6790 = vmax.xlane.f32.xlu1 %v6789_v12  ;;  %v6786_v23 = vsel %vm1309_vm4, %v6762_v19, -inf }
 0xbb5   :  { %6787 = vmax.xlane.f32.xlu0 %v6786_v23 }
 0xbb7   :  { %v17743_v45 = vpop.f32.mrb[90].mxu0 }
 0xbb8   :  { %v6749_v18 = vmul.f32 0.125, %v17743_v45  ;;  %v6369_v11 = vpop.f32.mrb[91].mxu0 }
 0xbb9   :  { %v6748_v6 = vmul.f32 0.125, %v6369_v11 }
 0xbba   :  { %v22291_v62 = vsel %vm21091_vm3, %v6749_v18, -inf }
 0xbbb   :  { %v22295_v32 = vsel %vm21096_vm5, %v6748_v6, -inf  ;;  %v6795_v54 = vsel %vm1309_vm4, %v22291_v62, -inf }
 0xbbc   :  { %6796 = vmax.xlane.f32.xlu1 %v6795_v54  ;;  %v6792_v38 = vsel %vm1309_vm4, %v22295_v32, -inf }
 0xbbd   :  { %6793 = vmax.xlane.f32.xlu0 %v6792_v38 }
 0xbbf   :  { %v17757_v61 = vpop.f32.mrb[92].mxu0 }
 0xbc0   :  { %v6753_v51 = vmul.f32 0.125, %v17757_v61  ;;  %v6551_v4 = vpop.f32.mrb[93].mxu0 }
 0xbc1   :  { %v6752_v42 = vmul.f32 0.125, %v6551_v4 }
 0xbc2   :  { %v22303_v22 = vsel %vm21091_vm3, %v6753_v51, -inf }
 0xbc3   :  { %v22307_v41 = vsel %vm21096_vm5, %v6752_v42, -inf  ;;  %v6807_v29 = vsel %vm1309_vm4, %v22303_v22, -inf }
 0xbc4   :  { %6808 = vmax.xlane.f32.xlu1 %v6807_v29  ;;  %v6804_v50 = vsel %vm1309_vm4, %v22307_v41, -inf }
 0xbc5   :  { %6805 = vmax.xlane.f32.xlu0 %v6804_v50 }
 0xbc7   :  { %v17771_v10 = vpop.f32.mrb[94].mxu0 }
 0xbc8   :  { %v6757_v36 = vmul.f32 0.125, %v17771_v10  ;;  %v6733_v40 = vpop.f32.mrb[95].mxu0 }
 0xbc9   :  { %v6756_v2 = vmul.f32 0.125, %v6733_v40 }
 0xbca   :  { %v22315_v17 = vsel %vm21091_vm3, %v6757_v36, -inf }
 0xbcb   :  { %v22319_v57 = vsel %vm21096_vm5, %v6756_v2, -inf  ;;  %v6819_v24 = vsel %vm1309_vm4, %v22315_v17, -inf }
 0xbcc   :  { %6820 = vmax.xlane.f32.xlu1 %v6819_v24  ;;  %v6816_v0 = vsel %vm1309_vm4, %v22319_v57, -inf }
 0xbcd   :  { %6817 = vmax.xlane.f32.xlu0 %v6816_v0 }
 0xc31   :  { %v6779_v3 = vpop.xlane.xlu1 %6778 }
 0xc32   :  { %v6823_v12 = vsub.f32 %v6759_v14, %v6779_v3  ;;  %v6776_v23 = vpop.xlane.xlu0 %6775 }
 0xc33   :  { %v6822_v45 = vsub.f32 %v6758_v20, %v6776_v23 }
 0xc34   :  { %v6840_v18 = vmul.f32 1.442695, %v6823_v12 }
 0xc35   :  { %v6838_v11 = vmul.f32 1.442695, %v6822_v45 }
 0xc36   :  { %20067 = vpow2.f32 %v6840_v18 }
 0xc37   :  { %20069 = vpow2.f32 %v6838_v11 }
 0xc39   :  { %v6785_v6 = vpop.xlane.xlu0 %6784 }
 0xc3a   :  { %v6825_v54 = vsub.f32 %v6761_v44, %v6785_v6 }
 0xc3c   :  { %v6844_v38 = vmul.f32 1.442695, %v6825_v54 }
 0xc3d   :  { %v6782_v61 = vpop.xlane.xlu0 %6781 }
 0xc3e   :  { %20071 = vpow2.f32 %v6844_v38  ;;  %v6824_v51 = vsub.f32 %v6760_v39, %v6782_v61 }
 0xc40   :  { %v22325_v4 = vpop.eup %20067  ;;  %v6842_v42 = vmul.f32 1.442695, %v6824_v51 }
 0xc41   :  { %v22327_v29 = vpop.eup %20069  ;;  %v6791_v50 = vpop.xlane.xlu1 %6790  ;;  %v6873_v14 = vsel %vm1309_vm4, %v22325_v4, 0.0 }
 0xc42   :  { %20073 = vpow2.f32 %v6842_v42  ;;  %v6827_v20 = vsub.f32 %v6763_v27, %v6791_v50  ;;  %v6788_v10 = vpop.xlane.xlu0 %6787  ;;  %6874 = vadd.xlane.f32.xlu1 %v6873_v14  ;;  %v6870_v44 = vsel %vm1309_vm4, %v22327_v29, 0.0 }
 0xc43   :  { %v6826_v36 = vsub.f32 %v6762_v19, %v6788_v10  ;;  %6871 = vadd.xlane.f32.xlu0 %v6870_v44 }
 0xc44   :  { %v6848_v40 = vmul.f32 1.442695, %v6827_v20 }
 0xc45   :  { %v6846_v39 = vmul.f32 1.442695, %v6826_v36 }
 0xc46   :  { %20075 = vpow2.f32 %v6848_v40 }
 0xc47   :  { %20077 = vpow2.f32 %v6846_v39 }
 0xc48   :  { %v22333_v2 = vpop.eup %20071 }
 0xc49   :  { %v6797_v24 = vpop.xlane.xlu1 %6796  ;;  %v6879_v0 = vsel %vm1309_vm4, %v22333_v2, 0.0 }
 0xc4a   :  { %v6829_v3 = vsub.f32 %v22291_v62, %v6797_v24  ;;  %v6794_v27 = vpop.xlane.xlu0 %6793  ;;  %6880 = vadd.xlane.f32.xlu1 %v6879_v0 }
 0xc4b   :  { %v6828_v12 = vsub.f32 %v22295_v32, %v6794_v27 }
 0xc4c   :  { %v22339_v23 = vpop.eup %20073  ;;  %v6852_v19 = vmul.f32 1.442695, %v6829_v3 }
 0xc4d   :  { %v6850_v45 = vmul.f32 1.442695, %v6828_v12  ;;  %v6876_v18 = vsel %vm1309_vm4, %v22339_v23, 0.0 }
 0xc4e   :  { %20079 = vpow2.f32 %v6852_v19  ;;  %6877 = vadd.xlane.f32.xlu0 %v6876_v18 }
 0xc4f   :  { %20081 = vpow2.f32 %v6850_v45 }
 0xc50   :  { %v22343_v11 = vpop.eup %20075 }
 0xc51   :  { %v22345_v6 = vpop.eup %20077  ;;  %v6809_v54 = vpop.xlane.xlu1 %6808  ;;  %v6885_v62 = vsel %vm1309_vm4, %v22343_v11, 0.0 }
 0xc52   :  { %v6833_v32 = vsub.f32 %v22303_v22, %v6809_v54  ;;  %v6806_v38 = vpop.xlane.xlu0 %6805  ;;  %6886 = vadd.xlane.f32.xlu1 %v6885_v62  ;;  %v6882_v61 = vsel %vm1309_vm4, %v22345_v6, 0.0 }
 0xc53   :  { %v6832_v51 = vsub.f32 %v22307_v41, %v6806_v38  ;;  %6883 = vadd.xlane.f32.xlu0 %v6882_v61 }
 0xc54   :  { %v6860_v42 = vmul.f32 1.442695, %v6833_v32 }
 0xc55   :  { %v6858_v50 = vmul.f32 1.442695, %v6832_v51 }
 0xc56   :  { %20083 = vpow2.f32 %v6860_v42 }
 0xc57   :  { %20085 = vpow2.f32 %v6858_v50 }
 0xc58   :  { %v22353_v14 = vpop.eup %20079 }
 0xc59   :  { %v22355_v20 = vpop.eup %20081  ;;  %v6891_v10 = vsel %vm1309_vm4, %v22353_v14, 0.0  ;;  %v6821_v50 = vpop.xlane.xlu1 %6820 }
 0xc5a   :  { %6892 = vadd.xlane.f32.xlu1 %v6891_v10  ;;  %v6888_v22 = vsel %vm1309_vm4, %v22355_v20, 0.0  ;;  %v6818_v10 = vpop.xlane.xlu0 %6817 }
 0xc5b   :  { %6889 = vadd.xlane.f32.xlu0 %v6888_v22  ;;  %v6837_v22 = vsub.f32 %v22315_v17, %v6821_v50 }
 0xc60   :  { %v22361_v44 = vpop.eup %20083 }
 0xc61   :  { %v22363_v41 = vpop.eup %20085  ;;  %v6903_v36 = vsel %vm1309_vm4, %v22361_v44, 0.0 }
 0xc62   :  { %6904 = vadd.xlane.f32.xlu1 %v6903_v36  ;;  %v6900_v40 = vsel %vm1309_vm4, %v22363_v41, 0.0  ;;  %v6836_v36 = vsub.f32 %v22319_v57, %v6818_v10 }
 0xc63   :  { %6901 = vadd.xlane.f32.xlu0 %v6900_v40  ;;  %v6868_v40 = vmul.f32 1.442695, %v6837_v22 }
 0xc65   :  { %20087 = vpow2.f32 %v6868_v40 }
 0xc71   :  { %v17750_v39 = vpop.f32.mrb[66].mxu1 }
 0xc72   :  { %v6751_v24 = vmul.f32 0.125, %v17750_v39  ;;  %v6460_v0 = vpop.f32.mrb[67].mxu1  ;;  %v6866_v39 = vmul.f32 1.442695, %v6836_v36 }
 0xc73   :  { %v6750_v3 = vmul.f32 0.125, %v6460_v0 }
 0xc74   :  { %v6767_v27 = vsel %vm21091_vm3, %v6751_v24, -inf  ;;  %20089 = vpow2.f32 %v6866_v39  ;;  %v22387_v24 = vpop.eup %20087 }
 0xc75   :  { %v6766_v12 = vsel %vm21096_vm5, %v6750_v3, -inf  ;;  %v6801_v19 = vsel %vm1309_vm4, %v6767_v27, -inf  ;;  %v6915_v3 = vsel %vm1309_vm4, %v22387_v24, 0.0 }
 0xc76   :  { %6802 = vmax.xlane.f32.xlu1 %v6801_v19  ;;  %v6798_v45 = vsel %vm1309_vm4, %v6766_v12, -inf }
 0xc77   :  { %6799 = vmax.xlane.f32.xlu0 %v6798_v45 }
 0xc79   :  { %v17764_v18 = vpop.f32.mrb[68].mxu1 }
 0xc7a   :  { %v6755_v54 = vmul.f32 0.125, %v17764_v18  ;;  %v6642_v62 = vpop.f32.mrb[69].mxu1 }
 0xc7b   :  { %v6754_v32 = vmul.f32 0.125, %v6642_v62 }
 0xc7c   :  { %v6771_v38 = vsel %vm21091_vm3, %v6755_v54, -inf }
 0xc7d   :  { %v6770_v61 = vsel %vm21096_vm5, %v6754_v32, -inf  ;;  %v6813_v51 = vsel %vm1309_vm4, %v6771_v38, -inf }
 0xc7e   :  { %6814 = vmax.xlane.f32.xlu1 %v6813_v51  ;;  %v6810_v42 = vsel %vm1309_vm4, %v6770_v61, -inf  ;;  %v22389_v0 = vpop.eup %20089 }
 0xc7f   :  { %6811 = vmax.xlane.f32.xlu0 %v6810_v42  ;;  %v6912_v19 = vsel %vm1309_vm4, %v22389_v0, 0.0 }
 0xc8f   :  { %19489 = vrot.lane.b32.xlu1 %v20930_v55, %s20493_s20 }
 0xc95   :  { %19484 = vrot.lane.b32.xlu0 %v20916_v33, %s20493_s20 }
 0xcb3   :  { %6916 = vadd.xlane.f32.xlu1 %v6915_v3 }
 0xcb4   :  { %6913 = vadd.xlane.f32.xlu0 %v6912_v19 }
 0xcc4   :  { %19499 = vrot.lane.b32.xlu1 %v24459_v8, %s20493_s20 }
 0xcc8   :  { %19509 = vrot.lane.b32.xlu1 %v24461_v1, %s20493_s20 }
 0xcca   :  { %19494 = vrot.lane.b32.xlu0 %v24458_v34, %s20493_s20 }
 0xcce   :  { %19504 = vrot.lane.b32.xlu0 %v24463_v58, %s20493_s20 }
 0xccf   :  { %v6875_v51 = vpop.xlane.xlu1 %6874 }
 0xcd0   :  { %v6872_v17 = vpop.xlane.xlu0 %6871 }
 0xcd1   :  { %20091 = vrcp.f32 %v6872_v17 }
 0xcd7   :  { %v6881_v42 = vpop.xlane.xlu1 %6880 }
 0xcdb   :  { %v20092_v57 = vpop.eup %20091  ;;  %v6878_v45 = vpop.xlane.xlu0 %6877 }
 0xcdc   :  { %v6919_v18 = vmul.f32 %v20092_v57, %v22327_v29 }
 0xcde   :  { %17776 = vmatprep.mubr.msk.f32.mxu1 %vm1309_vm4, %v6919_v18 }
 0xcdf   :  { %v22407_v50 = vpop.xlane.xlu1 %6886 }
 0xce0   :  { %v6884_v54 = vpop.xlane.xlu0 %6883 }
 0xce1   :  { %20093 = vrcp.f32 %v6884_v54 }
 0xce7   :  { %v22409_v10 = vpop.xlane.xlu1 %6892 }
 0xce8   :  { %v6890_v22 = vpop.xlane.xlu0 %6889 }
 0xceb   :  { %v20094_v62 = vpop.eup %20093 }
 0xcec   :  { %v6927_v32 = vmul.f32 %v20094_v62, %v22345_v6 }
 0xcee   :  { %17790 = vmatprep.mubr.msk.f32.mxu0 %vm1309_vm4, %v6927_v32 }
 0xcef   :  { %v22411_v36 = vpop.xlane.xlu1 %6904 }
 0xcf0   :  { %v22413_v40 = vpop.xlane.xlu0 %6901 }
 0xd03   :  { %v6803_v29 = vpop.xlane.xlu1 %6802 }
 0xd04   :  { %v6831_v39 = vsub.f32 %v6767_v27, %v6803_v29  ;;  %v6800_v3 = vpop.xlane.xlu0 %6799 }
 0xd05   :  { %v6830_v19 = vsub.f32 %v6766_v12, %v6800_v3 }
 0xd06   :  { %v6856_v17 = vmul.f32 1.442695, %v6831_v39 }
 0xd07   :  { %v6854_v57 = vmul.f32 1.442695, %v6830_v19 }
 0xd08   :  { %20095 = vpow2.f32 %v6856_v17 }
 0xd09   :  { %20097 = vpow2.f32 %v6854_v57 }
 0xd0a   :  { %20099 = vrcp.f32 %v6875_v51 }
 0xd0b   :  { %20101 = vrcp.f32 %v6878_v45  ;;  %v6815_v6 = vpop.xlane.xlu1 %6814 }
 0xd0c   :  { %v6835_v18 = vsub.f32 %v6771_v38, %v6815_v6  ;;  %v6812_v54 = vpop.xlane.xlu0 %6811  ;;  %20103 = vrcp.f32 %v6881_v42 }
 0xd0d   :  { %v6834_v62 = vsub.f32 %v6770_v61, %v6812_v54  ;;  %20105 = vrcp.f32 %v6890_v22 }
 0xd0e   :  { %v6864_v32 = vmul.f32 1.442695, %v6835_v18 }
 0xd0f   :  { %v6862_v58 = vmul.f32 1.442695, %v6834_v62  ;;  %v19490_v34 = vpop.permute.xlu1 %19489 }
 0xd10   :  { %20107 = vpow2.f32 %v6864_v32  ;;  %v19485_v1 = vpop.permute.xlu0 %19484  ;;  %v19492_v27 = vunpack.i.h.bf16 %v19490_v34  ;;  %v19491_v29 = vunpack.i.l.bf16 %v19490_v34 }
 0xd11   :  { %v19487_v12 = vunpack.i.h.bf16 %v19485_v1  ;;  %v19486_v39 = vunpack.i.l.bf16 %v19485_v1  ;;  %20109 = vpow2.f32 %v6862_v58 }
 0xd12   :  { %v22415_v3 = vpop.eup %20095  ;;  %v18714_v34 = vpack.c.bf16 %v19492_v27, %v19491_v29  ;;  %20111 = vrcp.f32 %v22409_v10 }
 0xd13   :  { %v22417_v51 = vpop.eup %20097  ;;  %v6897_v38 = vsel %vm1309_vm4, %v22415_v3, 0.0  ;;  %v18710_v61 = vpack.c.bf16 %v19487_v12, %v19486_v39  ;;  %20113 = vrcp.f32 %v22407_v50 }
 0xd14   :  { %v20100_v45 = vpop.eup %20099  ;;  %6898 = vadd.xlane.f32.xlu1 %v6897_v38  ;;  %v6894_v42 = vsel %vm1309_vm4, %v22417_v51, 0.0  ;;  %20115 = vrcp.f32 %v22413_v40 }
 0xd15   :  { %v20102_v22 = vpop.eup %20101  ;;  %18711 = vmatprep.subr.bf16.mxu1 %v18710_v61  ;;  %6895 = vadd.xlane.f32.xlu0 %v6894_v42  ;;  %v6921_v1 = vmul.f32 %v20100_v45, %v22325_v4  ;;  %20117 = vrcp.f32 %v22411_v36 }
 0xd16   :  { %18713 = vmatpush3.bf16.msra.mxu1 %v18710_v61  ;;  %v20104_v58 = vpop.eup %20103  ;;  %v6923_v19 = vmul.f32 %v20102_v22, %v22339_v23 }
 0xd17   :  { %18715 = vmatprep.subr.bf16.mxu1 %v18714_v34  ;;  %v20106_v17 = vpop.eup %20105  ;;  %v6925_v18 = vmul.f32 %v20104_v58, %v22333_v2 }
 0xd18   :  { %v6931_v4 = vmul.f32 %v20106_v17, %v22355_v20 }
 0xd19   :  { %17777 = vmatmul.mubr.msk.f32.vlgmr.msra.gmra.mrb[70].mxu1 %vm1309_vm4, %v6921_v1 }
 0xd1a   :  { %v22426_v57 = vpop.eup %20107  ;;  %18717 = vmatpush3.bf16.msra.mxu1 %v18714_v34  ;;  %17783 = vmatprep.mubr.msk.f32.mxu1 %vm1309_vm4, %v6923_v19 }
 0xd1b   :  { %v6909_v6 = vsel %vm1309_vm4, %v22426_v57, 0.0  ;;  %v22432_v54 = vpop.eup %20109 }
 0xd1c   :  { %6910 = vadd.xlane.f32.xlu1 %v6909_v6  ;;  %v6906_v23 = vsel %vm1309_vm4, %v22432_v54, 0.0  ;;  %v20112_v12 = vpop.eup %20111 }
 0xd1d   :  { %17784 = vmatmul.mubr.msk.f32.vlgmr.msra.gmra.mrb[72].mxu1 %vm1309_vm4, %v6925_v18  ;;  %v20114_v38 = vpop.eup %20113  ;;  %v6933_v58 = vmul.f32 %v20112_v12, %v22353_v14 }
 0xd1e   :  { %17797 = vmatprep.mubr.msk.f32.mxu1 %vm1309_vm4, %v6931_v4  ;;  %v20116_v1 = vpop.eup %20115  ;;  %v6929_v17 = vmul.f32 %v20114_v38, %v22343_v11 }
 0xd1f   :  { %v20118_v18 = vpop.eup %20117 }
 0xd20   :  { %6907 = vadd.xlane.f32.xlu1 %v6906_v23  ;;  %v6939_v23 = vmul.f32 %v20116_v1, %v22363_v41  ;;  %v6941_v11 = vmul.f32 %v20118_v18, %v22361_v44  ;;  %v24497_v44 = vld [vmem:[#allocation22_spill] sm:$0xff]  ;;  %v24498_v41 = vld [vmem:[#allocation29_spill] sm:$0xff] }
 0xd2b   :  { %19514 = vrot.lane.b32.xlu0 %v24462_v63, %s20493_s20 }
 0xd2f   :  { %19524 = vrot.lane.b32.xlu0 %v20912_v52, %s20494_s21 }
 0xd31   :  { %19519 = vrot.lane.b32.xlu1 %v24460_v7, %s20493_s20 }
 0xd33   :  { %7857 = vrot.lane.b32.xlu0 %v20904_v30, %s20495_s23 }
 0xd35   :  { %19529 = vrot.lane.b32.xlu1 %v20926_v35, %s20494_s21 }
 0xd37   :  { %19534 = vrot.lane.b32.xlu0 %v20940_v47, %s20494_s21 }
 0xd39   :  { %7859 = vrot.lane.b32.xlu1 %v20908_v31, %s20495_s23 }
 0xd3b   :  { %7950 = vrot.lane.b32.xlu0 %v24475_v48, %s20495_s23 }
 0xd3d   :  { %7948 = vrot.lane.b32.xlu1 %v20920_v53, %s20495_s23 }
 0xd3f   :  { %8039 = vrot.lane.b32.xlu0 %v24479_v9, %s20495_s23 }
 0xd40   :  { %v22461_v2 = vpop.xlane.xlu1 %6916 }
 0xd41   :  { %19539 = vrot.lane.b32.xlu1 %v20954_v25, %s20494_s21  ;;  %v6914_v20 = vpop.xlane.xlu0 %6913 }
 0xd42   :  { %20119 = vrcp.f32 %v6914_v20  ;;  %v24500_v20 = vld [vmem:[#allocation30_spill] sm:$0xff] }
 0xd43   :  { %19544 = vrot.lane.b32.xlu0 %v24483_v49, %s20494_s21 }
 0xd44   :  { %v19500_v10 = vpop.permute.xlu1 %19499 }
 0xd45   :  { %v19502_v62 = vunpack.i.h.bf16 %v19500_v10  ;;  %v19501_v50 = vunpack.i.l.bf16 %v19500_v10  ;;  %8041 = vrot.lane.b32.xlu1 %v24473_v59, %s20495_s23  ;;  %v19495_v32 = vpop.permute.xlu0 %19494 }
 0xd46   :  { %v19497_v27 = vunpack.i.h.bf16 %v19495_v32  ;;  %v19496_v29 = vunpack.i.l.bf16 %v19495_v32 }
 0xd47   :  { %8130 = vrot.lane.b32.xlu0 %v24487_v15, %s20495_s23  ;;  %v18722_v40 = vpack.c.bf16 %v19502_v62, %v19501_v50 }
 0xd48   :  { %v19510_v39 = vpop.permute.xlu1 %19509  ;;  %v18718_v36 = vpack.c.bf16 %v19497_v27, %v19496_v29 }
 0xd49   :  { %v19512_v61 = vunpack.i.h.bf16 %v19510_v39  ;;  %v19511_v45 = vunpack.i.l.bf16 %v19510_v39  ;;  %19549 = vrot.lane.b32.xlu1 %v24477_v60, %s20494_s21  ;;  %v19505_v42 = vpop.permute.xlu0 %19504  ;;  %18723 = vmatprep.subr.bf16.mxu1 %v18722_v40 }
 0xd4a   :  { %v19507_v22 = vunpack.i.h.bf16 %v19505_v42  ;;  %v19506_v34 = vunpack.i.l.bf16 %v19505_v42  ;;  %18719 = vmatprep.subr.bf16.mxu0 %v18718_v36  ;;  %18725 = vmatpush3.bf16.msra.mxu1 %v18722_v40 }
 0xd4b   :  { %18721 = vmatpush3.bf16.msra.mxu0 %v18718_v36  ;;  %19554 = vrot.lane.b32.xlu0 %v24489_v13, %s20494_s21  ;;  %v18730_v19 = vpack.c.bf16 %v19512_v61, %v19511_v45 }
 0xd4c   :  { %v18726_v6 = vpack.c.bf16 %v19507_v22, %v19506_v34  ;;  %v20120_v4 = vpop.eup %20119 }
 0xd4d   :  { %8132 = vrot.lane.b32.xlu1 %v24481_v5, %s20495_s23  ;;  %17798 = vmatmul.mubr.msk.f32.vlgmr.msra.gmra.mrb[74].mxu1 %vm1309_vm4, %v6933_v58  ;;  %v6947_v14 = vmul.f32 %v20120_v4, %v22389_v0  ;;  %v24499_v0 = vld [vmem:[#allocation26_spill] sm:$0xff] }
 0xd4e   :  { %18731 = vmatprep.subr.bf16.mxu1 %v18730_v19  ;;  %17791 = vmatmul.mubr.msk.f32.vlgmr.msra.gmra.mrb[96].mxu0 %vm1309_vm4, %v6929_v17 }
 0xd4f   :  { %18727 = vmatprep.subr.bf16.mxu0 %v18726_v6  ;;  %18733 = vmatpush3.bf16.msra.mxu1 %v18730_v19 }
 0xd50   :  { %17811 = vmatprep.mubr.msk.f32.mxu1 %vm1309_vm4, %v6939_v23  ;;  %18729 = vmatpush3.bf16.msra.mxu0 %v18726_v6  ;;  %v7647_v23 = vld [vmem:[#allocation2 + $0x18] sm:$0xff] }
 0xd51   :  { %8223 = vrot.lane.b32.xlu0 %v24491_v46, %s20495_s23  ;;  %8221 = vrot.lane.b32.xlu1 %v24485_v43, %s20495_s23 }
 0xd52   :  { %17812 = vmatmul.mubr.msk.f32.vlgmr.msra.gmra.mrb[76].mxu1 %vm1309_vm4, %v6941_v11 }
 0xd53   :  { %17825 = vmatprep.mubr.msk.f32.mxu1 %vm1309_vm4, %v6947_v14 }
 0xd55   :  { %8312 = vrot.lane.b32.xlu0 %v24493_v37, %s20495_s23  ;;  %19559 = vrot.lane.b32.xlu1 %v24488_v21, %s20494_s21 }
 0xd59   :  { %8403 = vrot.lane.b32.xlu0 %v24495_v26, %s20495_s23  ;;  %8314 = vrot.lane.b32.xlu1 %v24497_v44, %s20495_s23 }
 0xd5d   :  { %8494 = vrot.lane.b32.xlu0 %v24498_v41, %s20495_s23  ;;  %8405 = vrot.lane.b32.xlu1 %v24499_v0, %s20495_s23 }
 0xd61   :  { %8496 = vrot.lane.b32.xlu1 %v24500_v20, %s20495_s23 }
 0xda1   :  { %v6899_v10 = vpop.xlane.xlu1 %6898 }
 0xda2   :  { %20121 = vrcp.f32 %v6899_v10  ;;  %v6896_v62 = vpop.xlane.xlu0 %6895 }
 0xda3   :  { %20123 = vrcp.f32 %v6896_v62 }
 0xda4   :  { %20125 = vrcp.f32 %v22461_v2 }
 0xda6   :  { %v19515_v50 = vpop.permute.xlu0 %19514 }
 0xda7   :  { %v19517_v32 = vunpack.i.h.bf16 %v19515_v50  ;;  %v19516_v27 = vunpack.i.l.bf16 %v19515_v50 }
 0xda9   :  { %v6911_v29 = vpop.xlane.xlu1 %6910  ;;  %v18734_v40 = vpack.c.bf16 %v19517_v32, %v19516_v27 }
 0xdaa   :  { %v19525_v12 = vpop.permute.xlu0 %19524  ;;  %20127 = vrcp.f32 %v6911_v29 }
 0xdab   :  { %18735 = vmatprep.subr.bf16.mxu0 %v18734_v40  ;;  %v19527_v38 = vunpack.i.h.bf16 %v19525_v12  ;;  %v19526_v61 = vunpack.i.l.bf16 %v19525_v12 }
 0xdac   :  { %v20122_v39 = vpop.eup %20121 }
 0xdad   :  { %v20124_v36 = vpop.eup %20123  ;;  %v6908_v45 = vpop.xlane.xlu1 %6907  ;;  %v6937_v34 = vmul.f32 %v20122_v39, %v22415_v3  ;;  %v18742_v1 = vpack.c.bf16 %v19527_v38, %v19526_v61 }
 0xdae   :  { %20129 = vrcp.f32 %v6908_v45  ;;  %v7858_v42 = vpop.permute.xlu0 %7857  ;;  %v6935_v22 = vmul.f32 %v20124_v36, %v22417_v51  ;;  %v20126_v18 = vpop.eup %20125 }
 0xdaf   :  { %v6949_v62 = vmul.f32 %v20126_v18, %v22387_v24 }
 0xdb0   :  { %17804 = vmatprep.mubr.msk.f32.mxu0 %vm1309_vm4, %v6935_v22 }
 0xdb1   :  { %v19520_v58 = vpop.permute.xlu1 %19519  ;;  %17805 = vmatmul.mubr.msk.f32.vlgmr.msra.gmra.mrb[98].mxu0 %vm1309_vm4, %v6937_v34 }
 0xdb2   :  { %v19522_v2 = vunpack.i.h.bf16 %v19520_v58  ;;  %v19521_v19 = vunpack.i.l.bf16 %v19520_v58  ;;  %18737 = vmatpush3.bf16.msra.mxu0 %v18734_v40  ;;  %v19535_v17 = vpop.permute.xlu0 %19534 }
 0xdb3   :  { %18744 = vmatprep.subr.msk.bf16.mxu0 %vm21019_vm2, %v18742_v1  ;;  %v19537_v36 = vunpack.i.h.bf16 %v19535_v17 }
 0xdb4   :  { %v18738_v6 = vpack.c.bf16 %v19522_v2, %v19521_v19  ;;  %v20128_v3 = vpop.eup %20127 }
 0xdb5   :  { %v19530_v4 = vpop.permute.xlu1 %19529  ;;  %v6945_v29 = vmul.f32 %v20128_v3, %v22426_v57  ;;  %v19536_v57 = vunpack.i.l.bf16 %v19535_v17 }
 0xdb6   :  { %18739 = vmatprep.subr.bf16.mxu1 %v18738_v6  ;;  %v7951_v51 = vpop.permute.xlu0 %7950  ;;  %v19532_v14 = vunpack.i.h.bf16 %v19530_v4  ;;  %v19531_v10 = vunpack.i.l.bf16 %v19530_v4 }
 0xdb7   :  { %18741 = vmatpush3.bf16.msra.mxu1 %v18738_v6  ;;  %v18754_v45 = vpack.c.bf16 %v19537_v36, %v19536_v57 }
 0xdb8   :  { %v20130_v11 = vpop.eup %20129  ;;  %17828 = vmatprep.subr.mxu1 %v7647_v23  ;;  %v18748_v40 = vpack.c.bf16 %v19532_v14, %v19531_v10 }
 0xdb9   :  { %v7860_v50 = vpop.permute.xlu1 %7859  ;;  %v6943_v32 = vmul.f32 %v20130_v11, %v22432_v54 }
 0xdba   :  { %17826 = vmatmul.mubr.msk.f32.vlgmr.msra.gmra.mrb[78].mxu1 %vm1309_vm4, %v6949_v62  ;;  %v8040_v27 = vpop.permute.xlu0 %8039 }
 0xdbb   :  { %17818 = vmatprep.mubr.msk.f32.mxu0 %vm1309_vm4, %v6943_v32  ;;  %17829 = vmatpush3.msra.mxu1 %v7647_v23 }
 0xdbc   :  { %17819 = vmatmul.mubr.msk.f32.vlgmr.msra.gmra.mrb[100].mxu0 %vm1309_vm4, %v6945_v29 }
 0xdbd   :  { %18747 = vmatpush3.bf16.xpose.msk.msra.mxu0 %vm21019_vm2, %v18742_v1  ;;  %v7949_v12 = vpop.permute.xlu1 %7948  ;;  %17858 = vmatprep.mubr.msk.f32.mxu0 %vm566_vm1, %v7858_v42 }
 0xdbe   :  { %18750 = vmatprep.subr.msk.bf16.mxu0 %vm21019_vm2, %v18748_v40  ;;  %v19545_v24 = vpop.permute.xlu0 %19544 }
 0xdbf   :  { %v19547_v54 = vunpack.i.h.bf16 %v19545_v24  ;;  %v19546_v39 = vunpack.i.l.bf16 %v19545_v24 }
 0xdc1   :  { %v18766_v38 = vpack.c.bf16 %v19547_v54, %v19546_v39  ;;  %v19540_v61 = vpop.permute.xlu1 %19539 }
 0xdc2   :  { %v8131_v22 = vpop.permute.xlu0 %8130  ;;  %v19542_v34 = vunpack.i.h.bf16 %v19540_v61  ;;  %v19541_v1 = vunpack.i.l.bf16 %v19540_v61 }
 0xdc3   :  { %18768 = vmatprep.subr.msk.bf16.mxu1 %vm21019_vm2, %v18766_v38 }
 0xdc4   :  { %17859 = vmatmul.mubr.msk.f32.vlgmr.msra.gmra.mrb[102].mxu0 %vm566_vm1, %v7860_v50  ;;  %v18760_v2 = vpack.c.bf16 %v19542_v34, %v19541_v1 }
 0xdc5   :  { %18753 = vmatpush3.bf16.xpose.msk.msra.mxu0 %vm21019_vm2, %v18748_v40  ;;  %17865 = vmatprep.mubr.msk.f32.mxu0 %vm566_vm1, %v7949_v12  ;;  %v8042_v42 = vpop.permute.xlu1 %8041 }
 0xdc6   :  { %18756 = vmatprep.subr.msk.bf16.mxu0 %vm21019_vm2, %v18754_v45  ;;  %v19555_v19 = vpop.permute.xlu0 %19554 }
 0xdc7   :  { %v19557_v40 = vunpack.i.h.bf16 %v19555_v19  ;;  %v19556_v12 = vunpack.i.l.bf16 %v19555_v19 }
 0xdc9   :  { %v19550_v58 = vpop.permute.xlu1 %19549  ;;  %v18778_v36 = vpack.c.bf16 %v19557_v40, %v19556_v12 }
 0xdca   :  { %v19552_v6 = vunpack.i.h.bf16 %v19550_v58  ;;  %v19551_v18 = vunpack.i.l.bf16 %v19550_v58  ;;  %v22541_v23 = vpop.permute.xlu0 %8223 }
 0xdcc   :  { %17866 = vmatmul.mubr.msk.f32.vlgmr.msra.gmra.mrb[104].mxu0 %vm566_vm1, %v7951_v51  ;;  %v18772_v3 = vpack.c.bf16 %v19552_v6, %v19551_v18 }
 0xdcd   :  { %18759 = vmatpush3.bf16.xpose.msk.msra.mxu0 %vm21019_vm2, %v18754_v45  ;;  %17872 = vmatprep.mubr.msk.f32.mxu0 %vm566_vm1, %v8040_v27  ;;  %v8133_v17 = vpop.permute.xlu1 %8132 }
 0xdce   :  { %18762 = vmatprep.subr.msk.bf16.mxu0 %vm21019_vm2, %v18760_v2  ;;  %v8313_v11 = vpop.permute.xlu0 %8312 }
 0xdd1   :  { %v22539_v4 = vpop.permute.xlu1 %8221 }
 0xdd2   :  { %v8404_v50 = vpop.permute.xlu0 %8403 }
 0xdd4   :  { %17873 = vmatmul.mubr.msk.f32.vlgmr.msra.gmra.mrb[106].mxu0 %vm566_vm1, %v8042_v42 }
 0xdd5   :  { %18765 = vmatpush3.bf16.xpose.msk.msra.mxu0 %vm21019_vm2, %v18760_v2  ;;  %17879 = vmatprep.mubr.msk.f32.mxu0 %vm566_vm1, %v8131_v22  ;;  %v19560_v51 = vpop.permute.xlu1 %19559 }
 0xdd6   :  { %18774 = vmatprep.subr.msk.bf16.mxu0 %vm21019_vm2, %v18772_v3  ;;  %v19562_v14 = vunpack.i.h.bf16 %v19560_v51  ;;  %v19561_v10 = vunpack.i.l.bf16 %v19560_v51  ;;  %v8495_v27 = vpop.permute.xlu0 %8494 }
 0xdd8   :  { %v18784_v62 = vpack.c.bf16 %v19562_v14, %v19561_v10 }
 0xdd9   :  { %v8315_v32 = vpop.permute.xlu1 %8314 }
 0xddc   :  { %17880 = vmatmul.mubr.msk.f32.vlgmr.msra.gmra.mrb[108].mxu0 %vm566_vm1, %v8133_v17 }
 0xddd   :  { %18777 = vmatpush3.bf16.xpose.msk.msra.mxu0 %vm21019_vm2, %v18772_v3  ;;  %17893 = vmatprep.mubr.msk.f32.mxu0 %vm566_vm1, %v8313_v11  ;;  %v8406_v29 = vpop.permute.xlu1 %8405 }
 0xdde   :  { %18786 = vmatprep.subr.msk.bf16.mxu0 %vm21019_vm2, %v18784_v62 }
 0xde1   :  { %v8497_v24 = vpop.permute.xlu1 %8496 }
 0xde4   :  { %17894 = vmatmul.mubr.msk.f32.vlgmr.msra.gmra.mrb[110].mxu0 %vm566_vm1, %v8315_v32 }
 0xde5   :  { %18789 = vmatpush3.bf16.xpose.msk.msra.mxu0 %vm21019_vm2, %v18784_v62  ;;  %17907 = vmatprep.mubr.msk.f32.mxu0 %vm566_vm1, %v8495_v27 }
 0xdec   :  { %17908 = vmatmul.mubr.msk.f32.vlgmr.msra.gmra.mrb[112].mxu0 %vm566_vm1, %v8497_v24  ;;  %v17778_v54 = vpop.f32.mrb[70].mxu1 }
 0xded   :  { %v7028_v39 = vpop.f32.mrb[71].mxu1 }
 0xdee   :  { %17830 = vmatprep.mubr.msk.f32.mxu1 %vm566_vm1, %v7028_v39 }
 0xdef   :  { %17831 = vmatmul.mubr.msk.f32.vlgmr.msra.gmra.mrb[52].mxu1 %vm566_vm1, %v17778_v54 }
 0xdf0   :  { %18771 = vmatpush3.bf16.xpose.msk.msra.mxu1 %vm21019_vm2, %v18766_v38  ;;  %v17785_v57 = vpop.f32.mrb[72].mxu1 }
 0xdf1   :  { %18780 = vmatprep.subr.msk.bf16.mxu1 %vm21019_vm2, %v18778_v36  ;;  %v7115_v61 = vpop.f32.mrb[73].mxu1 }
 0xdf2   :  { %17833 = vmatprep.mubr.msk.f32.mxu1 %vm566_vm1, %v7115_v61 }
 0xdf3   :  { %17834 = vmatmul.mubr.msk.f32.gmra.mrb[54].mxu1 %vm566_vm1, %v17785_v57 }
 0xe20   :  { %v17799_v45 = vpop.f32.mrb[74].mxu1 }
 0xe21   :  { %v17792_v42 = vpop.f32.mrb[96].mxu0  ;;  %v7289_v22 = vpop.f32.mrb[75].mxu1 }
 0xe22   :  { %v7202_v34 = vpop.f32.mrb[97].mxu0 }
 0xe23   :  { %17836 = vmatprep.mubr.msk.f32.mxu1 %vm566_vm1, %v7202_v34 }
 0xe24   :  { %17837 = vmatmul.mubr.msk.f32.gmra.mrb[56].mxu1 %vm566_vm1, %v17792_v42 }
 0xe25   :  { %v17813_v1 = vpop.f32.mrb[76].mxu1  ;;  %17839 = vmatprep.mubr.msk.f32.mxu1 %vm566_vm1, %v7289_v22 }
 0xe26   :  { %v7463_v38 = vpop.f32.mrb[77].mxu1 }
 0xe28   :  { %17840 = vmatmul.mubr.msk.f32.gmra.mrb[42].mxu1 %vm566_vm1, %v17799_v45 }
 0xe84   :  { %v17806_v58 = vpop.f32.mrb[98].mxu0 }
 0xe85   :  { %v7376_v2 = vpop.f32.mrb[99].mxu0 }
 0xe86   :  { %17842 = vmatprep.mubr.msk.f32.mxu1 %vm566_vm1, %v7376_v2 }
 0xe87   :  { %17843 = vmatmul.mubr.msk.f32.gmra.mrb[44].mxu1 %vm566_vm1, %v17806_v58 }
 0xe88   :  { %17845 = vmatprep.mubr.msk.f32.mxu1 %vm566_vm1, %v7463_v38 }
 0xe8b   :  { %17846 = vmatmul.mubr.msk.f32.gmra.mrb[46].mxu1 %vm566_vm1, %v17813_v1 }
 0xe8d   :  { %v17827_v19 = vpop.f32.mrb[78].mxu1 }
 0xe8e   :  { %v7637_v17 = vpop.f32.mrb[79].mxu1 }
 0xe8f   :  { %v17820_v6 = vpop.f32.mrb[100].mxu0 }
 0xe90   :  { %v7550_v18 = vpop.f32.mrb[101].mxu0 }
 0xe91   :  { %17848 = vmatprep.mubr.msk.f32.mxu1 %vm566_vm1, %v7550_v18 }
 0xe92   :  { %17849 = vmatmul.mubr.msk.f32.gmra.mrb[48].mxu1 %vm566_vm1, %v17820_v6 }
 0xe93   :  { %17851 = vmatprep.mubr.msk.f32.mxu1 %vm566_vm1, %v7637_v17 }
 0xe96   :  { %17852 = vmatmul.mubr.msk.f32.gmra.mrb[50].mxu1 %vm566_vm1, %v17827_v19 }
 0xe97   :  { %v17860_v3 = vpop.f32.mrb[102].mxu0  ;;  %17886 = vmatprep.mubr.msk.f32.mxu1 %vm566_vm1, %v22539_v4 }
 0xe98   :  { %v8586_v51 = vmul.f32 0.125, %v17860_v3  ;;  %v7939_v11 = vpop.f32.mrb[103].mxu0 }
 0xe99   :  { %v8585_v14 = vmul.f32 0.125, %v7939_v11 }
 0xe9a   :  { %v22584_v10 = vsel %vm21091_vm3, %v8586_v51, -inf  ;;  %17887 = vmatmul.mubr.msk.f32.vlgmr.msra.gmra.mrb[80].mxu1 %vm566_vm1, %v22541_v23 }
 0xe9b   :  { %v22590_v62 = vsel %vm21096_vm5, %v8585_v14, -inf  ;;  %18783 = vmatpush3.bf16.xpose.msk.msra.mxu1 %vm21019_vm2, %v18778_v36  ;;  %v8620_v4 = vsel %vm1309_vm4, %v22584_v10, -inf  ;;  %17900 = vmatprep.mubr.msk.f32.mxu1 %vm566_vm1, %v8404_v50 }
 0xe9c   :  { %8621 = vmax.xlane.f32.xlu1 %v8620_v4  ;;  %v8617_v32 = vsel %vm1309_vm4, %v22590_v62, -inf }
 0xe9d   :  { %8618 = vmax.xlane.f32.xlu0 %v8617_v32 }
 0xe9f   :  { %v17867_v27 = vpop.f32.mrb[104].mxu0 }
 0xea0   :  { %v8588_v40 = vmul.f32 0.125, %v17867_v27  ;;  %v8030_v23 = vpop.f32.mrb[105].mxu0 }
 0xea1   :  { %v8587_v12 = vmul.f32 0.125, %v8030_v23 }
 0xea2   :  { %v8604_v24 = vsel %vm21091_vm3, %v8588_v40, -inf  ;;  %17901 = vmatmul.mubr.msk.f32.vlgmr.msra.gmra.mrb[82].mxu1 %vm566_vm1, %v8406_v29 }
 0xea3   :  { %v8626_v54 = vsel %vm1309_vm4, %v8604_v24, -inf  ;;  %v8603_v39 = vsel %vm21096_vm5, %v8587_v12, -inf }
 0xea4   :  { %8627 = vmax.xlane.f32.xlu0 %v8626_v54  ;;  %v8623_v36 = vsel %vm1309_vm4, %v8603_v39, -inf }
 0xea7   :  { %v17874_v50 = vpop.f32.mrb[106].mxu0 }
 0xea8   :  { %v8590_v57 = vmul.f32 0.125, %v17874_v50  ;;  %8624 = vmax.xlane.f32.xlu0 %v8623_v36  ;;  %v8121_v61 = vpop.f32.mrb[107].mxu0 }
 0xea9   :  { %v8589_v45 = vmul.f32 0.125, %v8121_v61 }
 0xeaa   :  { %v8606_v42 = vsel %vm21091_vm3, %v8590_v57, -inf }
 0xeab   :  { %v8605_v22 = vsel %vm21096_vm5, %v8589_v45, -inf  ;;  %v8632_v29 = vsel %vm1309_vm4, %v8606_v42, -inf }
 0xeac   :  { %8633 = vmax.xlane.f32.xlu1 %v8632_v29  ;;  %v8629_v34 = vsel %vm1309_vm4, %v8605_v22, -inf }
 0xead   :  { %8630 = vmax.xlane.f32.xlu0 %v8629_v34 }
 0xeaf   :  { %v17881_v1 = vpop.f32.mrb[108].mxu0 }
 0xeb0   :  { %v8592_v38 = vmul.f32 0.125, %v17881_v1  ;;  %v8212_v58 = vpop.f32.mrb[109].mxu0 }
 0xeb1   :  { %v8591_v2 = vmul.f32 0.125, %v8212_v58 }
 0xeb2   :  { %v22614_v19 = vsel %vm21091_vm3, %v8592_v38, -inf }
 0xeb3   :  { %v22618_v17 = vsel %vm21096_vm5, %v8591_v2, -inf  ;;  %v8638_v6 = vsel %vm1309_vm4, %v22614_v19, -inf }
 0xeb4   :  { %8639 = vmax.xlane.f32.xlu1 %v8638_v6  ;;  %v8635_v18 = vsel %vm1309_vm4, %v22618_v17, -inf }
 0xeb5   :  { %8636 = vmax.xlane.f32.xlu0 %v8635_v18 }
 0xeb7   :  { %v17895_v3 = vpop.f32.mrb[110].mxu0 }
 0xeb8   :  { %v8596_v51 = vmul.f32 0.125, %v17895_v3  ;;  %v8394_v11 = vpop.f32.mrb[111].mxu0 }
 0xeb9   :  { %v8595_v14 = vmul.f32 0.125, %v8394_v11 }
 0xeba   :  { %v22626_v4 = vsel %vm21091_vm3, %v8596_v51, -inf }
 0xebb   :  { %v22630_v32 = vsel %vm21096_vm5, %v8595_v14, -inf  ;;  %v8650_v27 = vsel %vm1309_vm4, %v22626_v4, -inf }
 0xebc   :  { %8651 = vmax.xlane.f32.xlu1 %v8650_v27  ;;  %v8647_v40 = vsel %vm1309_vm4, %v22630_v32, -inf }
 0xebd   :  { %8648 = vmax.xlane.f32.xlu0 %v8647_v40 }
 0xebf   :  { %v17909_v23 = vpop.f32.mrb[112].mxu0 }
 0xec0   :  { %v8600_v12 = vmul.f32 0.125, %v17909_v23  ;;  %v8576_v54 = vpop.f32.mrb[113].mxu0 }
 0xec1   :  { %v8599_v50 = vmul.f32 0.125, %v8576_v54 }
 0xec2   :  { %v22638_v36 = vsel %vm21091_vm3, %v8600_v12, -inf }
 0xec3   :  { %v22642_v57 = vsel %vm21096_vm5, %v8599_v50, -inf  ;;  %v8662_v61 = vsel %vm1309_vm4, %v22638_v36, -inf }
 0xec4   :  { %8663 = vmax.xlane.f32.xlu1 %v8662_v61  ;;  %v8659_v45 = vsel %vm1309_vm4, %v22642_v57, -inf }
 0xec5   :  { %8660 = vmax.xlane.f32.xlu0 %v8659_v45 }
 0xf29   :  { %v8622_v29 = vpop.xlane.xlu1 %8621 }
 0xf2a   :  { %v8666_v34 = vsub.f32 %v22584_v10, %v8622_v29  ;;  %v8619_v1 = vpop.xlane.xlu0 %8618 }
 0xf2b   :  { %v8665_v38 = vsub.f32 %v22590_v62, %v8619_v1 }
 0xf2c   :  { %v8683_v58 = vmul.f32 1.442695, %v8666_v34 }
 0xf2d   :  { %v8681_v2 = vmul.f32 1.442695, %v8665_v38 }
 0xf2e   :  { %20131 = vpow2.f32 %v8683_v58 }
 0xf2f   :  { %20133 = vpow2.f32 %v8681_v2 }
 0xf31   :  { %v8628_v6 = vpop.xlane.xlu0 %8627 }
 0xf32   :  { %v8668_v18 = vsub.f32 %v8604_v24, %v8628_v6 }
 0xf34   :  { %v8687_v3 = vmul.f32 1.442695, %v8668_v18 }
 0xf35   :  { %v8625_v51 = vpop.xlane.xlu0 %8624 }
 0xf36   :  { %20135 = vpow2.f32 %v8687_v3  ;;  %v8667_v11 = vsub.f32 %v8603_v39, %v8625_v51 }
 0xf38   :  { %v22650_v14 = vpop.eup %20131  ;;  %v8685_v27 = vmul.f32 1.442695, %v8667_v11 }
 0xf39   :  { %v22652_v40 = vpop.eup %20133  ;;  %v8634_v23 = vpop.xlane.xlu1 %8633  ;;  %v8716_v10 = vsel %vm1309_vm4, %v22650_v14, 0.0 }
 0xf3a   :  { %20137 = vpow2.f32 %v8685_v27  ;;  %v8670_v62 = vsub.f32 %v8606_v42, %v8634_v23  ;;  %v8631_v12 = vpop.xlane.xlu0 %8630  ;;  %8717 = vadd.xlane.f32.xlu1 %v8716_v10  ;;  %v8713_v24 = vsel %vm1309_vm4, %v22652_v40, 0.0 }
 0xf3b   :  { %v8669_v54 = vsub.f32 %v8605_v22, %v8631_v12  ;;  %8714 = vadd.xlane.f32.xlu0 %v8713_v24 }
 0xf3c   :  { %v8691_v50 = vmul.f32 1.442695, %v8670_v62 }
 0xf3d   :  { %v8689_v39 = vmul.f32 1.442695, %v8669_v54 }
 0xf3e   :  { %20139 = vpow2.f32 %v8691_v50 }
 0xf3f   :  { %20141 = vpow2.f32 %v8689_v39 }
 0xf40   :  { %v22658_v61 = vpop.eup %20135 }
 0xf41   :  { %v8640_v45 = vpop.xlane.xlu1 %8639  ;;  %v8722_v29 = vsel %vm1309_vm4, %v22658_v61, 0.0 }
 0xf42   :  { %v8672_v34 = vsub.f32 %v22614_v19, %v8640_v45  ;;  %v8637_v42 = vpop.xlane.xlu0 %8636  ;;  %8723 = vadd.xlane.f32.xlu1 %v8722_v29 }
 0xf43   :  { %v8671_v1 = vsub.f32 %v22618_v17, %v8637_v42 }
 0xf44   :  { %v22664_v38 = vpop.eup %20137  ;;  %v8695_v22 = vmul.f32 1.442695, %v8672_v34 }
 0xf45   :  { %v8693_v58 = vmul.f32 1.442695, %v8671_v1  ;;  %v8719_v2 = vsel %vm1309_vm4, %v22664_v38, 0.0 }
 0xf46   :  { %20143 = vpow2.f32 %v8695_v22  ;;  %8720 = vadd.xlane.f32.xlu0 %v8719_v2 }
 0xf47   :  { %20145 = vpow2.f32 %v8693_v58 }
 0xf48   :  { %v22668_v6 = vpop.eup %20139 }
 0xf49   :  { %v22670_v18 = vpop.eup %20141  ;;  %v8652_v3 = vpop.xlane.xlu1 %8651  ;;  %v8728_v19 = vsel %vm1309_vm4, %v22668_v6, 0.0 }
 0xf4a   :  { %v8676_v17 = vsub.f32 %v22626_v4, %v8652_v3  ;;  %v8649_v51 = vpop.xlane.xlu0 %8648  ;;  %8729 = vadd.xlane.f32.xlu1 %v8728_v19  ;;  %v8725_v11 = vsel %vm1309_vm4, %v22670_v18, 0.0 }
 0xf4b   :  { %v8675_v27 = vsub.f32 %v22630_v32, %v8649_v51  ;;  %8726 = vadd.xlane.f32.xlu0 %v8725_v11 }
 0xf4c   :  { %v8703_v23 = vmul.f32 1.442695, %v8676_v17 }
 0xf4d   :  { %v8701_v10 = vmul.f32 1.442695, %v8675_v27 }
 0xf4e   :  { %20147 = vpow2.f32 %v8703_v23 }
 0xf4f   :  { %20149 = vpow2.f32 %v8701_v10 }
 0xf50   :  { %v22678_v62 = vpop.eup %20143 }
 0xf51   :  { %v22680_v12 = vpop.eup %20145  ;;  %v8734_v24 = vsel %vm1309_vm4, %v22678_v62, 0.0 }
 0xf52   :  { %8735 = vadd.xlane.f32.xlu1 %v8734_v24  ;;  %v8731_v4 = vsel %vm1309_vm4, %v22680_v12, 0.0  ;;  %v8664_v24 = vpop.xlane.xlu1 %8663 }
 0xf53   :  { %8732 = vadd.xlane.f32.xlu0 %v8731_v4  ;;  %v8661_v4 = vpop.xlane.xlu0 %8660 }
 0xf58   :  { %v22686_v54 = vpop.eup %20147 }
 0xf59   :  { %v22688_v32 = vpop.eup %20149  ;;  %v8746_v50 = vsel %vm1309_vm4, %v22686_v54, 0.0 }
 0xf5a   :  { %8747 = vadd.xlane.f32.xlu1 %v8746_v50  ;;  %v8743_v39 = vsel %vm1309_vm4, %v22688_v32, 0.0  ;;  %v8680_v50 = vsub.f32 %v22638_v36, %v8664_v24  ;;  %v24501_v36 = vld [vmem:[#allocation24_spill] sm:$0xff] }
 0xf5b   :  { %8744 = vadd.xlane.f32.xlu0 %v8743_v39  ;;  %v8679_v39 = vsub.f32 %v22642_v57, %v8661_v4  ;;  %v24502_v57 = vld [vmem:[#allocation13_spill] sm:$0xff] }
 0xf6d   :  { %v17888_v45 = vpop.f32.mrb[80].mxu1 }
 0xf6e   :  { %v8594_v29 = vmul.f32 0.125, %v17888_v45  ;;  %v8303_v34 = vpop.f32.mrb[81].mxu1  ;;  %v8711_v45 = vmul.f32 1.442695, %v8680_v50 }
 0xf6f   :  { %v8593_v42 = vmul.f32 0.125, %v8303_v34 }
 0xf70   :  { %v8610_v1 = vsel %vm21091_vm3, %v8594_v29, -inf  ;;  %v8709_v29 = vmul.f32 1.442695, %v8679_v39  ;;  %20151 = vpow2.f32 %v8711_v45 }
 0xf71   :  { %v8609_v22 = vsel %vm21096_vm5, %v8593_v42, -inf  ;;  %v8644_v58 = vsel %vm1309_vm4, %v8610_v1, -inf }
 0xf72   :  { %8645 = vmax.xlane.f32.xlu1 %v8644_v58  ;;  %v8641_v2 = vsel %vm1309_vm4, %v8609_v22, -inf  ;;  %20153 = vpow2.f32 %v8709_v29 }
 0xf73   :  { %8642 = vmax.xlane.f32.xlu0 %v8641_v2 }
 0xf75   :  { %v17902_v3 = vpop.f32.mrb[82].mxu1 }
 0xf76   :  { %v8598_v19 = vmul.f32 0.125, %v17902_v3  ;;  %v8485_v17 = vpop.f32.mrb[83].mxu1 }
 0xf77   :  { %v8597_v51 = vmul.f32 0.125, %v8485_v17 }
 0xf78   :  { %v8614_v11 = vsel %vm21091_vm3, %v8598_v19, -inf  ;;  %v24503_v19 = vld [vmem:[#allocation20_spill] sm:$0xff] }
 0xf79   :  { %v8613_v27 = vsel %vm21096_vm5, %v8597_v51, -inf  ;;  %v8656_v23 = vsel %vm1309_vm4, %v8614_v11, -inf }
 0xf7a   :  { %8657 = vmax.xlane.f32.xlu1 %v8656_v23  ;;  %v8653_v10 = vsel %vm1309_vm4, %v8613_v27, -inf  ;;  %v22712_v34 = vpop.eup %20151 }
 0xf7b   :  { %8654 = vmax.xlane.f32.xlu0 %v8653_v10  ;;  %v8758_v58 = vsel %vm1309_vm4, %v22712_v34, 0.0 }
 0xf7c   :  { %v22714_v42 = vpop.eup %20153 }
 0xf7d   :  { %v8755_v2 = vsel %vm1309_vm4, %v22714_v42, 0.0 }
 0xf8b   :  { %19569 = vrot.lane.b32.xlu1 %v20930_v55, %s20495_s23 }
 0xf91   :  { %19564 = vrot.lane.b32.xlu0 %v20916_v33, %s20495_s23 }
 0xfaf   :  { %8759 = vadd.xlane.f32.xlu1 %v8758_v58 }
 0xfb0   :  { %8756 = vadd.xlane.f32.xlu0 %v8755_v2 }
 0xfc0   :  { %19579 = vrot.lane.b32.xlu1 %v24459_v8, %s20495_s23 }
 0xfc4   :  { %19589 = vrot.lane.b32.xlu1 %v24501_v36, %s20495_s23 }
 0xfc6   :  { %19574 = vrot.lane.b32.xlu0 %v24502_v57, %s20495_s23 }
 0xfc7   :  { %v8718_v4 = vpop.xlane.xlu1 %8717 }
 0xfc8   :  { %v8715_v3 = vpop.xlane.xlu0 %8714 }
 0xfc9   :  { %20155 = vrcp.f32 %v8715_v3 }
 0xfca   :  { %19584 = vrot.lane.b32.xlu0 %v24503_v19, %s20495_s23 }
 0xfcf   :  { %v8724_v50 = vpop.xlane.xlu1 %8723 }
 0xfd3   :  { %v20156_v17 = vpop.eup %20155  ;;  %v8721_v51 = vpop.xlane.xlu0 %8720 }
 0xfd4   :  { %20157 = vrcp.f32 %v8721_v51  ;;  %v8762_v23 = vmul.f32 %v20156_v17, %v22652_v40 }
 0xfd5   :  { %20159 = vrcp.f32 %v8718_v4 }
 0xfd6   :  { %17914 = vmatprep.mubr.msk.f32.mxu1 %vm1309_vm4, %v8762_v23  ;;  %20161 = vrcp.f32 %v8724_v50 }
 0xfd7   :  { %v22732_v39 = vpop.xlane.xlu1 %8729 }
 0xfd8   :  { %v8727_v45 = vpop.xlane.xlu0 %8726 }
 0xfde   :  { %v20158_v10 = vpop.eup %20157 }
 0xfdf   :  { %v8766_v24 = vmul.f32 %v20158_v10, %v22664_v38  ;;  %v22734_v29 = vpop.xlane.xlu1 %8735  ;;  %v20160_v28 = vpop.eup %20159 }
 0xfe0   :  { %v8733_v58 = vpop.xlane.xlu0 %8732  ;;  %v20162_v4 = vpop.eup %20161 }
 0xfe1   :  { %17921 = vmatprep.mubr.msk.f32.mxu0 %vm1309_vm4, %v8766_v24 }
 0xfe7   :  { %v22736_v2 = vpop.xlane.xlu1 %8747 }
 0xfe8   :  { %v22738_v3 = vpop.xlane.xlu0 %8744 }
 0xfff   :  { %v8646_v40 = vpop.xlane.xlu1 %8645 }
0x1000   :  { %v8674_v17 = vsub.f32 %v8610_v1, %v8646_v40  ;;  %v8643_v51 = vpop.xlane.xlu0 %8642 }
0x1001   :  { %v8673_v23 = vsub.f32 %v8609_v22, %v8643_v51 }
0x1002   :  { %v8699_v38 = vmul.f32 1.442695, %v8674_v17 }
0x1003   :  { %v8697_v10 = vmul.f32 1.442695, %v8673_v23 }
0x1004   :  { %20163 = vpow2.f32 %v8699_v38 }
0x1005   :  { %20165 = vpow2.f32 %v8697_v10 }
0x1006   :  { %20167 = vrcp.f32 %v8733_v58 }
0x1007   :  { %20169 = vrcp.f32 %v8727_v45  ;;  %v8658_v24 = vpop.xlane.xlu1 %8657 }
0x1008   :  { %v8678_v19 = vsub.f32 %v8614_v11, %v8658_v24  ;;  %v8655_v57 = vpop.xlane.xlu0 %8654 }
0x1009   :  { %v8677_v36 = vsub.f32 %v8613_v27, %v8655_v57  ;;  %v8764_v57 = vmul.f32 %v20160_v28, %v22650_v14 }
0x100a   :  { %v8707_v8 = vmul.f32 1.442695, %v8678_v19 }
0x100b   :  { %v8705_v33 = vmul.f32 1.442695, %v8677_v36  ;;  %v19570_v55 = vpop.permute.xlu1 %19569 }
0x100c   :  { %20171 = vpow2.f32 %v8707_v8  ;;  %v19572_v1 = vunpack.i.h.bf16 %v19570_v55  ;;  %v19571_v40 = vunpack.i.l.bf16 %v19570_v55  ;;  %v19565_v22 = vpop.permute.xlu0 %19564 }
0x100d   :  { %v19567_v17 = vunpack.i.h.bf16 %v19565_v22  ;;  %v19566_v50 = vunpack.i.l.bf16 %v19565_v22  ;;  %20173 = vpow2.f32 %v8705_v33  ;;  %v8768_v33 = vmul.f32 %v20162_v4, %v22658_v61 }
0x100e   :  { %v22740_v51 = vpop.eup %20163  ;;  %v18794_v58 = vpack.c.bf16 %v19572_v1, %v19571_v40  ;;  %20175 = vrcp.f32 %v22734_v29 }
0x100f   :  { %v22742_v45 = vpop.eup %20165  ;;  %v8740_v11 = vsel %vm1309_vm4, %v22740_v51, 0.0  ;;  %v18790_v27 = vpack.c.bf16 %v19567_v17, %v19566_v50  ;;  %20177 = vrcp.f32 %v22732_v39 }
0x1010   :  { %v20168_v36 = vpop.eup %20167  ;;  %18795 = vmatprep.subr.bf16.mxu0 %v18794_v58  ;;  %8741 = vadd.xlane.f32.xlu1 %v8740_v11  ;;  %v8737_v55 = vsel %vm1309_vm4, %v22742_v45, 0.0  ;;  %20179 = vrcp.f32 %v22738_v3 }
0x1011   :  { %v20170_v8 = vpop.eup %20169  ;;  %18791 = vmatprep.subr.bf16.mxu1 %v18790_v27  ;;  %18797 = vmatpush3.bf16.msra.mxu0 %v18794_v58  ;;  %v8774_v19 = vmul.f32 %v20168_v36, %v22680_v12  ;;  %20181 = vrcp.f32 %v22736_v2 }
0x1012   :  { %8738 = vadd.xlane.f32.xlu0 %v8737_v55  ;;  %18793 = vmatpush3.bf16.msra.mxu1 %v18790_v27  ;;  %v8770_v23 = vmul.f32 %v20170_v8, %v22670_v18 }
0x1014   :  { %17922 = vmatmul.mubr.msk.f32.vlgmr.msra.gmra.mrb[114].mxu0 %vm1309_vm4, %v8768_v33 }
0x1015   :  { %17915 = vmatmul.mubr.msk.f32.vlgmr.msra.gmra.mrb[84].mxu1 %vm1309_vm4, %v8764_v57  ;;  %17935 = vmatprep.mubr.msk.f32.mxu0 %vm1309_vm4, %v8774_v19 }
0x1016   :  { %v22755_v38 = vpop.eup %20171  ;;  %17928 = vmatprep.mubr.msk.f32.mxu1 %vm1309_vm4, %v8770_v23 }
0x1017   :  { %v8752_v10 = vsel %vm1309_vm4, %v22755_v38, 0.0  ;;  %v22760_v61 = vpop.eup %20173 }
0x1018   :  { %8753 = vadd.xlane.f32.xlu1 %v8752_v10  ;;  %v8749_v28 = vsel %vm1309_vm4, %v22760_v61, 0.0  ;;  %v20176_v22 = vpop.eup %20175 }
0x1019   :  { %v20178_v17 = vpop.eup %20177  ;;  %v8776_v8 = vmul.f32 %v20176_v22, %v22678_v62 }
0x101a   :  { %v20180_v55 = vpop.eup %20179  ;;  %v8772_v57 = vmul.f32 %v20178_v17, %v22668_v6 }
0x101b   :  { %v20182_v23 = vpop.eup %20181 }
0x101c   :  { %8750 = vadd.xlane.f32.xlu1 %v8749_v28  ;;  %v8782_v28 = vmul.f32 %v20180_v55, %v22688_v32  ;;  %v8784_v6 = vmul.f32 %v20182_v23, %v22686_v54 }
0x1028   :  { %19594 = vrot.lane.b32.xlu0 %v24462_v63, %s20495_s23 }
0x102c   :  { %19604 = vrot.lane.b32.xlu0 %v20912_v52, %s20496_s2 }
0x102d   :  { %19599 = vrot.lane.b32.xlu1 %v24460_v7, %s20495_s23 }
0x1030   :  { %9700 = vrot.lane.b32.xlu0 %v20904_v30, %s20497_s22 }
0x1031   :  { %19609 = vrot.lane.b32.xlu1 %v20926_v35, %s20496_s2 }
0x1034   :  { %19614 = vrot.lane.b32.xlu0 %v20940_v47, %s20496_s2 }
0x1035   :  { %9702 = vrot.lane.b32.xlu1 %v20908_v31, %s20497_s22 }
0x1038   :  { %9793 = vrot.lane.b32.xlu0 %v24475_v48, %s20497_s22 }
0x1039   :  { %9791 = vrot.lane.b32.xlu1 %v20920_v53, %s20497_s22 }
0x103c   :  { %v22784_v14 = vpop.xlane.xlu1 %8759  ;;  %9882 = vrot.lane.b32.xlu0 %v24479_v9, %s20497_s22 }
0x103d   :  { %19619 = vrot.lane.b32.xlu1 %v20954_v25, %s20496_s2  ;;  %v8757_v18 = vpop.xlane.xlu0 %8756 }
0x103e   :  { %20183 = vrcp.f32 %v8757_v18 }
0x1040   :  { %v19580_v12 = vpop.permute.xlu1 %19579  ;;  %19624 = vrot.lane.b32.xlu0 %v24483_v49, %s20496_s2 }
0x1041   :  { %v19582_v29 = vunpack.i.h.bf16 %v19580_v12  ;;  %v19581_v39 = vunpack.i.l.bf16 %v19580_v12  ;;  %9884 = vrot.lane.b32.xlu1 %v24473_v59, %s20497_s22  ;;  %v19575_v24 = vpop.permute.xlu0 %19574 }
0x1042   :  { %v19577_v1 = vunpack.i.h.bf16 %v19575_v24  ;;  %v19576_v40 = vunpack.i.l.bf16 %v19575_v24 }
0x1043   :  { %v18802_v3 = vpack.c.bf16 %v19582_v29, %v19581_v39 }
0x1044   :  { %v19590_v4 = vpop.permute.xlu1 %19589  ;;  %9973 = vrot.lane.b32.xlu0 %v24487_v15, %s20497_s22  ;;  %v18798_v2 = vpack.c.bf16 %v19577_v1, %v19576_v40 }
0x1045   :  { %v19592_v50 = vunpack.i.h.bf16 %v19590_v4  ;;  %v19591_v58 = vunpack.i.l.bf16 %v19590_v4  ;;  %18803 = vmatprep.subr.bf16.mxu0 %v18802_v3  ;;  %19629 = vrot.lane.b32.xlu1 %v24477_v60, %s20496_s2  ;;  %v19585_v11 = vpop.permute.xlu0 %19584 }
0x1046   :  { %v19587_v27 = vunpack.i.h.bf16 %v19585_v11  ;;  %v19586_v36 = vunpack.i.l.bf16 %v19585_v11  ;;  %18799 = vmatprep.subr.bf16.mxu1 %v18798_v2  ;;  %18805 = vmatpush3.bf16.msra.mxu0 %v18802_v3 }
0x1047   :  { %18801 = vmatpush3.bf16.msra.mxu1 %v18798_v2  ;;  %v18810_v33 = vpack.c.bf16 %v19592_v50, %v19591_v58  ;;  %v9490_v50 = vld [vmem:[#allocation2 + $0x20] sm:$0xff] }
0x1048   :  { %19634 = vrot.lane.b32.xlu0 %v24489_v13, %s20496_s2  ;;  %v18806_v19 = vpack.c.bf16 %v19587_v27, %v19586_v36  ;;  %v20184_v10 = vpop.eup %20183 }
0x1049   :  { %17936 = vmatmul.mubr.msk.f32.vlgmr.msra.gmra.mrb[116].mxu0 %vm1309_vm4, %v8776_v8  ;;  %18811 = vmatprep.subr.bf16.mxu0 %v18810_v33  ;;  %v8790_v62 = vmul.f32 %v20184_v10, %v22714_v42 }
0x104a   :  { %9975 = vrot.lane.b32.xlu1 %v24481_v5, %s20497_s22  ;;  %17929 = vmatmul.mubr.msk.f32.vlgmr.msra.gmra.mrb[86].mxu1 %vm1309_vm4, %v8772_v57 }
0x104b   :  { %18807 = vmatprep.subr.bf16.mxu1 %v18806_v19  ;;  %18813 = vmatpush3.bf16.msra.mxu0 %v18810_v33 }
0x104c   :  { %17949 = vmatprep.mubr.msk.f32.mxu0 %vm1309_vm4, %v8782_v28  ;;  %18809 = vmatpush3.bf16.msra.mxu1 %v18806_v19 }
0x104d   :  { %10066 = vrot.lane.b32.xlu0 %v24491_v46, %s20497_s22 }
0x104e   :  { %17950 = vmatmul.mubr.msk.f32.vlgmr.msra.gmra.mrb[118].mxu0 %vm1309_vm4, %v8784_v6  ;;  %10064 = vrot.lane.b32.xlu1 %v24485_v43, %s20497_s22 }
0x104f   :  { %17963 = vmatprep.mubr.msk.f32.mxu0 %vm1309_vm4, %v8790_v62 }
0x1051   :  { %10155 = vrot.lane.b32.xlu0 %v24493_v37, %s20497_s22 }
0x1052   :  { %19639 = vrot.lane.b32.xlu1 %v24488_v21, %s20496_s2 }
0x1055   :  { %10246 = vrot.lane.b32.xlu0 %v24495_v26, %s20497_s22 }
0x1056   :  { %10157 = vrot.lane.b32.xlu1 %v24497_v44, %s20497_s22 }
0x1059   :  { %10337 = vrot.lane.b32.xlu0 %v24498_v41, %s20497_s22 }
0x105a   :  { %10248 = vrot.lane.b32.xlu1 %v24499_v0, %s20497_s22 }
0x105e   :  { %10339 = vrot.lane.b32.xlu1 %v24500_v20, %s20497_s22 }
0x109d   :  { %v8742_v54 = vpop.xlane.xlu1 %8741 }
0x109e   :  { %20185 = vrcp.f32 %v8742_v54 }
0x109f   :  { %v8739_v32 = vpop.xlane.xlu0 %8738 }
0x10a0   :  { %20187 = vrcp.f32 %v8739_v32 }
0x10a1   :  { %20189 = vrcp.f32 %v22784_v14 }
0x10a3   :  { %v19595_v42 = vpop.permute.xlu0 %19594 }
0x10a4   :  { %v19597_v18 = vunpack.i.h.bf16 %v19595_v42  ;;  %v19596_v12 = vunpack.i.l.bf16 %v19595_v42 }
0x10a5   :  { %v8754_v29 = vpop.xlane.xlu1 %8753 }
0x10a6   :  { %v18814_v39 = vpack.c.bf16 %v19597_v18, %v19596_v12  ;;  %20191 = vrcp.f32 %v8754_v29 }
0x10a7   :  { %v19605_v24 = vpop.permute.xlu0 %19604 }
0x10a8   :  { %18815 = vmatprep.subr.bf16.mxu1 %v18814_v39  ;;  %v20186_v1 = vpop.eup %20185  ;;  %v19607_v58 = vunpack.i.h.bf16 %v19605_v24  ;;  %v19606_v11 = vunpack.i.l.bf16 %v19605_v24 }
0x10a9   :  { %v8751_v40 = vpop.xlane.xlu1 %8750  ;;  %v8780_v2 = vmul.f32 %v20186_v1, %v22740_v51 }
0x10aa   :  { %v20188_v3 = vpop.eup %20187  ;;  %20193 = vrcp.f32 %v8751_v40  ;;  %v18822_v57 = vpack.c.bf16 %v19607_v58, %v19606_v11 }
0x10ab   :  { %v9701_v22 = vpop.permute.xlu0 %9700  ;;  %v8778_v4 = vmul.f32 %v20188_v3, %v22742_v45  ;;  %v20190_v8 = vpop.eup %20189 }
0x10ac   :  { %v8792_v23 = vmul.f32 %v20190_v8, %v22712_v34 }
0x10ad   :  { %v19600_v17 = vpop.permute.xlu1 %19599  ;;  %17942 = vmatprep.mubr.msk.f32.mxu1 %vm1309_vm4, %v8778_v4 }
0x10ae   :  { %v19602_v27 = vunpack.i.h.bf16 %v19600_v17  ;;  %v19601_v14 = vunpack.i.l.bf16 %v19600_v17  ;;  %17943 = vmatmul.mubr.msk.f32.vlgmr.msra.gmra.mrb[88].mxu1 %vm1309_vm4, %v8780_v2 }
0x10af   :  { %18817 = vmatpush3.bf16.msra.mxu1 %v18814_v39  ;;  %v19615_v36 = vpop.permute.xlu0 %19614 }
0x10b0   :  { %v18818_v55 = vpack.c.bf16 %v19602_v27, %v19601_v14  ;;  %17966 = vmatprep.subr.mxu1 %v9490_v50  ;;  %v20192_v45 = vpop.eup %20191  ;;  %v19617_v39 = vunpack.i.h.bf16 %v19615_v36  ;;  %v19616_v24 = vunpack.i.l.bf16 %v19615_v36 }
0x10b1   :  { %v19610_v33 = vpop.permute.xlu1 %19609  ;;  %v8788_v6 = vmul.f32 %v20192_v45, %v22755_v38 }
0x10b2   :  { %18819 = vmatprep.subr.bf16.mxu0 %v18818_v55  ;;  %v19612_v62 = vunpack.i.h.bf16 %v19610_v33  ;;  %v19611_v54 = vunpack.i.l.bf16 %v19610_v33  ;;  %v18834_v40 = vpack.c.bf16 %v19617_v39, %v19616_v24 }
0x10b3   :  { %18821 = vmatpush3.bf16.msra.mxu0 %v18818_v55  ;;  %v9794_v51 = vpop.permute.xlu0 %9793 }
0x10b4   :  { %v20194_v19 = vpop.eup %20193  ;;  %18824 = vmatprep.subr.msk.bf16.mxu0 %vm21019_vm2, %v18822_v57  ;;  %v18828_v18 = vpack.c.bf16 %v19612_v62, %v19611_v54 }
0x10b5   :  { %v9703_v10 = vpop.permute.xlu1 %9702  ;;  %v8786_v28 = vmul.f32 %v20194_v19, %v22760_v61 }
0x10b6   :  { %17964 = vmatmul.mubr.msk.f32.vlgmr.msra.gmra.mrb[120].mxu0 %vm1309_vm4, %v8792_v23 }
0x10b7   :  { %17996 = vmatprep.mubr.msk.f32.mxu0 %vm566_vm1, %v9701_v22  ;;  %v9883_v32 = vpop.permute.xlu0 %9882  ;;  %17956 = vmatprep.mubr.msk.f32.mxu1 %vm1309_vm4, %v8786_v28 }
0x10b8   :  { %17957 = vmatmul.mubr.msk.f32.vlgmr.msra.gmra.mrb[90].mxu1 %vm1309_vm4, %v8788_v6 }
0x10b9   :  { %v9792_v42 = vpop.permute.xlu1 %9791  ;;  %17967 = vmatpush3.msra.mxu1 %v9490_v50 }
0x10bb   :  { %v19625_v34 = vpop.permute.xlu0 %19624 }
0x10bc   :  { %v19627_v12 = vunpack.i.h.bf16 %v19625_v34  ;;  %v19626_v29 = vunpack.i.l.bf16 %v19625_v34  ;;  %18827 = vmatpush3.bf16.xpose.msk.msra.mxu0 %vm21019_vm2, %v18822_v57 }
0x10bd   :  { %v19620_v61 = vpop.permute.xlu1 %19619  ;;  %18830 = vmatprep.subr.msk.bf16.mxu0 %vm21019_vm2, %v18828_v18 }
0x10be   :  { %v18846_v38 = vpack.c.bf16 %v19627_v12, %v19626_v29  ;;  %v19622_v4 = vunpack.i.h.bf16 %v19620_v61  ;;  %v19621_v2 = vunpack.i.l.bf16 %v19620_v61 }
0x10bf   :  { %v9974_v3 = vpop.permute.xlu0 %9973 }
0x10c0   :  { %18848 = vmatprep.subr.msk.bf16.mxu1 %vm21019_vm2, %v18846_v38  ;;  %v18840_v50 = vpack.c.bf16 %v19622_v4, %v19621_v2 }
0x10c1   :  { %v9885_v1 = vpop.permute.xlu1 %9884 }
0x10c3   :  { %17997 = vmatmul.mubr.msk.f32.vlgmr.msra.gmra.mrb[122].mxu0 %vm566_vm1, %v9703_v10  ;;  %v19635_v58 = vpop.permute.xlu0 %19634 }
0x10c4   :  { %18833 = vmatpush3.bf16.xpose.msk.msra.mxu0 %vm21019_vm2, %v18828_v18  ;;  %18003 = vmatprep.mubr.msk.f32.mxu0 %vm566_vm1, %v9792_v42  ;;  %v19637_v6 = vunpack.i.h.bf16 %v19635_v58  ;;  %v19636_v62 = vunpack.i.l.bf16 %v19635_v58 }
0x10c5   :  { %v19630_v22 = vpop.permute.xlu1 %19629  ;;  %18836 = vmatprep.subr.msk.bf16.mxu0 %vm21019_vm2, %v18834_v40 }
0x10c6   :  { %v19632_v27 = vunpack.i.h.bf16 %v19630_v22  ;;  %v19631_v14 = vunpack.i.l.bf16 %v19630_v22  ;;  %v18858_v12 = vpack.c.bf16 %v19637_v6, %v19636_v62 }
0x10c7   :  { %v22866_v36 = vpop.permute.xlu0 %10066 }
0x10c8   :  { %v18852_v55 = vpack.c.bf16 %v19632_v27, %v19631_v14 }
0x10c9   :  { %v9976_v17 = vpop.permute.xlu1 %9975 }
0x10cb   :  { %18004 = vmatmul.mubr.msk.f32.vlgmr.msra.gmra.mrb[124].mxu0 %vm566_vm1, %v9794_v51  ;;  %v10156_v33 = vpop.permute.xlu0 %10155 }
0x10cc   :  { %18839 = vmatpush3.bf16.xpose.msk.msra.mxu0 %vm21019_vm2, %v18834_v40  ;;  %18010 = vmatprep.mubr.msk.f32.mxu0 %vm566_vm1, %v9883_v32 }
0x10cd   :  { %18842 = vmatprep.subr.msk.bf16.mxu0 %vm21019_vm2, %v18840_v50  ;;  %v22864_v11 = vpop.permute.xlu1 %10064 }
0x10cf   :  { %v10247_v19 = vpop.permute.xlu0 %10246 }
0x10d1   :  { %v19640_v8 = vpop.permute.xlu1 %19639 }
0x10d2   :  { %v19642_v57 = vunpack.i.h.bf16 %v19640_v8  ;;  %v19641_v45 = vunpack.i.l.bf16 %v19640_v8 }
0x10d3   :  { %18011 = vmatmul.mubr.msk.f32.vlgmr.msra.gmra.mrb[126].mxu0 %vm566_vm1, %v9885_v1  ;;  %v10338_v10 = vpop.permute.xlu0 %10337 }
0x10d4   :  { %18845 = vmatpush3.bf16.xpose.msk.msra.mxu0 %vm21019_vm2, %v18840_v50  ;;  %18017 = vmatprep.mubr.msk.f32.mxu0 %vm566_vm1, %v9974_v3  ;;  %v18864_v51 = vpack.c.bf16 %v19642_v57, %v19641_v45 }
0x10d5   :  { %18854 = vmatprep.subr.msk.bf16.mxu0 %vm21019_vm2, %v18852_v55  ;;  %v10158_v23 = vpop.permute.xlu1 %10157 }
0x10d9   :  { %v10249_v28 = vpop.permute.xlu1 %10248 }
0x10db   :  { %18018 = vmatmul.mubr.msk.f32.vlgmr.msra.gmra.mrb[128].mxu0 %vm566_vm1, %v9976_v17 }
0x10dc   :  { %18857 = vmatpush3.bf16.xpose.msk.msra.mxu0 %vm21019_vm2, %v18852_v55  ;;  %18031 = vmatprep.mubr.msk.f32.mxu0 %vm566_vm1, %v10156_v33 }
0x10dd   :  { %18866 = vmatprep.subr.msk.bf16.mxu0 %vm21019_vm2, %v18864_v51  ;;  %v10340_v34 = vpop.permute.xlu1 %10339 }
0x10e3   :  { %18032 = vmatmul.mubr.msk.f32.vlgmr.msra.gmra.mrb[130].mxu0 %vm566_vm1, %v10158_v23 }
0x10e4   :  { %18869 = vmatpush3.bf16.xpose.msk.msra.mxu0 %vm21019_vm2, %v18864_v51  ;;  %18045 = vmatprep.mubr.msk.f32.mxu0 %vm566_vm1, %v10338_v10 }
0x10e7   :  { %v17923_v54 = vpop.f32.mrb[114].mxu0 }
0x10e8   :  { %v17916_v32 = vpop.f32.mrb[84].mxu1  ;;  %v8958_v42 = vpop.f32.mrb[115].mxu0 }
0x10e9   :  { %v8871_v18 = vpop.f32.mrb[85].mxu1 }
0x10ea   :  { %17968 = vmatprep.mubr.msk.f32.mxu1 %vm566_vm1, %v8871_v18 }
0x10eb   :  { %17969 = vmatmul.mubr.msk.f32.vlgmr.msra.gmra.mrb[52].mxu1 %vm566_vm1, %v17916_v32  ;;  %18046 = vmatmul.mubr.msk.f32.vlgmr.msra.gmra.mrb[132].mxu0 %vm566_vm1, %v10340_v34 }
0x10ec   :  { %18851 = vmatpush3.bf16.xpose.msk.msra.mxu1 %vm21019_vm2, %v18846_v38  ;;  %17971 = vmatprep.mubr.msk.f32.mxu1 %vm566_vm1, %v8958_v42 }
0x10ed   :  { %18860 = vmatprep.subr.msk.bf16.mxu1 %vm21019_vm2, %v18858_v12 }
0x10ef   :  { %17972 = vmatmul.mubr.msk.f32.gmra.mrb[54].mxu1 %vm566_vm1, %v17923_v54 }
0x111c   :  { %v17937_v29 = vpop.f32.mrb[116].mxu0 }
0x111d   :  { %v17930_v61 = vpop.f32.mrb[86].mxu1  ;;  %v9132_v39 = vpop.f32.mrb[117].mxu0 }
0x111e   :  { %v9045_v24 = vpop.f32.mrb[87].mxu1 }
0x111f   :  { %17974 = vmatprep.mubr.msk.f32.mxu1 %vm566_vm1, %v9045_v24 }
0x1120   :  { %17975 = vmatmul.mubr.msk.f32.gmra.mrb[56].mxu1 %vm566_vm1, %v17930_v61 }
0x1121   :  { %v17951_v1 = vpop.f32.mrb[118].mxu0  ;;  %17977 = vmatprep.mubr.msk.f32.mxu1 %vm566_vm1, %v9132_v39 }
0x1122   :  { %v9306_v40 = vpop.f32.mrb[119].mxu0 }
0x1124   :  { %17978 = vmatmul.mubr.msk.f32.gmra.mrb[42].mxu1 %vm566_vm1, %v17937_v29 }
0x1181   :  { %v17944_v38 = vpop.f32.mrb[88].mxu1 }
0x1182   :  { %v9219_v3 = vpop.f32.mrb[89].mxu1 }
0x1183   :  { %17980 = vmatprep.mubr.msk.f32.mxu1 %vm566_vm1, %v9219_v3 }
0x1184   :  { %17981 = vmatmul.mubr.msk.f32.gmra.mrb[44].mxu1 %vm566_vm1, %v17944_v38 }
0x1185   :  { %17983 = vmatprep.mubr.msk.f32.mxu1 %vm566_vm1, %v9306_v40 }
0x1188   :  { %17984 = vmatmul.mubr.msk.f32.gmra.mrb[46].mxu1 %vm566_vm1, %v17951_v1 }
0x1189   :  { %v17965_v22 = vpop.f32.mrb[120].mxu0 }
0x118a   :  { %v9480_v4 = vpop.f32.mrb[121].mxu0 }
0x118b   :  { %v17958_v2 = vpop.f32.mrb[90].mxu1 }
0x118c   :  { %v9393_v17 = vpop.f32.mrb[91].mxu1 }
0x118d   :  { %17986 = vmatprep.mubr.msk.f32.mxu1 %vm566_vm1, %v9393_v17 }
0x118e   :  { %17987 = vmatmul.mubr.msk.f32.gmra.mrb[48].mxu1 %vm566_vm1, %v17958_v2 }
0x118f   :  { %17989 = vmatprep.mubr.msk.f32.mxu1 %vm566_vm1, %v9480_v4 }
0x1192   :  { %17990 = vmatmul.mubr.msk.f32.gmra.mrb[50].mxu1 %vm566_vm1, %v17965_v22 }
0x1193   :  { %18024 = vmatprep.mubr.msk.f32.mxu1 %vm566_vm1, %v22864_v11 }
0x1196   :  { %v17998_v50 = vpop.f32.mrb[122].mxu0  ;;  %18025 = vmatmul.mubr.msk.f32.vlgmr.msra.gmra.mrb[92].mxu1 %vm566_vm1, %v22866_v36 }
0x1197   :  { %v10429_v58 = vmul.f32 0.125, %v17998_v50  ;;  %18863 = vmatpush3.bf16.xpose.msk.msra.mxu1 %vm21019_vm2, %v18858_v12  ;;  %v9782_v27 = vpop.f32.mrb[123].mxu0  ;;  %18038 = vmatprep.mubr.msk.f32.mxu1 %vm566_vm1, %v10247_v19 }
0x1198   :  { %v10428_v14 = vmul.f32 0.125, %v9782_v27 }
0x1199   :  { %v10445_v55 = vsel %vm21091_vm3, %v10429_v58, -inf }
0x119a   :  { %v10444_v33 = vsel %vm21096_vm5, %v10428_v14, -inf  ;;  %v10463_v11 = vsel %vm1309_vm4, %v10445_v55, -inf }
0x119b   :  { %10464 = vmax.xlane.f32.xlu1 %v10463_v11  ;;  %v10460_v57 = vsel %vm1309_vm4, %v10444_v33, -inf }
0x119c   :  { %10461 = vmax.xlane.f32.xlu0 %v10460_v57 }
0x119e   :  { %18039 = vmatmul.mubr.msk.f32.vlgmr.msra.gmra.mrb[94].mxu1 %vm566_vm1, %v10249_v28  ;;  %v18005_v36 = vpop.f32.mrb[124].mxu0 }
0x119f   :  { %v10431_v45 = vmul.f32 0.125, %v18005_v36  ;;  %v9873_v51 = vpop.f32.mrb[125].mxu0 }
0x11a0   :  { %v10430_v23 = vmul.f32 0.125, %v9873_v51 }
0x11a1   :  { %v10447_v19 = vsel %vm21091_vm3, %v10431_v45, -inf }
0x11a2   :  { %v10469_v10 = vsel %vm1309_vm4, %v10447_v19, -inf  ;;  %v10446_v6 = vsel %vm21096_vm5, %v10430_v23, -inf }
0x11a3   :  { %10470 = vmax.xlane.f32.xlu0 %v10469_v10  ;;  %v10466_v54 = vsel %vm1309_vm4, %v10446_v6, -inf }
0x11a6   :  { %v18012_v62 = vpop.f32.mrb[126].mxu0 }
0x11a7   :  { %v10433_v32 = vmul.f32 0.125, %v18012_v62  ;;  %10467 = vmax.xlane.f32.xlu0 %v10466_v54  ;;  %v9964_v42 = vpop.f32.mrb[127].mxu0 }
0x11a8   :  { %v10432_v28 = vmul.f32 0.125, %v9964_v42 }
0x11a9   :  { %v10449_v18 = vsel %vm21091_vm3, %v10433_v32, -inf }
0x11aa   :  { %v10448_v34 = vsel %vm21096_vm5, %v10432_v28, -inf  ;;  %v10475_v12 = vsel %vm1309_vm4, %v10449_v18, -inf }
0x11ab   :  { %10476 = vmax.xlane.f32.xlu1 %v10475_v12  ;;  %v10472_v29 = vsel %vm1309_vm4, %v10448_v34, -inf }
0x11ac   :  { %10473 = vmax.xlane.f32.xlu0 %v10472_v29 }
0x11ae   :  { %v18019_v61 = vpop.f32.mrb[128].mxu0 }
0x11af   :  { %v10435_v39 = vmul.f32 0.125, %v18019_v61  ;;  %v10055_v24 = vpop.f32.mrb[129].mxu0 }
0x11b0   :  { %v10434_v1 = vmul.f32 0.125, %v10055_v24 }
0x11b1   :  { %v22933_v40 = vsel %vm21091_vm3, %v10435_v39, -inf }
0x11b2   :  { %v22937_v38 = vsel %vm21096_vm5, %v10434_v1, -inf  ;;  %v10481_v3 = vsel %vm1309_vm4, %v22933_v40, -inf }
0x11b3   :  { %10482 = vmax.xlane.f32.xlu1 %v10481_v3  ;;  %v10478_v22 = vsel %vm1309_vm4, %v22937_v38, -inf }
0x11b4   :  { %10479 = vmax.xlane.f32.xlu0 %v10478_v22 }
0x11b6   :  { %v18033_v4 = vpop.f32.mrb[130].mxu0 }
0x11b7   :  { %v10439_v2 = vmul.f32 0.125, %v18033_v4  ;;  %v10237_v17 = vpop.f32.mrb[131].mxu0 }
0x11b8   :  { %v10438_v50 = vmul.f32 0.125, %v10237_v17 }
0x11b9   :  { %v22945_v58 = vsel %vm21091_vm3, %v10439_v2, -inf }
0x11ba   :  { %v22949_v27 = vsel %vm21096_vm5, %v10438_v50, -inf  ;;  %v10493_v14 = vsel %vm1309_vm4, %v22945_v58, -inf }
0x11bb   :  { %10494 = vmax.xlane.f32.xlu1 %v10493_v14  ;;  %v10490_v11 = vsel %vm1309_vm4, %v22949_v27, -inf }
0x11bc   :  { %10491 = vmax.xlane.f32.xlu0 %v10490_v11 }
0x11be   :  { %v18047_v57 = vpop.f32.mrb[132].mxu0 }
0x11bf   :  { %v10443_v36 = vmul.f32 0.125, %v18047_v57  ;;  %v10419_v45 = vpop.f32.mrb[133].mxu0 }
0x11c0   :  { %v10442_v51 = vmul.f32 0.125, %v10419_v45 }
0x11c1   :  { %v22957_v23 = vsel %vm21091_vm3, %v10443_v36, -inf }
0x11c2   :  { %v22961_v10 = vsel %vm21096_vm5, %v10442_v51, -inf  ;;  %v10505_v62 = vsel %vm1309_vm4, %v22957_v23, -inf }
0x11c3   :  { %10506 = vmax.xlane.f32.xlu1 %v10505_v62  ;;  %v10502_v54 = vsel %vm1309_vm4, %v22961_v10, -inf }
0x11c4   :  { %10503 = vmax.xlane.f32.xlu0 %v10502_v54 }
0x1228   :  { %v10465_v32 = vpop.xlane.xlu1 %10464 }
0x1229   :  { %v10509_v42 = vsub.f32 %v10445_v55, %v10465_v32  ;;  %v10462_v28 = vpop.xlane.xlu0 %10461 }
0x122a   :  { %v10508_v12 = vsub.f32 %v10444_v33, %v10462_v28 }
0x122b   :  { %v10526_v29 = vmul.f32 1.442695, %v10509_v42 }
0x122c   :  { %v10524_v61 = vmul.f32 1.442695, %v10508_v12 }
0x122d   :  { %20195 = vpow2.f32 %v10526_v29 }
0x122e   :  { %20197 = vpow2.f32 %v10524_v61 }
0x1230   :  { %v10471_v39 = vpop.xlane.xlu0 %10470 }
0x1231   :  { %v10511_v24 = vsub.f32 %v10447_v19, %v10471_v39 }
0x1233   :  { %v10530_v1 = vmul.f32 1.442695, %v10511_v24 }
0x1234   :  { %v10468_v3 = vpop.xlane.xlu0 %10467 }
0x1235   :  { %20199 = vpow2.f32 %v10530_v1  ;;  %v10510_v22 = vsub.f32 %v10446_v6, %v10468_v3 }
0x1237   :  { %v22967_v4 = vpop.eup %20195  ;;  %v10528_v2 = vmul.f32 1.442695, %v10510_v22 }
0x1238   :  { %v22969_v17 = vpop.eup %20197  ;;  %v10477_v50 = vpop.xlane.xlu1 %10476  ;;  %v10559_v55 = vsel %vm1309_vm4, %v22967_v4, 0.0 }
0x1239   :  { %20201 = vpow2.f32 %v10528_v2  ;;  %v10513_v33 = vsub.f32 %v10449_v18, %v10477_v50  ;;  %v10474_v14 = vpop.xlane.xlu0 %10473  ;;  %10560 = vadd.xlane.f32.xlu1 %v10559_v55  ;;  %v10556_v19 = vsel %vm1309_vm4, %v22969_v17, 0.0 }
0x123a   :  { %v10512_v11 = vsub.f32 %v10448_v34, %v10474_v14  ;;  %10557 = vadd.xlane.f32.xlu0 %v10556_v19 }
0x123b   :  { %v10534_v57 = vmul.f32 1.442695, %v10513_v33 }
0x123c   :  { %v10532_v6 = vmul.f32 1.442695, %v10512_v11 }
0x123d   :  { %20203 = vpow2.f32 %v10534_v57 }
0x123e   :  { %20205 = vpow2.f32 %v10532_v6 }
0x123f   :  { %v22975_v36 = vpop.eup %20199 }
0x1240   :  { %v10483_v45 = vpop.xlane.xlu1 %10482  ;;  %v10565_v51 = vsel %vm1309_vm4, %v22975_v36, 0.0 }
0x1241   :  { %v10515_v62 = vsub.f32 %v22933_v40, %v10483_v45  ;;  %v10480_v18 = vpop.xlane.xlu0 %10479  ;;  %10566 = vadd.xlane.f32.xlu1 %v10565_v51 }
0x1242   :  { %v10514_v54 = vsub.f32 %v22937_v38, %v10480_v18 }
0x1243   :  { %v22981_v32 = vpop.eup %20201  ;;  %v10538_v34 = vmul.f32 1.442695, %v10515_v62 }
0x1244   :  { %v10536_v42 = vmul.f32 1.442695, %v10514_v54  ;;  %v10562_v28 = vsel %vm1309_vm4, %v22981_v32, 0.0 }
0x1245   :  { %20207 = vpow2.f32 %v10538_v34  ;;  %10563 = vadd.xlane.f32.xlu0 %v10562_v28 }
0x1246   :  { %20209 = vpow2.f32 %v10536_v42 }
0x1247   :  { %v22985_v12 = vpop.eup %20203 }
0x1248   :  { %v22987_v29 = vpop.eup %20205  ;;  %v10495_v61 = vpop.xlane.xlu1 %10494  ;;  %v10571_v40 = vsel %vm1309_vm4, %v22985_v12, 0.0 }
0x1249   :  { %v10519_v38 = vsub.f32 %v22945_v58, %v10495_v61  ;;  %v10492_v39 = vpop.xlane.xlu0 %10491  ;;  %10572 = vadd.xlane.f32.xlu1 %v10571_v40  ;;  %v10568_v24 = vsel %vm1309_vm4, %v22987_v29, 0.0 }
0x124a   :  { %v10518_v1 = vsub.f32 %v22949_v27, %v10492_v39  ;;  %10569 = vadd.xlane.f32.xlu0 %v10568_v24 }
0x124b   :  { %v10546_v3 = vmul.f32 1.442695, %v10519_v38 }
0x124c   :  { %v10544_v22 = vmul.f32 1.442695, %v10518_v1  ;;  %v24505_v1 = vld [vmem:[#allocation10_spill] sm:$0xff] }
0x124d   :  { %20211 = vpow2.f32 %v10546_v3  ;;  %v24506_v3 = vld [vmem:[#allocation8_spill] sm:$0xff] }
0x124e   :  { %20213 = vpow2.f32 %v10544_v22 }
0x124f   :  { %v22995_v2 = vpop.eup %20207 }
0x1250   :  { %v22997_v50 = vpop.eup %20209  ;;  %v10577_v55 = vsel %vm1309_vm4, %v22995_v2, 0.0  ;;  %v10507_v22 = vpop.xlane.xlu1 %10506 }
0x1251   :  { %10578 = vadd.xlane.f32.xlu1 %v10577_v55  ;;  %v10574_v58 = vsel %vm1309_vm4, %v22997_v50, 0.0  ;;  %v10504_v55 = vpop.xlane.xlu0 %10503 }
0x1252   :  { %10575 = vadd.xlane.f32.xlu0 %v10574_v58  ;;  %v10523_v58 = vsub.f32 %v22957_v23, %v10507_v22  ;;  %v24507_v23 = vld [vmem:[#allocation16_spill] sm:$0xff] }
0x1257   :  { %v23003_v33 = vpop.eup %20211 }
0x1258   :  { %v23005_v27 = vpop.eup %20213  ;;  %v10589_v14 = vsel %vm1309_vm4, %v23003_v33, 0.0 }
0x1259   :  { %10590 = vadd.xlane.f32.xlu1 %v10589_v14  ;;  %v10586_v19 = vsel %vm1309_vm4, %v23005_v27, 0.0  ;;  %v10522_v14 = vsub.f32 %v22961_v10, %v10504_v55  ;;  %v24508_v10 = vld [vmem:[#allocation24_spill] sm:$0xff] }
0x125a   :  { %10587 = vadd.xlane.f32.xlu0 %v10586_v19  ;;  %v10554_v19 = vmul.f32 1.442695, %v10523_v58 }
0x125c   :  { %20215 = vpow2.f32 %v10554_v19 }
0x1269   :  { %v18026_v11 = vpop.f32.mrb[92].mxu1 }
0x126a   :  { %v10437_v57 = vmul.f32 0.125, %v18026_v11  ;;  %v10146_v6 = vpop.f32.mrb[93].mxu1  ;;  %v10552_v11 = vmul.f32 1.442695, %v10522_v14 }
0x126b   :  { %v10436_v45 = vmul.f32 0.125, %v10146_v6 }
0x126c   :  { %v10453_v51 = vsel %vm21091_vm3, %v10437_v57, -inf  ;;  %20217 = vpow2.f32 %v10552_v11  ;;  %v23029_v57 = vpop.eup %20215 }
0x126d   :  { %v10452_v62 = vsel %vm21096_vm5, %v10436_v45, -inf  ;;  %v10487_v18 = vsel %vm1309_vm4, %v10453_v51, -inf  ;;  %v10601_v45 = vsel %vm1309_vm4, %v23029_v57, 0.0 }
0x126e   :  { %10488 = vmax.xlane.f32.xlu1 %v10487_v18  ;;  %v10484_v54 = vsel %vm1309_vm4, %v10452_v62, -inf }
0x126f   :  { %10485 = vmax.xlane.f32.xlu0 %v10484_v54  ;;  %v24509_v54 = vld [vmem:[#allocation13_spill] sm:$0xff] }
0x1271   :  { %v18040_v34 = vpop.f32.mrb[94].mxu1 }
0x1272   :  { %v10441_v42 = vmul.f32 0.125, %v18040_v34  ;;  %v10328_v28 = vpop.f32.mrb[95].mxu1  ;;  %v24510_v34 = vld [vmem:[#allocation20_spill] sm:$0xff] }
0x1273   :  { %v10440_v61 = vmul.f32 0.125, %v10328_v28 }
0x1274   :  { %v10457_v40 = vsel %vm21091_vm3, %v10441_v42, -inf }
0x1275   :  { %v10456_v38 = vsel %vm21096_vm5, %v10440_v61, -inf  ;;  %v10499_v39 = vsel %vm1309_vm4, %v10457_v40, -inf }
0x1276   :  { %10500 = vmax.xlane.f32.xlu1 %v10499_v39  ;;  %v10496_v24 = vsel %vm1309_vm4, %v10456_v38, -inf  ;;  %v23031_v6 = vpop.eup %20217 }
0x1277   :  { %10497 = vmax.xlane.f32.xlu0 %v10496_v24  ;;  %v10598_v18 = vsel %vm1309_vm4, %v23031_v6, 0.0 }
0x1287   :  { %19649 = vrot.lane.b32.xlu1 %v24505_v1, %s20497_s22 }
0x128d   :  { %19644 = vrot.lane.b32.xlu0 %v24506_v3, %s20497_s22 }
0x12ab   :  { %10602 = vadd.xlane.f32.xlu1 %v10601_v45 }
0x12ac   :  { %10599 = vadd.xlane.f32.xlu0 %v10598_v18 }
0x12bc   :  { %19659 = vrot.lane.b32.xlu1 %v24507_v23, %s20497_s22 }
0x12c0   :  { %19669 = vrot.lane.b32.xlu1 %v24508_v10, %s20497_s22 }
0x12c2   :  { %19654 = vrot.lane.b32.xlu0 %v24509_v54, %s20497_s22 }
0x12c6   :  { %19664 = vrot.lane.b32.xlu0 %v24510_v34, %s20497_s22  ;;  %v10561_v58 = vpop.xlane.xlu1 %10560 }
0x12c7   :  { %v10558_v42 = vpop.xlane.xlu0 %10557 }
0x12c8   :  { %20219 = vrcp.f32 %v10558_v42 }
0x12ce   :  { %v10567_v14 = vpop.xlane.xlu1 %10566 }
0x12d2   :  { %v20220_v28 = vpop.eup %20219  ;;  %v10564_v61 = vpop.xlane.xlu0 %10563 }
0x12d3   :  { %v10605_v39 = vmul.f32 %v20220_v28, %v22969_v17 }
0x12d5   :  { %18052 = vmatprep.mubr.msk.f32.mxu1 %vm1309_vm4, %v10605_v39 }
0x12d6   :  { %v23049_v19 = vpop.xlane.xlu1 %10572 }
0x12d7   :  { %v10570_v24 = vpop.xlane.xlu0 %10569 }
0x12d8   :  { %20221 = vrcp.f32 %v10570_v24 }
0x12de   :  { %v23051_v11 = vpop.xlane.xlu1 %10578 }
0x12df   :  { %v10576_v45 = vpop.xlane.xlu0 %10575 }
0x12e2   :  { %v20222_v22 = vpop.eup %20221 }
0x12e3   :  { %v10613_v55 = vmul.f32 %v20222_v22, %v22987_v29 }
0x12e5   :  { %18066 = vmatprep.mubr.msk.f32.mxu0 %vm1309_vm4, %v10613_v55 }
0x12e6   :  { %v23053_v18 = vpop.xlane.xlu1 %10590 }
0x12e7   :  { %v23055_v42 = vpop.xlane.xlu0 %10587 }
0x12fb   :  { %v10489_v17 = vpop.xlane.xlu1 %10488 }
0x12fc   :  { %v10517_v28 = vsub.f32 %v10453_v51, %v10489_v17  ;;  %v10486_v39 = vpop.xlane.xlu0 %10485 }
0x12fd   :  { %v10516_v24 = vsub.f32 %v10452_v62, %v10486_v39 }
0x12fe   :  { %v10542_v34 = vmul.f32 1.442695, %v10517_v28 }
0x12ff   :  { %v10540_v54 = vmul.f32 1.442695, %v10516_v24 }
0x1300   :  { %20223 = vpow2.f32 %v10542_v34 }
0x1301   :  { %20225 = vpow2.f32 %v10540_v54 }
0x1302   :  { %20227 = vrcp.f32 %v10561_v58 }
0x1303   :  { %20229 = vrcp.f32 %v10564_v61  ;;  %v10501_v29 = vpop.xlane.xlu1 %10500 }
0x1304   :  { %v10521_v22 = vsub.f32 %v10457_v40, %v10501_v29  ;;  %v10498_v55 = vpop.xlane.xlu0 %10497  ;;  %20231 = vrcp.f32 %v10567_v14 }
0x1305   :  { %v10520_v10 = vsub.f32 %v10456_v38, %v10498_v55  ;;  %20233 = vrcp.f32 %v10576_v45 }
0x1306   :  { %v10550_v23 = vmul.f32 1.442695, %v10521_v22 }
0x1307   :  { %v10548_v3 = vmul.f32 1.442695, %v10520_v10  ;;  %v19650_v1 = vpop.permute.xlu1 %19649 }
0x1308   :  { %20235 = vpow2.f32 %v10550_v23  ;;  %v19645_v8 = vpop.permute.xlu0 %19644  ;;  %v19652_v51 = vunpack.i.h.bf16 %v19650_v1  ;;  %v19651_v17 = vunpack.i.l.bf16 %v19650_v1 }
0x1309   :  { %v19647_v62 = vunpack.i.h.bf16 %v19645_v8  ;;  %v19646_v28 = vunpack.i.l.bf16 %v19645_v8  ;;  %20237 = vpow2.f32 %v10548_v3 }
0x130a   :  { %v23057_v39 = vpop.eup %20223  ;;  %v18874_v1 = vpack.c.bf16 %v19652_v51, %v19651_v17  ;;  %20239 = vrcp.f32 %v23051_v11 }
0x130b   :  { %v23059_v54 = vpop.eup %20225  ;;  %v10583_v40 = vsel %vm1309_vm4, %v23057_v39, 0.0  ;;  %v18870_v38 = vpack.c.bf16 %v19647_v62, %v19646_v28  ;;  %20241 = vrcp.f32 %v23049_v19 }
0x130c   :  { %v20228_v34 = vpop.eup %20227  ;;  %10584 = vadd.xlane.f32.xlu1 %v10583_v40  ;;  %v10580_v10 = vsel %vm1309_vm4, %v23059_v54, 0.0  ;;  %20243 = vrcp.f32 %v23055_v42 }
0x130d   :  { %v20230_v23 = vpop.eup %20229  ;;  %18871 = vmatprep.subr.bf16.mxu1 %v18870_v38  ;;  %10581 = vadd.xlane.f32.xlu0 %v10580_v10  ;;  %v10607_v8 = vmul.f32 %v20228_v34, %v22967_v4  ;;  %20245 = vrcp.f32 %v23053_v18 }
0x130e   :  { %18873 = vmatpush3.bf16.msra.mxu1 %v18870_v38  ;;  %v20232_v3 = vpop.eup %20231  ;;  %v10609_v61 = vmul.f32 %v20230_v23, %v22981_v32 }
0x130f   :  { %18875 = vmatprep.subr.bf16.mxu1 %v18874_v1  ;;  %v20234_v58 = vpop.eup %20233  ;;  %v10611_v24 = vmul.f32 %v20232_v3, %v22975_v36 }
0x1310   :  { %v10617_v4 = vmul.f32 %v20234_v58, %v22997_v50 }
0x1311   :  { %18053 = vmatmul.mubr.msk.f32.vlgmr.msra.gmra.mrb[96].mxu1 %vm1309_vm4, %v10607_v8 }
0x1312   :  { %v23068_v14 = vpop.eup %20235  ;;  %18877 = vmatpush3.bf16.msra.mxu1 %v18874_v1  ;;  %18059 = vmatprep.mubr.msk.f32.mxu1 %vm1309_vm4, %v10609_v61 }
0x1313   :  { %v10595_v45 = vsel %vm1309_vm4, %v23068_v14, 0.0  ;;  %v23074_v29 = vpop.eup %20237 }
0x1314   :  { %10596 = vadd.xlane.f32.xlu1 %v10595_v45  ;;  %v10592_v32 = vsel %vm1309_vm4, %v23074_v29, 0.0  ;;  %v20240_v62 = vpop.eup %20239 }
0x1315   :  { %18060 = vmatmul.mubr.msk.f32.vlgmr.msra.gmra.mrb[98].mxu1 %vm1309_vm4, %v10611_v24  ;;  %v20242_v40 = vpop.eup %20241  ;;  %v10619_v3 = vmul.f32 %v20240_v62, %v22995_v2 }
0x1316   :  { %18073 = vmatprep.mubr.msk.f32.mxu1 %vm1309_vm4, %v10617_v4  ;;  %v20244_v8 = vpop.eup %20243  ;;  %v10615_v58 = vmul.f32 %v20242_v40, %v22985_v12 }
0x1317   :  { %v20246_v24 = vpop.eup %20245 }
0x1318   :  { %10593 = vadd.xlane.f32.xlu1 %v10592_v32  ;;  %v10625_v32 = vmul.f32 %v20244_v8, %v23005_v27  ;;  %v10627_v12 = vmul.f32 %v20246_v24, %v23003_v33 }
0x1323   :  { %19674 = vrot.lane.b32.xlu0 %v24462_v63, %s20497_s22 }
0x1327   :  { %19684 = vrot.lane.b32.xlu0 %v20912_v52, %s20498_s24 }
0x1329   :  { %19679 = vrot.lane.b32.xlu1 %v24460_v7, %s20497_s22 }
0x132b   :  { %11543 = vrot.lane.b32.xlu0 %v20904_v30, %s20499_s25 }
0x132d   :  { %19689 = vrot.lane.b32.xlu1 %v20926_v35, %s20498_s24 }
0x132f   :  { %19694 = vrot.lane.b32.xlu0 %v20940_v47, %s20498_s24 }
0x1331   :  { %11545 = vrot.lane.b32.xlu1 %v20908_v31, %s20499_s25 }
0x1333   :  { %11636 = vrot.lane.b32.xlu0 %v24475_v48, %s20499_s25 }
0x1335   :  { %11634 = vrot.lane.b32.xlu1 %v20920_v53, %s20499_s25 }
0x1337   :  { %11725 = vrot.lane.b32.xlu0 %v24479_v9, %s20499_s25 }
0x1338   :  { %v23103_v36 = vpop.xlane.xlu1 %10602 }
0x1339   :  { %19699 = vrot.lane.b32.xlu1 %v20954_v25, %s20498_s24  ;;  %v10600_v50 = vpop.xlane.xlu0 %10599 }
0x133a   :  { %20247 = vrcp.f32 %v10600_v50 }
0x133b   :  { %19704 = vrot.lane.b32.xlu0 %v24483_v49, %s20498_s24 }
0x133c   :  { %v19660_v11 = vpop.permute.xlu1 %19659 }
0x133d   :  { %v19662_v22 = vunpack.i.h.bf16 %v19660_v11  ;;  %v19661_v19 = vunpack.i.l.bf16 %v19660_v11  ;;  %11727 = vrot.lane.b32.xlu1 %v24473_v59, %s20499_s25  ;;  %v19655_v55 = vpop.permute.xlu0 %19654 }
0x133e   :  { %v19657_v51 = vunpack.i.h.bf16 %v19655_v55  ;;  %v19656_v17 = vunpack.i.l.bf16 %v19655_v55 }
0x133f   :  { %11816 = vrot.lane.b32.xlu0 %v24487_v15, %s20499_s25  ;;  %v18882_v42 = vpack.c.bf16 %v19662_v22, %v19661_v19 }
0x1340   :  { %v19670_v28 = vpop.permute.xlu1 %19669  ;;  %v18878_v18 = vpack.c.bf16 %v19657_v51, %v19656_v17 }
0x1341   :  { %v19672_v38 = vunpack.i.h.bf16 %v19670_v28  ;;  %v19671_v34 = vunpack.i.l.bf16 %v19670_v28  ;;  %19709 = vrot.lane.b32.xlu1 %v24477_v60, %s20498_s24  ;;  %v19665_v10 = vpop.permute.xlu0 %19664  ;;  %18883 = vmatprep.subr.bf16.mxu1 %v18882_v42 }
0x1342   :  { %v19667_v23 = vunpack.i.h.bf16 %v19665_v10  ;;  %v19666_v1 = vunpack.i.l.bf16 %v19665_v10  ;;  %18879 = vmatprep.subr.bf16.mxu0 %v18878_v18  ;;  %18885 = vmatpush3.bf16.msra.mxu1 %v18882_v42 }
0x1343   :  { %18881 = vmatpush3.bf16.msra.mxu0 %v18878_v18  ;;  %19714 = vrot.lane.b32.xlu0 %v24489_v13, %s20498_s24  ;;  %v18890_v61 = vpack.c.bf16 %v19672_v38, %v19671_v34 }
0x1344   :  { %v18886_v45 = vpack.c.bf16 %v19667_v23, %v19666_v1  ;;  %v20248_v4 = vpop.eup %20247 }
0x1345   :  { %11818 = vrot.lane.b32.xlu1 %v24481_v5, %s20499_s25  ;;  %18074 = vmatmul.mubr.msk.f32.vlgmr.msra.gmra.mrb[100].mxu1 %vm1309_vm4, %v10619_v3  ;;  %v10633_v2 = vmul.f32 %v20248_v4, %v23031_v6 }
0x1346   :  { %18891 = vmatprep.subr.bf16.mxu1 %v18890_v61  ;;  %18067 = vmatmul.mubr.msk.f32.vlgmr.msra.gmra.mrb[134].mxu0 %vm1309_vm4, %v10615_v58  ;;  %v11333_v58 = vld [vmem:[#allocation2 + $0x28] sm:$0xff] }
0x1347   :  { %18887 = vmatprep.subr.bf16.mxu0 %v18886_v45  ;;  %18893 = vmatpush3.bf16.msra.mxu1 %v18890_v61 }
0x1348   :  { %18087 = vmatprep.mubr.msk.f32.mxu1 %vm1309_vm4, %v10625_v32  ;;  %18889 = vmatpush3.bf16.msra.mxu0 %v18886_v45 }
0x1349   :  { %11909 = vrot.lane.b32.xlu0 %v24491_v46, %s20499_s25  ;;  %11907 = vrot.lane.b32.xlu1 %v24485_v43, %s20499_s25 }
0x134a   :  { %18088 = vmatmul.mubr.msk.f32.vlgmr.msra.gmra.mrb[102].mxu1 %vm1309_vm4, %v10627_v12 }
0x134b   :  { %18101 = vmatprep.mubr.msk.f32.mxu1 %vm1309_vm4, %v10633_v2 }
0x134d   :  { %11998 = vrot.lane.b32.xlu0 %v24493_v37, %s20499_s25  ;;  %19719 = vrot.lane.b32.xlu1 %v24488_v21, %s20498_s24 }
0x1351   :  { %12089 = vrot.lane.b32.xlu0 %v24495_v26, %s20499_s25  ;;  %12000 = vrot.lane.b32.xlu1 %v24497_v44, %s20499_s25 }
0x1355   :  { %12180 = vrot.lane.b32.xlu0 %v24498_v41, %s20499_s25  ;;  %12091 = vrot.lane.b32.xlu1 %v24499_v0, %s20499_s25 }
0x1359   :  { %12182 = vrot.lane.b32.xlu1 %v24500_v20, %s20499_s25 }
0x1399   :  { %v10585_v33 = vpop.xlane.xlu1 %10584 }
0x139a   :  { %20249 = vrcp.f32 %v10585_v33  ;;  %v10582_v27 = vpop.xlane.xlu0 %10581 }
0x139b   :  { %20251 = vrcp.f32 %v10582_v27 }
0x139c   :  { %20253 = vrcp.f32 %v23103_v36 }
0x139e   :  { %v19675_v6 = vpop.permute.xlu0 %19674 }
0x139f   :  { %v19677_v50 = vunpack.i.h.bf16 %v19675_v6  ;;  %v19676_v11 = vunpack.i.l.bf16 %v19675_v6 }
0x13a1   :  { %v10597_v22 = vpop.xlane.xlu1 %10596  ;;  %v18894_v19 = vpack.c.bf16 %v19677_v50, %v19676_v11 }
0x13a2   :  { %v19685_v55 = vpop.permute.xlu0 %19684  ;;  %20255 = vrcp.f32 %v10597_v22 }
0x13a3   :  { %18895 = vmatprep.subr.bf16.mxu0 %v18894_v19  ;;  %v19687_v42 = vunpack.i.h.bf16 %v19685_v55  ;;  %v19686_v62 = vunpack.i.l.bf16 %v19685_v55 }
0x13a4   :  { %v20250_v51 = vpop.eup %20249 }
0x13a5   :  { %v20252_v17 = vpop.eup %20251  ;;  %v10594_v28 = vpop.xlane.xlu1 %10593  ;;  %v10623_v38 = vmul.f32 %v20250_v51, %v23057_v39  ;;  %v18902_v34 = vpack.c.bf16 %v19687_v42, %v19686_v62 }
0x13a6   :  { %20257 = vrcp.f32 %v10594_v28  ;;  %v11544_v18 = vpop.permute.xlu0 %11543  ;;  %v10621_v40 = vmul.f32 %v20252_v17, %v23059_v54  ;;  %v20254_v3 = vpop.eup %20253 }
0x13a7   :  { %v10635_v32 = vmul.f32 %v20254_v3, %v23029_v57 }
0x13a8   :  { %18080 = vmatprep.mubr.msk.f32.mxu0 %vm1309_vm4, %v10621_v40 }
0x13a9   :  { %v19680_v10 = vpop.permute.xlu1 %19679  ;;  %18081 = vmatmul.mubr.msk.f32.vlgmr.msra.gmra.mrb[136].mxu0 %vm1309_vm4, %v10623_v38 }
0x13aa   :  { %v19682_v36 = vunpack.i.h.bf16 %v19680_v10  ;;  %v19681_v23 = vunpack.i.l.bf16 %v19680_v10  ;;  %18897 = vmatpush3.bf16.msra.mxu0 %v18894_v19  ;;  %v19695_v1 = vpop.permute.xlu0 %19694 }
0x13ab   :  { %18904 = vmatprep.subr.msk.bf16.mxu0 %vm21019_vm2, %v18902_v34  ;;  %v19697_v22 = vunpack.i.h.bf16 %v19695_v1 }
0x13ac   :  { %v18898_v8 = vpack.c.bf16 %v19682_v36, %v19681_v23  ;;  %v20256_v39 = vpop.eup %20255 }
0x13ad   :  { %v19690_v61 = vpop.permute.xlu1 %19689  ;;  %v10631_v27 = vmul.f32 %v20256_v39, %v23068_v14  ;;  %v19696_v14 = vunpack.i.l.bf16 %v19695_v1 }
0x13ae   :  { %18899 = vmatprep.subr.bf16.mxu1 %v18898_v8  ;;  %v11637_v54 = vpop.permute.xlu0 %11636  ;;  %v19692_v24 = vunpack.i.h.bf16 %v19690_v61  ;;  %v19691_v4 = vunpack.i.l.bf16 %v19690_v61 }
0x13af   :  { %18901 = vmatpush3.bf16.msra.mxu1 %v18898_v8  ;;  %v18914_v51 = vpack.c.bf16 %v19697_v22, %v19696_v14 }
0x13b0   :  { %v20258_v45 = vpop.eup %20257  ;;  %18104 = vmatprep.subr.mxu1 %v11333_v58  ;;  %v18908_v6 = vpack.c.bf16 %v19692_v24, %v19691_v4 }
0x13b1   :  { %v11546_v12 = vpop.permute.xlu1 %11545  ;;  %v10629_v2 = vmul.f32 %v20258_v45, %v23074_v29 }
0x13b2   :  { %18102 = vmatmul.mubr.msk.f32.vlgmr.msra.gmra.mrb[104].mxu1 %vm1309_vm4, %v10635_v32  ;;  %v11726_v33 = vpop.permute.xlu0 %11725 }
0x13b3   :  { %18094 = vmatprep.mubr.msk.f32.mxu0 %vm1309_vm4, %v10629_v2  ;;  %18105 = vmatpush3.msra.mxu1 %v11333_v58 }
0x13b4   :  { %18095 = vmatmul.mubr.msk.f32.vlgmr.msra.gmra.mrb[138].mxu0 %vm1309_vm4, %v10631_v27 }
0x13b5   :  { %18907 = vmatpush3.bf16.xpose.msk.msra.mxu0 %vm21019_vm2, %v18902_v34  ;;  %v11635_v50 = vpop.permute.xlu1 %11634  ;;  %18134 = vmatprep.mubr.msk.f32.mxu0 %vm566_vm1, %v11544_v18 }
0x13b6   :  { %18910 = vmatprep.subr.msk.bf16.mxu0 %vm21019_vm2, %v18908_v6  ;;  %v19705_v57 = vpop.permute.xlu0 %19704 }
0x13b7   :  { %v19707_v29 = vunpack.i.h.bf16 %v19705_v57  ;;  %v19706_v11 = vunpack.i.l.bf16 %v19705_v57 }
0x13b9   :  { %v18926_v19 = vpack.c.bf16 %v19707_v29, %v19706_v11  ;;  %v19700_v55 = vpop.permute.xlu1 %19699 }
0x13ba   :  { %v11817_v42 = vpop.permute.xlu0 %11816  ;;  %v19702_v62 = vunpack.i.h.bf16 %v19700_v55  ;;  %v19701_v28 = vunpack.i.l.bf16 %v19700_v55 }
0x13bb   :  { %18928 = vmatprep.subr.msk.bf16.mxu1 %vm21019_vm2, %v18926_v19 }
0x13bc   :  { %18135 = vmatmul.mubr.msk.f32.vlgmr.msra.gmra.mrb[140].mxu0 %vm566_vm1, %v11546_v12  ;;  %v18920_v40 = vpack.c.bf16 %v19702_v62, %v19701_v28 }
0x13bd   :  { %18913 = vmatpush3.bf16.xpose.msk.msra.mxu0 %vm21019_vm2, %v18908_v6  ;;  %18141 = vmatprep.mubr.msk.f32.mxu0 %vm566_vm1, %v11635_v50  ;;  %v11728_v17 = vpop.permute.xlu1 %11727 }
0x13be   :  { %18916 = vmatprep.subr.msk.bf16.mxu0 %vm21019_vm2, %v18914_v51  ;;  %v19715_v38 = vpop.permute.xlu0 %19714 }
0x13bf   :  { %v19717_v12 = vunpack.i.h.bf16 %v19715_v38  ;;  %v19716_v2 = vunpack.i.l.bf16 %v19715_v38 }
0x13c1   :  { %v19710_v18 = vpop.permute.xlu1 %19709  ;;  %v18938_v50 = vpack.c.bf16 %v19717_v12, %v19716_v2 }
0x13c2   :  { %v19712_v10 = vunpack.i.h.bf16 %v19710_v18  ;;  %v19711_v36 = vunpack.i.l.bf16 %v19710_v18  ;;  %v23183_v1 = vpop.permute.xlu0 %11909 }
0x13c4   :  { %18142 = vmatmul.mubr.msk.f32.vlgmr.msra.gmra.mrb[142].mxu0 %vm566_vm1, %v11637_v54  ;;  %v18932_v8 = vpack.c.bf16 %v19712_v10, %v19711_v36 }
0x13c5   :  { %18919 = vmatpush3.bf16.xpose.msk.msra.mxu0 %vm21019_vm2, %v18914_v51  ;;  %18148 = vmatprep.mubr.msk.f32.mxu0 %vm566_vm1, %v11726_v33  ;;  %v11819_v34 = vpop.permute.xlu1 %11818 }
0x13c6   :  { %18922 = vmatprep.subr.msk.bf16.mxu0 %vm21019_vm2, %v18920_v40  ;;  %v11999_v61 = vpop.permute.xlu0 %11998 }
0x13c9   :  { %v23181_v23 = vpop.permute.xlu1 %11907 }
0x13ca   :  { %v12090_v45 = vpop.permute.xlu0 %12089 }
0x13cc   :  { %18149 = vmatmul.mubr.msk.f32.vlgmr.msra.gmra.mrb[144].mxu0 %vm566_vm1, %v11728_v17 }
0x13cd   :  { %18925 = vmatpush3.bf16.xpose.msk.msra.mxu0 %vm21019_vm2, %v18920_v40  ;;  %18155 = vmatprep.mubr.msk.f32.mxu0 %vm566_vm1, %v11817_v42  ;;  %v19720_v3 = vpop.permute.xlu1 %19719 }
0x13ce   :  { %18934 = vmatprep.subr.msk.bf16.mxu0 %vm21019_vm2, %v18932_v8  ;;  %v19722_v58 = vunpack.i.h.bf16 %v19720_v3  ;;  %v19721_v54 = vunpack.i.l.bf16 %v19720_v3  ;;  %v12181_v4 = vpop.permute.xlu0 %12180 }
0x13d0   :  { %v18944_v39 = vpack.c.bf16 %v19722_v58, %v19721_v54 }
0x13d1   :  { %v12001_v24 = vpop.permute.xlu1 %12000 }
0x13d4   :  { %18156 = vmatmul.mubr.msk.f32.vlgmr.msra.gmra.mrb[146].mxu0 %vm566_vm1, %v11819_v34 }
0x13d5   :  { %18937 = vmatpush3.bf16.xpose.msk.msra.mxu0 %vm21019_vm2, %v18932_v8  ;;  %18169 = vmatprep.mubr.msk.f32.mxu0 %vm566_vm1, %v11999_v61  ;;  %v12092_v32 = vpop.permute.xlu1 %12091 }
0x13d6   :  { %18946 = vmatprep.subr.msk.bf16.mxu0 %vm21019_vm2, %v18944_v39 }
0x13d9   :  { %v12183_v33 = vpop.permute.xlu1 %12182 }
0x13dc   :  { %18170 = vmatmul.mubr.msk.f32.vlgmr.msra.gmra.mrb[148].mxu0 %vm566_vm1, %v12001_v24 }
0x13dd   :  { %18949 = vmatpush3.bf16.xpose.msk.msra.mxu0 %vm21019_vm2, %v18944_v39  ;;  %18183 = vmatprep.mubr.msk.f32.mxu0 %vm566_vm1, %v12181_v4 }
0x13e4   :  { %18184 = vmatmul.mubr.msk.f32.vlgmr.msra.gmra.mrb[150].mxu0 %vm566_vm1, %v12183_v33  ;;  %v18054_v27 = vpop.f32.mrb[96].mxu1 }
0x13e5   :  { %v10714_v6 = vpop.f32.mrb[97].mxu1 }
0x13e6   :  { %18106 = vmatprep.mubr.msk.f32.mxu1 %vm566_vm1, %v10714_v6 }
0x13e7   :  { %18107 = vmatmul.mubr.msk.f32.vlgmr.msra.gmra.mrb[52].mxu1 %vm566_vm1, %v18054_v27 }
0x13e8   :  { %18931 = vmatpush3.bf16.xpose.msk.msra.mxu1 %vm21019_vm2, %v18926_v19  ;;  %v18061_v57 = vpop.f32.mrb[98].mxu1 }
0x13e9   :  { %18940 = vmatprep.subr.msk.bf16.mxu1 %vm21019_vm2, %v18938_v50  ;;  %v10801_v29 = vpop.f32.mrb[99].mxu1 }
0x13ea   :  { %18109 = vmatprep.mubr.msk.f32.mxu1 %vm566_vm1, %v10801_v29 }
0x13eb   :  { %18110 = vmatmul.mubr.msk.f32.gmra.mrb[54].mxu1 %vm566_vm1, %v18061_v57 }
0x1418   :  { %v18075_v11 = vpop.f32.mrb[100].mxu1 }
0x1419   :  { %v18068_v22 = vpop.f32.mrb[134].mxu0  ;;  %v10975_v14 = vpop.f32.mrb[101].mxu1 }
0x141a   :  { %v10888_v55 = vpop.f32.mrb[135].mxu0 }
0x141b   :  { %18112 = vmatprep.mubr.msk.f32.mxu1 %vm566_vm1, %v10888_v55 }
0x141c   :  { %18113 = vmatmul.mubr.msk.f32.gmra.mrb[56].mxu1 %vm566_vm1, %v18068_v22 }
0x141d   :  { %v18089_v51 = vpop.f32.mrb[102].mxu1  ;;  %18115 = vmatprep.mubr.msk.f32.mxu1 %vm566_vm1, %v10975_v14 }
0x141e   :  { %v11149_v19 = vpop.f32.mrb[103].mxu1 }
0x1420   :  { %18116 = vmatmul.mubr.msk.f32.gmra.mrb[42].mxu1 %vm566_vm1, %v18075_v11 }
0x147c   :  { %v18082_v17 = vpop.f32.mrb[136].mxu0 }
0x147d   :  { %v11062_v42 = vpop.f32.mrb[137].mxu0 }
0x147e   :  { %18118 = vmatprep.mubr.msk.f32.mxu1 %vm566_vm1, %v11062_v42 }
0x147f   :  { %18119 = vmatmul.mubr.msk.f32.gmra.mrb[44].mxu1 %vm566_vm1, %v18082_v17 }
0x1480   :  { %18121 = vmatprep.mubr.msk.f32.mxu1 %vm566_vm1, %v11149_v19 }
0x1483   :  { %18122 = vmatmul.mubr.msk.f32.gmra.mrb[46].mxu1 %vm566_vm1, %v18089_v51 }
0x1485   :  { %v18103_v62 = vpop.f32.mrb[104].mxu1 }
0x1486   :  { %v11323_v28 = vpop.f32.mrb[105].mxu1 }
0x1487   :  { %v18096_v18 = vpop.f32.mrb[138].mxu0 }
0x1488   :  { %v11236_v40 = vpop.f32.mrb[139].mxu0 }
0x1489   :  { %18124 = vmatprep.mubr.msk.f32.mxu1 %vm566_vm1, %v11236_v40 }
0x148a   :  { %18125 = vmatmul.mubr.msk.f32.gmra.mrb[48].mxu1 %vm566_vm1, %v18096_v18 }
0x148b   :  { %18127 = vmatprep.mubr.msk.f32.mxu1 %vm566_vm1, %v11323_v28 }
0x148e   :  { %18128 = vmatmul.mubr.msk.f32.gmra.mrb[50].mxu1 %vm566_vm1, %v18103_v62 }
0x148f   :  { %v18136_v38 = vpop.f32.mrb[140].mxu0  ;;  %18162 = vmatprep.mubr.msk.f32.mxu1 %vm566_vm1, %v23181_v23 }
0x1490   :  { %v12272_v34 = vmul.f32 0.125, %v18136_v38  ;;  %v11625_v10 = vpop.f32.mrb[141].mxu0 }
0x1491   :  { %v12271_v36 = vmul.f32 0.125, %v11625_v10 }
0x1492   :  { %v23226_v8 = vsel %vm21091_vm3, %v12272_v34, -inf  ;;  %18163 = vmatmul.mubr.msk.f32.vlgmr.msra.gmra.mrb[106].mxu1 %vm566_vm1, %v23183_v1 }
0x1493   :  { %v23232_v61 = vsel %vm21096_vm5, %v12271_v36, -inf  ;;  %18943 = vmatpush3.bf16.xpose.msk.msra.mxu1 %vm21019_vm2, %v18938_v50  ;;  %v12306_v23 = vsel %vm1309_vm4, %v23226_v8, -inf  ;;  %18176 = vmatprep.mubr.msk.f32.mxu1 %vm566_vm1, %v12090_v45 }
0x1494   :  { %12307 = vmax.xlane.f32.xlu1 %v12306_v23  ;;  %v12303_v58 = vsel %vm1309_vm4, %v23232_v61, -inf }
0x1495   :  { %12304 = vmax.xlane.f32.xlu0 %v12303_v58 }
0x1497   :  { %v18143_v54 = vpop.f32.mrb[142].mxu0 }
0x1498   :  { %v12274_v39 = vmul.f32 0.125, %v18143_v54  ;;  %v11716_v1 = vpop.f32.mrb[143].mxu0 }
0x1499   :  { %v12273_v24 = vmul.f32 0.125, %v11716_v1 }
0x149a   :  { %v12290_v4 = vsel %vm21091_vm3, %v12274_v39, -inf  ;;  %18177 = vmatmul.mubr.msk.f32.vlgmr.msra.gmra.mrb[108].mxu1 %vm566_vm1, %v12092_v32 }
0x149b   :  { %v12312_v12 = vsel %vm1309_vm4, %v12290_v4, -inf  ;;  %v12289_v2 = vsel %vm21096_vm5, %v12273_v24, -inf }
0x149c   :  { %12313 = vmax.xlane.f32.xlu0 %v12312_v12  ;;  %v12309_v33 = vsel %vm1309_vm4, %v12289_v2, -inf }
0x149f   :  { %v18150_v45 = vpop.f32.mrb[144].mxu0 }
0x14a0   :  { %v12276_v27 = vmul.f32 0.125, %v18150_v45  ;;  %12310 = vmax.xlane.f32.xlu0 %v12309_v33  ;;  %v11807_v6 = vpop.f32.mrb[145].mxu0 }
0x14a1   :  { %v12275_v50 = vmul.f32 0.125, %v11807_v6 }
0x14a2   :  { %v12292_v57 = vsel %vm21091_vm3, %v12276_v27, -inf }
0x14a3   :  { %v12291_v29 = vsel %vm21096_vm5, %v12275_v50, -inf  ;;  %v12318_v32 = vsel %vm1309_vm4, %v12292_v57, -inf }
0x14a4   :  { %12319 = vmax.xlane.f32.xlu1 %v12318_v32  ;;  %v12315_v11 = vsel %vm1309_vm4, %v12291_v29, -inf }
0x14a5   :  { %12316 = vmax.xlane.f32.xlu0 %v12315_v11 }
0x14a7   :  { %v18157_v22 = vpop.f32.mrb[146].mxu0 }
0x14a8   :  { %v12278_v14 = vmul.f32 0.125, %v18157_v22  ;;  %v11898_v55 = vpop.f32.mrb[147].mxu0 }
0x14a9   :  { %v12277_v51 = vmul.f32 0.125, %v11898_v55 }
0x14aa   :  { %v23256_v19 = vsel %vm21091_vm3, %v12278_v14, -inf }
0x14ab   :  { %v23260_v17 = vsel %vm21096_vm5, %v12277_v51, -inf  ;;  %v12324_v42 = vsel %vm1309_vm4, %v23256_v19, -inf }
0x14ac   :  { %12325 = vmax.xlane.f32.xlu1 %v12324_v42  ;;  %v12321_v62 = vsel %vm1309_vm4, %v23260_v17, -inf }
0x14ad   :  { %12322 = vmax.xlane.f32.xlu0 %v12321_v62 }
0x14af   :  { %v18171_v28 = vpop.f32.mrb[148].mxu0 }
0x14b0   :  { %v12282_v18 = vmul.f32 0.125, %v18171_v28  ;;  %v12080_v40 = vpop.f32.mrb[149].mxu0 }
0x14b1   :  { %v12281_v38 = vmul.f32 0.125, %v12080_v40 }
0x14b2   :  { %v23268_v34 = vsel %vm21091_vm3, %v12282_v18, -inf }
0x14b3   :  { %v23272_v10 = vsel %vm21096_vm5, %v12281_v38, -inf  ;;  %v12336_v36 = vsel %vm1309_vm4, %v23268_v34, -inf }
0x14b4   :  { %12337 = vmax.xlane.f32.xlu1 %v12336_v36  ;;  %v12333_v23 = vsel %vm1309_vm4, %v23272_v10, -inf }
0x14b5   :  { %12334 = vmax.xlane.f32.xlu0 %v12333_v23 }
0x14b7   :  { %v18185_v58 = vpop.f32.mrb[150].mxu0 }
0x14b8   :  { %v12286_v54 = vmul.f32 0.125, %v18185_v58  ;;  %v12262_v39 = vpop.f32.mrb[151].mxu0 }
0x14b9   :  { %v12285_v1 = vmul.f32 0.125, %v12262_v39 }
0x14ba   :  { %v23280_v24 = vsel %vm21091_vm3, %v12286_v54, -inf }
0x14bb   :  { %v23284_v12 = vsel %vm21096_vm5, %v12285_v1, -inf  ;;  %v12348_v45 = vsel %vm1309_vm4, %v23280_v24, -inf }
0x14bc   :  { %12349 = vmax.xlane.f32.xlu1 %v12348_v45  ;;  %v12345_v33 = vsel %vm1309_vm4, %v23284_v12, -inf }
0x14bd   :  { %12346 = vmax.xlane.f32.xlu0 %v12345_v33 }
0x1521   :  { %v12308_v27 = vpop.xlane.xlu1 %12307 }
0x1522   :  { %v12352_v6 = vsub.f32 %v23226_v8, %v12308_v27  ;;  %v12305_v50 = vpop.xlane.xlu0 %12304 }
0x1523   :  { %v12351_v32 = vsub.f32 %v23232_v61, %v12305_v50 }
0x1524   :  { %v12369_v11 = vmul.f32 1.442695, %v12352_v6 }
0x1525   :  { %v12367_v22 = vmul.f32 1.442695, %v12351_v32 }
0x1526   :  { %20259 = vpow2.f32 %v12369_v11 }
0x1527   :  { %20261 = vpow2.f32 %v12367_v22 }
0x1529   :  { %v12314_v14 = vpop.xlane.xlu0 %12313 }
0x152a   :  { %v12354_v55 = vsub.f32 %v12290_v4, %v12314_v14 }
0x152c   :  { %v12373_v51 = vmul.f32 1.442695, %v12354_v55 }
0x152d   :  { %v12311_v42 = vpop.xlane.xlu0 %12310 }
0x152e   :  { %20263 = vpow2.f32 %v12373_v51  ;;  %v12353_v62 = vsub.f32 %v12289_v2, %v12311_v42 }
0x1530   :  { %v23292_v28 = vpop.eup %20259  ;;  %v12371_v18 = vmul.f32 1.442695, %v12353_v62 }
0x1531   :  { %v23294_v40 = vpop.eup %20261  ;;  %v12320_v38 = vpop.xlane.xlu1 %12319  ;;  %v12402_v8 = vsel %vm1309_vm4, %v23292_v28, 0.0 }
0x1532   :  { %20265 = vpow2.f32 %v12371_v18  ;;  %v12356_v61 = vsub.f32 %v12292_v57, %v12320_v38  ;;  %v12317_v36 = vpop.xlane.xlu0 %12316  ;;  %12403 = vadd.xlane.f32.xlu1 %v12402_v8  ;;  %v12399_v4 = vsel %vm1309_vm4, %v23294_v40, 0.0 }
0x1533   :  { %v12355_v23 = vsub.f32 %v12291_v29, %v12317_v36  ;;  %12400 = vadd.xlane.f32.xlu0 %v12399_v4 }
0x1534   :  { %v12377_v58 = vmul.f32 1.442695, %v12356_v61 }
0x1535   :  { %v12375_v2 = vmul.f32 1.442695, %v12355_v23 }
0x1536   :  { %20267 = vpow2.f32 %v12377_v58 }
0x1537   :  { %20269 = vpow2.f32 %v12375_v2 }
0x1538   :  { %v23300_v54 = vpop.eup %20263 }
0x1539   :  { %v12326_v39 = vpop.xlane.xlu1 %12325  ;;  %v12408_v1 = vsel %vm1309_vm4, %v23300_v54, 0.0 }
0x153a   :  { %v12358_v45 = vsub.f32 %v23256_v19, %v12326_v39  ;;  %v12323_v57 = vpop.xlane.xlu0 %12322  ;;  %12409 = vadd.xlane.f32.xlu1 %v12408_v1 }
0x153b   :  { %v12357_v33 = vsub.f32 %v23260_v17, %v12323_v57 }
0x153c   :  { %v23306_v27 = vpop.eup %20265  ;;  %v12381_v29 = vmul.f32 1.442695, %v12358_v45 }
0x153d   :  { %v12379_v6 = vmul.f32 1.442695, %v12357_v33  ;;  %v12405_v50 = vsel %vm1309_vm4, %v23306_v27, 0.0 }
0x153e   :  { %20271 = vpow2.f32 %v12381_v29  ;;  %12406 = vadd.xlane.f32.xlu0 %v12405_v50 }
0x153f   :  { %20273 = vpow2.f32 %v12379_v6 }
0x1540   :  { %v23310_v32 = vpop.eup %20267 }
0x1541   :  { %v23312_v11 = vpop.eup %20269  ;;  %v12338_v22 = vpop.xlane.xlu1 %12337  ;;  %v12414_v19 = vsel %vm1309_vm4, %v23310_v32, 0.0 }
0x1542   :  { %v12362_v17 = vsub.f32 %v23268_v34, %v12338_v22  ;;  %v12335_v14 = vpop.xlane.xlu0 %12334  ;;  %12415 = vadd.xlane.f32.xlu1 %v12414_v19  ;;  %v12411_v55 = vsel %vm1309_vm4, %v23312_v11, 0.0 }
0x1543   :  { %v12361_v51 = vsub.f32 %v23272_v10, %v12335_v14  ;;  %12412 = vadd.xlane.f32.xlu0 %v12411_v55 }
0x1544   :  { %v12389_v42 = vmul.f32 1.442695, %v12362_v17 }
0x1545   :  { %v12387_v62 = vmul.f32 1.442695, %v12361_v51  ;;  %v24512_v51 = vld [vmem:[#allocation10_spill] sm:$0xff] }
0x1546   :  { %20275 = vpow2.f32 %v12389_v42  ;;  %v24513_v42 = vld [vmem:[#allocation8_spill] sm:$0xff] }
0x1547   :  { %20277 = vpow2.f32 %v12387_v62 }
0x1548   :  { %v23320_v18 = vpop.eup %20271 }
0x1549   :  { %v23322_v38 = vpop.eup %20273  ;;  %v12420_v8 = vsel %vm1309_vm4, %v23320_v18, 0.0  ;;  %v12350_v62 = vpop.xlane.xlu1 %12349 }
0x154a   :  { %12421 = vadd.xlane.f32.xlu1 %v12420_v8  ;;  %v12417_v34 = vsel %vm1309_vm4, %v23322_v38, 0.0  ;;  %v12347_v8 = vpop.xlane.xlu0 %12346 }
0x154b   :  { %12418 = vadd.xlane.f32.xlu0 %v12417_v34  ;;  %v12366_v34 = vsub.f32 %v23280_v24, %v12350_v62  ;;  %v24514_v24 = vld [vmem:[#allocation16_spill] sm:$0xff] }
0x1550   :  { %v23328_v61 = vpop.eup %20275 }
0x1551   :  { %v23330_v10 = vpop.eup %20277  ;;  %v12432_v36 = vsel %vm1309_vm4, %v23328_v61, 0.0 }
0x1552   :  { %12433 = vadd.xlane.f32.xlu1 %v12432_v36  ;;  %v12429_v4 = vsel %vm1309_vm4, %v23330_v10, 0.0  ;;  %v12365_v36 = vsub.f32 %v23284_v12, %v12347_v8  ;;  %v24515_v12 = vld [vmem:[#allocation24_spill] sm:$0xff] }
0x1553   :  { %12430 = vadd.xlane.f32.xlu0 %v12429_v4  ;;  %v12397_v4 = vmul.f32 1.442695, %v12366_v34 }
0x1555   :  { %20279 = vpow2.f32 %v12397_v4 }
0x1565   :  { %v18164_v23 = vpop.f32.mrb[106].mxu1 }
0x1566   :  { %v12280_v58 = vmul.f32 0.125, %v18164_v23  ;;  %v11989_v2 = vpop.f32.mrb[107].mxu1  ;;  %v12395_v23 = vmul.f32 1.442695, %v12365_v36 }
0x1567   :  { %v12279_v39 = vmul.f32 0.125, %v11989_v2 }
0x1568   :  { %v12296_v1 = vsel %vm21091_vm3, %v12280_v58, -inf  ;;  %20281 = vpow2.f32 %v12395_v23  ;;  %v23354_v58 = vpop.eup %20279 }
0x1569   :  { %v12295_v45 = vsel %vm21096_vm5, %v12279_v39, -inf  ;;  %v12330_v57 = vsel %vm1309_vm4, %v12296_v1, -inf  ;;  %v12444_v39 = vsel %vm1309_vm4, %v23354_v58, 0.0 }
0x156a   :  { %12331 = vmax.xlane.f32.xlu1 %v12330_v57  ;;  %v12327_v33 = vsel %vm1309_vm4, %v12295_v45, -inf }
0x156b   :  { %12328 = vmax.xlane.f32.xlu0 %v12327_v33  ;;  %v24516_v33 = vld [vmem:[#allocation13_spill] sm:$0xff] }
0x156d   :  { %v18178_v29 = vpop.f32.mrb[108].mxu1 }
0x156e   :  { %v12284_v6 = vmul.f32 0.125, %v18178_v29  ;;  %v12171_v50 = vpop.f32.mrb[109].mxu1 }
0x156f   :  { %v12283_v22 = vmul.f32 0.125, %v12171_v50 }
0x1570   :  { %v12300_v19 = vsel %vm21091_vm3, %v12284_v6, -inf  ;;  %v24517_v6 = vld [vmem:[#allocation20_spill] sm:$0xff] }
0x1571   :  { %v12299_v17 = vsel %vm21096_vm5, %v12283_v22, -inf  ;;  %v12342_v14 = vsel %vm1309_vm4, %v12300_v19, -inf }
0x1572   :  { %12343 = vmax.xlane.f32.xlu1 %v12342_v14  ;;  %v12339_v55 = vsel %vm1309_vm4, %v12299_v17, -inf  ;;  %v23356_v2 = vpop.eup %20281 }
0x1573   :  { %12340 = vmax.xlane.f32.xlu0 %v12339_v55  ;;  %v12441_v57 = vsel %vm1309_vm4, %v23356_v2, 0.0 }
0x1583   :  { %19729 = vrot.lane.b32.xlu1 %v24512_v51, %s20499_s25 }
0x1589   :  { %19724 = vrot.lane.b32.xlu0 %v24513_v42, %s20499_s25 }
0x15a7   :  { %12445 = vadd.xlane.f32.xlu1 %v12444_v39 }
0x15a8   :  { %12442 = vadd.xlane.f32.xlu0 %v12441_v57 }
0x15b8   :  { %19739 = vrot.lane.b32.xlu1 %v24514_v24, %s20499_s25 }
0x15bc   :  { %19749 = vrot.lane.b32.xlu1 %v24515_v12, %s20499_s25 }
0x15be   :  { %19734 = vrot.lane.b32.xlu0 %v24516_v33, %s20499_s25 }
0x15bf   :  { %v12404_v8 = vpop.xlane.xlu1 %12403 }
0x15c0   :  { %v12401_v29 = vpop.xlane.xlu0 %12400 }
0x15c1   :  { %20283 = vrcp.f32 %v12401_v29 }
0x15c2   :  { %19744 = vrot.lane.b32.xlu0 %v24517_v6, %s20499_s25 }
0x15c7   :  { %v12410_v34 = vpop.xlane.xlu1 %12409 }
0x15cb   :  { %v20284_v50 = vpop.eup %20283  ;;  %v12407_v22 = vpop.xlane.xlu0 %12406 }
0x15cc   :  { %20285 = vrcp.f32 %v12407_v22  ;;  %v12448_v14 = vmul.f32 %v20284_v50, %v23294_v40 }
0x15cd   :  { %20287 = vrcp.f32 %v12404_v8 }
0x15ce   :  { %18190 = vmatprep.mubr.msk.f32.mxu1 %vm1309_vm4, %v12448_v14  ;;  %20289 = vrcp.f32 %v12410_v34 }
0x15cf   :  { %v23374_v36 = vpop.xlane.xlu1 %12415 }
0x15d0   :  { %v12413_v4 = vpop.xlane.xlu0 %12412 }
0x15d6   :  { %v20286_v55 = vpop.eup %20285 }
0x15d7   :  { %v12452_v62 = vmul.f32 %v20286_v55, %v23306_v27  ;;  %v23376_v23 = vpop.xlane.xlu1 %12421  ;;  %v20288_v56 = vpop.eup %20287 }
0x15d8   :  { %v12419_v39 = vpop.xlane.xlu0 %12418  ;;  %v20290_v8 = vpop.eup %20289 }
0x15d9   :  { %18197 = vmatprep.mubr.msk.f32.mxu0 %vm1309_vm4, %v12452_v62 }
0x15df   :  { %v23378_v57 = vpop.xlane.xlu1 %12433 }
0x15e0   :  { %v23380_v29 = vpop.xlane.xlu0 %12430 }
0x15f7   :  { %v12332_v40 = vpop.xlane.xlu1 %12331 }
0x15f8   :  { %v12360_v50 = vsub.f32 %v12296_v1, %v12332_v40  ;;  %v12329_v22 = vpop.xlane.xlu0 %12328 }
0x15f9   :  { %v12359_v14 = vsub.f32 %v12295_v45, %v12329_v22 }
0x15fa   :  { %v12385_v27 = vmul.f32 1.442695, %v12360_v50 }
0x15fb   :  { %v12383_v55 = vmul.f32 1.442695, %v12359_v14 }
0x15fc   :  { %20291 = vpow2.f32 %v12385_v27 }
0x15fd   :  { %20293 = vpow2.f32 %v12383_v55 }
0x15fe   :  { %20295 = vrcp.f32 %v12419_v39 }
0x15ff   :  { %20297 = vrcp.f32 %v12413_v4  ;;  %v12344_v62 = vpop.xlane.xlu1 %12343 }
0x1600   :  { %v12364_v12 = vsub.f32 %v12300_v19, %v12344_v62  ;;  %v12341_v24 = vpop.xlane.xlu0 %12340 }
0x1601   :  { %v12363_v6 = vsub.f32 %v12299_v17, %v12341_v24 }
0x1602   :  { %v12393_v51 = vmul.f32 1.442695, %v12364_v12  ;;  %v12454_v12 = vmul.f32 %v20290_v8, %v23300_v54 }
0x1603   :  { %v12391_v33 = vmul.f32 1.442695, %v12363_v6  ;;  %v19730_v3 = vpop.permute.xlu1 %19729 }
0x1604   :  { %20299 = vpow2.f32 %v12393_v51  ;;  %v19732_v1 = vunpack.i.h.bf16 %v19730_v3  ;;  %v19731_v40 = vunpack.i.l.bf16 %v19730_v3  ;;  %v19725_v45 = vpop.permute.xlu0 %19724 }
0x1605   :  { %v19727_v50 = vunpack.i.h.bf16 %v19725_v45  ;;  %v19726_v34 = vunpack.i.l.bf16 %v19725_v45  ;;  %20301 = vpow2.f32 %v12391_v33  ;;  %v12450_v33 = vmul.f32 %v20288_v56, %v23292_v28 }
0x1606   :  { %v23382_v22 = vpop.eup %20291  ;;  %v18954_v39 = vpack.c.bf16 %v19732_v1, %v19731_v40  ;;  %20303 = vrcp.f32 %v23376_v23 }
0x1607   :  { %v23384_v4 = vpop.eup %20293  ;;  %v12426_v19 = vsel %vm1309_vm4, %v23382_v22, 0.0  ;;  %v18950_v17 = vpack.c.bf16 %v19727_v50, %v19726_v34  ;;  %20305 = vrcp.f32 %v23374_v36  ;;  %v13176_v34 = vld [vmem:[#allocation2 + $0x30] sm:$0xff] }
0x1608   :  { %v20296_v24 = vpop.eup %20295  ;;  %18955 = vmatprep.subr.bf16.mxu0 %v18954_v39  ;;  %12427 = vadd.xlane.f32.xlu1 %v12426_v19  ;;  %v12423_v3 = vsel %vm1309_vm4, %v23384_v4, 0.0  ;;  %20307 = vrcp.f32 %v23380_v29 }
0x1609   :  { %v20298_v51 = vpop.eup %20297  ;;  %18951 = vmatprep.subr.bf16.mxu1 %v18950_v17  ;;  %18957 = vmatpush3.bf16.msra.mxu0 %v18954_v39  ;;  %v12460_v6 = vmul.f32 %v20296_v24, %v23322_v38  ;;  %20309 = vrcp.f32 %v23378_v57 }
0x160a   :  { %12424 = vadd.xlane.f32.xlu0 %v12423_v3  ;;  %18953 = vmatpush3.bf16.msra.mxu1 %v18950_v17  ;;  %v12456_v14 = vmul.f32 %v20298_v51, %v23312_v11 }
0x160c   :  { %18198 = vmatmul.mubr.msk.f32.vlgmr.msra.gmra.mrb[152].mxu0 %vm1309_vm4, %v12454_v12 }
0x160d   :  { %18191 = vmatmul.mubr.msk.f32.vlgmr.msra.gmra.mrb[110].mxu1 %vm1309_vm4, %v12450_v33  ;;  %18211 = vmatprep.mubr.msk.f32.mxu0 %vm1309_vm4, %v12460_v6 }
0x160e   :  { %v23397_v27 = vpop.eup %20299  ;;  %18204 = vmatprep.mubr.msk.f32.mxu1 %vm1309_vm4, %v12456_v14 }
0x160f   :  { %v12438_v55 = vsel %vm1309_vm4, %v23397_v27, 0.0  ;;  %v23402_v54 = vpop.eup %20301 }
0x1610   :  { %12439 = vadd.xlane.f32.xlu1 %v12438_v55  ;;  %v12435_v56 = vsel %vm1309_vm4, %v23402_v54, 0.0  ;;  %v20304_v11 = vpop.eup %20303 }
0x1611   :  { %v20306_v36 = vpop.eup %20305  ;;  %v12462_v1 = vmul.f32 %v20304_v11, %v23320_v18 }
0x1612   :  { %v20308_v62 = vpop.eup %20307 }
0x1613   :  { %v20310_v8 = vpop.eup %20309  ;;  %v12468_v50 = vmul.f32 %v20308_v62, %v23330_v10 }
0x1614   :  { %12436 = vadd.xlane.f32.xlu1 %v12435_v56 }
0x1620   :  { %19754 = vrot.lane.b32.xlu0 %v24462_v63, %s20499_s25 }
0x1624   :  { %19764 = vrot.lane.b32.xlu0 %v20912_v52, %s20485_s14 }
0x1625   :  { %19759 = vrot.lane.b32.xlu1 %v24460_v7, %s20499_s25 }
0x1628   :  { %13386 = vrot.lane.b32.xlu0 %v20904_v30, %s20500_s26 }
0x1629   :  { %19769 = vrot.lane.b32.xlu1 %v20926_v35, %s20485_s14 }
0x162c   :  { %19774 = vrot.lane.b32.xlu0 %v20940_v47, %s20485_s14 }
0x162d   :  { %13388 = vrot.lane.b32.xlu1 %v20908_v31, %s20500_s26 }
0x1630   :  { %13479 = vrot.lane.b32.xlu0 %v24475_v48, %s20500_s26 }
0x1631   :  { %13477 = vrot.lane.b32.xlu1 %v20920_v53, %s20500_s26 }
0x1634   :  { %v23426_v30 = vpop.xlane.xlu1 %12445  ;;  %13570 = vrot.lane.b32.xlu0 %v24473_v59, %s20500_s26 }
0x1635   :  { %13568 = vrot.lane.b32.xlu1 %v24479_v9, %s20500_s26  ;;  %v12443_v31 = vpop.xlane.xlu0 %12442 }
0x1636   :  { %20311 = vrcp.f32 %v12443_v31 }
0x1638   :  { %v19740_v52 = vpop.permute.xlu1 %19739  ;;  %19784 = vrot.lane.b32.xlu0 %v24483_v49, %s20485_s14 }
0x1639   :  { %v19742_v53 = vunpack.i.h.bf16 %v19740_v52  ;;  %v19741_v35 = vunpack.i.l.bf16 %v19740_v52  ;;  %19779 = vrot.lane.b32.xlu1 %v20954_v25, %s20485_s14  ;;  %v19735_v47 = vpop.permute.xlu0 %19734 }
0x163a   :  { %v19737_v59 = vunpack.i.h.bf16 %v19735_v47  ;;  %v19736_v48 = vunpack.i.l.bf16 %v19735_v47 }
0x163b   :  { %v18962_v28 = vpack.c.bf16 %v19742_v53, %v19741_v35 }
0x163c   :  { %v19750_v38 = vpop.permute.xlu1 %19749  ;;  %13661 = vrot.lane.b32.xlu0 %v24481_v5, %s20500_s26  ;;  %v18958_v9 = vpack.c.bf16 %v19737_v59, %v19736_v48  ;;  %v12458_v5 = vmul.f32 %v20306_v36, %v23310_v32 }
0x163d   :  { %v19752_v23 = vunpack.i.h.bf16 %v19750_v38  ;;  %v19751_v57 = vunpack.i.l.bf16 %v19750_v38  ;;  %18963 = vmatprep.subr.bf16.mxu0 %v18962_v28  ;;  %13659 = vrot.lane.b32.xlu1 %v24487_v15, %s20500_s26  ;;  %v19745_v49 = vpop.permute.xlu0 %19744 }
0x163e   :  { %v19747_v29 = vunpack.i.h.bf16 %v19745_v49  ;;  %v19746_v25 = vunpack.i.l.bf16 %v19745_v49  ;;  %18959 = vmatprep.subr.bf16.mxu1 %v18958_v9  ;;  %18965 = vmatpush3.bf16.msra.mxu0 %v18962_v28 }
0x163f   :  { %18961 = vmatpush3.bf16.msra.mxu1 %v18958_v9  ;;  %v18970_v40 = vpack.c.bf16 %v19752_v23, %v19751_v57 }
0x1640   :  { %13750 = vrot.lane.b32.xlu0 %v24485_v43, %s20500_s26  ;;  %v18966_v45 = vpack.c.bf16 %v19747_v29, %v19746_v25  ;;  %v20312_v15 = vpop.eup %20311  ;;  %v12470_v43 = vmul.f32 %v20310_v8, %v23328_v61 }
0x1641   :  { %18212 = vmatmul.mubr.msk.f32.vlgmr.msra.gmra.mrb[154].mxu0 %vm1309_vm4, %v12462_v1  ;;  %18971 = vmatprep.subr.bf16.mxu0 %v18970_v40  ;;  %v12476_v32 = vmul.f32 %v20312_v15, %v23356_v2 }
0x1642   :  { %19789 = vrot.lane.b32.xlu1 %v24477_v60, %s20485_s14  ;;  %18205 = vmatmul.mubr.msk.f32.vlgmr.msra.gmra.mrb[112].mxu1 %vm1309_vm4, %v12458_v5 }
0x1643   :  { %18967 = vmatprep.subr.bf16.mxu1 %v18966_v45  ;;  %18973 = vmatpush3.bf16.msra.mxu0 %v18970_v40 }
0x1644   :  { %18225 = vmatprep.mubr.msk.f32.mxu0 %vm1309_vm4, %v12468_v50  ;;  %18969 = vmatpush3.bf16.msra.mxu1 %v18966_v45 }
0x1645   :  { %19794 = vrot.lane.b32.xlu0 %v24489_v13, %s20485_s14 }
0x1646   :  { %18226 = vmatmul.mubr.msk.f32.vlgmr.msra.gmra.mrb[156].mxu0 %vm1309_vm4, %v12470_v43  ;;  %13752 = vrot.lane.b32.xlu1 %v24491_v46, %s20500_s26 }
0x1647   :  { %18239 = vmatprep.mubr.msk.f32.mxu0 %vm1309_vm4, %v12476_v32 }
0x1649   :  { %13843 = vrot.lane.b32.xlu0 %v24497_v44, %s20500_s26 }
0x164a   :  { %13841 = vrot.lane.b32.xlu1 %v24493_v37, %s20500_s26 }
0x164d   :  { %13932 = vrot.lane.b32.xlu0 %v24495_v26, %s20500_s26 }
0x164e   :  { %19799 = vrot.lane.b32.xlu1 %v24488_v21, %s20485_s14 }
0x1651   :  { %14023 = vrot.lane.b32.xlu0 %v24498_v41, %s20500_s26 }
0x1652   :  { %13934 = vrot.lane.b32.xlu1 %v24499_v0, %s20500_s26 }
0x1655   :  { %19804 = vrot.lane.b32.xlu0 %v24513_v42, %s20500_s26 }
0x1656   :  { %14025 = vrot.lane.b32.xlu1 %v24500_v20, %s20500_s26 }
0x1695   :  { %v12428_v60 = vpop.xlane.xlu1 %12427 }
0x1696   :  { %20313 = vrcp.f32 %v12428_v60 }
0x1697   :  { %v12425_v13 = vpop.xlane.xlu0 %12424 }
0x1698   :  { %20315 = vrcp.f32 %v12425_v13 }
0x1699   :  { %20317 = vrcp.f32 %v23426_v30 }
0x169b   :  { %v19755_v46 = vpop.permute.xlu0 %19754 }
0x169c   :  { %v19757_v37 = vunpack.i.h.bf16 %v19755_v46  ;;  %v19756_v26 = vunpack.i.l.bf16 %v19755_v46 }
0x169d   :  { %v12440_v21 = vpop.xlane.xlu1 %12439 }
0x169e   :  { %v18974_v44 = vpack.c.bf16 %v19757_v37, %v19756_v26  ;;  %20319 = vrcp.f32 %v12440_v21 }
0x169f   :  { %v19765_v41 = vpop.permute.xlu0 %19764 }
0x16a0   :  { %18975 = vmatprep.subr.bf16.mxu1 %v18974_v44  ;;  %v20314_v0 = vpop.eup %20313  ;;  %v19767_v39 = vunpack.i.h.bf16 %v19765_v41  ;;  %v19766_v19 = vunpack.i.l.bf16 %v19765_v41 }
0x16a1   :  { %v12437_v18 = vpop.xlane.xlu1 %12436  ;;  %v12466_v42 = vmul.f32 %v20314_v0, %v23382_v22 }
0x16a2   :  { %v20316_v61 = vpop.eup %20315  ;;  %20321 = vrcp.f32 %v12437_v18  ;;  %v18982_v6 = vpack.c.bf16 %v19767_v39, %v19766_v19 }
0x16a3   :  { %v13387_v10 = vpop.permute.xlu0 %13386  ;;  %v12464_v20 = vmul.f32 %v20316_v61, %v23384_v4  ;;  %v20318_v12 = vpop.eup %20317 }
0x16a4   :  { %v12478_v55 = vmul.f32 %v20318_v12, %v23354_v58 }
0x16a5   :  { %v19760_v2 = vpop.permute.xlu1 %19759  ;;  %18218 = vmatprep.mubr.msk.f32.mxu1 %vm1309_vm4, %v12464_v20 }
0x16a6   :  { %v19762_v17 = vunpack.i.h.bf16 %v19760_v2  ;;  %v19761_v24 = vunpack.i.l.bf16 %v19760_v2  ;;  %18219 = vmatmul.mubr.msk.f32.vlgmr.msra.gmra.mrb[114].mxu1 %vm1309_vm4, %v12466_v42 }
0x16a7   :  { %18977 = vmatpush3.bf16.msra.mxu1 %v18974_v44  ;;  %v19775_v3 = vpop.permute.xlu0 %19774 }
0x16a8   :  { %v18978_v51 = vpack.c.bf16 %v19762_v17, %v19761_v24  ;;  %18242 = vmatprep.subr.mxu1 %v13176_v34  ;;  %v20320_v4 = vpop.eup %20319  ;;  %v19777_v11 = vunpack.i.h.bf16 %v19775_v3  ;;  %v19776_v38 = vunpack.i.l.bf16 %v19775_v3 }
0x16a9   :  { %v19770_v33 = vpop.permute.xlu1 %19769  ;;  %v12474_v31 = vmul.f32 %v20320_v4, %v23397_v27 }
0x16aa   :  { %18979 = vmatprep.subr.bf16.mxu0 %v18978_v51  ;;  %v19772_v52 = vunpack.i.h.bf16 %v19770_v33  ;;  %v19771_v53 = vunpack.i.l.bf16 %v19770_v33  ;;  %v18994_v36 = vpack.c.bf16 %v19777_v11, %v19776_v38 }
0x16ab   :  { %18981 = vmatpush3.bf16.msra.mxu0 %v18978_v51  ;;  %v13480_v22 = vpop.permute.xlu0 %13479 }
0x16ac   :  { %v20322_v14 = vpop.eup %20321  ;;  %18984 = vmatprep.subr.msk.bf16.mxu0 %vm21019_vm2, %v18982_v6  ;;  %v18988_v59 = vpack.c.bf16 %v19772_v52, %v19771_v53 }
0x16ad   :  { %v13389_v56 = vpop.permute.xlu1 %13388  ;;  %v12472_v30 = vmul.f32 %v20322_v14, %v23402_v54 }
0x16ae   :  { %18240 = vmatmul.mubr.msk.f32.vlgmr.msra.gmra.mrb[158].mxu0 %vm1309_vm4, %v12478_v55 }
0x16af   :  { %18272 = vmatprep.mubr.msk.f32.mxu0 %vm566_vm1, %v13387_v10  ;;  %v13571_v35 = vpop.permute.xlu0 %13570  ;;  %18232 = vmatprep.mubr.msk.f32.mxu1 %vm1309_vm4, %v12472_v30 }
0x16b0   :  { %18233 = vmatmul.mubr.msk.f32.vlgmr.msra.gmra.mrb[116].mxu1 %vm1309_vm4, %v12474_v31 }
0x16b1   :  { %v13478_v47 = vpop.permute.xlu1 %13477  ;;  %18243 = vmatpush3.msra.mxu1 %v13176_v34 }
0x16b3   :  { %v19785_v58 = vpop.permute.xlu0 %19784 }
0x16b4   :  { %v19787_v48 = vunpack.i.h.bf16 %v19785_v58  ;;  %v19786_v28 = vunpack.i.l.bf16 %v19785_v58  ;;  %18987 = vmatpush3.bf16.xpose.msk.msra.mxu0 %vm21019_vm2, %v18982_v6 }
0x16b5   :  { %v13569_v54 = vpop.permute.xlu1 %13568  ;;  %18990 = vmatprep.subr.msk.bf16.mxu0 %vm21019_vm2, %v18988_v59 }
0x16b6   :  { %v19006_v27 = vpack.c.bf16 %v19787_v48, %v19786_v28 }
0x16b7   :  { %v13662_v23 = vpop.permute.xlu0 %13661 }
0x16b8   :  { %19008 = vmatprep.subr.msk.bf16.mxu1 %vm21019_vm2, %v19006_v27 }
0x16b9   :  { %v19780_v9 = vpop.permute.xlu1 %19779 }
0x16ba   :  { %v19782_v49 = vunpack.i.h.bf16 %v19780_v9  ;;  %v19781_v29 = vunpack.i.l.bf16 %v19780_v9 }
0x16bb   :  { %18273 = vmatmul.mubr.msk.f32.vlgmr.msra.gmra.mrb[160].mxu0 %vm566_vm1, %v13389_v56  ;;  %v23502_v1 = vpop.permute.xlu0 %13750 }
0x16bc   :  { %18993 = vmatpush3.bf16.xpose.msk.msra.mxu0 %vm21019_vm2, %v18988_v59  ;;  %18279 = vmatprep.mubr.msk.f32.mxu0 %vm566_vm1, %v13478_v47  ;;  %v19000_v62 = vpack.c.bf16 %v19782_v49, %v19781_v29  ;;  %v24522_v59 = vld [vmem:[#allocation20_spill] sm:$0xff] }
0x16bd   :  { %v13660_v57 = vpop.permute.xlu1 %13659  ;;  %18996 = vmatprep.subr.msk.bf16.mxu0 %vm21019_vm2, %v18994_v36 }
0x16bf   :  { %v19795_v8 = vpop.permute.xlu0 %19794 }
0x16c0   :  { %v19797_v44 = vunpack.i.h.bf16 %v19795_v8  ;;  %v19796_v41 = vunpack.i.l.bf16 %v19795_v8 }
0x16c1   :  { %v19790_v25 = vpop.permute.xlu1 %19789 }
0x16c2   :  { %v19792_v5 = vunpack.i.h.bf16 %v19790_v25  ;;  %v19791_v45 = vunpack.i.l.bf16 %v19790_v25  ;;  %v19018_v42 = vpack.c.bf16 %v19797_v44, %v19796_v41 }
0x16c3   :  { %18280 = vmatmul.mubr.msk.f32.vlgmr.msra.gmra.mrb[162].mxu0 %vm566_vm1, %v13480_v22  ;;  %v13844_v32 = vpop.permute.xlu0 %13843 }
0x16c4   :  { %18999 = vmatpush3.bf16.xpose.msk.msra.mxu0 %vm21019_vm2, %v18994_v36  ;;  %18286 = vmatprep.mubr.msk.f32.mxu0 %vm566_vm1, %v13569_v54  ;;  %v19012_v50 = vpack.c.bf16 %v19792_v5, %v19791_v45 }
0x16c5   :  { %v23508_v40 = vpop.permute.xlu1 %13752  ;;  %19002 = vmatprep.subr.msk.bf16.mxu0 %vm21019_vm2, %v19000_v62 }
0x16c7   :  { %v13933_v37 = vpop.permute.xlu0 %13932 }
0x16c9   :  { %v13842_v15 = vpop.permute.xlu1 %13841 }
0x16cb   :  { %18287 = vmatmul.mubr.msk.f32.vlgmr.msra.gmra.mrb[164].mxu0 %vm566_vm1, %v13571_v35  ;;  %v14024_v26 = vpop.permute.xlu0 %14023  ;;  %v24523_v35 = vld [vmem:[#allocation16_spill] sm:$0xff] }
0x16cc   :  { %19005 = vmatpush3.bf16.xpose.msk.msra.mxu0 %vm21019_vm2, %v19000_v62  ;;  %18293 = vmatprep.mubr.msk.f32.mxu0 %vm566_vm1, %v13660_v57 }
0x16cd   :  { %v19800_v43 = vpop.permute.xlu1 %19799  ;;  %19014 = vmatprep.subr.msk.bf16.mxu0 %vm21019_vm2, %v19012_v50 }
0x16ce   :  { %v19802_v60 = vunpack.i.h.bf16 %v19800_v43  ;;  %v19801_v13 = vunpack.i.l.bf16 %v19800_v43 }
0x16cf   :  { %v19805_v22 = vpop.permute.xlu0 %19804 }
0x16d0   :  { %v19024_v46 = vpack.c.bf16 %v19802_v60, %v19801_v13  ;;  %v19807_v14 = vunpack.i.h.bf16 %v19805_v22  ;;  %v19806_v55 = vunpack.i.l.bf16 %v19805_v22 }
0x16d1   :  { %v13935_v21 = vpop.permute.xlu1 %13934 }
0x16d2   :  { %v19030_v56 = vpack.c.bf16 %v19807_v14, %v19806_v55 }
0x16d3   :  { %18294 = vmatmul.mubr.msk.f32.vlgmr.msra.gmra.mrb[166].mxu0 %vm566_vm1, %v13662_v23 }
0x16d4   :  { %19017 = vmatpush3.bf16.xpose.msk.msra.mxu0 %vm21019_vm2, %v19012_v50  ;;  %18307 = vmatprep.mubr.msk.f32.mxu0 %vm566_vm1, %v13842_v15 }
0x16d5   :  { %19026 = vmatprep.subr.msk.bf16.mxu0 %vm21019_vm2, %v19024_v46  ;;  %v14026_v20 = vpop.permute.xlu1 %14025 }
0x16db   :  { %18308 = vmatmul.mubr.msk.f32.vlgmr.msra.gmra.mrb[168].mxu0 %vm566_vm1, %v13844_v32 }
0x16dc   :  { %19029 = vmatpush3.bf16.xpose.msk.msra.mxu0 %vm21019_vm2, %v19024_v46  ;;  %18321 = vmatprep.mubr.msk.f32.mxu0 %vm566_vm1, %v14024_v26 }
0x16df   :  { %v18199_v0 = vpop.f32.mrb[152].mxu0 }
0x16e0   :  { %v18192_v18 = vpop.f32.mrb[110].mxu1  ;;  %v12644_v61 = vpop.f32.mrb[153].mxu0 }
0x16e1   :  { %v12557_v10 = vpop.f32.mrb[111].mxu1 }
0x16e2   :  { %18244 = vmatprep.mubr.msk.f32.mxu1 %vm566_vm1, %v12557_v10 }
0x16e3   :  { %18245 = vmatmul.mubr.msk.f32.vlgmr.msra.gmra.mrb[52].mxu1 %vm566_vm1, %v18192_v18  ;;  %18322 = vmatmul.mubr.msk.f32.vlgmr.msra.gmra.mrb[170].mxu0 %vm566_vm1, %v14026_v20 }
0x16e4   :  { %19011 = vmatpush3.bf16.xpose.msk.msra.mxu1 %vm21019_vm2, %v19006_v27  ;;  %18247 = vmatprep.mubr.msk.f32.mxu1 %vm566_vm1, %v12644_v61 }
0x16e5   :  { %19020 = vmatprep.subr.msk.bf16.mxu1 %vm21019_vm2, %v19018_v42 }
0x16e7   :  { %18248 = vmatmul.mubr.msk.f32.gmra.mrb[54].mxu1 %vm566_vm1, %v18199_v0 }
0x1714   :  { %v18213_v2 = vpop.f32.mrb[154].mxu0 }
0x1715   :  { %v18206_v34 = vpop.f32.mrb[112].mxu1  ;;  %v12818_v39 = vpop.f32.mrb[155].mxu0 }
0x1716   :  { %v12731_v19 = vpop.f32.mrb[113].mxu1 }
0x1717   :  { %18250 = vmatprep.mubr.msk.f32.mxu1 %vm566_vm1, %v12731_v19 }
0x1718   :  { %18251 = vmatmul.mubr.msk.f32.gmra.mrb[56].mxu1 %vm566_vm1, %v18206_v34 }
0x1719   :  { %v18227_v17 = vpop.f32.mrb[156].mxu0  ;;  %18253 = vmatprep.mubr.msk.f32.mxu1 %vm566_vm1, %v12818_v39 }
0x171a   :  { %v12992_v24 = vpop.f32.mrb[157].mxu0 }
0x171c   :  { %18254 = vmatmul.mubr.msk.f32.gmra.mrb[42].mxu1 %vm566_vm1, %v18213_v2 }
0x1779   :  { %v18220_v3 = vpop.f32.mrb[114].mxu1 }
0x177a   :  { %v12905_v51 = vpop.f32.mrb[115].mxu1 }
0x177b   :  { %18256 = vmatprep.mubr.msk.f32.mxu1 %vm566_vm1, %v12905_v51 }
0x177c   :  { %18257 = vmatmul.mubr.msk.f32.gmra.mrb[44].mxu1 %vm566_vm1, %v18220_v3 }
0x177d   :  { %18259 = vmatprep.mubr.msk.f32.mxu1 %vm566_vm1, %v12992_v24 }
0x1780   :  { %18260 = vmatmul.mubr.msk.f32.gmra.mrb[46].mxu1 %vm566_vm1, %v18227_v17 }
0x1781   :  { %v18241_v12 = vpop.f32.mrb[158].mxu0 }
0x1782   :  { %v13166_v33 = vpop.f32.mrb[159].mxu0 }
0x1783   :  { %v18234_v6 = vpop.f32.mrb[116].mxu1 }
0x1784   :  { %v13079_v4 = vpop.f32.mrb[117].mxu1 }
0x1785   :  { %18262 = vmatprep.mubr.msk.f32.mxu1 %vm566_vm1, %v13079_v4 }
0x1786   :  { %18263 = vmatmul.mubr.msk.f32.gmra.mrb[48].mxu1 %vm566_vm1, %v18234_v6 }
0x1787   :  { %18265 = vmatprep.mubr.msk.f32.mxu1 %vm566_vm1, %v13166_v33 }
0x178a   :  { %18266 = vmatmul.mubr.msk.f32.gmra.mrb[50].mxu1 %vm566_vm1, %v18241_v12 }
0x178b   :  { %18300 = vmatprep.mubr.msk.f32.mxu1 %vm566_vm1, %v23502_v1 }
0x178e   :  { %v18274_v30 = vpop.f32.mrb[160].mxu0  ;;  %18301 = vmatmul.mubr.msk.f32.vlgmr.msra.gmra.mrb[118].mxu1 %vm566_vm1, %v23508_v40 }
0x178f   :  { %v14115_v31 = vmul.f32 0.125, %v18274_v30  ;;  %19023 = vmatpush3.bf16.xpose.msk.msra.mxu1 %vm21019_vm2, %v19018_v42  ;;  %v13468_v52 = vpop.f32.mrb[161].mxu0  ;;  %18314 = vmatprep.mubr.msk.f32.mxu1 %vm566_vm1, %v13933_v37 }
0x1790   :  { %v14114_v53 = vmul.f32 0.125, %v13468_v52  ;;  %19031 = vmatprep.subr.bf16.mxu1 %v19030_v56 }
0x1791   :  { %v14131_v47 = vsel %vm21091_vm3, %v14115_v31, -inf }
0x1792   :  { %v14130_v58 = vsel %vm21096_vm5, %v14114_v53, -inf  ;;  %v14149_v48 = vsel %vm1309_vm4, %v14131_v47, -inf }
0x1793   :  { %14150 = vmax.xlane.f32.xlu1 %v14149_v48  ;;  %v14146_v28 = vsel %vm1309_vm4, %v14130_v58, -inf }
0x1794   :  { %14147 = vmax.xlane.f32.xlu0 %v14146_v28 }
0x1796   :  { %18315 = vmatmul.mubr.msk.f32.vlgmr.msra.gmra.mrb[120].mxu1 %vm566_vm1, %v13935_v21  ;;  %v18281_v16 = vpop.f32.mrb[162].mxu0 }
0x1797   :  { %v14117_v54 = vmul.f32 0.125, %v18281_v16  ;;  %19033 = vmatpush3.bf16.msra.mxu1 %v19030_v56  ;;  %v13559_v27 = vpop.f32.mrb[163].mxu0 }
0x1798   :  { %v14116_v11 = vmul.f32 0.125, %v13559_v27 }
0x1799   :  { %v14133_v38 = vsel %vm21091_vm3, %v14117_v54, -inf }
0x179a   :  { %v14155_v9 = vsel %vm1309_vm4, %v14133_v38, -inf  ;;  %v14132_v36 = vsel %vm21096_vm5, %v14116_v11, -inf }
0x179b   :  { %14156 = vmax.xlane.f32.xlu0 %v14155_v9  ;;  %v14152_v57 = vsel %vm1309_vm4, %v14132_v36, -inf }
0x179e   :  { %v18288_v23 = vpop.f32.mrb[164].mxu0 }
0x179f   :  { %v14119_v49 = vmul.f32 0.125, %v18288_v23  ;;  %14153 = vmax.xlane.f32.xlu0 %v14152_v57  ;;  %v13650_v29 = vpop.f32.mrb[165].mxu0 }
0x17a0   :  { %v14118_v25 = vmul.f32 0.125, %v13650_v29 }
0x17a1   :  { %v14135_v62 = vsel %vm21091_vm3, %v14119_v49, -inf }
0x17a2   :  { %v14134_v1 = vsel %vm21096_vm5, %v14118_v25, -inf  ;;  %v14161_v40 = vsel %vm1309_vm4, %v14135_v62, -inf }
0x17a3   :  { %14162 = vmax.xlane.f32.xlu1 %v14161_v40  ;;  %v14158_v5 = vsel %vm1309_vm4, %v14134_v1, -inf }
0x17a4   :  { %14159 = vmax.xlane.f32.xlu0 %v14158_v5 }
0x17a6   :  { %v18295_v45 = vpop.f32.mrb[166].mxu0 }
0x17a7   :  { %v14121_v8 = vmul.f32 0.125, %v18295_v45  ;;  %v13741_v15 = vpop.f32.mrb[167].mxu0 }
0x17a8   :  { %v14120_v50 = vmul.f32 0.125, %v13741_v15 }
0x17a9   :  { %v23577_v43 = vsel %vm21091_vm3, %v14121_v8, -inf }
0x17aa   :  { %v23581_v32 = vsel %vm21096_vm5, %v14120_v50, -inf  ;;  %v14167_v60 = vsel %vm1309_vm4, %v23577_v43, -inf }
0x17ab   :  { %14168 = vmax.xlane.f32.xlu1 %v14167_v60  ;;  %v14164_v13 = vsel %vm1309_vm4, %v23581_v32, -inf }
0x17ac   :  { %14165 = vmax.xlane.f32.xlu0 %v14164_v13 }
0x17ae   :  { %v18309_v46 = vpop.f32.mrb[168].mxu0 }
0x17af   :  { %v14125_v37 = vmul.f32 0.125, %v18309_v46  ;;  %v13923_v26 = vpop.f32.mrb[169].mxu0 }
0x17b0   :  { %v14124_v21 = vmul.f32 0.125, %v13923_v26 }
0x17b1   :  { %v23589_v44 = vsel %vm21091_vm3, %v14125_v37, -inf }
0x17b2   :  { %v23593_v41 = vsel %vm21096_vm5, %v14124_v21, -inf  ;;  %v14179_v0 = vsel %vm1309_vm4, %v23589_v44, -inf }
0x17b3   :  { %14180 = vmax.xlane.f32.xlu1 %v14179_v0  ;;  %v14176_v18 = vsel %vm1309_vm4, %v23593_v41, -inf }
0x17b4   :  { %14177 = vmax.xlane.f32.xlu0 %v14176_v18 }
0x17b6   :  { %v18323_v61 = vpop.f32.mrb[170].mxu0 }
0x17b7   :  { %v14129_v10 = vmul.f32 0.125, %v18323_v61  ;;  %v14105_v20 = vpop.f32.mrb[171].mxu0 }
0x17b8   :  { %v14128_v42 = vmul.f32 0.125, %v14105_v20 }
0x17b9   :  { %v23601_v2 = vsel %vm21091_vm3, %v14129_v10, -inf }
0x17ba   :  { %v23605_v34 = vsel %vm21096_vm5, %v14128_v42, -inf  ;;  %v14191_v39 = vsel %vm1309_vm4, %v23601_v2, -inf  ;;  %v24521_v42 = vld [vmem:[#allocation10_spill] sm:$0xff] }
0x17bb   :  { %14192 = vmax.xlane.f32.xlu1 %v14191_v39  ;;  %v14188_v19 = vsel %vm1309_vm4, %v23605_v34, -inf }
0x17bc   :  { %14189 = vmax.xlane.f32.xlu0 %v14188_v19 }
0x1820   :  { %v14151_v17 = vpop.xlane.xlu1 %14150 }
0x1821   :  { %v14195_v24 = vsub.f32 %v14131_v47, %v14151_v17  ;;  %v14148_v3 = vpop.xlane.xlu0 %14147 }
0x1822   :  { %v14194_v51 = vsub.f32 %v14130_v58, %v14148_v3 }
0x1823   :  { %v14212_v12 = vmul.f32 1.442695, %v14195_v24 }
0x1824   :  { %v14210_v33 = vmul.f32 1.442695, %v14194_v51 }
0x1825   :  { %20323 = vpow2.f32 %v14212_v12 }
0x1826   :  { %20325 = vpow2.f32 %v14210_v33 }
0x1828   :  { %v14157_v6 = vpop.xlane.xlu0 %14156 }
0x1829   :  { %v14197_v4 = vsub.f32 %v14133_v38, %v14157_v6 }
0x182b   :  { %v14216_v22 = vmul.f32 1.442695, %v14197_v4 }
0x182c   :  { %v14154_v14 = vpop.xlane.xlu0 %14153 }
0x182d   :  { %20327 = vpow2.f32 %v14216_v22  ;;  %v14196_v55 = vsub.f32 %v14132_v36, %v14154_v14 }
0x182f   :  { %v23611_v56 = vpop.eup %20323  ;;  %v14214_v30 = vmul.f32 1.442695, %v14196_v55 }
0x1830   :  { %v23613_v31 = vpop.eup %20325  ;;  %v14163_v52 = vpop.xlane.xlu1 %14162  ;;  %v14245_v53 = vsel %vm1309_vm4, %v23611_v56, 0.0 }
0x1831   :  { %20329 = vpow2.f32 %v14214_v30  ;;  %v14199_v47 = vsub.f32 %v14135_v62, %v14163_v52  ;;  %v14160_v58 = vpop.xlane.xlu0 %14159  ;;  %14246 = vadd.xlane.f32.xlu1 %v14245_v53  ;;  %v14242_v48 = vsel %vm1309_vm4, %v23613_v31, 0.0 }
0x1832   :  { %v14198_v28 = vsub.f32 %v14134_v1, %v14160_v58  ;;  %14243 = vadd.xlane.f32.xlu0 %v14242_v48 }
0x1833   :  { %v14220_v16 = vmul.f32 1.442695, %v14199_v47 }
0x1834   :  { %v14218_v54 = vmul.f32 1.442695, %v14198_v28 }
0x1835   :  { %20331 = vpow2.f32 %v14220_v16 }
0x1836   :  { %20333 = vpow2.f32 %v14218_v54 }
0x1837   :  { %v23619_v27 = vpop.eup %20327 }
0x1838   :  { %v14169_v11 = vpop.xlane.xlu1 %14168  ;;  %v14251_v38 = vsel %vm1309_vm4, %v23619_v27, 0.0 }
0x1839   :  { %v14201_v9 = vsub.f32 %v23577_v43, %v14169_v11  ;;  %v14166_v36 = vpop.xlane.xlu0 %14165  ;;  %14252 = vadd.xlane.f32.xlu1 %v14251_v38  ;;  %v24520_v43 = vld [vmem:[#allocation13_spill] sm:$0xff] }
0x183a   :  { %v14200_v23 = vsub.f32 %v23581_v32, %v14166_v36 }
0x183b   :  { %v23625_v57 = vpop.eup %20329  ;;  %v14224_v49 = vmul.f32 1.442695, %v14201_v9 }
0x183c   :  { %v14222_v29 = vmul.f32 1.442695, %v14200_v23  ;;  %v14248_v25 = vsel %vm1309_vm4, %v23625_v57, 0.0 }
0x183d   :  { %20335 = vpow2.f32 %v14224_v49  ;;  %14249 = vadd.xlane.f32.xlu0 %v14248_v25 }
0x183e   :  { %20337 = vpow2.f32 %v14222_v29 }
0x183f   :  { %v23629_v62 = vpop.eup %20331 }
0x1840   :  { %v23631_v1 = vpop.eup %20333  ;;  %v14257_v40 = vsel %vm1309_vm4, %v23629_v62, 0.0  ;;  %v14181_v24 = vpop.xlane.xlu1 %14180 }
0x1841   :  { %14258 = vadd.xlane.f32.xlu1 %v14257_v40  ;;  %v14254_v5 = vsel %vm1309_vm4, %v23631_v1, 0.0  ;;  %v14178_v19 = vpop.xlane.xlu0 %14177  ;;  %v14205_v3 = vsub.f32 %v23589_v44, %v14181_v24 }
0x1842   :  { %14255 = vadd.xlane.f32.xlu0 %v14254_v5  ;;  %v14204_v17 = vsub.f32 %v23593_v41, %v14178_v19 }
0x1843   :  { %v14232_v12 = vmul.f32 1.442695, %v14205_v3 }
0x1844   :  { %v14230_v51 = vmul.f32 1.442695, %v14204_v17 }
0x1846   :  { %20339 = vpow2.f32 %v14230_v51 }
0x1847   :  { %v23637_v45 = vpop.eup %20335  ;;  %20341 = vpow2.f32 %v14232_v12 }
0x1848   :  { %v14263_v8 = vsel %vm1309_vm4, %v23637_v45, 0.0  ;;  %v23641_v15 = vpop.eup %20337  ;;  %v14193_v55 = vpop.xlane.xlu1 %14192 }
0x1849   :  { %14264 = vadd.xlane.f32.xlu1 %v14263_v8  ;;  %v14260_v50 = vsel %vm1309_vm4, %v23641_v15, 0.0  ;;  %v14190_v30 = vpop.xlane.xlu0 %14189  ;;  %v14209_v58 = vsub.f32 %v23601_v2, %v14193_v55 }
0x184a   :  { %v14208_v47 = vsub.f32 %v23605_v34, %v14190_v30 }
0x184b   :  { %v14240_v54 = vmul.f32 1.442695, %v14209_v58 }
0x184c   :  { %v14238_v48 = vmul.f32 1.442695, %v14208_v47 }
0x184d   :  { %14261 = vadd.xlane.f32.xlu1 %v14260_v50 }
0x1850   :  { %v23677_v22 = vpop.eup %20339 }
0x1851   :  { %v14272_v44 = vsel %vm1309_vm4, %v23677_v22, 0.0  ;;  %v23681_v41 = vpop.eup %20341 }
0x1852   :  { %v14275_v14 = vsel %vm1309_vm4, %v23681_v41, 0.0 }
0x1858   :  { %19814 = vrot.lane.b32.xlu0 %v24520_v43, %s20500_s26 }
0x1861   :  { %v18302_v32 = vpop.f32.mrb[118].mxu1 }
0x1862   :  { %v14123_v60 = vmul.f32 0.125, %v18302_v32  ;;  %v13832_v13 = vpop.f32.mrb[119].mxu1 }
0x1863   :  { %v14122_v0 = vmul.f32 0.125, %v13832_v13 }
0x1864   :  { %v23649_v46 = vsel %vm21091_vm3, %v14123_v60, -inf }
0x1865   :  { %v14173_v37 = vsel %vm1309_vm4, %v23649_v46, -inf  ;;  %v23655_v18 = vsel %vm21096_vm5, %v14122_v0, -inf }
0x1866   :  { %14174 = vmax.xlane.f32.xlu1 %v14173_v37  ;;  %v14170_v10 = vsel %vm1309_vm4, %v23655_v18, -inf }
0x1869   :  { %v18316_v26 = vpop.f32.mrb[120].mxu1 }
0x186a   :  { %v14014_v21 = vpop.f32.mrb[121].mxu1  ;;  %v14127_v33 = vmul.f32 0.125, %v18316_v26 }
0x186b   :  { %v14126_v61 = vmul.f32 0.125, %v14014_v21 }
0x186c   :  { %v23673_v6 = vsel %vm21091_vm3, %v14127_v33, -inf }
0x186d   :  { %v23661_v20 = vsel %vm21096_vm5, %v14126_v61, -inf  ;;  %v14185_v4 = vsel %vm1309_vm4, %v23673_v6, -inf }
0x186e   :  { %v14182_v39 = vsel %vm1309_vm4, %v23661_v20, -inf }
0x1877   :  { %19809 = vrot.lane.b32.xlu1 %v24521_v42, %s20500_s26  ;;  %14171 = vmax.xlane.f32.xlu0 %v14170_v10 }
0x187b   :  { %14183 = vmax.xlane.f32.xlu0 %v14182_v39 }
0x1891   :  { %19824 = vrot.lane.b32.xlu0 %v24522_v59, %s20500_s26 }
0x189b   :  { %14186 = vmax.xlane.f32.xlu1 %v14185_v4 }
0x189f   :  { %14273 = vadd.xlane.f32.xlu1 %v14272_v44 }
0x18a3   :  { %14276 = vadd.xlane.f32.xlu1 %v14275_v14 }
0x18b4   :  { %19819 = vrot.lane.b32.xlu1 %v24523_v35, %s20500_s26 }
0x18be   :  { %v14247_v52 = vpop.xlane.xlu1 %14246 }
0x18bf   :  { %20343 = vrcp.f32 %v14247_v52  ;;  %v14244_v53 = vpop.xlane.xlu0 %14243  ;;  %v24524_v52 = vld [vmem:[#allocation24_spill] sm:$0xff] }
0x18c0   :  { %20345 = vrcp.f32 %v14244_v53 }
0x18c1   :  { %20347 = vpow2.f32 %v14238_v48 }
0x18c6   :  { %v14253_v11 = vpop.xlane.xlu1 %14252 }
0x18c9   :  { %v20344_v28 = vpop.eup %20343 }
0x18ca   :  { %v20346_v16 = vpop.eup %20345  ;;  %v14250_v38 = vpop.xlane.xlu0 %14249  ;;  %v14293_v36 = vmul.f32 %v20344_v28, %v23611_v56 }
0x18cb   :  { %20349 = vrcp.f32 %v14250_v38  ;;  %v14291_v9 = vmul.f32 %v20346_v16, %v23613_v31  ;;  %v23693_v49 = vpop.eup %20347 }
0x18cc   :  { %20351 = vpow2.f32 %v14240_v54  ;;  %v14284_v56 = vsel %vm1309_vm4, %v23693_v49, 0.0 }
0x18cd   :  { %18328 = vmatprep.mubr.msk.f32.mxu1 %vm1309_vm4, %v14291_v9 }
0x18ce   :  { %v14259_v23 = vpop.xlane.xlu1 %14258  ;;  %18329 = vmatmul.mubr.msk.f32.vlgmr.msra.gmra.mrb[122].mxu1 %vm1309_vm4, %v14293_v36 }
0x18cf   :  { %20353 = vrcp.f32 %v14259_v23  ;;  %v14256_v2 = vpop.xlane.xlu0 %14255 }
0x18d0   :  { %20355 = vrcp.f32 %v14256_v2 }
0x18d1   :  { %20357 = vrcp.f32 %v14253_v11 }
0x18d3   :  { %v19815_v34 = vpop.permute.xlu0 %19814 }
0x18d4   :  { %v19817_v29 = vunpack.i.h.bf16 %v19815_v34  ;;  %v19816_v25 = vunpack.i.l.bf16 %v19815_v34 }
0x18d5   :  { %v20350_v40 = vpop.eup %20349 }
0x18d6   :  { %v19038_v5 = vpack.c.bf16 %v19817_v29, %v19816_v25  ;;  %v14295_v31 = vmul.f32 %v20350_v40, %v23625_v57  ;;  %v23696_v8 = vpop.eup %20351  ;;  %v14265_v57 = vpop.xlane.xlu1 %14264 }
0x18d7   :  { %v14287_v13 = vsel %vm1309_vm4, %v23696_v8, 0.0 }
0x18d8   :  { %18335 = vmatprep.mubr.msk.f32.mxu1 %vm1309_vm4, %v14295_v31  ;;  %19039 = vmatprep.subr.bf16.mxu0 %v19038_v5 }
0x18d9   :  { %v20354_v50 = vpop.eup %20353  ;;  %14285 = vadd.xlane.f32.xlu1 %v14284_v56  ;;  %19041 = vmatpush3.bf16.msra.mxu0 %v19038_v5 }
0x18da   :  { %v20356_v43 = vpop.eup %20355  ;;  %v14301_v60 = vmul.f32 %v20354_v50, %v23629_v62  ;;  %v14262_v37 = vpop.xlane.xlu1 %14261 }
0x18db   :  { %v14299_v32 = vmul.f32 %v20356_v43, %v23631_v1  ;;  %20359 = vrcp.f32 %v14262_v37  ;;  %v20358_v42 = vpop.eup %20357 }
0x18dc   :  { %v14297_v19 = vmul.f32 %v20358_v42, %v23619_v27 }
0x18dd   :  { %14288 = vadd.xlane.f32.xlu1 %v14287_v13  ;;  %18342 = vmatprep.mubr.msk.f32.mxu0 %vm1309_vm4, %v14299_v32 }
0x18de   :  { %18343 = vmatmul.mubr.msk.f32.vlgmr.msra.gmra.mrb[172].mxu0 %vm1309_vm4, %v14301_v60 }
0x18e5   :  { %v20360_v39 = vpop.eup %20359 }
0x18e6   :  { %v14303_v17 = vmul.f32 %v20360_v39, %v23641_v15 }
0x18f3   :  { %v14175_v26 = vpop.xlane.xlu1 %14174 }
0x18f4   :  { %v14203_v21 = vsub.f32 %v23649_v46, %v14175_v26 }
0x18f6   :  { %v14228_v0 = vmul.f32 1.442695, %v14203_v21 }
0x18f7   :  { %v19810_v61 = vpop.permute.xlu1 %19809 }
0x18f8   :  { %20361 = vpow2.f32 %v14228_v0  ;;  %v19812_v1 = vunpack.i.h.bf16 %v19810_v61  ;;  %v19811_v62 = vunpack.i.l.bf16 %v19810_v61 }
0x18fa   :  { %v19034_v10 = vpack.c.bf16 %v19812_v1, %v19811_v62 }
0x18fc   :  { %19035 = vmatprep.subr.bf16.mxu1 %v19034_v10 }
0x18fd   :  { %19037 = vmatpush3.bf16.msra.mxu1 %v19034_v10 }
0x1900   :  { %18336 = vmatmul.mubr.msk.f32.vlgmr.msra.gmra.mrb[124].mxu1 %vm1309_vm4, %v14297_v19 }
0x1901   :  { %18349 = vmatprep.mubr.msk.f32.mxu1 %vm1309_vm4, %v14303_v17 }
0x1902   :  { %v23712_v24 = vpop.eup %20361 }
0x1903   :  { %v14269_v46 = vsel %vm1309_vm4, %v23712_v24, 0.0 }
0x1904   :  { %v14172_v3 = vpop.xlane.xlu0 %14171  ;;  %14270 = vadd.xlane.f32.xlu1 %v14269_v46 }
0x1905   :  { %v14202_v51 = vsub.f32 %v23655_v18, %v14172_v3  ;;  %v15019_v3 = vld [vmem:[#allocation2 + $0x38] sm:$0xff] }
0x1907   :  { %v14226_v12 = vmul.f32 1.442695, %v14202_v51 }
0x1908   :  { %v14184_v59 = vpop.xlane.xlu0 %14183 }
0x1909   :  { %20363 = vpow2.f32 %v14226_v12  ;;  %v14206_v47 = vsub.f32 %v23661_v20, %v14184_v59 }
0x190b   :  { %v14234_v38 = vmul.f32 1.442695, %v14206_v47 }
0x190c   :  { %v19825_v33 = vpop.permute.xlu0 %19824 }
0x190d   :  { %v19827_v27 = vunpack.i.h.bf16 %v19825_v33  ;;  %v19826_v4 = vunpack.i.l.bf16 %v19825_v33 }
0x190f   :  { %v19046_v15 = vpack.c.bf16 %v19827_v27, %v19826_v4  ;;  %v24525_v4 = vmov 0.0  }
0x1911   :  { %19047 = vmatprep.subr.bf16.mxu0 %v19046_v15 }
0x1912   :  { %19049 = vmatpush3.bf16.msra.mxu0 %v19046_v15 }
0x1913   :  { %v20364_v44 = vpop.eup %20363 }
0x1914   :  { %v14266_v14 = vsel %vm1309_vm4, %v20364_v44, 0.0 }
0x1915   :  { %14267 = vadd.xlane.f32.xlu0 %v14266_v14 }
0x1928   :  { %v14187_v35 = vpop.xlane.xlu1 %14186 }
0x1929   :  { %v14207_v55 = vsub.f32 %v23673_v6, %v14187_v35 }
0x192b   :  { %v14236_v30 = vmul.f32 1.442695, %v14207_v55  ;;  %19829 = vrot.lane.b32.xlu0 %v24524_v52, %s20500_s26 }
0x192c   :  { %v14274_v18 = vpop.xlane.xlu1 %14273 }
0x192d   :  { %20365 = vpow2.f32 %v14236_v30 }
0x192e   :  { %20367 = vrcp.f32 %v14265_v57 }
0x192f   :  { %20369 = vrcp.f32 %v14274_v18 }
0x1930   :  { %v14277_v53 = vpop.xlane.xlu1 %14276  ;;  %20371 = vpow2.f32 %v14234_v38 }
0x1931   :  { %20373 = vrcp.f32 %v14277_v53 }
0x1934   :  { %v19820_v58 = vpop.permute.xlu1 %19819 }
0x1935   :  { %v19822_v48 = vunpack.i.h.bf16 %v19820_v58  ;;  %v19821_v28 = vunpack.i.l.bf16 %v19820_v58  ;;  %v23763_v58 = vld [vmem:[%s24344_s3] ss:$0 sm:$0xff] }
0x1937   :  { %v23722_v16 = vpop.eup %20365  ;;  %v19042_v54 = vpack.c.bf16 %v19822_v48, %v19821_v28  ;;  %v24526_v48 = vld [vmem:[#allocation32_spill] sm:$0xff] }
0x1938   :  { %v20368_v11 = vpop.eup %20367  ;;  %v14281_v6 = vsel %vm1309_vm4, %v23722_v16, 0.0 }
0x1939   :  { %v20370_v9 = vpop.eup %20369  ;;  %14282 = vadd.xlane.f32.xlu1 %v14281_v6  ;;  %19043 = vmatprep.subr.bf16.mxu1 %v19042_v54  ;;  %v14305_v36 = vmul.f32 %v20368_v11, %v23637_v45 }
0x193a   :  { %19045 = vmatpush3.bf16.msra.mxu1 %v19042_v54  ;;  %v14311_v20 = vmul.f32 %v20370_v9, %v23677_v22  ;;  %v20372_v23 = vpop.eup %20371  ;;  %v24527_v54 = vld [vmem:[#allocation28_spill] sm:$0xff] }
0x193b   :  { %v14278_v2 = vsel %vm1309_vm4, %v20372_v23, 0.0  ;;  %v20374_v43 = vpop.eup %20373 }
0x193c   :  { %v14313_v60 = vmul.f32 %v20374_v43, %v23681_v41  ;;  %v24530_v43 = vld [vmem:[#allocation48_spill] sm:$0xff] }
0x193d   :  { %18350 = vmatmul.mubr.msk.f32.vlgmr.msra.gmra.mrb[126].mxu1 %vm1309_vm4, %v14305_v36  ;;  %v20419_v36 = vld [vmem:[%s24341_s0 + $0x8] sm:$0xff] }
0x193e   :  { %18363 = vmatprep.mubr.msk.f32.mxu1 %vm1309_vm4, %v14311_v20 }
0x194a   :  { %19834 = vrot.lane.b32.xlu1 %v24462_v63, %s20500_s26  ;;  %14279 = vadd.xlane.f32.xlu0 %v14278_v2 }
0x1960   :  { %19839 = vrot.lane.b32.xlu0 %v24460_v7, %s20500_s26 }
0x1966   :  { %v14286_v34 = vpop.xlane.xlu1 %14285 }
0x1967   :  { %20375 = vrcp.f32 %v14286_v34 }
0x196a   :  { %v14289_v29 = vpop.xlane.xlu1 %14288 }
0x1971   :  { %v20376_v63 = vpop.eup %20375 }
0x1972   :  { %v14319_v57 = vmul.f32 %v20376_v63, %v23693_v49 }
0x1991   :  { %v14271_v45 = vpop.xlane.xlu1 %14270 }
0x1992   :  { %20377 = vrcp.f32 %v14271_v45 }
0x199c   :  { %v20378_v32 = vpop.eup %20377 }
0x199d   :  { %v14309_v37 = vmul.f32 %v20378_v32, %v23712_v24 }
0x19a1   :  { %v18330_v22 = vpop.f32.mrb[122].mxu1 }
0x19a2   :  { %v14400_v25 = vpop.f32.mrb[123].mxu1  ;;  %v14268_v40 = vpop.xlane.xlu0 %14267 }
0x19a3   :  { %20379 = vrcp.f32 %v14268_v40 }
0x19a4   :  { %20381 = vrcp.f32 %v14289_v29  ;;  %v20420_v29 = vld [vmem:[%s24341_s0] sm:$0xff] }
0x19a6   :  { %v19830_v5 = vpop.permute.xlu0 %19829 }
0x19a7   :  { %v19832_v31 = vunpack.i.h.bf16 %v19830_v5  ;;  %v19831_v56 = vunpack.i.l.bf16 %v19830_v5 }
0x19a9   :  { %v19050_v50 = vpack.c.bf16 %v19832_v31, %v19831_v56 }
0x19ab   :  { %19051 = vmatprep.subr.bf16.mxu1 %v19050_v50 }
0x19ac   :  { %19053 = vmatpush3.bf16.msra.mxu1 %v19050_v50 }
0x19ad   :  { %v20380_v7 = vpop.eup %20379 }
0x19ae   :  { %v14307_v13 = vmul.f32 %v20380_v7, %v20364_v44  ;;  %v20382_v46 = vpop.eup %20381  ;;  %v20421_v7 = vld [vmem:[%s24341_s0 + $0x10] sm:$0xff] }
0x19af   :  { %18364 = vmatmul.mubr.msk.f32.vlgmr.msra.gmra.mrb[128].mxu1 %vm1309_vm4, %v14313_v60  ;;  %v14321_v59 = vmul.f32 %v20382_v46, %v23696_v8 }
0x19b0   :  { %18356 = vmatprep.mubr.msk.f32.mxu0 %vm1309_vm4, %v14307_v13  ;;  %18377 = vmatprep.mubr.msk.f32.mxu1 %vm1309_vm4, %v14319_v57  ;;  %v24531_v13 = vld [vmem:[#allocation49_spill] sm:$0xff] }
0x19b1   :  { %v18344_v26 = vpop.f32.mrb[172].mxu0  ;;  %18357 = vmatmul.mubr.msk.f32.vlgmr.msra.gmra.mrb[174].mxu0 %vm1309_vm4, %v14309_v37  ;;  %v20422_v37 = vld [vmem:[%s24341_s0 + $0x18] sm:$0xff] }
0x19b2   :  { %v14574_v21 = vpop.f32.mrb[173].mxu0 }
0x19c6   :  { %v14283_v0 = vpop.xlane.xlu1 %14282 }
0x19c7   :  { %20383 = vrcp.f32 %v14283_v0 }
0x19ca   :  { %v19835_v61 = vpop.permute.xlu1 %19834 }
0x19cb   :  { %v19837_v1 = vunpack.i.h.bf16 %v19835_v61  ;;  %v19836_v62 = vunpack.i.l.bf16 %v19835_v61 }
0x19cd   :  { %v19054_v41 = vpack.c.bf16 %v19837_v1, %v19836_v62  ;;  %v20423_v1 = vld [vmem:[%s24341_s0 + $0x20] sm:$0xff] }
0x19cf   :  { %19055 = vmatprep.subr.bf16.mxu0 %v19054_v41 }
0x19d0   :  { %19057 = vmatpush3.bf16.msra.mxu0 %v19054_v41 }
0x19d1   :  { %v20384_v51 = vpop.eup %20383 }
0x19d2   :  { %v14317_v27 = vmul.f32 %v20384_v51, %v23722_v16 }
0x19d3   :  { %v18337_v49 = vpop.f32.mrb[124].mxu1 }
0x19d4   :  { %v14487_v10 = vpop.f32.mrb[125].mxu1 }
0x19d7   :  { %v14280_v42 = vpop.xlane.xlu0 %14279 }
0x19d8   :  { %20385 = vrcp.f32 %v14280_v42 }
0x19db   :  { %v19840_v39 = vpop.permute.xlu0 %19839 }
0x19dc   :  { %v19842_v19 = vunpack.i.h.bf16 %v19840_v39  ;;  %v19841_v17 = vunpack.i.l.bf16 %v19840_v39 }
0x19de   :  { %v19058_v24 = vpack.c.bf16 %v19842_v19, %v19841_v17 }
0x19e0   :  { %19059 = vmatprep.subr.bf16.mxu1 %v19058_v24 }
0x19e1   :  { %19061 = vmatpush3.bf16.msra.mxu1 %v19058_v24 }
0x19e2   :  { %v20386_v12 = vpop.eup %20385  ;;  %18380 = vmatprep.subr.mxu1 %v15019_v3 }
0x19e3   :  { %v14315_v33 = vmul.f32 %v20386_v12, %v20372_v23  ;;  %v24528_v23 = vld [vmem:[#allocation46_spill] sm:$0xff] }
0x19e4   :  { %18378 = vmatmul.mubr.msk.f32.vlgmr.msra.gmra.mrb[130].mxu1 %vm1309_vm4, %v14321_v59  ;;  %v20426_v12 = vld [vmem:[%s24341_s0 + $0x30] sm:$0xff] }
0x19e5   :  { %18370 = vmatprep.mubr.msk.f32.mxu0 %vm1309_vm4, %v14315_v33  ;;  %18382 = vmatprep.mubr.msk.f32.mxu1 %vm566_vm1, %v14400_v25 }
0x19e6   :  { %18371 = vmatmul.mubr.msk.f32.vlgmr.msra.gmra.mrb[176].mxu0 %vm1309_vm4, %v14317_v27  ;;  %18381 = vmatpush3.msra.mxu1 %v15019_v3  ;;  %v20425_v3 = vld [vmem:[%s24341_s0 + $0x38] sm:$0xff] }
0x19e7   :  { %15662 = vmatprep.mubr.f32.mxu0 %v24525_v4 }
0x19e8   :  { %18383 = vmatmul.mubr.msk.f32.vlgmr.msra.gmra.mrb[52].mxu1 %vm566_vm1, %v18330_v22  ;;  %v24529_v22 = vld [vmem:[#allocation47_spill] sm:$0xff] }
0x19e9   :  { %18385 = vmatprep.mubr.msk.f32.mxu1 %vm566_vm1, %v14487_v10 }
0x19ec   :  { %18386 = vmatmul.mubr.msk.f32.gmra.mrb[54].mxu1 %vm566_vm1, %v18337_v49  ;;  %v20424_v49 = vld [vmem:[%s24341_s0 + $0x28] sm:$0xff] }
0x19ed   :  { %18388 = vmatprep.mubr.msk.f32.mxu1 %vm566_vm1, %v14574_v21 }
0x19f0   :  { %18389 = vmatmul.mubr.msk.f32.gmra.mrb[56].mxu1 %vm566_vm1, %v18344_v26 }
0x1a10   :  { %v18351_v8 = vpop.f32.mrb[126].mxu1 }
0x1a11   :  { %v14661_v15 = vpop.f32.mrb[127].mxu1 }
0x1a12   :  { %18391 = vmatprep.mubr.msk.f32.mxu1 %vm566_vm1, %v14661_v15 }
0x1a13   :  { %18392 = vmatmul.mubr.msk.f32.gmra.mrb[42].mxu1 %vm566_vm1, %v18351_v8 }
0x1a82   :  { %v18365_v44 = vpop.f32.mrb[128].mxu1 }
0x1a83   :  { %v14835_v14 = vpop.f32.mrb[129].mxu1 }
0x1a84   :  { %v18358_v35 = vpop.f32.mrb[174].mxu0 }
0x1a85   :  { %v14748_v55 = vpop.f32.mrb[175].mxu0 }
0x1a86   :  { %18394 = vmatprep.mubr.msk.f32.mxu1 %vm566_vm1, %v14748_v55 }
0x1a87   :  { %18395 = vmatmul.mubr.msk.f32.gmra.mrb[44].mxu1 %vm566_vm1, %v18358_v35  ;;  %v20427_v35 = vld [vmem:[%s24341_s0 + $0x48] sm:$0xff] }
0x1a88   :  { %18397 = vmatprep.mubr.msk.f32.mxu1 %vm566_vm1, %v14835_v14 }
0x1a8b   :  { %18398 = vmatmul.mubr.msk.f32.gmra.mrb[46].mxu1 %vm566_vm1, %v18365_v44 }
0x1ab7   :  { %v18379_v30 = vpop.f32.mrb[130].mxu1 }
0x1ab8   :  { %v15009_v52 = vpop.f32.mrb[131].mxu1 }
0x1ab9   :  { %v18372_v18 = vpop.f32.mrb[176].mxu0 }
0x1aba   :  { %v14922_v53 = vpop.f32.mrb[177].mxu0 }
0x1abb   :  { %v18384_v47 = vpop.f32.mrb[52].mxu1  ;;  %18400 = vmatprep.mubr.msk.f32.mxu1 %vm566_vm1, %v14922_v53 }
0x1abc   :  { %v19112_v28 = vadd.f32 %v18384_v47, %v24526_v48  ;;  %v15134_v16 = vpop.f32.mrb[53].mxu1  ;;  %18401 = vmatmul.mubr.msk.f32.gmra.mrb[48].mxu1 %vm566_vm1, %v18372_v18 }
0x1abd   :  { %v19113_v11 = vadd.f32 %v15134_v16, %v24527_v54  ;;  %18403 = vmatprep.mubr.msk.f32.mxu1 %vm566_vm1, %v15009_v52  ;;  %v20429_v54 = vld [vmem:[%s24341_s0 + $0x58] sm:$0xff] }
0x1abe   :  { %v15237_v38 = vadd.f32 %v19112_v28, %v23763_v58 }
0x1abf   :  { %v15236_v6 = vadd.f32 %v19113_v11, %v23763_v58  ;;  %v18387_v9 = vpop.f32.mrb[54].mxu1 }
0x1ac0   :  { %v23775_v20 = vadd.f32 %v20419_v36, %v15237_v38  ;;  %v19114_v2 = vadd.f32 %v18387_v9, %v24528_v23  ;;  %v15144_v34 = vpop.f32.mrb[55].mxu1  ;;  %18404 = vmatmul.mubr.msk.f32.gmra.mrb[50].mxu1 %vm566_vm1, %v18379_v30  ;;  %v20428_v30 = vld [vmem:[%s24341_s0 + $0x40] sm:$0xff]  ;;  %v20430_v38 = vld [vmem:[%s24341_s0 + $0x50] sm:$0xff] }
0x1ac1   :  { %v23782_v45 = vadd.f32 %v20420_v29, %v15236_v6  ;;  %v19115_v25 = vadd.f32 %v15144_v34, %v24529_v22 }
0x1ac2   :  { %v15273_v40 = vsel %vm74_vm0, %v23775_v20, 0.0  ;;  %v15239_v5 = vadd.f32 %v19114_v2, %v23763_v58 }
0x1ac3   :  { %v15238_v31 = vadd.f32 %v19115_v25, %v23763_v58  ;;  %15274 = vadd.xlane.f32.xlu1 %v15273_v40  ;;  %v18390_v56 = vpop.f32.mrb[56].mxu1  ;;  %v15270_v50 = vsel %vm74_vm0, %v23782_v45, 0.0 }
0x1ac4   :  { %v19116_v63 = vadd.f32 %v18390_v56, %v24530_v43  ;;  %15271 = vadd.xlane.f32.xlu0 %v15270_v50  ;;  %v15154_v32 = vpop.f32.mrb[57].mxu1  ;;  %v23801_v26 = vadd.f32 %v20422_v37, %v15239_v5  ;;  %v20431_v43 = vld [vmem:[%s24341_s0 + $0x68] sm:$0xff] }
0x1ac5   :  { %v23795_v60 = vadd.f32 %v20421_v7, %v15238_v31  ;;  %v19117_v57 = vadd.f32 %v15154_v32, %v24531_v13  ;;  %v20432_v32 = vld [vmem:[%s24341_s0 + $0x60] sm:$0xff] }
0x1ac6   :  { %v15241_v61 = vadd.f32 %v19116_v63, %v23763_v58  ;;  %v15279_v41 = vsel %vm74_vm0, %v23801_v26, 0.0 }
0x1ac7   :  { %v15240_v21 = vadd.f32 %v19117_v57, %v23763_v58  ;;  %v15276_v0 = vsel %vm74_vm0, %v23795_v60, 0.0 }
0x1ac8   :  { %15277 = vadd.xlane.f32.xlu0 %v15276_v0  ;;  %v23817_v10 = vadd.f32 %v20424_v49, %v15241_v61 }
0x1ac9   :  { %v23810_v62 = vadd.f32 %v20423_v1, %v15240_v21 }
0x1aca   :  { %v15285_v39 = vsel %vm74_vm0, %v23817_v10, 0.0 }
0x1acb   :  { %v15282_v42 = vsel %vm74_vm0, %v23810_v62, 0.0 }
0x1acc   :  { %15280 = vadd.xlane.f32.xlu0 %v15279_v41 }
0x1ad0   :  { %15283 = vadd.xlane.f32.xlu0 %v15282_v42 }
0x1ad4   :  { %15286 = vadd.xlane.f32.xlu0 %v15285_v39 }
0x1ae6   :  { %v18393_v19 = vpop.f32.mrb[42].mxu1 }
0x1ae7   :  { %v15243_v17 = vadd.f32 %v18393_v19, %v23763_v58  ;;  %v15164_v24 = vpop.f32.mrb[43].mxu1  ;;  %v20433_v19 = vld [vmem:[%s24341_s0 + $0x78] sm:$0xff] }
0x1ae8   :  { %v15242_v46 = vadd.f32 %v23763_v58, %v15164_v24  ;;  %v20434_v24 = vld [vmem:[%s24341_s0 + $0x70] sm:$0xff] }
0x1ae9   :  { %v23828_v51 = vadd.f32 %v20425_v3, %v15243_v17 }
0x1aea   :  { %v23833_v59 = vadd.f32 %v20426_v12, %v15242_v46 }
0x1aeb   :  { %v15291_v33 = vsel %vm74_vm0, %v23828_v51, 0.0 }
0x1aec   :  { %15292 = vadd.xlane.f32.xlu1 %v15291_v33  ;;  %v15288_v27 = vsel %vm74_vm0, %v23833_v59, 0.0 }
0x1aed   :  { %15289 = vadd.xlane.f32.xlu0 %v15288_v27 }
0x1b50   :  { %v15275_v29 = vpop.xlane.xlu1 %15274 }
0x1b51   :  { %v15272_v23 = vpop.xlane.xlu0 %15271  ;;  %v15319_v40 = vmul.f32 0.015625, %v15275_v29 }
0x1b52   :  { %v15318_v56 = vmul.f32 0.015625, %v15272_v23 }
0x1b53   :  { %v23884_v57 = vsub.f32 %v23775_v20, %v15319_v40 }
0x1b54   :  { %v23890_v1 = vsub.f32 %v23782_v45, %v15318_v56  ;;  %v15523_v56 = vld [vmem:[%s24345_s4 + $0x8] sm:$0xff] }
0x1b55   :  { %v15278_v2 = vpop.xlane.xlu0 %15277  ;;  %v15351_v33 = vmul.f32 %v23884_v57, %v23884_v57 }
0x1b56   :  { %v15320_v41 = vmul.f32 0.015625, %v15278_v2 }
0x1b58   :  { %v23913_v27 = vsub.f32 %v23795_v60, %v15320_v41  ;;  %v15526_v41 = vld [vmem:[%s24345_s4 + $0x20] sm:$0xff] }
0x1b59   :  { %v15281_v34 = vpop.xlane.xlu0 %15280 }
0x1b5a   :  { %v18396_v8 = vpop.f32.mrb[44].mxu1  ;;  %v15321_v37 = vmul.f32 0.015625, %v15281_v34 }
0x1b5b   :  { %v15245_v15 = vadd.f32 %v18396_v8, %v23763_v58  ;;  %v15174_v44 = vpop.f32.mrb[45].mxu1 }
0x1b5c   :  { %v15244_v14 = vadd.f32 %v23763_v58, %v15174_v44  ;;  %v23906_v3 = vsub.f32 %v23801_v26, %v15321_v37 }
0x1b5d   :  { %v23844_v55 = vadd.f32 %v20427_v35, %v15245_v15  ;;  %v15284_v22 = vpop.xlane.xlu0 %15283 }
0x1b5e   :  { %v23849_v52 = vadd.f32 %v20428_v30, %v15244_v14  ;;  %v18399_v18 = vpop.f32.mrb[46].mxu1  ;;  %v15322_v8 = vmul.f32 0.015625, %v15284_v22  ;;  %v15350_v14 = vmul.f32 %v23890_v1, %v23890_v1 }
0x1b5f   :  { %v15247_v53 = vadd.f32 %v18399_v18, %v23763_v58  ;;  %v15184_v47 = vpop.f32.mrb[47].mxu1  ;;  %v15297_v48 = vsel %vm74_vm0, %v23844_v55, 0.0 }
0x1b60   :  { %v15246_v28 = vadd.f32 %v23763_v58, %v15184_v47  ;;  %15298 = vadd.xlane.f32.xlu1 %v15297_v48  ;;  %v15294_v16 = vsel %vm74_vm0, %v23849_v52, 0.0  ;;  %v15353_v47 = vmul.f32 %v23906_v3, %v23906_v3  ;;  %v23926_v48 = vsub.f32 %v23810_v62, %v15322_v8  ;;  %v15535_v8 = vld [vmem:[%s24345_s4 + $0x68] sm:$0xff] }
0x1b61   :  { %v23860_v11 = vadd.f32 %v20429_v54, %v15247_v53  ;;  %15295 = vadd.xlane.f32.xlu0 %v15294_v16  ;;  %v15287_v49 = vpop.xlane.xlu0 %15286  ;;  %v15369_v53 = vsel %vm74_vm0, %v15351_v33, 0.0  ;;  %v15366_v16 = vsel %vm74_vm0, %v15350_v14, 0.0  ;;  %v15352_v54 = vmul.f32 %v23913_v27, %v23913_v27 }
0x1b62   :  { %v23865_v6 = vadd.f32 %v20430_v38, %v15246_v28  ;;  %v15354_v34 = vmul.f32 %v23926_v48, %v23926_v48 }
0x1b63   :  { %v15303_v9 = vsel %vm74_vm0, %v23860_v11, 0.0  ;;  %v15372_v2 = vsel %vm74_vm0, %v15352_v54, 0.0 }
0x1b64   :  { %15304 = vadd.xlane.f32.xlu1 %v15303_v9  ;;  %v15300_v36 = vsel %vm74_vm0, %v23865_v6, 0.0  ;;  %v15375_v9 = vsel %vm74_vm0, %v15353_v47, 0.0 }
0x1b65   :  { %15301 = vadd.xlane.f32.xlu0 %v15300_v36 }
0x1b79   :  { %v15293_v15 = vpop.xlane.xlu1 %15292 }
0x1b7a   :  { %v15290_v35 = vpop.xlane.xlu0 %15289  ;;  %v15325_v18 = vmul.f32 0.015625, %v15293_v15  ;;  %v15537_v15 = vld [vmem:[%s24345_s4 + $0x78] sm:$0xff] }
0x1b7b   :  { %v15324_v28 = vmul.f32 0.015625, %v15290_v35  ;;  %v19074_v14 = vpack.c.bf16 %v15537_v15, %v15535_v8  ;;  %v15536_v35 = vld [vmem:[%s24345_s4 + $0x70] sm:$0xff] }
0x1b7c   :  { %v23932_v38 = vsub.f32 %v23828_v51, %v15325_v18 }
0x1b7d   :  { %v23938_v23 = vsub.f32 %v23833_v59, %v15324_v28 }
0x1b7e   :  { %v15357_v22 = vmul.f32 %v23932_v38, %v23932_v38 }
0x1b7f   :  { %v15356_v40 = vmul.f32 %v23938_v23, %v23938_v23 }
0x1b8f   :  { %v18402_v25 = vpop.f32.mrb[48].mxu1 }
0x1b90   :  { %v15249_v5 = vadd.f32 %v18402_v25, %v23763_v58  ;;  %v15194_v31 = vpop.f32.mrb[49].mxu1  ;;  %v15378_v25 = vsel %vm74_vm0, %v15354_v34, 0.0 }
0x1b91   :  { %v15248_v50 = vadd.f32 %v23763_v58, %v15194_v31  ;;  %v15384_v31 = vsel %vm74_vm0, %v15356_v40, 0.0 }
0x1b92   :  { %v23876_v63 = vadd.f32 %v20431_v43, %v15249_v5  ;;  %v15387_v5 = vsel %vm74_vm0, %v15357_v22, 0.0 }
0x1b93   :  { %v23881_v7 = vadd.f32 %v20432_v32, %v15248_v50  ;;  %v18405_v13 = vpop.f32.mrb[50].mxu1  ;;  %v15525_v50 = vld [vmem:[%s24345_s4 + $0x18] sm:$0xff]  ;;  %v15522_v32 = vld [vmem:[%s24345_s4] sm:$0xff] }
0x1b94   :  { %v15251_v21 = vadd.f32 %v18405_v13, %v23763_v58  ;;  %v15204_v0 = vpop.f32.mrb[51].mxu1  ;;  %v15309_v61 = vsel %vm74_vm0, %v23876_v63, 0.0  ;;  %v19062_v43 = vpack.c.bf16 %v15525_v50, %v15523_v56  ;;  %v15524_v13 = vld [vmem:[%s24345_s4 + $0x10] sm:$0xff] }
0x1b95   :  { %v15250_v42 = vadd.f32 %v23763_v58, %v15204_v0  ;;  %15310 = vadd.xlane.f32.xlu1 %v15309_v61  ;;  %v15306_v39 = vsel %vm74_vm0, %v23881_v7, 0.0  ;;  %v15323_v58 = vmul.f32 0.015625, %v15287_v49  ;;  %v19064_v37 = vpack.c.bf16 %v15524_v13, %v15522_v32  ;;  %v15529_v0 = vld [vmem:[%s24345_s4 + $0x38] sm:$0xff]  ;;  %v15528_v49 = vld [vmem:[%s24345_s4 + $0x30] sm:$0xff] }
0x1b96   :  { %v23898_v17 = vadd.f32 %v20433_v19, %v15251_v21  ;;  %15307 = vadd.xlane.f32.xlu0 %v15306_v39  ;;  %19063 = vmatprep.subr.bf16.mxu0 %v19062_v43  ;;  %v15527_v21 = vld [vmem:[%s24345_s4 + $0x28] sm:$0xff]  ;;  %v15533_v19 = vld [vmem:[%s24345_s4 + $0x58] sm:$0xff] }
0x1b97   :  { %v23903_v46 = vadd.f32 %v20434_v24, %v15250_v42  ;;  %v23920_v30 = vsub.f32 %v23817_v10, %v15323_v58  ;;  %19065 = vmatpush1.bf16.msra.mxu0 %v19064_v37  ;;  %v19066_v61 = vpack.c.bf16 %v15529_v0, %v15527_v21  ;;  %v19068_v42 = vpack.c.bf16 %v15528_v49, %v15526_v41  ;;  %v15531_v39 = vld [vmem:[%s24345_s4 + $0x48] sm:$0xff]  ;;  %v15530_v58 = vld [vmem:[%s24345_s4 + $0x40] sm:$0xff] }
0x1b98   :  { %v15315_v12 = vsel %vm74_vm0, %v23898_v17, 0.0  ;;  %v19070_v24 = vpack.c.bf16 %v15533_v19, %v15531_v39 }
0x1b99   :  { %15316 = vadd.xlane.f32.xlu1 %v15315_v12  ;;  %v15312_v44 = vsel %vm74_vm0, %v23903_v46, 0.0  ;;  %v15355_v36 = vmul.f32 %v23920_v30, %v23920_v30  ;;  %19067 = vmatprep.subr.bf16.mxu0 %v19066_v61  ;;  %v15532_v12 = vld [vmem:[%s24345_s4 + $0x50] sm:$0xff] }
0x1b9a   :  { %15313 = vadd.xlane.f32.xlu0 %v15312_v44  ;;  %v19072_v33 = vpack.c.bf16 %v15532_v12, %v15530_v58  ;;  %v15534_v44 = vld [vmem:[%s24345_s4 + $0x60] sm:$0xff] }
0x1b9b   :  { %v15381_v29 = vsel %vm74_vm0, %v15355_v36, 0.0  ;;  %19069 = vmatpush1.bf16.msra.mxu0 %v19068_v42  ;;  %v19076_v18 = vpack.c.bf16 %v15536_v35, %v15534_v44 }
0x1b9c   :  { %19071 = vmatprep.subr.bf16.mxu0 %v19070_v24 }
0x1b9d   :  { %15370 = vadd.xlane.f32.xlu1 %v15369_v53 }
0x1b9e   :  { %15367 = vadd.xlane.f32.xlu0 %v15366_v16 }
0x1b9f   :  { %19073 = vmatpush1.bf16.msra.mxu0 %v19072_v33 }
0x1ba0   :  { %19075 = vmatprep.subr.bf16.mxu0 %v19074_v14 }
0x1ba1   :  { %15376 = vadd.xlane.f32.xlu1 %v15375_v9 }
0x1ba2   :  { %15373 = vadd.xlane.f32.xlu0 %v15372_v2 }
0x1ba3   :  { %19077 = vmatpush1.bf16.msra.mxu0 %v19076_v18 }
0x1ba5   :  { %15382 = vadd.xlane.f32.xlu1 %v15381_v29 }
0x1ba6   :  { %15379 = vadd.xlane.f32.xlu0 %v15378_v25 }
0x1ba9   :  { %15388 = vadd.xlane.f32.xlu1 %v15387_v5 }
0x1baa   :  { %15385 = vadd.xlane.f32.xlu0 %v15384_v31 }
0x1bed   :  { %v15299_v53 = vpop.xlane.xlu1 %15298 }
0x1bee   :  { %v15327_v47 = vmul.f32 0.015625, %v15299_v53  ;;  %v15296_v28 = vpop.xlane.xlu0 %15295 }
0x1bef   :  { %v15326_v16 = vmul.f32 0.015625, %v15296_v28 }
0x1bf0   :  { %v24000_v54 = vsub.f32 %v23844_v55, %v15327_v47 }
0x1bf1   :  { %v24003_v9 = vsub.f32 %v23849_v52, %v15326_v16  ;;  %v15305_v36 = vpop.xlane.xlu1 %15304 }
0x1bf2   :  { %v15329_v2 = vmul.f32 0.015625, %v15305_v36  ;;  %v15302_v34 = vpop.xlane.xlu0 %15301  ;;  %v15359_v29 = vmul.f32 %v24000_v54, %v24000_v54 }
0x1bf3   :  { %v15328_v22 = vmul.f32 0.015625, %v15302_v34  ;;  %v15358_v25 = vmul.f32 %v24003_v9, %v24003_v9 }
0x1bf4   :  { %v24010_v40 = vsub.f32 %v23860_v11, %v15329_v2  ;;  %v15393_v5 = vsel %vm74_vm0, %v15359_v29, 0.0 }
0x1bf5   :  { %v24014_v31 = vsub.f32 %v23865_v6, %v15328_v22  ;;  %15394 = vadd.xlane.f32.xlu1 %v15393_v5  ;;  %v15390_v56 = vsel %vm74_vm0, %v15358_v25, 0.0 }
0x1bf6   :  { %15391 = vadd.xlane.f32.xlu0 %v15390_v56  ;;  %v15361_v50 = vmul.f32 %v24010_v40, %v24010_v40 }
0x1bf7   :  { %v15360_v43 = vmul.f32 %v24014_v31, %v24014_v31 }
0x1bf8   :  { %v15399_v32 = vsel %vm74_vm0, %v15361_v50, 0.0 }
0x1bf9   :  { %15400 = vadd.xlane.f32.xlu1 %v15399_v32  ;;  %v15396_v13 = vsel %vm74_vm0, %v15360_v43, 0.0 }
0x1bfa   :  { %15397 = vadd.xlane.f32.xlu0 %v15396_v13 }
0x1c22   :  { %v15311_v37 = vpop.xlane.xlu1 %15310 }
0x1c23   :  { %v15331_v21 = vmul.f32 0.015625, %v15311_v37  ;;  %v15308_v0 = vpop.xlane.xlu0 %15307 }
0x1c24   :  { %v15330_v61 = vmul.f32 0.015625, %v15308_v0 }
0x1c25   :  { %v24024_v41 = vsub.f32 %v23876_v63, %v15331_v21 }
0x1c26   :  { %v24027_v49 = vsub.f32 %v23881_v7, %v15330_v61  ;;  %v15317_v42 = vpop.xlane.xlu1 %15316 }
0x1c27   :  { %v15333_v39 = vmul.f32 0.015625, %v15317_v42  ;;  %v15314_v19 = vpop.xlane.xlu0 %15313  ;;  %v15363_v24 = vmul.f32 %v24024_v41, %v24024_v41 }
0x1c28   :  { %v15332_v58 = vmul.f32 0.015625, %v15314_v19  ;;  %v15362_v12 = vmul.f32 %v24027_v49, %v24027_v49 }
0x1c29   :  { %v24034_v33 = vsub.f32 %v23898_v17, %v15333_v39  ;;  %v15405_v8 = vsel %vm74_vm0, %v15363_v24, 0.0  ;;  %v24050_v24 = vld [vmem:[%s24351_s10] ss:$0 sm:$0xff] }
0x1c2a   :  { %v24038_v15 = vsub.f32 %v23903_v46, %v15332_v58  ;;  %15406 = vadd.xlane.f32.xlu1 %v15405_v8  ;;  %v15371_v44 = vpop.xlane.xlu1 %15370  ;;  %v15402_v14 = vsel %vm74_vm0, %v15362_v12, 0.0 }
0x1c2b   :  { %v15415_v35 = vmul.f32 0.015625, %v15371_v44  ;;  %15403 = vadd.xlane.f32.xlu0 %v15402_v14  ;;  %v15368_v18 = vpop.xlane.xlu0 %15367  ;;  %v15365_v53 = vmul.f32 %v24034_v33, %v24034_v33  ;;  %v24057_v44 = vld [vmem:[%s24352_s11] ss:$0 sm:$0xff] }
0x1c2c   :  { %v15414_v47 = vmul.f32 0.015625, %v15368_v18  ;;  %v15364_v28 = vmul.f32 %v24038_v15, %v24038_v15 }
0x1c2d   :  { %v15431_v16 = vadd.f32 1e-05, %v15415_v35  ;;  %v15411_v36 = vsel %vm74_vm0, %v15365_v53, 0.0 }
0x1c2e   :  { %v15430_v2 = vadd.f32 1e-05, %v15414_v47  ;;  %15412 = vadd.xlane.f32.xlu1 %v15411_v36  ;;  %v15377_v34 = vpop.xlane.xlu1 %15376  ;;  %v15408_v29 = vsel %vm74_vm0, %v15364_v28, 0.0 }
0x1c2f   :  { %20387 = vrsqrt.f32 %v15431_v16  ;;  %v15417_v22 = vmul.f32 0.015625, %v15377_v34  ;;  %15409 = vadd.xlane.f32.xlu0 %v15408_v29  ;;  %v15374_v25 = vpop.xlane.xlu0 %15373 }
0x1c30   :  { %20389 = vrsqrt.f32 %v15430_v2  ;;  %v15416_v5 = vmul.f32 0.015625, %v15374_v25 }
0x1c31   :  { %v15433_v56 = vadd.f32 1e-05, %v15417_v22 }
0x1c32   :  { %v15432_v50 = vadd.f32 1e-05, %v15416_v5  ;;  %v15383_v43 = vpop.xlane.xlu1 %15382 }
0x1c33   :  { %v15380_v32 = vpop.xlane.xlu0 %15379  ;;  %v15419_v37 = vmul.f32 0.015625, %v15383_v43 }
0x1c34   :  { %20391 = vrsqrt.f32 %v15432_v50  ;;  %v15418_v13 = vmul.f32 0.015625, %v15380_v32 }
0x1c35   :  { %20393 = vrsqrt.f32 %v15433_v56  ;;  %v15435_v39 = vadd.f32 1e-05, %v15419_v37 }
0x1c36   :  { %v15434_v21 = vadd.f32 1e-05, %v15418_v13  ;;  %v15389_v12 = vpop.xlane.xlu1 %15388 }
0x1c37   :  { %v15386_v0 = vpop.xlane.xlu0 %15385  ;;  %v15421_v18 = vmul.f32 0.015625, %v15389_v12  ;;  %v15792_v12 = vld [vmem:[%s24347_s6 + $0x8] sm:$0xff] }
0x1c38   :  { %20395 = vrsqrt.f32 %v15434_v21  ;;  %v15420_v19 = vmul.f32 0.015625, %v15386_v0 }
0x1c39   :  { %v20388_v61 = vpop.eup %20387  ;;  %20397 = vrsqrt.f32 %v15435_v39  ;;  %v15791_v39 = vld [vmem:[%s24347_s6] sm:$0xff] }
0x1c3a   :  { %v20390_v42 = vpop.eup %20389  ;;  %v15463_v8 = vmul.f32 %v20388_v61, %v23884_v57  ;;  %v15436_v53 = vadd.f32 1e-05, %v15420_v19  ;;  %v15437_v57 = vadd.f32 1e-05, %v15421_v18 }
0x1c3b   :  { %v15462_v58 = vmul.f32 %v20390_v42, %v23890_v1 }
0x1c3c   :  { %v15485_v28 = vmul.f32 %v24050_v24, %v15463_v8  ;;  %20399 = vrsqrt.f32 %v15436_v53  ;;  %v15809_v8 = vld [vmem:[%s24347_s6 + $0x90] sm:$0xff] }
0x1c3d   :  { %v15484_v14 = vmul.f32 %v24050_v24, %v15462_v58  ;;  %20401 = vrsqrt.f32 %v15437_v57  ;;  %v15793_v53 = vld [vmem:[%s24347_s6 + $0x10] sm:$0xff] }
0x1c3e   :  { %v20392_v35 = vpop.eup %20391  ;;  %v15507_v36 = vadd.f32 %v24057_v44, %v15485_v28  ;;  %v15811_v28 = vld [vmem:[%s24347_s6 + $0xa0] sm:$0xff] }
0x1c3f   :  { %v15506_v47 = vadd.f32 %v24057_v44, %v15484_v14  ;;  %v15464_v1 = vmul.f32 %v20392_v35, %v23913_v27  ;;  %v20394_v16 = vpop.eup %20393  ;;  %v15810_v14 = vld [vmem:[%s24347_s6 + $0x98] sm:$0xff]  ;;  %v19080_v35 = vpack.c.bf16 %v15792_v12, %v15791_v39 }
0x1c40   :  { %v15465_v34 = vmul.f32 %v20394_v16, %v23906_v3  ;;  %v19082_v18 = vpack.c.bf16 %v15810_v14, %v15809_v8 }
0x1c41   :  { %16557 = vmatmul.mubr.msk.f32.vlgmr.msra.gmra.mrb[178].mxu0 %vm74_vm0, %v15506_v47  ;;  %v15486_v2 = vmul.f32 %v24050_v24, %v15464_v1  ;;  %v15794_v47 = vld [vmem:[%s24347_s6 + $0x18] sm:$0xff]  ;;  %v15812_v1 = vld [vmem:[%s24347_s6 + $0xa8] sm:$0xff] }
0x1c42   :  { %15668 = vmatprep.mubr.f32.mxu0 %v24525_v4  ;;  %v20396_v29 = vpop.eup %20395  ;;  %v15487_v22 = vmul.f32 %v24050_v24, %v15465_v34  ;;  %v19084_v16 = vpack.c.bf16 %v15794_v47, %v15793_v53  ;;  %v19086_v57 = vpack.c.bf16 %v15812_v1, %v15811_v28  ;;  %v15813_v34 = vld [vmem:[%s24347_s6 + $0xb0] sm:$0xff] }
0x1c43   :  { %v15508_v27 = vadd.f32 %v24057_v44, %v15486_v2  ;;  %v15466_v25 = vmul.f32 %v20396_v29, %v23926_v48  ;;  %v20398_v5 = vpop.eup %20397  ;;  %v15796_v2 = vld [vmem:[%s24347_s6 + $0x28] sm:$0xff]  ;;  %v15814_v29 = vld [vmem:[%s24347_s6 + $0xb8] sm:$0xff] }
0x1c44   :  { %v15509_v56 = vadd.f32 %v24057_v44, %v15487_v22  ;;  %v15467_v50 = vmul.f32 %v20398_v5, %v23920_v30  ;;  %v19090_v22 = vpack.c.bf16 %v15814_v29, %v15813_v34  ;;  %v15798_v5 = vld [vmem:[%s24347_s6 + $0x38] sm:$0xff]  ;;  %v15803_v29 = vld [vmem:[%s24347_s6 + $0x60] sm:$0xff] }
0x1c45   :  { %16558 = vmatmul.mubr.msk.f32.gmra.mrb[180].mxu0 %vm74_vm0, %v15507_v36  ;;  %v15488_v3 = vmul.f32 %v24050_v24, %v15466_v25  ;;  %v15795_v36 = vld [vmem:[%s24347_s6 + $0x20] sm:$0xff]  ;;  %v15797_v25 = vld [vmem:[%s24347_s6 + $0x30] sm:$0xff] }
0x1c46   :  { %15674 = vmatprep.mubr.f32.mxu0 %v24525_v4  ;;  %v20400_v43 = vpop.eup %20399  ;;  %v15489_v48 = vmul.f32 %v24050_v24, %v15467_v50  ;;  %v19092_v50 = vpack.c.bf16 %v15798_v5, %v15797_v25 }
0x1c47   :  { %v15510_v32 = vadd.f32 %v24057_v44, %v15488_v3  ;;  %v15468_v13 = vmul.f32 %v20400_v43, %v23938_v23  ;;  %v20402_v37 = vpop.eup %20401  ;;  %v15807_v23 = vld [vmem:[%s24347_s6 + $0x80] sm:$0xff]  ;;  %v15816_v3 = vld [vmem:[%s24347_s6 + $0xc8] sm:$0xff] }
0x1c48   :  { %v15511_v21 = vadd.f32 %v24057_v44, %v15489_v48  ;;  %v15469_v0 = vmul.f32 %v20402_v37, %v23932_v38  ;;  %v15808_v38 = vld [vmem:[%s24347_s6 + $0x88] sm:$0xff]  ;;  %v15818_v37 = vld [vmem:[%s24347_s6 + $0xd8] sm:$0xff] }
0x1c49   :  { %16559 = vmatmul.mubr.msk.f32.gmra.mrb[182].mxu0 %vm74_vm0, %v15508_v27  ;;  %v15490_v30 = vmul.f32 %v24050_v24, %v15468_v13  ;;  %v19078_v58 = vpack.c.bf16 %v15808_v38, %v15807_v23  ;;  %v19088_v27 = vpack.c.bf16 %v15796_v2, %v15795_v36  ;;  %v15800_v48 = vld [vmem:[%s24347_s6 + $0x48] sm:$0xff]  ;;  %v15817_v13 = vld [vmem:[%s24347_s6 + $0xd0] sm:$0xff] }
0x1c4a   :  { %15680 = vmatprep.mubr.f32.mxu0 %v24525_v4  ;;  %v15491_v42 = vmul.f32 %v24050_v24, %v15469_v0  ;;  %v15801_v0 = vld [vmem:[%s24347_s6 + $0x50] sm:$0xff]  ;;  %v15820_v23 = vld [vmem:[%s24347_s6 + $0xe8] sm:$0xff] }
0x1c4b   :  { %v15512_v61 = vadd.f32 %v24057_v44, %v15490_v30  ;;  %19079 = vmatprep.subr.bf16.mxu1 %v19078_v58  ;;  %v19098_v30 = vpack.c.bf16 %v15818_v37, %v15817_v13 }
0x1c4c   :  { %v15513_v19 = vadd.f32 %v24057_v44, %v15491_v42  ;;  %19081 = vmatpush3.bf16.msra.mxu1 %v19080_v35  ;;  %v15819_v42 = vld [vmem:[%s24347_s6 + $0xe0] sm:$0xff] }
0x1c4d   :  { %16560 = vmatmul.mubr.msk.f32.gmra.mrb[184].mxu0 %vm74_vm0, %v15509_v56  ;;  %19083 = vmatprep.subr.bf16.mxu1 %v19082_v18  ;;  %v15815_v56 = vld [vmem:[%s24347_s6 + $0xc0] sm:$0xff]  ;;  %v19102_v39 = vpack.c.bf16 %v15820_v23, %v15819_v42 }
0x1c4e   :  { %15686 = vmatprep.mubr.f32.mxu0 %v24525_v4  ;;  %v19094_v43 = vpack.c.bf16 %v15816_v3, %v15815_v56  ;;  %v15821_v56 = vld [vmem:[%s24347_s6 + $0xf0] sm:$0xff] }
0x1c50   :  { %19085 = vmatpush3.bf16.msra.mxu1 %v19084_v16 }
0x1c51   :  { %16561 = vmatmul.mubr.msk.f32.gmra.mrb[186].mxu0 %vm74_vm0, %v15510_v32  ;;  %19087 = vmatprep.subr.bf16.mxu1 %v19086_v57  ;;  %v15799_v32 = vld [vmem:[%s24347_s6 + $0x40] sm:$0xff] }
0x1c52   :  { %15692 = vmatprep.mubr.f32.mxu0 %v24525_v4 }
0x1c54   :  { %19089 = vmatpush3.bf16.msra.mxu1 %v19088_v27  ;;  %v15804_v27 = vld [vmem:[%s24347_s6 + $0x68] sm:$0xff] }
0x1c55   :  { %16562 = vmatmul.mubr.msk.f32.gmra.mrb[188].mxu0 %vm74_vm0, %v15511_v21  ;;  %19091 = vmatprep.subr.bf16.mxu1 %v19090_v22  ;;  %v19096_v21 = vpack.c.bf16 %v15800_v48, %v15799_v32  ;;  %v19104_v22 = vpack.c.bf16 %v15804_v27, %v15803_v29  ;;  %v15805_v32 = vld [vmem:[%s24347_s6 + $0x70] sm:$0xff]  ;;  %v15806_v48 = vld [vmem:[%s24347_s6 + $0x78] sm:$0xff] }
0x1c56   :  { %15698 = vmatprep.mubr.f32.mxu0 %v24525_v4  ;;  %v19108_v37 = vpack.c.bf16 %v15806_v48, %v15805_v32 }
0x1c58   :  { %19093 = vmatpush3.bf16.msra.mxu1 %v19092_v50 }
0x1c59   :  { %16563 = vmatmul.mubr.msk.f32.gmra.mrb[190].mxu0 %vm74_vm0, %v15512_v61  ;;  %19095 = vmatprep.subr.bf16.mxu1 %v19094_v43  ;;  %v15802_v61 = vld [vmem:[%s24347_s6 + $0x58] sm:$0xff] }
0x1c5a   :  { %15704 = vmatprep.mubr.f32.mxu0 %v24525_v4  ;;  %v19100_v38 = vpack.c.bf16 %v15802_v61, %v15801_v0 }
0x1c5c   :  { %19097 = vmatpush3.bf16.msra.mxu1 %v19096_v21 }
0x1c5d   :  { %16564 = vmatmul.mubr.msk.f32.gmra.mrb[192].mxu0 %vm74_vm0, %v15513_v19  ;;  %19099 = vmatprep.subr.bf16.mxu1 %v19098_v30 }
0x1c5e   :  { %15710 = vmatprep.mubr.f32.mxu0 %v24525_v4 }
0x1c60   :  { %19101 = vmatpush3.bf16.msra.mxu1 %v19100_v38 }
0x1c61   :  { %19103 = vmatprep.subr.bf16.mxu1 %v19102_v39 }
0x1c64   :  { %19105 = vmatpush3.bf16.msra.mxu1 %v19104_v22 }
0x1c82   :  { %v15395_v19 = vpop.xlane.xlu1 %15394 }
0x1c83   :  { %v15423_v58 = vmul.f32 0.015625, %v15395_v19  ;;  %v15392_v12 = vpop.xlane.xlu0 %15391 }
0x1c84   :  { %v15422_v8 = vmul.f32 0.015625, %v15392_v12 }
0x1c85   :  { %v15439_v14 = vadd.f32 1e-05, %v15423_v58 }
0x1c86   :  { %v15438_v35 = vadd.f32 1e-05, %v15422_v8  ;;  %v15401_v18 = vpop.xlane.xlu1 %15400 }
0x1c87   :  { %20403 = vrsqrt.f32 %v15439_v14  ;;  %v15425_v53 = vmul.f32 0.015625, %v15401_v18  ;;  %v15398_v47 = vpop.xlane.xlu0 %15397 }
0x1c88   :  { %20405 = vrsqrt.f32 %v15438_v35  ;;  %v15424_v28 = vmul.f32 0.015625, %v15398_v47 }
0x1c89   :  { %v15441_v1 = vadd.f32 1e-05, %v15425_v53 }
0x1c8a   :  { %v15440_v16 = vadd.f32 1e-05, %v15424_v28 }
0x1c8c   :  { %20407 = vrsqrt.f32 %v15440_v16 }
0x1c8d   :  { %20409 = vrsqrt.f32 %v15441_v1 }
0x1c91   :  { %v20404_v57 = vpop.eup %20403 }
0x1c92   :  { %v20406_v36 = vpop.eup %20405  ;;  %v15471_v34 = vmul.f32 %v20404_v57, %v24000_v54  ;;  %v15822_v54 = vld [vmem:[%s24347_s6 + $0xf8] sm:$0xff] }
0x1c93   :  { %v15470_v2 = vmul.f32 %v20406_v36, %v24003_v9  ;;  %v19106_v43 = vpack.c.bf16 %v15822_v54, %v15821_v56  ;;  %v24532_v56 = vld [vmem:[#allocation33_spill] sm:$0xff] }
0x1c94   :  { %v15493_v3 = vmul.f32 %v24050_v24, %v15471_v34  ;;  %v15542_v54 = vsub.s32 0, %v24532_v56 }
0x1c95   :  { %v15492_v25 = vmul.f32 %v24050_v24, %v15470_v2  ;;  %19107 = vmatprep.subr.bf16.mxu1 %v19106_v43 }
0x1c96   :  { %v20408_v5 = vpop.eup %20407  ;;  %19109 = vmatpush3.bf16.msra.mxu1 %v19108_v37  ;;  %v15515_v21 = vadd.f32 %v24057_v44, %v15493_v3 }
0x1c97   :  { %v15514_v9 = vadd.f32 %v24057_v44, %v15492_v25  ;;  %v15472_v50 = vmul.f32 %v20408_v5, %v24014_v31  ;;  %v20410_v13 = vpop.eup %20409 }
0x1c98   :  { %v15473_v30 = vmul.f32 %v20410_v13, %v24010_v40 }
0x1c99   :  { %16565 = vmatmul.mubr.msk.f32.gmra.mrb[194].mxu0 %vm74_vm0, %v15514_v9  ;;  %v15494_v31 = vmul.f32 %v24050_v24, %v15472_v50  ;;  %v15546_v9 = vsub.s32 1, %v24532_v56 }
0x1c9a   :  { %15716 = vmatprep.mubr.f32.mxu0 %v24525_v4  ;;  %v15495_v61 = vmul.f32 %v24050_v24, %v15473_v30 }
0x1c9b   :  { %v15516_v0 = vadd.f32 %v24057_v44, %v15494_v31 }
0x1c9c   :  { %v15517_v42 = vadd.f32 %v24057_v44, %v15495_v61 }
0x1c9d   :  { %16566 = vmatmul.mubr.msk.f32.gmra.mrb[196].mxu0 %vm74_vm0, %v15515_v21 }
0x1c9e   :  { %15722 = vmatprep.mubr.f32.mxu0 %v24525_v4 }
0x1ca1   :  { %16567 = vmatmul.mubr.msk.f32.gmra.mrb[198].mxu0 %vm74_vm0, %v15516_v0 }
0x1ca2   :  { %15728 = vmatprep.mubr.f32.mxu0 %v24525_v4 }
0x1ca5   :  { %16568 = vmatmul.mubr.msk.f32.gmra.mrb[200].mxu0 %vm74_vm0, %v15517_v42 }
0x1ca6   :  { %15734 = vmatprep.mubr.f32.mxu0 %v24525_v4 }
0x1cb7   :  { %v15407_v23 = vpop.xlane.xlu1 %15406 }
0x1cb8   :  { %v15427_v40 = vmul.f32 0.015625, %v15407_v23  ;;  %v15404_v38 = vpop.xlane.xlu0 %15403 }
0x1cb9   :  { %v15426_v39 = vmul.f32 0.015625, %v15404_v38 }
0x1cba   :  { %v15443_v19 = vadd.f32 1e-05, %v15427_v40 }
0x1cbb   :  { %v15442_v58 = vadd.f32 1e-05, %v15426_v39  ;;  %v15413_v12 = vpop.xlane.xlu1 %15412 }
0x1cbc   :  { %20411 = vrsqrt.f32 %v15443_v19  ;;  %v15429_v8 = vmul.f32 0.015625, %v15413_v12  ;;  %v15410_v14 = vpop.xlane.xlu0 %15409 }
0x1cbd   :  { %20413 = vrsqrt.f32 %v15442_v58  ;;  %v15428_v35 = vmul.f32 0.015625, %v15410_v14 }
0x1cbe   :  { %v15445_v18 = vadd.f32 1e-05, %v15429_v8 }
0x1cbf   :  { %v15444_v53 = vadd.f32 1e-05, %v15428_v35 }
0x1cc1   :  { %20415 = vrsqrt.f32 %v15444_v53 }
0x1cc2   :  { %20417 = vrsqrt.f32 %v15445_v18 }
0x1cc6   :  { %v20412_v47 = vpop.eup %20411 }
0x1cc7   :  { %v20414_v28 = vpop.eup %20413  ;;  %v15475_v16 = vmul.f32 %v20412_v47, %v24024_v41 }
0x1cc8   :  { %v15474_v1 = vmul.f32 %v20414_v28, %v24027_v49 }
0x1cc9   :  { %v15497_v34 = vmul.f32 %v24050_v24, %v15475_v16 }
0x1cca   :  { %v15496_v57 = vmul.f32 %v24050_v24, %v15474_v1 }
0x1ccb   :  { %v20416_v36 = vpop.eup %20415  ;;  %v15519_v22 = vadd.f32 %v24057_v44, %v15497_v34 }
0x1ccc   :  { %v15518_v2 = vadd.f32 %v24057_v44, %v15496_v57  ;;  %v15476_v29 = vmul.f32 %v20416_v36, %v24038_v15  ;;  %v20418_v27 = vpop.eup %20417 }
0x1ccd   :  { %v15477_v41 = vmul.f32 %v20418_v27, %v24034_v33  ;;  %v15538_v33 = vld [vmem:[%s24346_s5] sm:$0x3] }
0x1cce   :  { %16569 = vmatmul.mubr.msk.f32.gmra.mrb[202].mxu0 %vm74_vm0, %v15518_v2  ;;  %v15498_v49 = vmul.f32 %v24050_v24, %v15476_v29  ;;  %v24237_v3 = vrot.slane %v15538_v33, %v15542_v54  ;;  %v24239_v50 = vrot.slane %v15538_v33, %v15546_v9 }
0x1ccf   :  { %15740 = vmatprep.mubr.f32.mxu0 %v24525_v4  ;;  %v15499_v5 = vmul.f32 %v24050_v24, %v15477_v41 }
0x1cd0   :  { %v15520_v25 = vadd.f32 %v24057_v44, %v15498_v49 }
0x1cd1   :  { %v15521_v15 = vadd.f32 %v24057_v44, %v15499_v5 }
0x1cd2   :  { %16570 = vmatmul.mubr.msk.f32.gmra.mrb[204].mxu0 %vm74_vm0, %v15519_v22 }
0x1cd3   :  { %15746 = vmatprep.mubr.f32.mxu0 %v24525_v4 }
0x1cd6   :  { %16571 = vmatmul.mubr.msk.f32.gmra.mrb[206].mxu0 %vm74_vm0, %v15520_v25 }
0x1cd7   :  { %15752 = vmatprep.mubr.f32.mxu0 %v24525_v4 }
0x1cda   :  { %16572 = vmatmul.mubr.msk.f32.gmra.mrb[208].mxu0 %vm74_vm0, %v15521_v15 }
0x1d14   :  { %v15664_v24 = vpop.f32.mrb[178].mxu0 }
0x1d15   :  { %v15665_v43 = vadd.f32 %v15664_v24, %v24237_v3  ;;  %v15666_v4 = vpop.f32.mrb[179].mxu0 }
0x1d16   :  { %v15667_v44 = vadd.f32 %v15666_v4, %v24239_v50 }
0x1d17   :  { %v15759_v13 = vmax.f32 %v15665_v43, 0.0 }
0x1d18   :  { %v15760_v32 = vmax.f32 %v15667_v44, 0.0  ;;  %v15670_v48 = vpop.f32.mrb[180].mxu0 }
0x1d19   :  { %v15671_v37 = vadd.f32 %v15670_v48, %v24237_v3  ;;  %v15672_v21 = vpop.f32.mrb[181].mxu0 }
0x1d1a   :  { %v15673_v31 = vadd.f32 %v15672_v21, %v24239_v50  ;;  %15894 = vmatprep.mubr.f32.mxu1 %v15760_v32 }
0x1d1b   :  { %15895 = vmatmul.mubr.f32.vlgmr.msra.gmra.mrb[132].mxu1 %v15759_v13  ;;  %v15761_v61 = vmax.f32 %v15671_v37, 0.0 }
0x1d1c   :  { %v15762_v30 = vmax.f32 %v15673_v31, 0.0  ;;  %v15676_v0 = vpop.f32.mrb[182].mxu0 }
0x1d1d   :  { %v15677_v42 = vadd.f32 %v15676_v0, %v24237_v3  ;;  %v15678_v23 = vpop.f32.mrb[183].mxu0 }
0x1d1e   :  { %v15679_v40 = vadd.f32 %v15678_v23, %v24239_v50  ;;  %15899 = vmatprep.mubr.f32.mxu1 %v15762_v30 }
0x1d1f   :  { %15900 = vmatmul.mubr.f32.gmra.mrb[134].mxu1 %v15761_v61  ;;  %v15763_v19 = vmax.f32 %v15677_v42, 0.0 }
0x1d20   :  { %v15764_v38 = vmax.f32 %v15679_v40, 0.0  ;;  %v15682_v39 = vpop.f32.mrb[184].mxu0 }
0x1d21   :  { %v15683_v58 = vadd.f32 %v15682_v39, %v24237_v3  ;;  %v15684_v12 = vpop.f32.mrb[185].mxu0 }
0x1d22   :  { %v15685_v8 = vadd.f32 %v15684_v12, %v24239_v50  ;;  %15904 = vmatprep.mubr.f32.mxu1 %v15764_v38 }
0x1d23   :  { %15905 = vmatmul.mubr.f32.gmra.mrb[136].mxu1 %v15763_v19  ;;  %v15765_v18 = vmax.f32 %v15683_v58, 0.0 }
0x1d24   :  { %v15766_v14 = vmax.f32 %v15685_v8, 0.0  ;;  %v15688_v35 = vpop.f32.mrb[186].mxu0 }
0x1d25   :  { %v15689_v53 = vadd.f32 %v15688_v35, %v24237_v3  ;;  %v15690_v47 = vpop.f32.mrb[187].mxu0 }
0x1d26   :  { %v15691_v28 = vadd.f32 %v15690_v47, %v24239_v50  ;;  %15909 = vmatprep.mubr.f32.mxu1 %v15766_v14 }
0x1d27   :  { %15910 = vmatmul.mubr.f32.gmra.mrb[138].mxu1 %v15765_v18  ;;  %v15767_v57 = vmax.f32 %v15689_v53, 0.0 }
0x1d28   :  { %v15768_v1 = vmax.f32 %v15691_v28, 0.0  ;;  %v15694_v16 = vpop.f32.mrb[188].mxu0 }
0x1d29   :  { %v15695_v36 = vadd.f32 %v15694_v16, %v24237_v3  ;;  %v15696_v2 = vpop.f32.mrb[189].mxu0 }
0x1d2a   :  { %v15697_v34 = vadd.f32 %v15696_v2, %v24239_v50  ;;  %15914 = vmatprep.mubr.f32.mxu1 %v15768_v1 }
0x1d2b   :  { %15915 = vmatmul.mubr.f32.gmra.mrb[140].mxu1 %v15767_v57  ;;  %v15769_v22 = vmax.f32 %v15695_v36, 0.0 }
0x1d2c   :  { %v15770_v29 = vmax.f32 %v15697_v34, 0.0  ;;  %v15700_v27 = vpop.f32.mrb[190].mxu0 }
0x1d2d   :  { %v15701_v49 = vadd.f32 %v15700_v27, %v24237_v3  ;;  %v15702_v41 = vpop.f32.mrb[191].mxu0 }
0x1d2e   :  { %v15703_v25 = vadd.f32 %v15702_v41, %v24239_v50  ;;  %15919 = vmatprep.mubr.f32.mxu1 %v15770_v29 }
0x1d2f   :  { %15920 = vmatmul.mubr.f32.gmra.mrb[142].mxu1 %v15769_v22  ;;  %v15771_v56 = vmax.f32 %v15701_v49, 0.0 }
0x1d30   :  { %v15772_v5 = vmax.f32 %v15703_v25, 0.0  ;;  %v15706_v15 = vpop.f32.mrb[192].mxu0 }
0x1d31   :  { %v15707_v54 = vadd.f32 %v15706_v15, %v24237_v3  ;;  %v15708_v33 = vpop.f32.mrb[193].mxu0 }
0x1d32   :  { %v15709_v9 = vadd.f32 %v15708_v33, %v24239_v50  ;;  %15924 = vmatprep.mubr.f32.mxu1 %v15772_v5 }
0x1d33   :  { %15925 = vmatmul.mubr.f32.gmra.mrb[144].mxu1 %v15771_v56  ;;  %v15773_v43 = vmax.f32 %v15707_v54, 0.0 }
0x1d34   :  { %v15774_v24 = vmax.f32 %v15709_v9, 0.0 }
0x1d36   :  { %15929 = vmatprep.mubr.f32.mxu1 %v15774_v24 }
0x1d37   :  { %15930 = vmatmul.mubr.f32.gmra.mrb[146].mxu1 %v15773_v43 }
0x1d6c   :  { %v15712_v4 = vpop.f32.mrb[194].mxu0 }
0x1d6d   :  { %v15713_v44 = vadd.f32 %v15712_v4, %v24237_v3  ;;  %v15714_v32 = vpop.f32.mrb[195].mxu0 }
0x1d6e   :  { %v15715_v48 = vadd.f32 %v15714_v32, %v24239_v50 }
0x1d6f   :  { %v15775_v21 = vmax.f32 %v15713_v44, 0.0 }
0x1d70   :  { %v15776_v13 = vmax.f32 %v15715_v48, 0.0  ;;  %v15718_v37 = vpop.f32.mrb[196].mxu0  ;;  %v24276_v48 = vld [vmem:[%s24348_s7] ss:$0 sm:$0xff]  ;;  %s20501_s7 = smov [#allocation5]  }
0x1d71   :  { %v15719_v31 = vadd.f32 %v15718_v37, %v24237_v3  ;;  %v15720_v30 = vpop.f32.mrb[197].mxu0  ;;  %s16012_s22 = sshll.u32 %s20501_s7, 4  ;;  %s16013_s22 = int_to_ptr.vmem [resolvable:$true] %s16012_s22 }
0x1d72   :  { %v15721_v0 = vadd.f32 %v15720_v30, %v24239_v50  ;;  %15934 = vmatprep.mubr.f32.mxu1 %v15776_v13  ;;  %s20457_s24 = scalar_lea.vmem %s16013_s22, 2048  ;;  %p20462_p9 = scmp.lt.s32.totalorder %s16013_s22, %s16013_s22 }
0x1d73   :  { %15935 = vmatmul.mubr.f32.gmra.mrb[148].mxu1 %v15775_v21  ;;  %v15777_v23 = vmax.f32 %v15719_v31, 0.0  ;;  %p20458_p8 = scmp.ne.s32.totalorder %s16013_s22, %s20457_s24  ;;  %p20463_p10 = scmp.lt.s32.totalorder %s20457_s24, %s20457_s24 }
0x1d74   :  { %v15778_v61 = vmax.f32 %v15721_v0, 0.0  ;;  %v15724_v42 = vpop.f32.mrb[198].mxu0 }
0x1d75   :  { %v15725_v40 = vadd.f32 %v15724_v42, %v24237_v3  ;;  %v15726_v38 = vpop.f32.mrb[199].mxu0  ;;  %p20464_p11 = por %p20463_p10, %p20462_p9 }
0x1d76   :  { %v15727_v39 = vadd.f32 %v15726_v38, %v24239_v50  ;;  %15939 = vmatprep.mubr.f32.mxu1 %v15778_v61 }
0x1d77   :  { %15940 = vmatmul.mubr.f32.gmra.mrb[150].mxu1 %v15777_v23  ;;  %v15779_v12 = vmax.f32 %v15725_v40, 0.0  ;;  %p20465_p12 = pnand %p20464_p11, %p20458_p8 }
0x1d78   :  { %v15780_v19 = vmax.f32 %v15727_v39, 0.0  ;;  %v15730_v58 = vpop.f32.mrb[200].mxu0 }
0x1d79   :  { %v15731_v8 = vadd.f32 %v15730_v58, %v24237_v3  ;;  %v15732_v14 = vpop.f32.mrb[201].mxu0 }
0x1d7a   :  { %v15733_v35 = vadd.f32 %v15732_v14, %v24239_v50  ;;  %15944 = vmatprep.mubr.f32.mxu1 %v15780_v19 }
0x1d7b   :  { %15945 = vmatmul.mubr.f32.gmra.mrb[152].mxu1 %v15779_v12  ;;  %v15781_v53 = vmax.f32 %v15731_v8, 0.0 }
0x1d7c   :  { %v15782_v18 = vmax.f32 %v15733_v35, 0.0 }
0x1d7e   :  { %15949 = vmatprep.mubr.f32.mxu1 %v15782_v18 }
0x1d7f   :  { %15950 = vmatmul.mubr.f32.gmra.mrb[154].mxu1 %v15781_v53 }
0x1da1   :  { %v15736_v47 = vpop.f32.mrb[202].mxu0 }
0x1da2   :  { %v15737_v28 = vadd.f32 %v15736_v47, %v24237_v3  ;;  %v15738_v1 = vpop.f32.mrb[203].mxu0 }
0x1da3   :  { %v15739_v16 = vadd.f32 %v15738_v1, %v24239_v50 }
0x1da4   :  { %v15783_v2 = vmax.f32 %v15737_v28, 0.0 }
0x1da5   :  { %v15784_v57 = vmax.f32 %v15739_v16, 0.0  ;;  %v15742_v36 = vpop.f32.mrb[204].mxu0 }
0x1da6   :  { %v15743_v34 = vadd.f32 %v15742_v36, %v24237_v3  ;;  %v15744_v29 = vpop.f32.mrb[205].mxu0 }
0x1da7   :  { %v15745_v27 = vadd.f32 %v15744_v29, %v24239_v50  ;;  %15954 = vmatprep.mubr.f32.mxu1 %v15784_v57 }
0x1da8   :  { %15955 = vmatmul.mubr.f32.gmra.mrb[156].mxu1 %v15783_v2  ;;  %v15785_v41 = vmax.f32 %v15743_v34, 0.0 }
0x1da9   :  { %v15786_v22 = vmax.f32 %v15745_v27, 0.0  ;;  %v15748_v49 = vpop.f32.mrb[206].mxu0 }
0x1daa   :  { %v15749_v25 = vadd.f32 %v15748_v49, %v24237_v3  ;;  %v15750_v5 = vpop.f32.mrb[207].mxu0 }
0x1dab   :  { %v15751_v15 = vadd.f32 %v15750_v5, %v24239_v50  ;;  %15959 = vmatprep.mubr.f32.mxu1 %v15786_v22 }
0x1dac   :  { %15960 = vmatmul.mubr.f32.gmra.mrb[158].mxu1 %v15785_v41  ;;  %v15787_v33 = vmax.f32 %v15749_v25, 0.0 }
0x1dad   :  { %v15788_v56 = vmax.f32 %v15751_v15, 0.0  ;;  %v15754_v54 = vpop.f32.mrb[208].mxu0 }
0x1dae   :  { %v15755_v9 = vadd.f32 %v15754_v54, %v24237_v3  ;;  %v15756_v24 = vpop.f32.mrb[209].mxu0 }
0x1daf   :  { %v15757_v43 = vadd.f32 %v15756_v24, %v24239_v50  ;;  %15964 = vmatprep.mubr.f32.mxu1 %v15788_v56 }
0x1db0   :  { %15965 = vmatmul.mubr.f32.gmra.mrb[160].mxu1 %v15787_v33  ;;  %v15789_v44 = vmax.f32 %v15755_v9, 0.0 }
0x1db1   :  { %v15790_v4 = vmax.f32 %v15757_v43, 0.0 }
0x1db3   :  { %15969 = vmatprep.mubr.f32.mxu1 %v15790_v4 }
0x1db4   :  { %15970 = vmatmul.mubr.f32.gmra.mrb[162].mxu1 %v15789_v44 }
0x1dee   :  { %v17254_v32 = vpop.f32.mrb[132].mxu1 }
0x1def   :  { %v17255_v13 = vpop.f32.mrb[133].mxu1 }
0x1df0   :  { %v17256_v37 = vadd.f32 %v17255_v13, %v17254_v32 }
0x1df2   :  { %v15897_v21 = vadd.f32 %v17256_v37, %v24276_v48  ;;  %v17257_v3 = vpop.f32.mrb[134].mxu1 }
0x1df3   :  { %v17258_v31 = vpop.f32.mrb[135].mxu1 }
0x1df4   :  { %v15975_v50 = vadd.f32 %v15897_v21, %v23782_v45  ;;  %v17259_v30 = vadd.f32 %v17258_v31, %v17257_v3 }
0x1df6   :  { %15991 = vst.msk [vmem:[#allocation5] sm:$0xff] %vm74_vm0, %v15975_v50  ;;  %v15902_v0 = vadd.f32 %v17259_v30, %v24276_v48  ;;  %v17260_v61 = vpop.f32.mrb[136].mxu1 }
0x1df7   :  { %v17261_v42 = vpop.f32.mrb[137].mxu1 }
0x1df8   :  { %v15976_v23 = vadd.f32 %v15902_v0, %v23775_v20  ;;  %v17262_v40 = vadd.f32 %v17261_v42, %v17260_v61 }
0x1dfa   :  { %15992 = vst.msk [vmem:[#allocation5 + $0x8] sm:$0xff] %vm74_vm0, %v15976_v23  ;;  %v15907_v38 = vadd.f32 %v17262_v40, %v24276_v48  ;;  %v17263_v39 = vpop.f32.mrb[138].mxu1 }
0x1dfb   :  { %v17264_v19 = vpop.f32.mrb[139].mxu1 }
0x1dfc   :  { %v15977_v58 = vadd.f32 %v15907_v38, %v23795_v60  ;;  %v17265_v12 = vadd.f32 %v17264_v19, %v17263_v39 }
0x1dfe   :  { %15993 = vst.msk [vmem:[#allocation5 + $0x10] sm:$0xff] %vm74_vm0, %v15977_v58  ;;  %v15912_v45 = vadd.f32 %v17265_v12, %v24276_v48  ;;  %v17266_v8 = vpop.f32.mrb[140].mxu1 }
0x1dff   :  { %v17267_v14 = vpop.f32.mrb[141].mxu1 }
0x1e00   :  { %v15978_v35 = vadd.f32 %v15912_v45, %v23801_v26  ;;  %v17268_v18 = vadd.f32 %v17267_v14, %v17266_v8 }
0x1e02   :  { %15994 = vst.msk [vmem:[#allocation5 + $0x18] sm:$0xff] %vm74_vm0, %v15978_v35  ;;  %v15917_v20 = vadd.f32 %v17268_v18, %v24276_v48  ;;  %v17269_v53 = vpop.f32.mrb[142].mxu1 }
0x1e03   :  { %v17270_v47 = vpop.f32.mrb[143].mxu1 }
0x1e04   :  { %v15979_v28 = vadd.f32 %v15917_v20, %v23810_v62  ;;  %v17271_v1 = vadd.f32 %v17270_v47, %v17269_v53 }
0x1e06   :  { %15995 = vst.msk [vmem:[#allocation5 + $0x20] sm:$0xff] %vm74_vm0, %v15979_v28  ;;  %v15922_v60 = vadd.f32 %v17271_v1, %v24276_v48  ;;  %v17272_v16 = vpop.f32.mrb[144].mxu1 }
0x1e07   :  { %v17273_v57 = vpop.f32.mrb[145].mxu1 }
0x1e08   :  { %v15980_v36 = vadd.f32 %v15922_v60, %v23817_v10  ;;  %v17274_v2 = vadd.f32 %v17273_v57, %v17272_v16 }
0x1e0a   :  { %15996 = vst.msk [vmem:[#allocation5 + $0x28] sm:$0xff] %vm74_vm0, %v15980_v36  ;;  %v15927_v26 = vadd.f32 %v17274_v2, %v24276_v48  ;;  %v17275_v34 = vpop.f32.mrb[146].mxu1 }
0x1e0b   :  { %v17276_v29 = vpop.f32.mrb[147].mxu1 }
0x1e0c   :  { %v15981_v27 = vadd.f32 %v15927_v26, %v23833_v59  ;;  %v17277_v22 = vadd.f32 %v17276_v29, %v17275_v34 }
0x1e0e   :  { %15997 = vst.msk [vmem:[#allocation5 + $0x30] sm:$0xff] %vm74_vm0, %v15981_v27  ;;  %v15932_v62 = vadd.f32 %v17277_v22, %v24276_v48 }
0x1e10   :  { %v15982_v49 = vadd.f32 %v15932_v62, %v23828_v51 }
0x1e12   :  { %15998 = vst.msk [vmem:[#allocation5 + $0x38] sm:$0xff] %vm74_vm0, %v15982_v49 }
0x1e46   :  { %v17278_v41 = vpop.f32.mrb[148].mxu1 }
0x1e47   :  { %v17279_v10 = vpop.f32.mrb[149].mxu1 }
0x1e48   :  { %v17280_v25 = vadd.f32 %v17279_v10, %v17278_v41 }
0x1e4a   :  { %v15937_v5 = vadd.f32 %v17280_v25, %v24276_v48  ;;  %v17281_v15 = vpop.f32.mrb[150].mxu1 }
0x1e4b   :  { %v17282_v56 = vpop.f32.mrb[151].mxu1 }
0x1e4c   :  { %v15983_v54 = vadd.f32 %v15937_v5, %v23849_v52  ;;  %v17283_v33 = vadd.f32 %v17282_v56, %v17281_v15 }
0x1e4e   :  { %15999 = vst.msk [vmem:[#allocation5 + $0x40] sm:$0xff] %vm74_vm0, %v15983_v54  ;;  %v15942_v59 = vadd.f32 %v17283_v33, %v24276_v48  ;;  %v17284_v9 = vpop.f32.mrb[152].mxu1 }
0x1e4f   :  { %v17285_v24 = vpop.f32.mrb[153].mxu1 }
0x1e50   :  { %v15984_v51 = vadd.f32 %v15942_v59, %v23844_v55  ;;  %v17286_v43 = vadd.f32 %v17285_v24, %v17284_v9 }
0x1e52   :  { %16000 = vst.msk [vmem:[#allocation5 + $0x48] sm:$0xff] %vm74_vm0, %v15984_v51  ;;  %v15947_v4 = vadd.f32 %v17286_v43, %v24276_v48  ;;  %v17287_v44 = vpop.f32.mrb[154].mxu1 }
0x1e53   :  { %v17288_v32 = vpop.f32.mrb[155].mxu1 }
0x1e54   :  { %v15985_v13 = vadd.f32 %v15947_v4, %v23865_v6  ;;  %v17289_v37 = vadd.f32 %v17288_v32, %v17287_v44 }
0x1e56   :  { %16001 = vst.msk [vmem:[#allocation5 + $0x50] sm:$0xff] %vm74_vm0, %v15985_v13  ;;  %v15952_v52 = vadd.f32 %v17289_v37, %v24276_v48 }
0x1e58   :  { %v15986_v21 = vadd.f32 %v15952_v52, %v23860_v11 }
0x1e5a   :  { %16002 = vst.msk [vmem:[#allocation5 + $0x58] sm:$0xff] %vm74_vm0, %v15986_v21 }
0x1e7b   :  { %v17290_v3 = vpop.f32.mrb[156].mxu1 }
0x1e7c   :  { %v17291_v55 = vpop.f32.mrb[157].mxu1 }
0x1e7d   :  { %v17292_v31 = vadd.f32 %v17291_v55, %v17290_v3 }
0x1e7f   :  { %v15957_v50 = vadd.f32 %v17292_v31, %v24276_v48  ;;  %v17293_v30 = vpop.f32.mrb[158].mxu1 }
0x1e80   :  { %v17294_v0 = vpop.f32.mrb[159].mxu1 }
0x1e81   :  { %v15987_v61 = vadd.f32 %v15957_v50, %v23881_v7  ;;  %v17295_v42 = vadd.f32 %v17294_v0, %v17293_v30 }
0x1e83   :  { %16003 = vst.msk [vmem:[#allocation5 + $0x60] sm:$0xff] %vm74_vm0, %v15987_v61  ;;  %v15962_v6 = vadd.f32 %v17295_v42, %v24276_v48  ;;  %v17296_v23 = vpop.f32.mrb[160].mxu1 }
0x1e84   :  { %v17297_v40 = vpop.f32.mrb[161].mxu1 }
0x1e85   :  { %v15988_v11 = vadd.f32 %v15962_v6, %v23876_v63  ;;  %v17298_v38 = vadd.f32 %v17297_v40, %v17296_v23 }
0x1e87   :  { %16004 = vst.msk [vmem:[#allocation5 + $0x68] sm:$0xff] %vm74_vm0, %v15988_v11  ;;  %v15967_v39 = vadd.f32 %v17298_v38, %v24276_v48  ;;  %v17299_v19 = vpop.f32.mrb[162].mxu1 }
0x1e88   :  { %v17300_v58 = vpop.f32.mrb[163].mxu1 }
0x1e89   :  { %v15989_v12 = vadd.f32 %v15967_v39, %v23903_v46  ;;  %v17301_v45 = vadd.f32 %v17300_v58, %v17299_v19 }
0x1e8b   :  { %16005 = vst.msk [vmem:[#allocation5 + $0x70] sm:$0xff] %vm74_vm0, %v15989_v12  ;;  %v15972_v7 = vadd.f32 %v17301_v45, %v24276_v48 }
0x1e8d   :  { %v15990_v8 = vadd.f32 %v15972_v7, %v23898_v17 }
0x1e8f   :  { %16006 = vst.msk [vmem:[#allocation5 + $0x78] sm:$0xff] %vm74_vm0, %v15990_v8 }
0x1e90   :  { %20468 = shalt.err (!%p20465_p12)
}
0x1e91   :  { %s20469_s27 = scalar_lea.hbm %s24353_s12, 2048 }
0x1e92   :  { %p20470_p13 = scmp.ne.s32.totalorder %s24353_s12, %s20469_s27  ;;  %p20473_p0 = scmp.lt.u32.totalorder %s20469_s27, %s24353_s12 }
0x1e94   :  { %p20475_p1 = pnand %p20473_p0, %p20470_p13 }
0x1e96   :  { %20478 = shalt.err (!%p20475_p1)
}
0x1e97   :  { %16018 = dma.vmem_to_hbm [thread:$0]  %s16013_s22, 2048, %s24353_s12, [#allocation4], %s20484_s13, %s20484_s13, %s20485_s14  }
0x1e98   :  { %20481 = dma.done.wait [#allocation4], 2048  }
0x1e99   :  { %20482 = vsyncadd [#allocation4], 4294965248 }
0x1e9a   :  { %16022 = vsyncpa [#allocation3], 1 }
0x1e9b   :  { %16023 = vsyncpa [#allocation4], 1 }

</bundles_post_ra>
